<compile_context>
chip_gen: v5e
topology: v5e:2x2
jax: 0.10.0
libtpu: 0.0.40
codegen_flags: <defaults>
</compile_context>

<pallas_src>
import functools

import jax
import jax.numpy as jnp
from jax.experimental import pallas as pl
from jax.experimental.pallas import tpu as pltpu

# ----------------------------- configuration (scaled-down) -----------------------------
NUM_CLASSES = 5
C_IN = 3
C3, C4 = 32, 64          # stand-ins for the backbone's 1024 / 2048 channels
MID = 64                 # stand-in for 512
OC = 32                  # stand-in for 256 (ASP_OC out_features)
KEY = OC // 2            # key_channels = out_features // 2
ASP_DILATIONS = (12, 24, 36)


# ----------------------------- Pallas kernels -----------------------------

def _conv_kernel(*refs, taps, oh, ow, relu, chained):
    """Fused im2col conv: accumulate bf16 tap matmuls into an f32 accumulator,
    add folded-BN shift, optional ReLU, optional chained 1x1 projection epilogue."""
    x_ref, w_ref, b_ref = refs[0], refs[1], refs[2]
    if chained:
        w2_ref, b2_ref, o_ref = refs[3], refs[4], refs[5]
    else:
        o_ref = refs[3]

    m = oh * ow
    xv = x_ref[0]                                    # (Hp, Wp, Cin), loaded once
    cin = xv.shape[-1]
    acc = jnp.zeros((m, w_ref.shape[-1]), jnp.float32)
    for t, (hs, ws) in enumerate(taps):              # static tap loop (<= 9)
        xt = xv[hs:hs + oh, ws:ws + ow, :].reshape(m, cin)
        acc = acc + jnp.dot(xt, w_ref[t], preferred_element_type=jnp.float32)
    y = acc + b_ref[...]
    if relu:
        y = jnp.maximum(y, 0.0)
    if chained:
        y = jnp.dot(y.astype(w2_ref.dtype), w2_ref[...],
                    preferred_element_type=jnp.float32) + b2_ref[...]
    o_ref[0] = y.reshape(oh, ow, y.shape[-1]).astype(o_ref.dtype)


def _attn_kernel(q_ref, v_ref, w_ref, b_ref, o_ref, *, scale):
    """softmax(q q^T * scale) v, whole batch in one step; chained W 1x1 projection."""
    q = q_ref[...]                                              # (B, L, Ck) bf16
    sim = jnp.einsum('bqd,bkd->bqk', q, q,
                     preferred_element_type=jnp.float32) * scale
    m = jnp.max(sim, axis=-1, keepdims=True)
    p = jnp.exp(sim - m)
    p = p * pl.reciprocal(jnp.sum(p, axis=-1, keepdims=True), approx=True)
    ctx = jnp.einsum('bqk,bkd->bqd', p.astype(v_ref.dtype), v_ref[...],
                     preferred_element_type=jnp.float32)        # (B, L, Cv)
    B, L, Cv = ctx.shape
    y = jnp.dot(ctx.reshape(B * L, Cv).astype(w_ref.dtype), w_ref[...],
                preferred_element_type=jnp.float32) + b_ref[...]
    o_ref[...] = y.reshape(B, L, Cv).astype(o_ref.dtype)


def _resize_mm_kernel(x_ref, k_ref, o_ref):
    # (N*C, H*W) @ (H*W, out_h*out_w tile)  -> lane-dense store
    o_ref[...] = jnp.dot(x_ref[...], k_ref[...],
                         preferred_element_type=jnp.float32).astype(o_ref.dtype)


# ----------------------------- conv wrappers -----------------------------

def fold_bn(bias, gamma, beta, mean, var, eps=1e-5):
    s = gamma / jnp.sqrt(var + eps)
    b0 = jnp.zeros_like(mean) if bias is None else bias
    return s, beta + (b0 - mean) * s


def _affine(p):
    cout = p['w'].shape[0]
    if 'gamma' in p:
        return fold_bn(p['b'], p['gamma'], p['beta'], p['mean'], p['var'])
    scale = jnp.ones((cout,), jnp.float32)
    shift = p['b'] if p['b'] is not None else jnp.zeros((cout,), jnp.float32)
    return scale, shift


def _conv_taps(H, W, kh, kw, dilation, padding):
    """Stride-1 conv tap analysis: drop taps that only ever read zero padding and
    compute the minimal padding required by the surviving taps."""
    oh = H + 2 * padding - dilation * (kh - 1)
    ow = W + 2 * padding - dilation * (kw - 1)
    taps = []
    for i in range(kh):
        for j in range(kw):
            h0 = i * dilation - padding
            w0 = j * dilation - padding
            if h0 + oh - 1 < 0 or h0 > H - 1 or w0 + ow - 1 < 0 or w0 > W - 1:
                continue  # this tap samples only the implicit zero padding
            taps.append((i, j, h0, w0))
    assert taps, "conv has no contributing taps"
    lh = max(0, -min(t[2] for t in taps))
    rh = max(0, max(t[2] for t in taps) + oh - 1 - (H - 1))
    lw = max(0, -min(t[3] for t in taps))
    rw = max(0, max(t[3] for t in taps) + ow - 1 - (W - 1))
    return oh, ow, taps, (lh, rh, lw, rw)


def _run_conv(x, tap_plan, w_stack, shift, *, relu, chain, oh, ow, out_dtype):
    N, hp, wp, cin = x.shape
    t_, _, cout = w_stack.shape
    c_final = chain[0].shape[1] if chain is not None else cout
    in_specs = [pl.BlockSpec((1, hp, wp, cin), lambda n: (n, 0, 0, 0)),
                pl.BlockSpec((t_, cin, cout), lambda n: (0, 0, 0)),
                pl.BlockSpec((1, cout), lambda n: (0, 0))]
    args = [x.astype(jnp.bfloat16), w_stack.astype(jnp.bfloat16),
            shift.reshape(1, cout).astype(jnp.float32)]
    if chain is not None:
        w2, b2 = chain
        in_specs += [pl.BlockSpec((cout, c_final), lambda n: (0, 0)),
                     pl.BlockSpec((1, c_final), lambda n: (0, 0))]
        args += [w2.astype(jnp.bfloat16), b2.reshape(1, c_final).astype(jnp.float32)]
    kernel = functools.partial(_conv_kernel, taps=tuple(tap_plan), oh=oh, ow=ow,
                               relu=relu, chained=chain is not None)
    return pl.pallas_call(
        kernel,
        out_shape=jax.ShapeDtypeStruct((N, oh, ow, c_final), out_dtype),
        grid=(N,),
        in_specs=in_specs,
        out_specs=pl.BlockSpec((1, oh, ow, c_final), lambda n: (n, 0, 0, 0)),
        compiler_params=pltpu.CompilerParams(dimension_semantics=("parallel",)),
    )(*args)


def conv2d(p, x, *, dilation=1, padding=0, relu=False, chain_p=None,
           out_dtype=jnp.bfloat16):
    """Stride-1 conv with folded BN (scale pre-multiplied into the weights), optional
    ReLU and optional chained 1x1 (bias) projection epilogue. x is NHWC."""
    w = p['w']                                     # torch layout (Cout, Cin, kh, kw)
    cout, cin, kh, kw = w.shape
    scale, shift = _affine(p)
    N, H, W, _ = x.shape
    oh, ow, taps, (lh, rh, lw, rw) = _conv_taps(H, W, kh, kw, dilation, padding)
    if lh or rh or lw or rw:
        x = jnp.pad(x, ((0, 0), (lh, rh), (lw, rw), (0, 0)))
    w_s = jnp.transpose(w, (2, 3, 1, 0)) * scale[None, None, None, :]
    w_stack = jnp.stack([w_s[i, j] for (i, j, _, _) in taps], axis=0)  # (T, Cin, Cout)
    tap_plan = [(h0 + lh, w0 + lw) for (_, _, h0, w0) in taps]
    chain = None
    if chain_p is not None:
        c2 = chain_p['w'].shape[0]
        w2 = jnp.transpose(chain_p['w'][:, :, 0, 0], (1, 0))
        b2 = chain_p['b'] if chain_p['b'] is not None else jnp.zeros((c2,), jnp.float32)
        chain = (w2, b2)
    return _run_conv(x, tap_plan, w_stack, shift, relu=relu, chain=chain,
                     oh=oh, ow=ow, out_dtype=out_dtype)


def merged_pointwise_convs(plist, dps, x):
    """Merge several convs that are effectively pointwise at this feature size
    (single surviving tap, no padding) into ONE lane-dense conv call over the
    concatenation of their output channels. Returns None if not mergeable."""
    N, H, W, cin = x.shape
    mats, shifts = [], []
    for p, (dil, pad) in zip(plist, dps):
        cout, _, kh, kw = p['w'].shape
        oh, ow, taps, pads = _conv_taps(H, W, kh, kw, dil, pad)
        if len(taps) != 1 or (oh, ow) != (H, W) or pads != (0, 0, 0, 0):
            return None
        i, j, _, _ = taps[0]
        scale, shift = _affine(p)
        mats.append(jnp.transpose(p['w'][:, :, i, j], (1, 0)) * scale[None, :])
        shifts.append(shift)
    w_cat = jnp.concatenate(mats, axis=1)[None]            # (1, Cin, sum Cout)
    return _run_conv(x, [(0, 0)], w_cat, jnp.concatenate(shifts),
                     relu=True, chain=None, oh=H, ow=W, out_dtype=jnp.bfloat16)


# ----------------------------- attention & resize wrappers -----------------------------

def attention_oc(q, v, w_proj, b_proj, scale):
    """ctx = softmax(q q^T * scale) v, then chained 1x1 W projection (whole batch)."""
    B, L, Ck = q.shape
    Cv = v.shape[-1]
    return pl.pallas_call(
        functools.partial(_attn_kernel, scale=scale),
        out_shape=jax.ShapeDtypeStruct((B, L, Cv), jnp.bfloat16),
        grid=(1,),
        in_specs=[
            pl.BlockSpec((B, L, Ck), lambda i: (0, 0, 0)),
            pl.BlockSpec((B, L, Cv), lambda i: (0, 0, 0)),
            pl.BlockSpec((Cv, Cv), lambda i: (0, 0)),
            pl.BlockSpec((1, Cv), lambda i: (0, 0)),
        ],
        out_specs=pl.BlockSpec((B, L, Cv), lambda i: (0, 0, 0)),
    )(q.astype(jnp.bfloat16), v.astype(jnp.bfloat16),
      w_proj.astype(jnp.bfloat16), b_proj.reshape(1, Cv).astype(jnp.float32))


def _bilinear_weights(out_size, in_size):
    # align_corners=True interpolation weight matrix (out_size, in_size)
    if out_size == 1:
        return jnp.zeros((1, in_size), jnp.float32).at[0, 0].set(1.0)
    src = jnp.arange(out_size, dtype=jnp.float32) * (in_size - 1) / (out_size - 1)
    i0 = jnp.clip(jnp.floor(src).astype(jnp.int32), 0, in_size - 1)
    i1 = jnp.clip(i0 + 1, 0, in_size - 1)
    frac = src - i0.astype(jnp.float32)
    w = jnp.zeros((out_size, in_size), jnp.float32)
    rows = jnp.arange(out_size)
    w = w.at[rows, i0].add(1.0 - frac)
    w = w.at[rows, i1].add(frac)
    return w


def resize_bilinear(x_nhwc, out_h, out_w, *, to_nchw, out_dtype=jnp.float32):
    """F.interpolate(mode='bilinear', align_corners=True) as one lane-dense matmul:
    rows = N*C, columns = out_h*out_w, kernel = kron(Wh, Ww)^T."""
    N, H, W, C = x_nhwc.shape
    kt = jnp.kron(_bilinear_weights(out_h, H), _bilinear_weights(out_w, W)).T  # (H*W, M)
    xm = jnp.transpose(x_nhwc, (0, 3, 1, 2)).reshape(N * C, H * W)
    M = out_h * out_w
    G = 2 if (M >= 256 and M % 256 == 0) else 1      # >=2 steps for v7x on the big resizes
    tn = M // G
    out = pl.pallas_call(
        _resize_mm_kernel,
        out_shape=jax.ShapeDtypeStruct((N * C, M), out_dtype),
        grid=(G,),
        in_specs=[pl.BlockSpec((N * C, H * W), lambda i: (0, 0)),
                  pl.BlockSpec((H * W, tn), lambda i: (0, i))],
        out_specs=pl.BlockSpec((N * C, tn), lambda i: (0, i)),
        compiler_params=pltpu.CompilerParams(dimension_semantics=("parallel",)),
    )(xm.astype(jnp.bfloat16), kt.astype(jnp.bfloat16))
    out = out.reshape(N, C, out_h, out_w)
    if to_nchw:
        return out
    return jnp.transpose(out, (0, 2, 3, 1))


# ----------------------------- parameter init (deterministic, synthetic) -----------------------------

def _make_conv(key, cin, cout, k, *, bias, bn):
    d = {}
    key, sub = jax.random.split(key)
    d['w'] = jax.random.normal(sub, (cout, cin, k, k), jnp.float32) * (0.3 / (cin * k * k) ** 0.5)
    if bias:
        key, sub = jax.random.split(key)
        d['b'] = jax.random.normal(sub, (cout,), jnp.float32) * 0.05
    else:
        d['b'] = None
    if bn:
        key, sub = jax.random.split(key)
        d['gamma'] = 1.0 + 0.05 * jax.random.normal(sub, (cout,), jnp.float32)
        key, sub = jax.random.split(key)
        d['beta'] = 0.05 * jax.random.normal(sub, (cout,), jnp.float32)
        key, sub = jax.random.split(key)
        d['mean'] = 0.05 * jax.random.normal(sub, (cout,), jnp.float32)
        key, sub = jax.random.split(key)
        d['var'] = 1.0 + 0.1 * jnp.abs(jax.random.normal(sub, (cout,), jnp.float32))
    return key, d


def init_params(key):
    p = {}
    specs = [
        # synthetic backbone stub (stands in for the config-selected ResNet/HRNet):
        # stride-4 patchify (space-to-depth + 1x1) then two 3x3 convs
        ('stem_a', 16 * C_IN, 16, 1, False, True),
        ('stem_b', 16, C3, 3, False, True),
        ('stem_c', C3, C4, 3, False, True),
        # context head: Conv3x3(2048->512) + BNReLU
        ('ctx_conv', C4, MID, 3, True, True),
        # ASP_OC_Module
        ('asp_ctx_conv', MID, OC, 3, True, True),     # context branch conv3x3 + BNReLU
        ('oc_fkey', OC, KEY, 1, True, True),          # shared f_key / f_query (conv1x1 + BNReLU)
        ('oc_fvalue', OC, OC, 1, True, False),        # f_value conv1x1
        ('oc_W', OC, OC, 1, True, False),             # W conv1x1
        ('oc_out', OC, OC, 1, True, True),            # BaseOC_Context conv_bn_dropout (dropout=0)
        ('asp_b2', MID, OC, 1, False, True),
        ('asp_b3', MID, OC, 3, False, True),
        ('asp_b4', MID, OC, 3, False, True),
        ('asp_b5', MID, OC, 3, False, True),
        ('asp_fuse', 5 * OC, 2 * OC, 1, False, True),
        # cls / dsn
        ('cls', 2 * OC, NUM_CLASSES, 1, True, False),
        ('dsn_conv', C3, MID, 3, True, True),
        ('dsn_cls', MID, NUM_CLASSES, 1, True, False),
    ]
    for name, cin, cout, k, bias, bn in specs:
        key, p[name] = _make_conv(key, cin, cout, k, bias=bias, bn=bn)
    return p


# ----------------------------- model forward -----------------------------

def _base_oc_context(params, feats):
    """BaseOC_Context_Module(sizes=[2]): pooled self-attention + conv1x1 BNReLU."""
    N, H, W, C = feats.shape
    sc = 2
    # MaxPool2d(kernel_size=(2, 2)) kept as trivial XLA glue on a few KB
    xp = feats.reshape(N, H // sc, sc, W // sc, sc, C).max(axis=(2, 4))
    hp, wp = H // sc, W // sc
    L = hp * wp

    kq = conv2d(params['oc_fkey'], xp, relu=True)        # (N,hp,wp,KEY), shared q/k
    val = conv2d(params['oc_fvalue'], xp, relu=False)    # (N,hp,wp,OC)

    q = kq.reshape(N, L, KEY)
    v = val.reshape(N, L, OC)
    w_proj = jnp.transpose(params['oc_W']['w'][:, :, 0, 0], (1, 0))
    b_proj = params['oc_W']['b']
    ctx = attention_oc(q, v, w_proj, b_proj, float(KEY) ** -0.5)   # attention + W proj
    ctx = ctx.reshape(N, hp, wp, OC)
    ctx = resize_bilinear(ctx, H, W, to_nchw=False, out_dtype=jnp.bfloat16)
    # conv_bn_dropout with dropout=0 -> conv1x1 + BNReLU
    return conv2d(params['oc_out'], ctx, relu=True)


def asp_ocnet_forward(params, x_nchw):
    N, _, Hin, Win = x_nchw.shape
    x = jnp.transpose(x_nchw, (0, 2, 3, 1)).astype(jnp.float32)   # -> NHWC

    # ---- backbone stub: stride-4 patchify (space-to-depth + 1x1) + two 3x3 convs ----
    ps = 4
    xr = x.reshape(N, Hin // ps, ps, Win // ps, ps, C_IN)
    xr = jnp.transpose(xr, (0, 1, 3, 2, 4, 5)).reshape(N, Hin // ps, Win // ps, ps * ps * C_IN)
    f = conv2d(params['stem_a'], xr, relu=True)
    feat3 = conv2d(params['stem_b'], f, padding=1, relu=True)          # ~1024ch map
    feat4 = conv2d(params['stem_c'], feat3, padding=1, relu=True)      # ~2048ch map

    # ---- dsn branch: conv3x3 + BNReLU fused with the 1x1 classifier epilogue ----
    aux = conv2d(params['dsn_conv'], feat3, padding=1, relu=True, chain_p=params['dsn_cls'])

    # ---- context: conv3x3 + BNReLU + ASP_OC_Module ----
    c = conv2d(params['ctx_conv'], feat4, padding=1, relu=True)

    f1 = conv2d(params['asp_ctx_conv'], c, padding=1, relu=True)
    f1 = _base_oc_context(params, f1)

    # ASP branches 2..5: at 8x8 with dilation 12/24/36 only the center tap can hit the
    # map, so all four are pointwise -> one lane-dense (128-channel) conv call.
    merged = merged_pointwise_convs(
        [params['asp_b2'], params['asp_b3'], params['asp_b4'], params['asp_b5']],
        [(1, 0), (ASP_DILATIONS[0], ASP_DILATIONS[0]),
         (ASP_DILATIONS[1], ASP_DILATIONS[1]), (ASP_DILATIONS[2], ASP_DILATIONS[2])], c)
    if merged is None:  # general fallback (larger feature maps): separate fused convs
        merged = jnp.concatenate(
            [conv2d(params['asp_b2'], c, relu=True),
             conv2d(params['asp_b3'], c, padding=ASP_DILATIONS[0], dilation=ASP_DILATIONS[0], relu=True),
             conv2d(params['asp_b4'], c, padding=ASP_DILATIONS[1], dilation=ASP_DILATIONS[1], relu=True),
             conv2d(params['asp_b5'], c, padding=ASP_DILATIONS[2], dilation=ASP_DILATIONS[2], relu=True)],
            axis=-1)

    cat = jnp.concatenate([f1, merged], axis=-1)   # (N,8,8,5*OC), tiny XLA concat
    # ASP fuse 1x1 + BNReLU (+Dropout2d(0.1) identity at inference) with chained cls 1x1.
    # TODO(synk): Dropout2d(0.1) is identity at inference; no RNG dropout applied here.
    logits = conv2d(params['asp_fuse'], cat, relu=True, chain_p=params['cls'])

    # ---- final bilinear upsampling to input resolution (align_corners=True), NCHW out ----
    aux_up = resize_bilinear(aux, Hin, Win, to_nchw=True, out_dtype=jnp.float32)
    out_up = resize_bilinear(logits, Hin, Win, to_nchw=True, out_dtype=jnp.float32)
    return aux_up, out_up


# ----------------------------- main -----------------------------

if __name__ == "__main__":
    root = jax.random.PRNGKey(0)
    pkey, xkey = jax.random.split(root)
    params = init_params(pkey)
    x = jax.random.normal(xkey, (2, C_IN, 32, 32), jnp.float32)

    fwd = jax.jit(asp_ocnet_forward)
    aux, out = fwd(params, x)
    jax.block_until_ready(aux)
    jax.block_until_ready(out)

    assert aux.shape == (2, NUM_CLASSES, 32, 32), aux.shape
    assert out.shape == (2, NUM_CLASSES, 32, 32), out.shape
    assert bool(jnp.isfinite(aux).all()) and bool(jnp.isfinite(out).all())
    print("KERNEL_OK")
</pallas_src>

<mosaic_0001>
module attributes {stable_mosaic.version = 11 : i64} {
  func.func @_conv_kernel(%arg0: i32, %arg1: memref<1x8x8x48xbf16, #tpu.memory_space<vmem>>, %arg2: memref<1x48x16xbf16, #tpu.memory_space<vmem>>, %arg3: memref<1x16xf32, #tpu.memory_space<vmem>>, %arg4: memref<1x8x8x16xbf16, #tpu.memory_space<vmem>>) attributes {dimension_semantics = [#tpu.dimension_semantics<parallel>], iteration_bounds = array<i64: 2>, scalar_prefetch = 0 : i64, scratch_operands = 0 : i64, tpu.core_type = #tpu.core_type<tc>, window_params = [{transform_indices = @transform_0, window_bounds = array<i64: 1, 8, 8, 48>}, {pipeline_mode = #tpu.pipeline_mode<synchronous>, transform_indices = @transform_1, window_bounds = array<i64: 1, 48, 16>}, {pipeline_mode = #tpu.pipeline_mode<synchronous>, transform_indices = @transform_2, window_bounds = array<i64: 1, 16>}, {transform_indices = @transform_3, window_bounds = array<i64: 1, 8, 8, 16>}]} {
    %c0 = arith.constant 0 : index
    %c0_0 = arith.constant 0 : index
    %c0_1 = arith.constant 0 : index
    %c0_2 = arith.constant 0 : index
    %0 = vector.load %arg1[%c0, %c0_0, %c0_1, %c0_2] : memref<1x8x8x48xbf16, #tpu.memory_space<vmem>>, vector<1x8x8x48xbf16>
    %1 = vector.shape_cast %0 : vector<1x8x8x48xbf16> to vector<8x8x48xbf16>
    %cst = arith.constant 0.000000e+00 : f32
    %2 = vector.broadcast %cst : f32 to vector<64x16xf32>
    %3 = vector.shape_cast %1 : vector<8x8x48xbf16> to vector<64x48xbf16>
    %c0_3 = arith.constant 0 : index
    %c0_4 = arith.constant 0 : index
    %c0_5 = arith.constant 0 : index
    %4 = vector.load %arg2[%c0_3, %c0_4, %c0_5] : memref<1x48x16xbf16, #tpu.memory_space<vmem>>, vector<1x48x16xbf16>
    %5 = vector.shape_cast %4 : vector<1x48x16xbf16> to vector<48x16xbf16>
    %cst_6 = arith.constant dense<0.000000e+00> : vector<64x16xf32>
    %6 = tpu.matmul %3, %5, %cst_6 {dimension_numbers = #tpu.dot_dimension_numbers<[1], [0], [0], [1], [0, 0, 1, 1], [], []>} : vector<64x48xbf16>, vector<48x16xbf16>, vector<64x16xf32> -> vector<64x16xf32>
    %7 = arith.addf %2, %6 : vector<64x16xf32>
    %c0_7 = arith.constant 0 : index
    %c0_8 = arith.constant 0 : index
    %8 = vector.load %arg3[%c0_7, %c0_8] : memref<1x16xf32, #tpu.memory_space<vmem>>, vector<1x16xf32>
    %9 = vector.broadcast %8 : vector<1x16xf32> to vector<64x16xf32>
    %10 = arith.addf %7, %9 : vector<64x16xf32>
    %cst_9 = arith.constant 0.000000e+00 : f32
    %11 = vector.broadcast %cst_9 : f32 to vector<64x16xf32>
    %12 = arith.maximumf %10, %11 : vector<64x16xf32>
    %13 = vector.shape_cast %12 : vector<64x16xf32> to vector<8x8x16xf32>
    %14 = arith.truncf %13 : vector<8x8x16xf32> to vector<8x8x16xbf16>
    %c0_10 = arith.constant 0 : index
    %c0_11 = arith.constant 0 : index
    %c0_12 = arith.constant 0 : index
    %c0_13 = arith.constant 0 : index
    %15 = vector.load %arg4[%c0_10, %c0_11, %c0_12, %c0_13] : memref<1x8x8x16xbf16, #tpu.memory_space<vmem>>, vector<1x8x8x16xbf16>
    %16 = vector.shape_cast %15 : vector<1x8x8x16xbf16> to vector<8x8x16xbf16>
    %17 = vector.shape_cast %14 : vector<8x8x16xbf16> to vector<1x8x8x16xbf16>
    tpu.vector_store %arg4[%c0_10, %c0_11, %c0_12, %c0_13], %17 {strides = array<i32>} : memref<1x8x8x16xbf16, #tpu.memory_space<vmem>>, vector<1x8x8x16xbf16>,
    return
  }
  func.func @transform_0(%arg0: i32) -> (i32, i32, i32, i32) {
    %c0_i32 = arith.constant 0 : i32
    %c0_i32_0 = arith.constant 0 : i32
    %c0_i32_1 = arith.constant 0 : i32
    %c0_i32_2 = arith.constant 0 : i32
    return %arg0, %c0_i32, %c0_i32_0, %c0_i32_1 : i32, i32, i32, i32
  }
  func.func @transform_1(%arg0: i32) -> (i32, i32, i32) {
    %c0_i32 = arith.constant 0 : i32
    %c0_i32_0 = arith.constant 0 : i32
    %c0_i32_1 = arith.constant 0 : i32
    %c0_i32_2 = arith.constant 0 : i32
    return %c0_i32, %c0_i32_0, %c0_i32_1 : i32, i32, i32
  }
  func.func @transform_2(%arg0: i32) -> (i32, i32) {
    %c0_i32 = arith.constant 0 : i32
    %c0_i32_0 = arith.constant 0 : i32
    %c0_i32_1 = arith.constant 0 : i32
    return %c0_i32, %c0_i32_0 : i32, i32
  }
  func.func @transform_3(%arg0: i32) -> (i32, i32, i32, i32) {
    %c0_i32 = arith.constant 0 : i32
    %c0_i32_0 = arith.constant 0 : i32
    %c0_i32_1 = arith.constant 0 : i32
    %c0_i32_2 = arith.constant 0 : i32
    return %arg0, %c0_i32, %c0_i32_0, %c0_i32_1 : i32, i32, i32, i32
  }
}

module attributes {stable_mosaic.version = 11 : i64} {
  func.func @_conv_kernel(%arg0: i32, %arg1: memref<1x10x10x16xbf16, #tpu.memory_space<vmem>>, %arg2: memref<9x16x32xbf16, #tpu.memory_space<vmem>>, %arg3: memref<1x32xf32, #tpu.memory_space<vmem>>, %arg4: memref<1x8x8x32xbf16, #tpu.memory_space<vmem>>) attributes {dimension_semantics = [#tpu.dimension_semantics<parallel>], iteration_bounds = array<i64: 2>, scalar_prefetch = 0 : i64, scratch_operands = 0 : i64, tpu.core_type = #tpu.core_type<tc>, window_params = [{transform_indices = @transform_0, window_bounds = array<i64: 1, 10, 10, 16>}, {pipeline_mode = #tpu.pipeline_mode<synchronous>, transform_indices = @transform_1, window_bounds = array<i64: 9, 16, 32>}, {pipeline_mode = #tpu.pipeline_mode<synchronous>, transform_indices = @transform_2, window_bounds = array<i64: 1, 32>}, {transform_indices = @transform_3, window_bounds = array<i64: 1, 8, 8, 32>}]} {
    %c0 = arith.constant 0 : index
    %c0_0 = arith.constant 0 : index
    %c0_1 = arith.constant 0 : index
    %c0_2 = arith.constant 0 : index
    %0 = vector.load %arg1[%c0, %c0_0, %c0_1, %c0_2] : memref<1x10x10x16xbf16, #tpu.memory_space<vmem>>, vector<1x10x10x16xbf16>
    %1 = vector.shape_cast %0 : vector<1x10x10x16xbf16> to vector<10x10x16xbf16>
    %cst = arith.constant 0.000000e+00 : f32
    %2 = vector.broadcast %cst : f32 to vector<64x32xf32>
    %3 = vector.extract_strided_slice %1 {offsets = [0, 0, 0], sizes = [8, 8, 16], strides = [1, 1, 1]} : vector<10x10x16xbf16> to vector<8x8x16xbf16>
    %4 = vector.shape_cast %3 : vector<8x8x16xbf16> to vector<64x16xbf16>
    %c0_3 = arith.constant 0 : index
    %c0_4 = arith.constant 0 : index
    %c0_5 = arith.constant 0 : index
    %5 = vector.load %arg2[%c0_3, %c0_4, %c0_5] : memref<9x16x32xbf16, #tpu.memory_space<vmem>>, vector<1x16x32xbf16>
    %6 = vector.shape_cast %5 : vector<1x16x32xbf16> to vector<16x32xbf16>
    %cst_6 = arith.constant dense<0.000000e+00> : vector<64x32xf32>
    %7 = tpu.matmul %4, %6, %cst_6 {dimension_numbers = #tpu.dot_dimension_numbers<[1], [0], [0], [1], [0, 0, 1, 1], [], []>} : vector<64x16xbf16>, vector<16x32xbf16>, vector<64x32xf32> -> vector<64x32xf32>
    %8 = arith.addf %2, %7 : vector<64x32xf32>
    %9 = vector.extract_strided_slice %1 {offsets = [0, 1, 0], sizes = [8, 8, 16], strides = [1, 1, 1]} : vector<10x10x16xbf16> to vector<8x8x16xbf16>
    %10 = vector.shape_cast %9 : vector<8x8x16xbf16> to vector<64x16xbf16>
    %c1 = arith.constant 1 : index
    %c0_7 = arith.constant 0 : index
    %c0_8 = arith.constant 0 : index
    %11 = vector.load %arg2[%c1, %c0_7, %c0_8] : memref<9x16x32xbf16, #tpu.memory_space<vmem>>, vector<1x16x32xbf16>
    %12 = vector.shape_cast %11 : vector<1x16x32xbf16> to vector<16x32xbf16>
    %cst_9 = arith.constant dense<0.000000e+00> : vector<64x32xf32>
    %13 = tpu.matmul %10, %12, %cst_9 {dimension_numbers = #tpu.dot_dimension_numbers<[1], [0], [0], [1], [0, 0, 1, 1], [], []>} : vector<64x16xbf16>, vector<16x32xbf16>, vector<64x32xf32> -> vector<64x32xf32>
    %14 = arith.addf %8, %13 : vector<64x32xf32>
    %15 = vector.extract_strided_slice %1 {offsets = [0, 2, 0], sizes = [8, 8, 16], strides = [1, 1, 1]} : vector<10x10x16xbf16> to vector<8x8x16xbf16>
    %16 = vector.shape_cast %15 : vector<8x8x16xbf16> to vector<64x16xbf16>
    %c2 = arith.constant 2 : index
    %c0_10 = arith.constant 0 : index
    %c0_11 = arith.constant 0 : index
    %17 = vector.load %arg2[%c2, %c0_10, %c0_11] : memref<9x16x32xbf16, #tpu.memory_space<vmem>>, vector<1x16x32xbf16>
    %18 = vector.shape_cast %17 : vector<1x16x32xbf16> to vector<16x32xbf16>
    %cst_12 = arith.constant dense<0.000000e+00> : vector<64x32xf32>
    %19 = tpu.matmul %16, %18, %cst_12 {dimension_numbers = #tpu.dot_dimension_numbers<[1], [0], [0], [1], [0, 0, 1, 1], [], []>} : vector<64x16xbf16>, vector<16x32xbf16>, vector<64x32xf32> -> vector<64x32xf32>
    %20 = arith.addf %14, %19 : vector<64x32xf32>
    %21 = vector.extract_strided_slice %1 {offsets = [1, 0, 0], sizes = [8, 8, 16], strides = [1, 1, 1]} : vector<10x10x16xbf16> to vector<8x8x16xbf16>
    %22 = vector.shape_cast %21 : vector<8x8x16xbf16> to vector<64x16xbf16>
    %c3 = arith.constant 3 : index
    %c0_13 = arith.constant 0 : index
    %c0_14 = arith.constant 0 : index
    %23 = vector.load %arg2[%c3, %c0_13, %c0_14] : memref<9x16x32xbf16, #tpu.memory_space<vmem>>, vector<1x16x32xbf16>
    %24 = vector.shape_cast %23 : vector<1x16x32xbf16> to vector<16x32xbf16>
    %cst_15 = arith.constant dense<0.000000e+00> : vector<64x32xf32>
    %25 = tpu.matmul %22, %24, %cst_15 {dimension_numbers = #tpu.dot_dimension_numbers<[1], [0], [0], [1], [0, 0, 1, 1], [], []>} : vector<64x16xbf16>, vector<16x32xbf16>, vector<64x32xf32> -> vector<64x32xf32>
    %26 = arith.addf %20, %25 : vector<64x32xf32>
    %27 = vector.extract_strided_slice %1 {offsets = [1, 1, 0], sizes = [8, 8, 16], strides = [1, 1, 1]} : vector<10x10x16xbf16> to vector<8x8x16xbf16>
    %28 = vector.shape_cast %27 : vector<8x8x16xbf16> to vector<64x16xbf16>
    %c4 = arith.constant 4 : index
    %c0_16 = arith.constant 0 : index
    %c0_17 = arith.constant 0 : index
    %29 = vector.load %arg2[%c4, %c0_16, %c0_17] : memref<9x16x32xbf16, #tpu.memory_space<vmem>>, vector<1x16x32xbf16>
    %30 = vector.shape_cast %29 : vector<1x16x32xbf16> to vector<16x32xbf16>
    %cst_18 = arith.constant dense<0.000000e+00> : vector<64x32xf32>
    %31 = tpu.matmul %28, %30, %cst_18 {dimension_numbers = #tpu.dot_dimension_numbers<[1], [0], [0], [1], [0, 0, 1, 1], [], []>} : vector<64x16xbf16>, vector<16x32xbf16>, vector<64x32xf32> -> vector<64x32xf32>
    %32 = arith.addf %26, %31 : vector<64x32xf32>
    %33 = vector.extract_strided_slice %1 {offsets = [1, 2, 0], sizes = [8, 8, 16], strides = [1, 1, 1]} : vector<10x10x16xbf16> to vector<8x8x16xbf16>
    %34 = vector.shape_cast %33 : vector<8x8x16xbf16> to vector<64x16xbf16>
    %c5 = arith.constant 5 : index
    %c0_19 = arith.constant 0 : index
    %c0_20 = arith.constant 0 : index
    %35 = vector.load %arg2[%c5, %c0_19, %c0_20] : memref<9x16x32xbf16, #tpu.memory_space<vmem>>, vector<1x16x32xbf16>
    %36 = vector.shape_cast %35 : vector<1x16x32xbf16> to vector<16x32xbf16>
    %cst_21 = arith.constant dense<0.000000e+00> : vector<64x32xf32>
    %37 = tpu.matmul %34, %36, %cst_21 {dimension_numbers = #tpu.dot_dimension_numbers<[1], [0], [0], [1], [0, 0, 1, 1], [], []>} : vector<64x16xbf16>, vector<16x32xbf16>, vector<64x32xf32> -> vector<64x32xf32>
    %38 = arith.addf %32, %37 : vector<64x32xf32>
    %39 = vector.extract_strided_slice %1 {offsets = [2, 0, 0], sizes = [8, 8, 16], strides = [1, 1, 1]} : vector<10x10x16xbf16> to vector<8x8x16xbf16>
    %40 = vector.shape_cast %39 : vector<8x8x16xbf16> to vector<64x16xbf16>
    %c6 = arith.constant 6 : index
    %c0_22 = arith.constant 0 : index
    %c0_23 = arith.constant 0 : index
    %41 = vector.load %arg2[%c6, %c0_22, %c0_23] : memref<9x16x32xbf16, #tpu.memory_space<vmem>>, vector<1x16x32xbf16>
    %42 = vector.shape_cast %41 : vector<1x16x32xbf16> to vector<16x32xbf16>
    %cst_24 = arith.constant dense<0.000000e+00> : vector<64x32xf32>
    %43 = tpu.matmul %40, %42, %cst_24 {dimension_numbers = #tpu.dot_dimension_numbers<[1], [0], [0], [1], [0, 0, 1, 1], [], []>} : vector<64x16xbf16>, vector<16x32xbf16>, vector<64x32xf32> -> vector<64x32xf32>
    %44 = arith.addf %38, %43 : vector<64x32xf32>
    %45 = vector.extract_strided_slice %1 {offsets = [2, 1, 0], sizes = [8, 8, 16], strides = [1, 1, 1]} : vector<10x10x16xbf16> to vector<8x8x16xbf16>
    %46 = vector.shape_cast %45 : vector<8x8x16xbf16> to vector<64x16xbf16>
    %c7 = arith.constant 7 : index
    %c0_25 = arith.constant 0 : index
    %c0_26 = arith.constant 0 : index
    %47 = vector.load %arg2[%c7, %c0_25, %c0_26] : memref<9x16x32xbf16, #tpu.memory_space<vmem>>, vector<1x16x32xbf16>
    %48 = vector.shape_cast %47 : vector<1x16x32xbf16> to vector<16x32xbf16>
    %cst_27 = arith.constant dense<0.000000e+00> : vector<64x32xf32>
    %49 = tpu.matmul %46, %48, %cst_27 {dimension_numbers = #tpu.dot_dimension_numbers<[1], [0], [0], [1], [0, 0, 1, 1], [], []>} : vector<64x16xbf16>, vector<16x32xbf16>, vector<64x32xf32> -> vector<64x32xf32>
    %50 = arith.addf %44, %49 : vector<64x32xf32>
    %51 = vector.extract_strided_slice %1 {offsets = [2, 2, 0], sizes = [8, 8, 16], strides = [1, 1, 1]} : vector<10x10x16xbf16> to vector<8x8x16xbf16>
    %52 = vector.shape_cast %51 : vector<8x8x16xbf16> to vector<64x16xbf16>
    %c8 = arith.constant 8 : index
    %c0_28 = arith.constant 0 : index
    %c0_29 = arith.constant 0 : index
    %53 = vector.load %arg2[%c8, %c0_28, %c0_29] : memref<9x16x32xbf16, #tpu.memory_space<vmem>>, vector<1x16x32xbf16>
    %54 = vector.shape_cast %53 : vector<1x16x32xbf16> to vector<16x32xbf16>
    %cst_30 = arith.constant dense<0.000000e+00> : vector<64x32xf32>
    %55 = tpu.matmul %52, %54, %cst_30 {dimension_numbers = #tpu.dot_dimension_numbers<[1], [0], [0], [1], [0, 0, 1, 1], [], []>} : vector<64x16xbf16>, vector<16x32xbf16>, vector<64x32xf32> -> vector<64x32xf32>
    %56 = arith.addf %50, %55 : vector<64x32xf32>
    %c0_31 = arith.constant 0 : index
    %c0_32 = arith.constant 0 : index
    %57 = vector.load %arg3[%c0_31, %c0_32] : memref<1x32xf32, #tpu.memory_space<vmem>>, vector<1x32xf32>
    %58 = vector.broadcast %57 : vector<1x32xf32> to vector<64x32xf32>
    %59 = arith.addf %56, %58 : vector<64x32xf32>
    %cst_33 = arith.constant 0.000000e+00 : f32
    %60 = vector.broadcast %cst_33 : f32 to vector<64x32xf32>
    %61 = arith.maximumf %59, %60 : vector<64x32xf32>
    %62 = vector.shape_cast %61 : vector<64x32xf32> to vector<8x8x32xf32>
    %63 = arith.truncf %62 : vector<8x8x32xf32> to vector<8x8x32xbf16>
    %c0_34 = arith.constant 0 : index
    %c0_35 = arith.constant 0 : index
    %c0_36 = arith.constant 0 : index
    %c0_37 = arith.constant 0 : index
    %64 = vector.load %arg4[%c0_34, %c0_35, %c0_36, %c0_37] : memref<1x8x8x32xbf16, #tpu.memory_space<vmem>>, vector<1x8x8x32xbf16>
    %65 = vector.shape_cast %64 : vector<1x8x8x32xbf16> to vector<8x8x32xbf16>
    %66 = vector.shape_cast %63 : vector<8x8x32xbf16> to vector<1x8x8x32xbf16>
    tpu.vector_store %arg4[%c0_34, %c0_35, %c0_36, %c0_37], %66 {strides = array<i32>} : memref<1x8x8x32xbf16, #tpu.memory_space<vmem>>, vector<1x8x8x32xbf16>,
    return
  }
  func.func @transform_0(%arg0: i32) -> (i32, i32, i32, i32) {
    %c0_i32 = arith.constant 0 : i32
    %c0_i32_0 = arith.constant 0 : i32
    %c0_i32_1 = arith.constant 0 : i32
    %c0_i32_2 = arith.constant 0 : i32
    return %arg0, %c0_i32, %c0_i32_0, %c0_i32_1 : i32, i32, i32, i32
  }
  func.func @transform_1(%arg0: i32) -> (i32, i32, i32) {
    %c0_i32 = arith.constant 0 : i32
    %c0_i32_0 = arith.constant 0 : i32
    %c0_i32_1 = arith.constant 0 : i32
    %c0_i32_2 = arith.constant 0 : i32
    return %c0_i32, %c0_i32_0, %c0_i32_1 : i32, i32, i32
  }
  func.func @transform_2(%arg0: i32) -> (i32, i32) {
    %c0_i32 = arith.constant 0 : i32
    %c0_i32_0 = arith.constant 0 : i32
    %c0_i32_1 = arith.constant 0 : i32
    return %c0_i32, %c0_i32_0 : i32, i32
  }
  func.func @transform_3(%arg0: i32) -> (i32, i32, i32, i32) {
    %c0_i32 = arith.constant 0 : i32
    %c0_i32_0 = arith.constant 0 : i32
    %c0_i32_1 = arith.constant 0 : i32
    %c0_i32_2 = arith.constant 0 : i32
    return %arg0, %c0_i32, %c0_i32_0, %c0_i32_1 : i32, i32, i32, i32
  }
}

module attributes {stable_mosaic.version = 11 : i64} {
  func.func @_conv_kernel(%arg0: i32, %arg1: memref<1x10x10x32xbf16, #tpu.memory_space<vmem>>, %arg2: memref<9x32x64xbf16, #tpu.memory_space<vmem>>, %arg3: memref<1x64xf32, #tpu.memory_space<vmem>>, %arg4: memref<1x8x8x64xbf16, #tpu.memory_space<vmem>>) attributes {dimension_semantics = [#tpu.dimension_semantics<parallel>], iteration_bounds = array<i64: 2>, scalar_prefetch = 0 : i64, scratch_operands = 0 : i64, tpu.core_type = #tpu.core_type<tc>, window_params = [{transform_indices = @transform_0, window_bounds = array<i64: 1, 10, 10, 32>}, {pipeline_mode = #tpu.pipeline_mode<synchronous>, transform_indices = @transform_1, window_bounds = array<i64: 9, 32, 64>}, {pipeline_mode = #tpu.pipeline_mode<synchronous>, transform_indices = @transform_2, window_bounds = array<i64: 1, 64>}, {transform_indices = @transform_3, window_bounds = array<i64: 1, 8, 8, 64>}]} {
    %c0 = arith.constant 0 : index
    %c0_0 = arith.constant 0 : index
    %c0_1 = arith.constant 0 : index
    %c0_2 = arith.constant 0 : index
    %0 = vector.load %arg1[%c0, %c0_0, %c0_1, %c0_2] : memref<1x10x10x32xbf16, #tpu.memory_space<vmem>>, vector<1x10x10x32xbf16>
    %1 = vector.shape_cast %0 : vector<1x10x10x32xbf16> to vector<10x10x32xbf16>
    %cst = arith.constant 0.000000e+00 : f32
    %2 = vector.broadcast %cst : f32 to vector<64x64xf32>
    %3 = vector.extract_strided_slice %1 {offsets = [0, 0, 0], sizes = [8, 8, 32], strides = [1, 1, 1]} : vector<10x10x32xbf16> to vector<8x8x32xbf16>
    %4 = vector.shape_cast %3 : vector<8x8x32xbf16> to vector<64x32xbf16>
    %c0_3 = arith.constant 0 : index
    %c0_4 = arith.constant 0 : index
    %c0_5 = arith.constant 0 : index
    %5 = vector.load %arg2[%c0_3, %c0_4, %c0_5] : memref<9x32x64xbf16, #tpu.memory_space<vmem>>, vector<1x32x64xbf16>
    %6 = vector.shape_cast %5 : vector<1x32x64xbf16> to vector<32x64xbf16>
    %cst_6 = arith.constant dense<0.000000e+00> : vector<64x64xf32>
    %7 = tpu.matmul %4, %6, %cst_6 {dimension_numbers = #tpu.dot_dimension_numbers<[1], [0], [0], [1], [0, 0, 1, 1], [], []>} : vector<64x32xbf16>, vector<32x64xbf16>, vector<64x64xf32> -> vector<64x64xf32>
    %8 = arith.addf %2, %7 : vector<64x64xf32>
    %9 = vector.extract_strided_slice %1 {offsets = [0, 1, 0], sizes = [8, 8, 32], strides = [1, 1, 1]} : vector<10x10x32xbf16> to vector<8x8x32xbf16>
    %10 = vector.shape_cast %9 : vector<8x8x32xbf16> to vector<64x32xbf16>
    %c1 = arith.constant 1 : index
    %c0_7 = arith.constant 0 : index
    %c0_8 = arith.constant 0 : index
    %11 = vector.load %arg2[%c1, %c0_7, %c0_8] : memref<9x32x64xbf16, #tpu.memory_space<vmem>>, vector<1x32x64xbf16>
    %12 = vector.shape_cast %11 : vector<1x32x64xbf16> to vector<32x64xbf16>
    %cst_9 = arith.constant dense<0.000000e+00> : vector<64x64xf32>
    %13 = tpu.matmul %10, %12, %cst_9 {dimension_numbers = #tpu.dot_dimension_numbers<[1], [0], [0], [1], [0, 0, 1, 1], [], []>} : vector<64x32xbf16>, vector<32x64xbf16>, vector<64x64xf32> -> vector<64x64xf32>
    %14 = arith.addf %8, %13 : vector<64x64xf32>
    %15 = vector.extract_strided_slice %1 {offsets = [0, 2, 0], sizes = [8, 8, 32], strides = [1, 1, 1]} : vector<10x10x32xbf16> to vector<8x8x32xbf16>
    %16 = vector.shape_cast %15 : vector<8x8x32xbf16> to vector<64x32xbf16>
    %c2 = arith.constant 2 : index
    %c0_10 = arith.constant 0 : index
    %c0_11 = arith.constant 0 : index
    %17 = vector.load %arg2[%c2, %c0_10, %c0_11] : memref<9x32x64xbf16, #tpu.memory_space<vmem>>, vector<1x32x64xbf16>
    %18 = vector.shape_cast %17 : vector<1x32x64xbf16> to vector<32x64xbf16>
    %cst_12 = arith.constant dense<0.000000e+00> : vector<64x64xf32>
    %19 = tpu.matmul %16, %18, %cst_12 {dimension_numbers = #tpu.dot_dimension_numbers<[1], [0], [0], [1], [0, 0, 1, 1], [], []>} : vector<64x32xbf16>, vector<32x64xbf16>, vector<64x64xf32> -> vector<64x64xf32>
    %20 = arith.addf %14, %19 : vector<64x64xf32>
    %21 = vector.extract_strided_slice %1 {offsets = [1, 0, 0], sizes = [8, 8, 32], strides = [1, 1, 1]} : vector<10x10x32xbf16> to vector<8x8x32xbf16>
    %22 = vector.shape_cast %21 : vector<8x8x32xbf16> to vector<64x32xbf16>
    %c3 = arith.constant 3 : index
    %c0_13 = arith.constant 0 : index
    %c0_14 = arith.constant 0 : index
    %23 = vector.load %arg2[%c3, %c0_13, %c0_14] : memref<9x32x64xbf16, #tpu.memory_space<vmem>>, vector<1x32x64xbf16>
    %24 = vector.shape_cast %23 : vector<1x32x64xbf16> to vector<32x64xbf16>
    %cst_15 = arith.constant dense<0.000000e+00> : vector<64x64xf32>
    %25 = tpu.matmul %22, %24, %cst_15 {dimension_numbers = #tpu.dot_dimension_numbers<[1], [0], [0], [1], [0, 0, 1, 1], [], []>} : vector<64x32xbf16>, vector<32x64xbf16>, vector<64x64xf32> -> vector<64x64xf32>
    %26 = arith.addf %20, %25 : vector<64x64xf32>
    %27 = vector.extract_strided_slice %1 {offsets = [1, 1, 0], sizes = [8, 8, 32], strides = [1, 1, 1]} : vector<10x10x32xbf16> to vector<8x8x32xbf16>
    %28 = vector.shape_cast %27 : vector<8x8x32xbf16> to vector<64x32xbf16>
    %c4 = arith.constant 4 : index
    %c0_16 = arith.constant 0 : index
    %c0_17 = arith.constant 0 : index
    %29 = vector.load %arg2[%c4, %c0_16, %c0_17] : memref<9x32x64xbf16, #tpu.memory_space<vmem>>, vector<1x32x64xbf16>
    %30 = vector.shape_cast %29 : vector<1x32x64xbf16> to vector<32x64xbf16>
    %cst_18 = arith.constant dense<0.000000e+00> : vector<64x64xf32>
    %31 = tpu.matmul %28, %30, %cst_18 {dimension_numbers = #tpu.dot_dimension_numbers<[1], [0], [0], [1], [0, 0, 1, 1], [], []>} : vector<64x32xbf16>, vector<32x64xbf16>, vector<64x64xf32> -> vector<64x64xf32>
    %32 = arith.addf %26, %31 : vector<64x64xf32>
    %33 = vector.extract_strided_slice %1 {offsets = [1, 2, 0], sizes = [8, 8, 32], strides = [1, 1, 1]} : vector<10x10x32xbf16> to vector<8x8x32xbf16>
    %34 = vector.shape_cast %33 : vector<8x8x32xbf16> to vector<64x32xbf16>
    %c5 = arith.constant 5 : index
    %c0_19 = arith.constant 0 : index
    %c0_20 = arith.constant 0 : index
    %35 = vector.load %arg2[%c5, %c0_19, %c0_20] : memref<9x32x64xbf16, #tpu.memory_space<vmem>>, vector<1x32x64xbf16>
    %36 = vector.shape_cast %35 : vector<1x32x64xbf16> to vector<32x64xbf16>
    %cst_21 = arith.constant dense<0.000000e+00> : vector<64x64xf32>
    %37 = tpu.matmul %34, %36, %cst_21 {dimension_numbers = #tpu.dot_dimension_numbers<[1], [0], [0], [1], [0, 0, 1, 1], [], []>} : vector<64x32xbf16>, vector<32x64xbf16>, vector<64x64xf32> -> vector<64x64xf32>
    %38 = arith.addf %32, %37 : vector<64x64xf32>
    %39 = vector.extract_strided_slice %1 {offsets = [2, 0, 0], sizes = [8, 8, 32], strides = [1, 1, 1]} : vector<10x10x32xbf16> to vector<8x8x32xbf16>
    %40 = vector.shape_cast %39 : vector<8x8x32xbf16> to vector<64x32xbf16>
    %c6 = arith.constant 6 : index
    %c0_22 = arith.constant 0 : index
    %c0_23 = arith.constant 0 : index
    %41 = vector.load %arg2[%c6, %c0_22, %c0_23] : memref<9x32x64xbf16, #tpu.memory_space<vmem>>, vector<1x32x64xbf16>
    %42 = vector.shape_cast %41 : vector<1x32x64xbf16> to vector<32x64xbf16>
    %cst_24 = arith.constant dense<0.000000e+00> : vector<64x64xf32>
    %43 = tpu.matmul %40, %42, %cst_24 {dimension_numbers = #tpu.dot_dimension_numbers<[1], [0], [0], [1], [0, 0, 1, 1], [], []>} : vector<64x32xbf16>, vector<32x64xbf16>, vector<64x64xf32> -> vector<64x64xf32>
    %44 = arith.addf %38, %43 : vector<64x64xf32>
    %45 = vector.extract_strided_slice %1 {offsets = [2, 1, 0], sizes = [8, 8, 32], strides = [1, 1, 1]} : vector<10x10x32xbf16> to vector<8x8x32xbf16>
    %46 = vector.shape_cast %45 : vector<8x8x32xbf16> to vector<64x32xbf16>
    %c7 = arith.constant 7 : index
    %c0_25 = arith.constant 0 : index
    %c0_26 = arith.constant 0 : index
    %47 = vector.load %arg2[%c7, %c0_25, %c0_26] : memref<9x32x64xbf16, #tpu.memory_space<vmem>>, vector<1x32x64xbf16>
    %48 = vector.shape_cast %47 : vector<1x32x64xbf16> to vector<32x64xbf16>
    %cst_27 = arith.constant dense<0.000000e+00> : vector<64x64xf32>
    %49 = tpu.matmul %46, %48, %cst_27 {dimension_numbers = #tpu.dot_dimension_numbers<[1], [0], [0], [1], [0, 0, 1, 1], [], []>} : vector<64x32xbf16>, vector<32x64xbf16>, vector<64x64xf32> -> vector<64x64xf32>
    %50 = arith.addf %44, %49 : vector<64x64xf32>
    %51 = vector.extract_strided_slice %1 {offsets = [2, 2, 0], sizes = [8, 8, 32], strides = [1, 1, 1]} : vector<10x10x32xbf16> to vector<8x8x32xbf16>
    %52 = vector.shape_cast %51 : vector<8x8x32xbf16> to vector<64x32xbf16>
    %c8 = arith.constant 8 : index
    %c0_28 = arith.constant 0 : index
    %c0_29 = arith.constant 0 : index
    %53 = vector.load %arg2[%c8, %c0_28, %c0_29] : memref<9x32x64xbf16, #tpu.memory_space<vmem>>, vector<1x32x64xbf16>
    %54 = vector.shape_cast %53 : vector<1x32x64xbf16> to vector<32x64xbf16>
    %cst_30 = arith.constant dense<0.000000e+00> : vector<64x64xf32>
    %55 = tpu.matmul %52, %54, %cst_30 {dimension_numbers = #tpu.dot_dimension_numbers<[1], [0], [0], [1], [0, 0, 1, 1], [], []>} : vector<64x32xbf16>, vector<32x64xbf16>, vector<64x64xf32> -> vector<64x64xf32>
    %56 = arith.addf %50, %55 : vector<64x64xf32>
    %c0_31 = arith.constant 0 : index
    %c0_32 = arith.constant 0 : index
    %57 = vector.load %arg3[%c0_31, %c0_32] : memref<1x64xf32, #tpu.memory_space<vmem>>, vector<1x64xf32>
    %58 = vector.broadcast %57 : vector<1x64xf32> to vector<64x64xf32>
    %59 = arith.addf %56, %58 : vector<64x64xf32>
    %cst_33 = arith.constant 0.000000e+00 : f32
    %60 = vector.broadcast %cst_33 : f32 to vector<64x64xf32>
    %61 = arith.maximumf %59, %60 : vector<64x64xf32>
    %62 = vector.shape_cast %61 : vector<64x64xf32> to vector<8x8x64xf32>
    %63 = arith.truncf %62 : vector<8x8x64xf32> to vector<8x8x64xbf16>
    %c0_34 = arith.constant 0 : index
    %c0_35 = arith.constant 0 : index
    %c0_36 = arith.constant 0 : index
    %c0_37 = arith.constant 0 : index
    %64 = vector.load %arg4[%c0_34, %c0_35, %c0_36, %c0_37] : memref<1x8x8x64xbf16, #tpu.memory_space<vmem>>, vector<1x8x8x64xbf16>
    %65 = vector.shape_cast %64 : vector<1x8x8x64xbf16> to vector<8x8x64xbf16>
    %66 = vector.shape_cast %63 : vector<8x8x64xbf16> to vector<1x8x8x64xbf16>
    tpu.vector_store %arg4[%c0_34, %c0_35, %c0_36, %c0_37], %66 {strides = array<i32>} : memref<1x8x8x64xbf16, #tpu.memory_space<vmem>>, vector<1x8x8x64xbf16>,
    return
  }
  func.func @transform_0(%arg0: i32) -> (i32, i32, i32, i32) {
    %c0_i32 = arith.constant 0 : i32
    %c0_i32_0 = arith.constant 0 : i32
    %c0_i32_1 = arith.constant 0 : i32
    %c0_i32_2 = arith.constant 0 : i32
    return %arg0, %c0_i32, %c0_i32_0, %c0_i32_1 : i32, i32, i32, i32
  }
  func.func @transform_1(%arg0: i32) -> (i32, i32, i32) {
    %c0_i32 = arith.constant 0 : i32
    %c0_i32_0 = arith.constant 0 : i32
    %c0_i32_1 = arith.constant 0 : i32
    %c0_i32_2 = arith.constant 0 : i32
    return %c0_i32, %c0_i32_0, %c0_i32_1 : i32, i32, i32
  }
  func.func @transform_2(%arg0: i32) -> (i32, i32) {
    %c0_i32 = arith.constant 0 : i32
    %c0_i32_0 = arith.constant 0 : i32
    %c0_i32_1 = arith.constant 0 : i32
    return %c0_i32, %c0_i32_0 : i32, i32
  }
  func.func @transform_3(%arg0: i32) -> (i32, i32, i32, i32) {
    %c0_i32 = arith.constant 0 : i32
    %c0_i32_0 = arith.constant 0 : i32
    %c0_i32_1 = arith.constant 0 : i32
    %c0_i32_2 = arith.constant 0 : i32
    return %arg0, %c0_i32, %c0_i32_0, %c0_i32_1 : i32, i32, i32, i32
  }
}

module attributes {stable_mosaic.version = 11 : i64} {
  func.func @_conv_kernel(%arg0: i32, %arg1: memref<1x10x10x64xbf16, #tpu.memory_space<vmem>>, %arg2: memref<9x64x64xbf16, #tpu.memory_space<vmem>>, %arg3: memref<1x64xf32, #tpu.memory_space<vmem>>, %arg4: memref<1x8x8x64xbf16, #tpu.memory_space<vmem>>) attributes {dimension_semantics = [#tpu.dimension_semantics<parallel>], iteration_bounds = array<i64: 2>, scalar_prefetch = 0 : i64, scratch_operands = 0 : i64, tpu.core_type = #tpu.core_type<tc>, window_params = [{transform_indices = @transform_0, window_bounds = array<i64: 1, 10, 10, 64>}, {pipeline_mode = #tpu.pipeline_mode<synchronous>, transform_indices = @transform_1, window_bounds = array<i64: 9, 64, 64>}, {pipeline_mode = #tpu.pipeline_mode<synchronous>, transform_indices = @transform_2, window_bounds = array<i64: 1, 64>}, {transform_indices = @transform_3, window_bounds = array<i64: 1, 8, 8, 64>}]} {
    %c0 = arith.constant 0 : index
    %c0_0 = arith.constant 0 : index
    %c0_1 = arith.constant 0 : index
    %c0_2 = arith.constant 0 : index
    %0 = vector.load %arg1[%c0, %c0_0, %c0_1, %c0_2] : memref<1x10x10x64xbf16, #tpu.memory_space<vmem>>, vector<1x10x10x64xbf16>
    %1 = vector.shape_cast %0 : vector<1x10x10x64xbf16> to vector<10x10x64xbf16>
    %cst = arith.constant 0.000000e+00 : f32
    %2 = vector.broadcast %cst : f32 to vector<64x64xf32>
    %3 = vector.extract_strided_slice %1 {offsets = [0, 0, 0], sizes = [8, 8, 64], strides = [1, 1, 1]} : vector<10x10x64xbf16> to vector<8x8x64xbf16>
    %4 = vector.shape_cast %3 : vector<8x8x64xbf16> to vector<64x64xbf16>
    %c0_3 = arith.constant 0 : index
    %c0_4 = arith.constant 0 : index
    %c0_5 = arith.constant 0 : index
    %5 = vector.load %arg2[%c0_3, %c0_4, %c0_5] : memref<9x64x64xbf16, #tpu.memory_space<vmem>>, vector<1x64x64xbf16>
    %6 = vector.shape_cast %5 : vector<1x64x64xbf16> to vector<64x64xbf16>
    %cst_6 = arith.constant dense<0.000000e+00> : vector<64x64xf32>
    %7 = tpu.matmul %4, %6, %cst_6 {dimension_numbers = #tpu.dot_dimension_numbers<[1], [0], [0], [1], [0, 0, 1, 1], [], []>} : vector<64x64xbf16>, vector<64x64xbf16>, vector<64x64xf32> -> vector<64x64xf32>
    %8 = arith.addf %2, %7 : vector<64x64xf32>
    %9 = vector.extract_strided_slice %1 {offsets = [0, 1, 0], sizes = [8, 8, 64], strides = [1, 1, 1]} : vector<10x10x64xbf16> to vector<8x8x64xbf16>
    %10 = vector.shape_cast %9 : vector<8x8x64xbf16> to vector<64x64xbf16>
    %c1 = arith.constant 1 : index
    %c0_7 = arith.constant 0 : index
    %c0_8 = arith.constant 0 : index
    %11 = vector.load %arg2[%c1, %c0_7, %c0_8] : memref<9x64x64xbf16, #tpu.memory_space<vmem>>, vector<1x64x64xbf16>
    %12 = vector.shape_cast %11 : vector<1x64x64xbf16> to vector<64x64xbf16>
    %cst_9 = arith.constant dense<0.000000e+00> : vector<64x64xf32>
    %13 = tpu.matmul %10, %12, %cst_9 {dimension_numbers = #tpu.dot_dimension_numbers<[1], [0], [0], [1], [0, 0, 1, 1], [], []>} : vector<64x64xbf16>, vector<64x64xbf16>, vector<64x64xf32> -> vector<64x64xf32>
    %14 = arith.addf %8, %13 : vector<64x64xf32>
    %15 = vector.extract_strided_slice %1 {offsets = [0, 2, 0], sizes = [8, 8, 64], strides = [1, 1, 1]} : vector<10x10x64xbf16> to vector<8x8x64xbf16>
    %16 = vector.shape_cast %15 : vector<8x8x64xbf16> to vector<64x64xbf16>
    %c2 = arith.constant 2 : index
    %c0_10 = arith.constant 0 : index
    %c0_11 = arith.constant 0 : index
    %17 = vector.load %arg2[%c2, %c0_10, %c0_11] : memref<9x64x64xbf16, #tpu.memory_space<vmem>>, vector<1x64x64xbf16>
    %18 = vector.shape_cast %17 : vector<1x64x64xbf16> to vector<64x64xbf16>
    %cst_12 = arith.constant dense<0.000000e+00> : vector<64x64xf32>
    %19 = tpu.matmul %16, %18, %cst_12 {dimension_numbers = #tpu.dot_dimension_numbers<[1], [0], [0], [1], [0, 0, 1, 1], [], []>} : vector<64x64xbf16>, vector<64x64xbf16>, vector<64x64xf32> -> vector<64x64xf32>
    %20 = arith.addf %14, %19 : vector<64x64xf32>
    %21 = vector.extract_strided_slice %1 {offsets = [1, 0, 0], sizes = [8, 8, 64], strides = [1, 1, 1]} : vector<10x10x64xbf16> to vector<8x8x64xbf16>
    %22 = vector.shape_cast %21 : vector<8x8x64xbf16> to vector<64x64xbf16>
    %c3 = arith.constant 3 : index
    %c0_13 = arith.constant 0 : index
    %c0_14 = arith.constant 0 : index
    %23 = vector.load %arg2[%c3, %c0_13, %c0_14] : memref<9x64x64xbf16, #tpu.memory_space<vmem>>, vector<1x64x64xbf16>
    %24 = vector.shape_cast %23 : vector<1x64x64xbf16> to vector<64x64xbf16>
    %cst_15 = arith.constant dense<0.000000e+00> : vector<64x64xf32>
    %25 = tpu.matmul %22, %24, %cst_15 {dimension_numbers = #tpu.dot_dimension_numbers<[1], [0], [0], [1], [0, 0, 1, 1], [], []>} : vector<64x64xbf16>, vector<64x64xbf16>, vector<64x64xf32> -> vector<64x64xf32>
    %26 = arith.addf %20, %25 : vector<64x64xf32>
    %27 = vector.extract_strided_slice %1 {offsets = [1, 1, 0], sizes = [8, 8, 64], strides = [1, 1, 1]} : vector<10x10x64xbf16> to vector<8x8x64xbf16>
    %28 = vector.shape_cast %27 : vector<8x8x64xbf16> to vector<64x64xbf16>
    %c4 = arith.constant 4 : index
    %c0_16 = arith.constant 0 : index
    %c0_17 = arith.constant 0 : index
    %29 = vector.load %arg2[%c4, %c0_16, %c0_17] : memref<9x64x64xbf16, #tpu.memory_space<vmem>>, vector<1x64x64xbf16>
    %30 = vector.shape_cast %29 : vector<1x64x64xbf16> to vector<64x64xbf16>
    %cst_18 = arith.constant dense<0.000000e+00> : vector<64x64xf32>
    %31 = tpu.matmul %28, %30, %cst_18 {dimension_numbers = #tpu.dot_dimension_numbers<[1], [0], [0], [1], [0, 0, 1, 1], [], []>} : vector<64x64xbf16>, vector<64x64xbf16>, vector<64x64xf32> -> vector<64x64xf32>
    %32 = arith.addf %26, %31 : vector<64x64xf32>
    %33 = vector.extract_strided_slice %1 {offsets = [1, 2, 0], sizes = [8, 8, 64], strides = [1, 1, 1]} : vector<10x10x64xbf16> to vector<8x8x64xbf16>
    %34 = vector.shape_cast %33 : vector<8x8x64xbf16> to vector<64x64xbf16>
    %c5 = arith.constant 5 : index
    %c0_19 = arith.constant 0 : index
    %c0_20 = arith.constant 0 : index
    %35 = vector.load %arg2[%c5, %c0_19, %c0_20] : memref<9x64x64xbf16, #tpu.memory_space<vmem>>, vector<1x64x64xbf16>
    %36 = vector.shape_cast %35 : vector<1x64x64xbf16> to vector<64x64xbf16>
    %cst_21 = arith.constant dense<0.000000e+00> : vector<64x64xf32>
    %37 = tpu.matmul %34, %36, %cst_21 {dimension_numbers = #tpu.dot_dimension_numbers<[1], [0], [0], [1], [0, 0, 1, 1], [], []>} : vector<64x64xbf16>, vector<64x64xbf16>, vector<64x64xf32> -> vector<64x64xf32>
    %38 = arith.addf %32, %37 : vector<64x64xf32>
    %39 = vector.extract_strided_slice %1 {offsets = [2, 0, 0], sizes = [8, 8, 64], strides = [1, 1, 1]} : vector<10x10x64xbf16> to vector<8x8x64xbf16>
    %40 = vector.shape_cast %39 : vector<8x8x64xbf16> to vector<64x64xbf16>
    %c6 = arith.constant 6 : index
    %c0_22 = arith.constant 0 : index
    %c0_23 = arith.constant 0 : index
    %41 = vector.load %arg2[%c6, %c0_22, %c0_23] : memref<9x64x64xbf16, #tpu.memory_space<vmem>>, vector<1x64x64xbf16>
    %42 = vector.shape_cast %41 : vector<1x64x64xbf16> to vector<64x64xbf16>
    %cst_24 = arith.constant dense<0.000000e+00> : vector<64x64xf32>
    %43 = tpu.matmul %40, %42, %cst_24 {dimension_numbers = #tpu.dot_dimension_numbers<[1], [0], [0], [1], [0, 0, 1, 1], [], []>} : vector<64x64xbf16>, vector<64x64xbf16>, vector<64x64xf32> -> vector<64x64xf32>
    %44 = arith.addf %38, %43 : vector<64x64xf32>
    %45 = vector.extract_strided_slice %1 {offsets = [2, 1, 0], sizes = [8, 8, 64], strides = [1, 1, 1]} : vector<10x10x64xbf16> to vector<8x8x64xbf16>
    %46 = vector.shape_cast %45 : vector<8x8x64xbf16> to vector<64x64xbf16>
    %c7 = arith.constant 7 : index
    %c0_25 = arith.constant 0 : index
    %c0_26 = arith.constant 0 : index
    %47 = vector.load %arg2[%c7, %c0_25, %c0_26] : memref<9x64x64xbf16, #tpu.memory_space<vmem>>, vector<1x64x64xbf16>
    %48 = vector.shape_cast %47 : vector<1x64x64xbf16> to vector<64x64xbf16>
    %cst_27 = arith.constant dense<0.000000e+00> : vector<64x64xf32>
    %49 = tpu.matmul %46, %48, %cst_27 {dimension_numbers = #tpu.dot_dimension_numbers<[1], [0], [0], [1], [0, 0, 1, 1], [], []>} : vector<64x64xbf16>, vector<64x64xbf16>, vector<64x64xf32> -> vector<64x64xf32>
    %50 = arith.addf %44, %49 : vector<64x64xf32>
    %51 = vector.extract_strided_slice %1 {offsets = [2, 2, 0], sizes = [8, 8, 64], strides = [1, 1, 1]} : vector<10x10x64xbf16> to vector<8x8x64xbf16>
    %52 = vector.shape_cast %51 : vector<8x8x64xbf16> to vector<64x64xbf16>
    %c8 = arith.constant 8 : index
    %c0_28 = arith.constant 0 : index
    %c0_29 = arith.constant 0 : index
    %53 = vector.load %arg2[%c8, %c0_28, %c0_29] : memref<9x64x64xbf16, #tpu.memory_space<vmem>>, vector<1x64x64xbf16>
    %54 = vector.shape_cast %53 : vector<1x64x64xbf16> to vector<64x64xbf16>
    %cst_30 = arith.constant dense<0.000000e+00> : vector<64x64xf32>
    %55 = tpu.matmul %52, %54, %cst_30 {dimension_numbers = #tpu.dot_dimension_numbers<[1], [0], [0], [1], [0, 0, 1, 1], [], []>} : vector<64x64xbf16>, vector<64x64xbf16>, vector<64x64xf32> -> vector<64x64xf32>
    %56 = arith.addf %50, %55 : vector<64x64xf32>
    %c0_31 = arith.constant 0 : index
    %c0_32 = arith.constant 0 : index
    %57 = vector.load %arg3[%c0_31, %c0_32] : memref<1x64xf32, #tpu.memory_space<vmem>>, vector<1x64xf32>
    %58 = vector.broadcast %57 : vector<1x64xf32> to vector<64x64xf32>
    %59 = arith.addf %56, %58 : vector<64x64xf32>
    %cst_33 = arith.constant 0.000000e+00 : f32
    %60 = vector.broadcast %cst_33 : f32 to vector<64x64xf32>
    %61 = arith.maximumf %59, %60 : vector<64x64xf32>
    %62 = vector.shape_cast %61 : vector<64x64xf32> to vector<8x8x64xf32>
    %63 = arith.truncf %62 : vector<8x8x64xf32> to vector<8x8x64xbf16>
    %c0_34 = arith.constant 0 : index
    %c0_35 = arith.constant 0 : index
    %c0_36 = arith.constant 0 : index
    %c0_37 = arith.constant 0 : index
    %64 = vector.load %arg4[%c0_34, %c0_35, %c0_36, %c0_37] : memref<1x8x8x64xbf16, #tpu.memory_space<vmem>>, vector<1x8x8x64xbf16>
    %65 = vector.shape_cast %64 : vector<1x8x8x64xbf16> to vector<8x8x64xbf16>
    %66 = vector.shape_cast %63 : vector<8x8x64xbf16> to vector<1x8x8x64xbf16>
    tpu.vector_store %arg4[%c0_34, %c0_35, %c0_36, %c0_37], %66 {strides = array<i32>} : memref<1x8x8x64xbf16, #tpu.memory_space<vmem>>, vector<1x8x8x64xbf16>,
    return
  }
  func.func @transform_0(%arg0: i32) -> (i32, i32, i32, i32) {
    %c0_i32 = arith.constant 0 : i32
    %c0_i32_0 = arith.constant 0 : i32
    %c0_i32_1 = arith.constant 0 : i32
    %c0_i32_2 = arith.constant 0 : i32
    return %arg0, %c0_i32, %c0_i32_0, %c0_i32_1 : i32, i32, i32, i32
  }
  func.func @transform_1(%arg0: i32) -> (i32, i32, i32) {
    %c0_i32 = arith.constant 0 : i32
    %c0_i32_0 = arith.constant 0 : i32
    %c0_i32_1 = arith.constant 0 : i32
    %c0_i32_2 = arith.constant 0 : i32
    return %c0_i32, %c0_i32_0, %c0_i32_1 : i32, i32, i32
  }
  func.func @transform_2(%arg0: i32) -> (i32, i32) {
    %c0_i32 = arith.constant 0 : i32
    %c0_i32_0 = arith.constant 0 : i32
    %c0_i32_1 = arith.constant 0 : i32
    return %c0_i32, %c0_i32_0 : i32, i32
  }
  func.func @transform_3(%arg0: i32) -> (i32, i32, i32, i32) {
    %c0_i32 = arith.constant 0 : i32
    %c0_i32_0 = arith.constant 0 : i32
    %c0_i32_1 = arith.constant 0 : i32
    %c0_i32_2 = arith.constant 0 : i32
    return %arg0, %c0_i32, %c0_i32_0, %c0_i32_1 : i32, i32, i32, i32
  }
}

module attributes {stable_mosaic.version = 11 : i64} {
  func.func @_conv_kernel(%arg0: i32, %arg1: memref<1x10x10x64xbf16, #tpu.memory_space<vmem>>, %arg2: memref<9x64x32xbf16, #tpu.memory_space<vmem>>, %arg3: memref<1x32xf32, #tpu.memory_space<vmem>>, %arg4: memref<1x8x8x32xbf16, #tpu.memory_space<vmem>>) attributes {dimension_semantics = [#tpu.dimension_semantics<parallel>], iteration_bounds = array<i64: 2>, scalar_prefetch = 0 : i64, scratch_operands = 0 : i64, tpu.core_type = #tpu.core_type<tc>, window_params = [{transform_indices = @transform_0, window_bounds = array<i64: 1, 10, 10, 64>}, {pipeline_mode = #tpu.pipeline_mode<synchronous>, transform_indices = @transform_1, window_bounds = array<i64: 9, 64, 32>}, {pipeline_mode = #tpu.pipeline_mode<synchronous>, transform_indices = @transform_2, window_bounds = array<i64: 1, 32>}, {transform_indices = @transform_3, window_bounds = array<i64: 1, 8, 8, 32>}]} {
    %c0 = arith.constant 0 : index
    %c0_0 = arith.constant 0 : index
    %c0_1 = arith.constant 0 : index
    %c0_2 = arith.constant 0 : index
    %0 = vector.load %arg1[%c0, %c0_0, %c0_1, %c0_2] : memref<1x10x10x64xbf16, #tpu.memory_space<vmem>>, vector<1x10x10x64xbf16>
    %1 = vector.shape_cast %0 : vector<1x10x10x64xbf16> to vector<10x10x64xbf16>
    %cst = arith.constant 0.000000e+00 : f32
    %2 = vector.broadcast %cst : f32 to vector<64x32xf32>
    %3 = vector.extract_strided_slice %1 {offsets = [0, 0, 0], sizes = [8, 8, 64], strides = [1, 1, 1]} : vector<10x10x64xbf16> to vector<8x8x64xbf16>
    %4 = vector.shape_cast %3 : vector<8x8x64xbf16> to vector<64x64xbf16>
    %c0_3 = arith.constant 0 : index
    %c0_4 = arith.constant 0 : index
    %c0_5 = arith.constant 0 : index
    %5 = vector.load %arg2[%c0_3, %c0_4, %c0_5] : memref<9x64x32xbf16, #tpu.memory_space<vmem>>, vector<1x64x32xbf16>
    %6 = vector.shape_cast %5 : vector<1x64x32xbf16> to vector<64x32xbf16>
    %cst_6 = arith.constant dense<0.000000e+00> : vector<64x32xf32>
    %7 = tpu.matmul %4, %6, %cst_6 {dimension_numbers = #tpu.dot_dimension_numbers<[1], [0], [0], [1], [0, 0, 1, 1], [], []>} : vector<64x64xbf16>, vector<64x32xbf16>, vector<64x32xf32> -> vector<64x32xf32>
    %8 = arith.addf %2, %7 : vector<64x32xf32>
    %9 = vector.extract_strided_slice %1 {offsets = [0, 1, 0], sizes = [8, 8, 64], strides = [1, 1, 1]} : vector<10x10x64xbf16> to vector<8x8x64xbf16>
    %10 = vector.shape_cast %9 : vector<8x8x64xbf16> to vector<64x64xbf16>
    %c1 = arith.constant 1 : index
    %c0_7 = arith.constant 0 : index
    %c0_8 = arith.constant 0 : index
    %11 = vector.load %arg2[%c1, %c0_7, %c0_8] : memref<9x64x32xbf16, #tpu.memory_space<vmem>>, vector<1x64x32xbf16>
    %12 = vector.shape_cast %11 : vector<1x64x32xbf16> to vector<64x32xbf16>
    %cst_9 = arith.constant dense<0.000000e+00> : vector<64x32xf32>
    %13 = tpu.matmul %10, %12, %cst_9 {dimension_numbers = #tpu.dot_dimension_numbers<[1], [0], [0], [1], [0, 0, 1, 1], [], []>} : vector<64x64xbf16>, vector<64x32xbf16>, vector<64x32xf32> -> vector<64x32xf32>
    %14 = arith.addf %8, %13 : vector<64x32xf32>
    %15 = vector.extract_strided_slice %1 {offsets = [0, 2, 0], sizes = [8, 8, 64], strides = [1, 1, 1]} : vector<10x10x64xbf16> to vector<8x8x64xbf16>
    %16 = vector.shape_cast %15 : vector<8x8x64xbf16> to vector<64x64xbf16>
    %c2 = arith.constant 2 : index
    %c0_10 = arith.constant 0 : index
    %c0_11 = arith.constant 0 : index
    %17 = vector.load %arg2[%c2, %c0_10, %c0_11] : memref<9x64x32xbf16, #tpu.memory_space<vmem>>, vector<1x64x32xbf16>
    %18 = vector.shape_cast %17 : vector<1x64x32xbf16> to vector<64x32xbf16>
    %cst_12 = arith.constant dense<0.000000e+00> : vector<64x32xf32>
    %19 = tpu.matmul %16, %18, %cst_12 {dimension_numbers = #tpu.dot_dimension_numbers<[1], [0], [0], [1], [0, 0, 1, 1], [], []>} : vector<64x64xbf16>, vector<64x32xbf16>, vector<64x32xf32> -> vector<64x32xf32>
    %20 = arith.addf %14, %19 : vector<64x32xf32>
    %21 = vector.extract_strided_slice %1 {offsets = [1, 0, 0], sizes = [8, 8, 64], strides = [1, 1, 1]} : vector<10x10x64xbf16> to vector<8x8x64xbf16>
    %22 = vector.shape_cast %21 : vector<8x8x64xbf16> to vector<64x64xbf16>
    %c3 = arith.constant 3 : index
    %c0_13 = arith.constant 0 : index
    %c0_14 = arith.constant 0 : index
    %23 = vector.load %arg2[%c3, %c0_13, %c0_14] : memref<9x64x32xbf16, #tpu.memory_space<vmem>>, vector<1x64x32xbf16>
    %24 = vector.shape_cast %23 : vector<1x64x32xbf16> to vector<64x32xbf16>
    %cst_15 = arith.constant dense<0.000000e+00> : vector<64x32xf32>
    %25 = tpu.matmul %22, %24, %cst_15 {dimension_numbers = #tpu.dot_dimension_numbers<[1], [0], [0], [1], [0, 0, 1, 1], [], []>} : vector<64x64xbf16>, vector<64x32xbf16>, vector<64x32xf32> -> vector<64x32xf32>
    %26 = arith.addf %20, %25 : vector<64x32xf32>
    %27 = vector.extract_strided_slice %1 {offsets = [1, 1, 0], sizes = [8, 8, 64], strides = [1, 1, 1]} : vector<10x10x64xbf16> to vector<8x8x64xbf16>
    %28 = vector.shape_cast %27 : vector<8x8x64xbf16> to vector<64x64xbf16>
    %c4 = arith.constant 4 : index
    %c0_16 = arith.constant 0 : index
    %c0_17 = arith.constant 0 : index
    %29 = vector.load %arg2[%c4, %c0_16, %c0_17] : memref<9x64x32xbf16, #tpu.memory_space<vmem>>, vector<1x64x32xbf16>
    %30 = vector.shape_cast %29 : vector<1x64x32xbf16> to vector<64x32xbf16>
    %cst_18 = arith.constant dense<0.000000e+00> : vector<64x32xf32>
    %31 = tpu.matmul %28, %30, %cst_18 {dimension_numbers = #tpu.dot_dimension_numbers<[1], [0], [0], [1], [0, 0, 1, 1], [], []>} : vector<64x64xbf16>, vector<64x32xbf16>, vector<64x32xf32> -> vector<64x32xf32>
    %32 = arith.addf %26, %31 : vector<64x32xf32>
    %33 = vector.extract_strided_slice %1 {offsets = [1, 2, 0], sizes = [8, 8, 64], strides = [1, 1, 1]} : vector<10x10x64xbf16> to vector<8x8x64xbf16>
    %34 = vector.shape_cast %33 : vector<8x8x64xbf16> to vector<64x64xbf16>
    %c5 = arith.constant 5 : index
    %c0_19 = arith.constant 0 : index
    %c0_20 = arith.constant 0 : index
    %35 = vector.load %arg2[%c5, %c0_19, %c0_20] : memref<9x64x32xbf16, #tpu.memory_space<vmem>>, vector<1x64x32xbf16>
    %36 = vector.shape_cast %35 : vector<1x64x32xbf16> to vector<64x32xbf16>
    %cst_21 = arith.constant dense<0.000000e+00> : vector<64x32xf32>
    %37 = tpu.matmul %34, %36, %cst_21 {dimension_numbers = #tpu.dot_dimension_numbers<[1], [0], [0], [1], [0, 0, 1, 1], [], []>} : vector<64x64xbf16>, vector<64x32xbf16>, vector<64x32xf32> -> vector<64x32xf32>
    %38 = arith.addf %32, %37 : vector<64x32xf32>
    %39 = vector.extract_strided_slice %1 {offsets = [2, 0, 0], sizes = [8, 8, 64], strides = [1, 1, 1]} : vector<10x10x64xbf16> to vector<8x8x64xbf16>
    %40 = vector.shape_cast %39 : vector<8x8x64xbf16> to vector<64x64xbf16>
    %c6 = arith.constant 6 : index
    %c0_22 = arith.constant 0 : index
    %c0_23 = arith.constant 0 : index
    %41 = vector.load %arg2[%c6, %c0_22, %c0_23] : memref<9x64x32xbf16, #tpu.memory_space<vmem>>, vector<1x64x32xbf16>
    %42 = vector.shape_cast %41 : vector<1x64x32xbf16> to vector<64x32xbf16>
    %cst_24 = arith.constant dense<0.000000e+00> : vector<64x32xf32>
    %43 = tpu.matmul %40, %42, %cst_24 {dimension_numbers = #tpu.dot_dimension_numbers<[1], [0], [0], [1], [0, 0, 1, 1], [], []>} : vector<64x64xbf16>, vector<64x32xbf16>, vector<64x32xf32> -> vector<64x32xf32>
    %44 = arith.addf %38, %43 : vector<64x32xf32>
    %45 = vector.extract_strided_slice %1 {offsets = [2, 1, 0], sizes = [8, 8, 64], strides = [1, 1, 1]} : vector<10x10x64xbf16> to vector<8x8x64xbf16>
    %46 = vector.shape_cast %45 : vector<8x8x64xbf16> to vector<64x64xbf16>
    %c7 = arith.constant 7 : index
    %c0_25 = arith.constant 0 : index
    %c0_26 = arith.constant 0 : index
    %47 = vector.load %arg2[%c7, %c0_25, %c0_26] : memref<9x64x32xbf16, #tpu.memory_space<vmem>>, vector<1x64x32xbf16>
    %48 = vector.shape_cast %47 : vector<1x64x32xbf16> to vector<64x32xbf16>
    %cst_27 = arith.constant dense<0.000000e+00> : vector<64x32xf32>
    %49 = tpu.matmul %46, %48, %cst_27 {dimension_numbers = #tpu.dot_dimension_numbers<[1], [0], [0], [1], [0, 0, 1, 1], [], []>} : vector<64x64xbf16>, vector<64x32xbf16>, vector<64x32xf32> -> vector<64x32xf32>
    %50 = arith.addf %44, %49 : vector<64x32xf32>
    %51 = vector.extract_strided_slice %1 {offsets = [2, 2, 0], sizes = [8, 8, 64], strides = [1, 1, 1]} : vector<10x10x64xbf16> to vector<8x8x64xbf16>
    %52 = vector.shape_cast %51 : vector<8x8x64xbf16> to vector<64x64xbf16>
    %c8 = arith.constant 8 : index
    %c0_28 = arith.constant 0 : index
    %c0_29 = arith.constant 0 : index
    %53 = vector.load %arg2[%c8, %c0_28, %c0_29] : memref<9x64x32xbf16, #tpu.memory_space<vmem>>, vector<1x64x32xbf16>
    %54 = vector.shape_cast %53 : vector<1x64x32xbf16> to vector<64x32xbf16>
    %cst_30 = arith.constant dense<0.000000e+00> : vector<64x32xf32>
    %55 = tpu.matmul %52, %54, %cst_30 {dimension_numbers = #tpu.dot_dimension_numbers<[1], [0], [0], [1], [0, 0, 1, 1], [], []>} : vector<64x64xbf16>, vector<64x32xbf16>, vector<64x32xf32> -> vector<64x32xf32>
    %56 = arith.addf %50, %55 : vector<64x32xf32>
    %c0_31 = arith.constant 0 : index
    %c0_32 = arith.constant 0 : index
    %57 = vector.load %arg3[%c0_31, %c0_32] : memref<1x32xf32, #tpu.memory_space<vmem>>, vector<1x32xf32>
    %58 = vector.broadcast %57 : vector<1x32xf32> to vector<64x32xf32>
    %59 = arith.addf %56, %58 : vector<64x32xf32>
    %cst_33 = arith.constant 0.000000e+00 : f32
    %60 = vector.broadcast %cst_33 : f32 to vector<64x32xf32>
    %61 = arith.maximumf %59, %60 : vector<64x32xf32>
    %62 = vector.shape_cast %61 : vector<64x32xf32> to vector<8x8x32xf32>
    %63 = arith.truncf %62 : vector<8x8x32xf32> to vector<8x8x32xbf16>
    %c0_34 = arith.constant 0 : index
    %c0_35 = arith.constant 0 : index
    %c0_36 = arith.constant 0 : index
    %c0_37 = arith.constant 0 : index
    %64 = vector.load %arg4[%c0_34, %c0_35, %c0_36, %c0_37] : memref<1x8x8x32xbf16, #tpu.memory_space<vmem>>, vector<1x8x8x32xbf16>
    %65 = vector.shape_cast %64 : vector<1x8x8x32xbf16> to vector<8x8x32xbf16>
    %66 = vector.shape_cast %63 : vector<8x8x32xbf16> to vector<1x8x8x32xbf16>
    tpu.vector_store %arg4[%c0_34, %c0_35, %c0_36, %c0_37], %66 {strides = array<i32>} : memref<1x8x8x32xbf16, #tpu.memory_space<vmem>>, vector<1x8x8x32xbf16>,
    return
  }
  func.func @transform_0(%arg0: i32) -> (i32, i32, i32, i32) {
    %c0_i32 = arith.constant 0 : i32
    %c0_i32_0 = arith.constant 0 : i32
    %c0_i32_1 = arith.constant 0 : i32
    %c0_i32_2 = arith.constant 0 : i32
    return %arg0, %c0_i32, %c0_i32_0, %c0_i32_1 : i32, i32, i32, i32
  }
  func.func @transform_1(%arg0: i32) -> (i32, i32, i32) {
    %c0_i32 = arith.constant 0 : i32
    %c0_i32_0 = arith.constant 0 : i32
    %c0_i32_1 = arith.constant 0 : i32
    %c0_i32_2 = arith.constant 0 : i32
    return %c0_i32, %c0_i32_0, %c0_i32_1 : i32, i32, i32
  }
  func.func @transform_2(%arg0: i32) -> (i32, i32) {
    %c0_i32 = arith.constant 0 : i32
    %c0_i32_0 = arith.constant 0 : i32
    %c0_i32_1 = arith.constant 0 : i32
    return %c0_i32, %c0_i32_0 : i32, i32
  }
  func.func @transform_3(%arg0: i32) -> (i32, i32, i32, i32) {
    %c0_i32 = arith.constant 0 : i32
    %c0_i32_0 = arith.constant 0 : i32
    %c0_i32_1 = arith.constant 0 : i32
    %c0_i32_2 = arith.constant 0 : i32
    return %arg0, %c0_i32, %c0_i32_0, %c0_i32_1 : i32, i32, i32, i32
  }
}

module attributes {stable_mosaic.version = 11 : i64} {
  func.func @_conv_kernel(%arg0: i32, %arg1: memref<1x4x4x32xbf16, #tpu.memory_space<vmem>>, %arg2: memref<1x32x16xbf16, #tpu.memory_space<vmem>>, %arg3: memref<1x16xf32, #tpu.memory_space<vmem>>, %arg4: memref<1x4x4x16xbf16, #tpu.memory_space<vmem>>) attributes {dimension_semantics = [#tpu.dimension_semantics<parallel>], iteration_bounds = array<i64: 2>, scalar_prefetch = 0 : i64, scratch_operands = 0 : i64, tpu.core_type = #tpu.core_type<tc>, window_params = [{transform_indices = @transform_0, window_bounds = array<i64: 1, 4, 4, 32>}, {pipeline_mode = #tpu.pipeline_mode<synchronous>, transform_indices = @transform_1, window_bounds = array<i64: 1, 32, 16>}, {pipeline_mode = #tpu.pipeline_mode<synchronous>, transform_indices = @transform_2, window_bounds = array<i64: 1, 16>}, {transform_indices = @transform_3, window_bounds = array<i64: 1, 4, 4, 16>}]} {
    %c0 = arith.constant 0 : index
    %c0_0 = arith.constant 0 : index
    %c0_1 = arith.constant 0 : index
    %c0_2 = arith.constant 0 : index
    %0 = vector.load %arg1[%c0, %c0_0, %c0_1, %c0_2] : memref<1x4x4x32xbf16, #tpu.memory_space<vmem>>, vector<1x4x4x32xbf16>
    %1 = vector.shape_cast %0 : vector<1x4x4x32xbf16> to vector<4x4x32xbf16>
    %cst = arith.constant 0.000000e+00 : f32
    %2 = vector.broadcast %cst : f32 to vector<16x16xf32>
    %3 = vector.shape_cast %1 : vector<4x4x32xbf16> to vector<16x32xbf16>
    %c0_3 = arith.constant 0 : index
    %c0_4 = arith.constant 0 : index
    %c0_5 = arith.constant 0 : index
    %4 = vector.load %arg2[%c0_3, %c0_4, %c0_5] : memref<1x32x16xbf16, #tpu.memory_space<vmem>>, vector<1x32x16xbf16>
    %5 = vector.shape_cast %4 : vector<1x32x16xbf16> to vector<32x16xbf16>
    %cst_6 = arith.constant dense<0.000000e+00> : vector<16x16xf32>
    %6 = tpu.matmul %3, %5, %cst_6 {dimension_numbers = #tpu.dot_dimension_numbers<[1], [0], [0], [1], [0, 0, 1, 1], [], []>} : vector<16x32xbf16>, vector<32x16xbf16>, vector<16x16xf32> -> vector<16x16xf32>
    %7 = arith.addf %2, %6 : vector<16x16xf32>
    %c0_7 = arith.constant 0 : index
    %c0_8 = arith.constant 0 : index
    %8 = vector.load %arg3[%c0_7, %c0_8] : memref<1x16xf32, #tpu.memory_space<vmem>>, vector<1x16xf32>
    %9 = vector.broadcast %8 : vector<1x16xf32> to vector<16x16xf32>
    %10 = arith.addf %7, %9 : vector<16x16xf32>
    %cst_9 = arith.constant 0.000000e+00 : f32
    %11 = vector.broadcast %cst_9 : f32 to vector<16x16xf32>
    %12 = arith.maximumf %10, %11 : vector<16x16xf32>
    %13 = vector.shape_cast %12 : vector<16x16xf32> to vector<4x4x16xf32>
    %14 = arith.truncf %13 : vector<4x4x16xf32> to vector<4x4x16xbf16>
    %c0_10 = arith.constant 0 : index
    %c0_11 = arith.constant 0 : index
    %c0_12 = arith.constant 0 : index
    %c0_13 = arith.constant 0 : index
    %15 = vector.load %arg4[%c0_10, %c0_11, %c0_12, %c0_13] : memref<1x4x4x16xbf16, #tpu.memory_space<vmem>>, vector<1x4x4x16xbf16>
    %16 = vector.shape_cast %15 : vector<1x4x4x16xbf16> to vector<4x4x16xbf16>
    %17 = vector.shape_cast %14 : vector<4x4x16xbf16> to vector<1x4x4x16xbf16>
    tpu.vector_store %arg4[%c0_10, %c0_11, %c0_12, %c0_13], %17 {strides = array<i32>} : memref<1x4x4x16xbf16, #tpu.memory_space<vmem>>, vector<1x4x4x16xbf16>,
    return
  }
  func.func @transform_0(%arg0: i32) -> (i32, i32, i32, i32) {
    %c0_i32 = arith.constant 0 : i32
    %c0_i32_0 = arith.constant 0 : i32
    %c0_i32_1 = arith.constant 0 : i32
    %c0_i32_2 = arith.constant 0 : i32
    return %arg0, %c0_i32, %c0_i32_0, %c0_i32_1 : i32, i32, i32, i32
  }
  func.func @transform_1(%arg0: i32) -> (i32, i32, i32) {
    %c0_i32 = arith.constant 0 : i32
    %c0_i32_0 = arith.constant 0 : i32
    %c0_i32_1 = arith.constant 0 : i32
    %c0_i32_2 = arith.constant 0 : i32
    return %c0_i32, %c0_i32_0, %c0_i32_1 : i32, i32, i32
  }
  func.func @transform_2(%arg0: i32) -> (i32, i32) {
    %c0_i32 = arith.constant 0 : i32
    %c0_i32_0 = arith.constant 0 : i32
    %c0_i32_1 = arith.constant 0 : i32
    return %c0_i32, %c0_i32_0 : i32, i32
  }
  func.func @transform_3(%arg0: i32) -> (i32, i32, i32, i32) {
    %c0_i32 = arith.constant 0 : i32
    %c0_i32_0 = arith.constant 0 : i32
    %c0_i32_1 = arith.constant 0 : i32
    %c0_i32_2 = arith.constant 0 : i32
    return %arg0, %c0_i32, %c0_i32_0, %c0_i32_1 : i32, i32, i32, i32
  }
}

module attributes {stable_mosaic.version = 11 : i64} {
  func.func @_conv_kernel(%arg0: i32, %arg1: memref<1x4x4x32xbf16, #tpu.memory_space<vmem>>, %arg2: memref<1x32x32xbf16, #tpu.memory_space<vmem>>, %arg3: memref<1x32xf32, #tpu.memory_space<vmem>>, %arg4: memref<1x4x4x32xbf16, #tpu.memory_space<vmem>>) attributes {dimension_semantics = [#tpu.dimension_semantics<parallel>], iteration_bounds = array<i64: 2>, scalar_prefetch = 0 : i64, scratch_operands = 0 : i64, tpu.core_type = #tpu.core_type<tc>, window_params = [{transform_indices = @transform_0, window_bounds = array<i64: 1, 4, 4, 32>}, {pipeline_mode = #tpu.pipeline_mode<synchronous>, transform_indices = @transform_1, window_bounds = array<i64: 1, 32, 32>}, {pipeline_mode = #tpu.pipeline_mode<synchronous>, transform_indices = @transform_2, window_bounds = array<i64: 1, 32>}, {transform_indices = @transform_3, window_bounds = array<i64: 1, 4, 4, 32>}]} {
    %c0 = arith.constant 0 : index
    %c0_0 = arith.constant 0 : index
    %c0_1 = arith.constant 0 : index
    %c0_2 = arith.constant 0 : index
    %0 = vector.load %arg1[%c0, %c0_0, %c0_1, %c0_2] : memref<1x4x4x32xbf16, #tpu.memory_space<vmem>>, vector<1x4x4x32xbf16>
    %1 = vector.shape_cast %0 : vector<1x4x4x32xbf16> to vector<4x4x32xbf16>
    %cst = arith.constant 0.000000e+00 : f32
    %2 = vector.broadcast %cst : f32 to vector<16x32xf32>
    %3 = vector.shape_cast %1 : vector<4x4x32xbf16> to vector<16x32xbf16>
    %c0_3 = arith.constant 0 : index
    %c0_4 = arith.constant 0 : index
    %c0_5 = arith.constant 0 : index
    %4 = vector.load %arg2[%c0_3, %c0_4, %c0_5] : memref<1x32x32xbf16, #tpu.memory_space<vmem>>, vector<1x32x32xbf16>
    %5 = vector.shape_cast %4 : vector<1x32x32xbf16> to vector<32x32xbf16>
    %cst_6 = arith.constant dense<0.000000e+00> : vector<16x32xf32>
    %6 = tpu.matmul %3, %5, %cst_6 {dimension_numbers = #tpu.dot_dimension_numbers<[1], [0], [0], [1], [0, 0, 1, 1], [], []>} : vector<16x32xbf16>, vector<32x32xbf16>, vector<16x32xf32> -> vector<16x32xf32>
    %7 = arith.addf %2, %6 : vector<16x32xf32>
    %c0_7 = arith.constant 0 : index
    %c0_8 = arith.constant 0 : index
    %8 = vector.load %arg3[%c0_7, %c0_8] : memref<1x32xf32, #tpu.memory_space<vmem>>, vector<1x32xf32>
    %9 = vector.broadcast %8 : vector<1x32xf32> to vector<16x32xf32>
    %10 = arith.addf %7, %9 : vector<16x32xf32>
    %11 = vector.shape_cast %10 : vector<16x32xf32> to vector<4x4x32xf32>
    %12 = arith.truncf %11 : vector<4x4x32xf32> to vector<4x4x32xbf16>
    %c0_9 = arith.constant 0 : index
    %c0_10 = arith.constant 0 : index
    %c0_11 = arith.constant 0 : index
    %c0_12 = arith.constant 0 : index
    %13 = vector.load %arg4[%c0_9, %c0_10, %c0_11, %c0_12] : memref<1x4x4x32xbf16, #tpu.memory_space<vmem>>, vector<1x4x4x32xbf16>
    %14 = vector.shape_cast %13 : vector<1x4x4x32xbf16> to vector<4x4x32xbf16>
    %15 = vector.shape_cast %12 : vector<4x4x32xbf16> to vector<1x4x4x32xbf16>
    tpu.vector_store %arg4[%c0_9, %c0_10, %c0_11, %c0_12], %15 {strides = array<i32>} : memref<1x4x4x32xbf16, #tpu.memory_space<vmem>>, vector<1x4x4x32xbf16>,
    return
  }
  func.func @transform_0(%arg0: i32) -> (i32, i32, i32, i32) {
    %c0_i32 = arith.constant 0 : i32
    %c0_i32_0 = arith.constant 0 : i32
    %c0_i32_1 = arith.constant 0 : i32
    %c0_i32_2 = arith.constant 0 : i32
    return %arg0, %c0_i32, %c0_i32_0, %c0_i32_1 : i32, i32, i32, i32
  }
  func.func @transform_1(%arg0: i32) -> (i32, i32, i32) {
    %c0_i32 = arith.constant 0 : i32
    %c0_i32_0 = arith.constant 0 : i32
    %c0_i32_1 = arith.constant 0 : i32
    %c0_i32_2 = arith.constant 0 : i32
    return %c0_i32, %c0_i32_0, %c0_i32_1 : i32, i32, i32
  }
  func.func @transform_2(%arg0: i32) -> (i32, i32) {
    %c0_i32 = arith.constant 0 : i32
    %c0_i32_0 = arith.constant 0 : i32
    %c0_i32_1 = arith.constant 0 : i32
    return %c0_i32, %c0_i32_0 : i32, i32
  }
  func.func @transform_3(%arg0: i32) -> (i32, i32, i32, i32) {
    %c0_i32 = arith.constant 0 : i32
    %c0_i32_0 = arith.constant 0 : i32
    %c0_i32_1 = arith.constant 0 : i32
    %c0_i32_2 = arith.constant 0 : i32
    return %arg0, %c0_i32, %c0_i32_0, %c0_i32_1 : i32, i32, i32, i32
  }
}

module attributes {stable_mosaic.version = 11 : i64} {
  func.func @_attn_kernel(%arg0: i32, %arg1: memref<2x16x16xbf16, #tpu.memory_space<vmem>>, %arg2: memref<2x16x32xbf16, #tpu.memory_space<vmem>>, %arg3: memref<32x32xbf16, #tpu.memory_space<vmem>>, %arg4: memref<1x32xf32, #tpu.memory_space<vmem>>, %arg5: memref<2x16x32xbf16, #tpu.memory_space<vmem>>) attributes {dimension_semantics = [#tpu.dimension_semantics<arbitrary>], iteration_bounds = array<i64: 1>, scalar_prefetch = 0 : i64, scratch_operands = 0 : i64, tpu.core_type = #tpu.core_type<tc>, window_params = [{pipeline_mode = #tpu.pipeline_mode<synchronous>, transform_indices = @transform_0, window_bounds = array<i64: 2, 16, 16>}, {pipeline_mode = #tpu.pipeline_mode<synchronous>, transform_indices = @transform_1, window_bounds = array<i64: 2, 16, 32>}, {pipeline_mode = #tpu.pipeline_mode<synchronous>, transform_indices = @transform_2, window_bounds = array<i64: 32, 32>}, {pipeline_mode = #tpu.pipeline_mode<synchronous>, transform_indices = @transform_3, window_bounds = array<i64: 1, 32>}, {pipeline_mode = #tpu.pipeline_mode<synchronous>, transform_indices = @transform_4, window_bounds = array<i64: 2, 16, 32>}]} {
    %c0 = arith.constant 0 : index
    %c0_0 = arith.constant 0 : index
    %c0_1 = arith.constant 0 : index
    %0 = vector.load %arg1[%c0, %c0_0, %c0_1] : memref<2x16x16xbf16, #tpu.memory_space<vmem>>, vector<2x16x16xbf16>
    "tpu.trace_start"() <{level = 10 : i32, message = "bqd,bkd->bqk"}> : () -> ()
    %cst = arith.constant dense<0.000000e+00> : vector<2x16x16xf32>
    %1 = tpu.matmul %0, %0, %cst {dimension_numbers = #tpu.dot_dimension_numbers<[2], [2], [1], [1], [0, 0, 0, 1, 1, 1], [0], [0]>} : vector<2x16x16xbf16>, vector<2x16x16xbf16>, vector<2x16x16xf32> -> vector<2x16x16xf32>
    "tpu.trace_stop"() : () -> ()
    %cst_2 = arith.constant 2.500000e-01 : f32
    %2 = vector.broadcast %cst_2 : f32 to vector<2x16x16xf32>
    %3 = arith.mulf %1, %2 : vector<2x16x16xf32>
    %cst_3 = arith.constant dense<0xFF800000> : vector<2x16xf32>
    %4 = vector.multi_reduction <maximumf>, %3, %cst_3 [2] : vector<2x16x16xf32> to vector<2x16xf32>
    %5 = vector.shape_cast %4 : vector<2x16xf32> to vector<2x16x1xf32>
    %6 = vector.broadcast %5 : vector<2x16x1xf32> to vector<2x16x16xf32>
    %7 = arith.subf %3, %6 : vector<2x16x16xf32>
    %8 = math.exp %7 : vector<2x16x16xf32>
    %cst_4 = arith.constant dense<0.000000e+00> : vector<2x16xf32>
    %9 = vector.multi_reduction <add>, %8, %cst_4 [2] : vector<2x16x16xf32> to vector<2x16xf32>
    %10 = vector.shape_cast %9 : vector<2x16xf32> to vector<2x16x1xf32>
    %11 = tpu.reciprocal %10 {approx = true} : vector<2x16x1xf32> -> vector<2x16x1xf32>
    %12 = vector.broadcast %11 : vector<2x16x1xf32> to vector<2x16x16xf32>
    %13 = arith.mulf %8, %12 : vector<2x16x16xf32>
    %14 = arith.truncf %13 : vector<2x16x16xf32> to vector<2x16x16xbf16>
    %c0_5 = arith.constant 0 : index
    %c0_6 = arith.constant 0 : index
    %c0_7 = arith.constant 0 : index
    %15 = vector.load %arg2[%c0_5, %c0_6, %c0_7] : memref<2x16x32xbf16, #tpu.memory_space<vmem>>, vector<2x16x32xbf16>
    "tpu.trace_start"() <{level = 10 : i32, message = "bqk,bkd->bqd"}> : () -> ()
    %cst_8 = arith.constant dense<0.000000e+00> : vector<2x16x32xf32>
    %16 = tpu.matmul %14, %15, %cst_8 {dimension_numbers = #tpu.dot_dimension_numbers<[2], [1], [1], [2], [0, 0, 0, 1, 1, 2], [0], [0]>} : vector<2x16x16xbf16>, vector<2x16x32xbf16>, vector<2x16x32xf32> -> vector<2x16x32xf32>
    "tpu.trace_stop"() : () -> ()
    %17 = vector.shape_cast %16 : vector<2x16x32xf32> to vector<32x32xf32>
    %18 = arith.truncf %17 : vector<32x32xf32> to vector<32x32xbf16>
    %c0_9 = arith.constant 0 : index
    %c0_10 = arith.constant 0 : index
    %19 = vector.load %arg3[%c0_9, %c0_10] : memref<32x32xbf16, #tpu.memory_space<vmem>>, vector<32x32xbf16>
    %cst_11 = arith.constant dense<0.000000e+00> : vector<32x32xf32>
    %20 = tpu.matmul %18, %19, %cst_11 {dimension_numbers = #tpu.dot_dimension_numbers<[1], [0], [0], [1], [0, 0, 1, 1], [], []>} : vector<32x32xbf16>, vector<32x32xbf16>, vector<32x32xf32> -> vector<32x32xf32>
    %c0_12 = arith.constant 0 : index
    %c0_13 = arith.constant 0 : index
    %21 = vector.load %arg4[%c0_12, %c0_13] : memref<1x32xf32, #tpu.memory_space<vmem>>, vector<1x32xf32>
    %22 = vector.broadcast %21 : vector<1x32xf32> to vector<32x32xf32>
    %23 = arith.addf %20, %22 : vector<32x32xf32>
    %24 = vector.shape_cast %23 : vector<32x32xf32> to vector<2x16x32xf32>
    %25 = arith.truncf %24 : vector<2x16x32xf32> to vector<2x16x32xbf16>
    %c0_14 = arith.constant 0 : index
    %c0_15 = arith.constant 0 : index
    %c0_16 = arith.constant 0 : index
    %26 = vector.load %arg5[%c0_14, %c0_15, %c0_16] : memref<2x16x32xbf16, #tpu.memory_space<vmem>>, vector<2x16x32xbf16>
    tpu.vector_store %arg5[%c0_14, %c0_15, %c0_16], %25 {strides = array<i32>} : memref<2x16x32xbf16, #tpu.memory_space<vmem>>, vector<2x16x32xbf16>,
    return
  }
  func.func @transform_0(%arg0: i32) -> (i32, i32, i32) {
    %c0_i32 = arith.constant 0 : i32
    %c0_i32_0 = arith.constant 0 : i32
    %c0_i32_1 = arith.constant 0 : i32
    %c0_i32_2 = arith.constant 0 : i32
    return %c0_i32, %c0_i32_0, %c0_i32_1 : i32, i32, i32
  }
  func.func @transform_1(%arg0: i32) -> (i32, i32, i32) {
    %c0_i32 = arith.constant 0 : i32
    %c0_i32_0 = arith.constant 0 : i32
    %c0_i32_1 = arith.constant 0 : i32
    %c0_i32_2 = arith.constant 0 : i32
    return %c0_i32, %c0_i32_0, %c0_i32_1 : i32, i32, i32
  }
  func.func @transform_2(%arg0: i32) -> (i32, i32) {
    %c0_i32 = arith.constant 0 : i32
    %c0_i32_0 = arith.constant 0 : i32
    %c0_i32_1 = arith.constant 0 : i32
    return %c0_i32, %c0_i32_0 : i32, i32
  }
  func.func @transform_3(%arg0: i32) -> (i32, i32) {
    %c0_i32 = arith.constant 0 : i32
    %c0_i32_0 = arith.constant 0 : i32
    %c0_i32_1 = arith.constant 0 : i32
    return %c0_i32, %c0_i32_0 : i32, i32
  }
  func.func @transform_4(%arg0: i32) -> (i32, i32, i32) {
    %c0_i32 = arith.constant 0 : i32
    %c0_i32_0 = arith.constant 0 : i32
    %c0_i32_1 = arith.constant 0 : i32
    %c0_i32_2 = arith.constant 0 : i32
    return %c0_i32, %c0_i32_0, %c0_i32_1 : i32, i32, i32
  }
}

module attributes {stable_mosaic.version = 11 : i64} {
  func.func @_resize_mm_kernel(%arg0: i32, %arg1: memref<64x16xbf16, #tpu.memory_space<vmem>>, %arg2: memref<16x64xbf16, #tpu.memory_space<vmem>>, %arg3: memref<64x64xbf16, #tpu.memory_space<vmem>>) attributes {dimension_semantics = [#tpu.dimension_semantics<parallel>], iteration_bounds = array<i64: 1>, scalar_prefetch = 0 : i64, scratch_operands = 0 : i64, tpu.core_type = #tpu.core_type<tc>, window_params = [{pipeline_mode = #tpu.pipeline_mode<synchronous>, transform_indices = @transform_0, window_bounds = array<i64: 64, 16>}, {transform_indices = @transform_1, window_bounds = array<i64: 16, 64>}, {transform_indices = @transform_2, window_bounds = array<i64: 64, 64>}]} {
    %c0 = arith.constant 0 : index
    %c0_0 = arith.constant 0 : index
    %0 = vector.load %arg1[%c0, %c0_0] : memref<64x16xbf16, #tpu.memory_space<vmem>>, vector<64x16xbf16>
    %c0_1 = arith.constant 0 : index
    %c0_2 = arith.constant 0 : index
    %1 = vector.load %arg2[%c0_1, %c0_2] : memref<16x64xbf16, #tpu.memory_space<vmem>>, vector<16x64xbf16>
    %cst = arith.constant dense<0.000000e+00> : vector<64x64xf32>
    %2 = tpu.matmul %0, %1, %cst {dimension_numbers = #tpu.dot_dimension_numbers<[1], [0], [0], [1], [0, 0, 1, 1], [], []>} : vector<64x16xbf16>, vector<16x64xbf16>, vector<64x64xf32> -> vector<64x64xf32>
    %3 = arith.truncf %2 : vector<64x64xf32> to vector<64x64xbf16>
    %c0_3 = arith.constant 0 : index
    %c0_4 = arith.constant 0 : index
    %4 = vector.load %arg3[%c0_3, %c0_4] : memref<64x64xbf16, #tpu.memory_space<vmem>>, vector<64x64xbf16>
    tpu.vector_store %arg3[%c0_3, %c0_4], %3 {strides = array<i32>} : memref<64x64xbf16, #tpu.memory_space<vmem>>, vector<64x64xbf16>,
    return
  }
  func.func @transform_0(%arg0: i32) -> (i32, i32) {
    %c0_i32 = arith.constant 0 : i32
    %c0_i32_0 = arith.constant 0 : i32
    %c0_i32_1 = arith.constant 0 : i32
    return %c0_i32, %c0_i32_0 : i32, i32
  }
  func.func @transform_1(%arg0: i32) -> (i32, i32) {
    %c0_i32 = arith.constant 0 : i32
    %c0_i32_0 = arith.constant 0 : i32
    return %c0_i32, %arg0 : i32, i32
  }
  func.func @transform_2(%arg0: i32) -> (i32, i32) {
    %c0_i32 = arith.constant 0 : i32
    %c0_i32_0 = arith.constant 0 : i32
    return %c0_i32, %arg0 : i32, i32
  }
}

module attributes {stable_mosaic.version = 11 : i64} {
  func.func @_conv_kernel(%arg0: i32, %arg1: memref<1x8x8x32xbf16, #tpu.memory_space<vmem>>, %arg2: memref<1x32x32xbf16, #tpu.memory_space<vmem>>, %arg3: memref<1x32xf32, #tpu.memory_space<vmem>>, %arg4: memref<1x8x8x32xbf16, #tpu.memory_space<vmem>>) attributes {dimension_semantics = [#tpu.dimension_semantics<parallel>], iteration_bounds = array<i64: 2>, scalar_prefetch = 0 : i64, scratch_operands = 0 : i64, tpu.core_type = #tpu.core_type<tc>, window_params = [{transform_indices = @transform_0, window_bounds = array<i64: 1, 8, 8, 32>}, {pipeline_mode = #tpu.pipeline_mode<synchronous>, transform_indices = @transform_1, window_bounds = array<i64: 1, 32, 32>}, {pipeline_mode = #tpu.pipeline_mode<synchronous>, transform_indices = @transform_2, window_bounds = array<i64: 1, 32>}, {transform_indices = @transform_3, window_bounds = array<i64: 1, 8, 8, 32>}]} {
    %c0 = arith.constant 0 : index
    %c0_0 = arith.constant 0 : index
    %c0_1 = arith.constant 0 : index
    %c0_2 = arith.constant 0 : index
    %0 = vector.load %arg1[%c0, %c0_0, %c0_1, %c0_2] : memref<1x8x8x32xbf16, #tpu.memory_space<vmem>>, vector<1x8x8x32xbf16>
    %1 = vector.shape_cast %0 : vector<1x8x8x32xbf16> to vector<8x8x32xbf16>
    %cst = arith.constant 0.000000e+00 : f32
    %2 = vector.broadcast %cst : f32 to vector<64x32xf32>
    %3 = vector.shape_cast %1 : vector<8x8x32xbf16> to vector<64x32xbf16>
    %c0_3 = arith.constant 0 : index
    %c0_4 = arith.constant 0 : index
    %c0_5 = arith.constant 0 : index
    %4 = vector.load %arg2[%c0_3, %c0_4, %c0_5] : memref<1x32x32xbf16, #tpu.memory_space<vmem>>, vector<1x32x32xbf16>
    %5 = vector.shape_cast %4 : vector<1x32x32xbf16> to vector<32x32xbf16>
    %cst_6 = arith.constant dense<0.000000e+00> : vector<64x32xf32>
    %6 = tpu.matmul %3, %5, %cst_6 {dimension_numbers = #tpu.dot_dimension_numbers<[1], [0], [0], [1], [0, 0, 1, 1], [], []>} : vector<64x32xbf16>, vector<32x32xbf16>, vector<64x32xf32> -> vector<64x32xf32>
    %7 = arith.addf %2, %6 : vector<64x32xf32>
    %c0_7 = arith.constant 0 : index
    %c0_8 = arith.constant 0 : index
    %8 = vector.load %arg3[%c0_7, %c0_8] : memref<1x32xf32, #tpu.memory_space<vmem>>, vector<1x32xf32>
    %9 = vector.broadcast %8 : vector<1x32xf32> to vector<64x32xf32>
    %10 = arith.addf %7, %9 : vector<64x32xf32>
    %cst_9 = arith.constant 0.000000e+00 : f32
    %11 = vector.broadcast %cst_9 : f32 to vector<64x32xf32>
    %12 = arith.maximumf %10, %11 : vector<64x32xf32>
    %13 = vector.shape_cast %12 : vector<64x32xf32> to vector<8x8x32xf32>
    %14 = arith.truncf %13 : vector<8x8x32xf32> to vector<8x8x32xbf16>
    %c0_10 = arith.constant 0 : index
    %c0_11 = arith.constant 0 : index
    %c0_12 = arith.constant 0 : index
    %c0_13 = arith.constant 0 : index
    %15 = vector.load %arg4[%c0_10, %c0_11, %c0_12, %c0_13] : memref<1x8x8x32xbf16, #tpu.memory_space<vmem>>, vector<1x8x8x32xbf16>
    %16 = vector.shape_cast %15 : vector<1x8x8x32xbf16> to vector<8x8x32xbf16>
    %17 = vector.shape_cast %14 : vector<8x8x32xbf16> to vector<1x8x8x32xbf16>
    tpu.vector_store %arg4[%c0_10, %c0_11, %c0_12, %c0_13], %17 {strides = array<i32>} : memref<1x8x8x32xbf16, #tpu.memory_space<vmem>>, vector<1x8x8x32xbf16>,
    return
  }
  func.func @transform_0(%arg0: i32) -> (i32, i32, i32, i32) {
    %c0_i32 = arith.constant 0 : i32
    %c0_i32_0 = arith.constant 0 : i32
    %c0_i32_1 = arith.constant 0 : i32
    %c0_i32_2 = arith.constant 0 : i32
    return %arg0, %c0_i32, %c0_i32_0, %c0_i32_1 : i32, i32, i32, i32
  }
  func.func @transform_1(%arg0: i32) -> (i32, i32, i32) {
    %c0_i32 = arith.constant 0 : i32
    %c0_i32_0 = arith.constant 0 : i32
    %c0_i32_1 = arith.constant 0 : i32
    %c0_i32_2 = arith.constant 0 : i32
    return %c0_i32, %c0_i32_0, %c0_i32_1 : i32, i32, i32
  }
  func.func @transform_2(%arg0: i32) -> (i32, i32) {
    %c0_i32 = arith.constant 0 : i32
    %c0_i32_0 = arith.constant 0 : i32
    %c0_i32_1 = arith.constant 0 : i32
    return %c0_i32, %c0_i32_0 : i32, i32
  }
  func.func @transform_3(%arg0: i32) -> (i32, i32, i32, i32) {
    %c0_i32 = arith.constant 0 : i32
    %c0_i32_0 = arith.constant 0 : i32
    %c0_i32_1 = arith.constant 0 : i32
    %c0_i32_2 = arith.constant 0 : i32
    return %arg0, %c0_i32, %c0_i32_0, %c0_i32_1 : i32, i32, i32, i32
  }
}

module attributes {stable_mosaic.version = 11 : i64} {
  func.func @_conv_kernel(%arg0: i32, %arg1: memref<1x8x8x64xbf16, #tpu.memory_space<vmem>>, %arg2: memref<1x64x128xbf16, #tpu.memory_space<vmem>>, %arg3: memref<1x128xf32, #tpu.memory_space<vmem>>, %arg4: memref<1x8x8x128xbf16, #tpu.memory_space<vmem>>) attributes {dimension_semantics = [#tpu.dimension_semantics<parallel>], iteration_bounds = array<i64: 2>, scalar_prefetch = 0 : i64, scratch_operands = 0 : i64, tpu.core_type = #tpu.core_type<tc>, window_params = [{transform_indices = @transform_0, window_bounds = array<i64: 1, 8, 8, 64>}, {pipeline_mode = #tpu.pipeline_mode<synchronous>, transform_indices = @transform_1, window_bounds = array<i64: 1, 64, 128>}, {pipeline_mode = #tpu.pipeline_mode<synchronous>, transform_indices = @transform_2, window_bounds = array<i64: 1, 128>}, {transform_indices = @transform_3, window_bounds = array<i64: 1, 8, 8, 128>}]} {
    %c0 = arith.constant 0 : index
    %c0_0 = arith.constant 0 : index
    %c0_1 = arith.constant 0 : index
    %c0_2 = arith.constant 0 : index
    %0 = vector.load %arg1[%c0, %c0_0, %c0_1, %c0_2] : memref<1x8x8x64xbf16, #tpu.memory_space<vmem>>, vector<1x8x8x64xbf16>
    %1 = vector.shape_cast %0 : vector<1x8x8x64xbf16> to vector<8x8x64xbf16>
    %cst = arith.constant 0.000000e+00 : f32
    %2 = vector.broadcast %cst : f32 to vector<64x128xf32>
    %3 = vector.shape_cast %1 : vector<8x8x64xbf16> to vector<64x64xbf16>
    %c0_3 = arith.constant 0 : index
    %c0_4 = arith.constant 0 : index
    %c0_5 = arith.constant 0 : index
    %4 = vector.load %arg2[%c0_3, %c0_4, %c0_5] : memref<1x64x128xbf16, #tpu.memory_space<vmem>>, vector<1x64x128xbf16>
    %5 = vector.shape_cast %4 : vector<1x64x128xbf16> to vector<64x128xbf16>
    %cst_6 = arith.constant dense<0.000000e+00> : vector<64x128xf32>
    %6 = tpu.matmul %3, %5, %cst_6 {dimension_numbers = #tpu.dot_dimension_numbers<[1], [0], [0], [1], [0, 0, 1, 1], [], []>} : vector<64x64xbf16>, vector<64x128xbf16>, vector<64x128xf32> -> vector<64x128xf32>
    %7 = arith.addf %2, %6 : vector<64x128xf32>
    %c0_7 = arith.constant 0 : index
    %c0_8 = arith.constant 0 : index
    %8 = vector.load %arg3[%c0_7, %c0_8] : memref<1x128xf32, #tpu.memory_space<vmem>>, vector<1x128xf32>
    %9 = vector.broadcast %8 : vector<1x128xf32> to vector<64x128xf32>
    %10 = arith.addf %7, %9 : vector<64x128xf32>
    %cst_9 = arith.constant 0.000000e+00 : f32
    %11 = vector.broadcast %cst_9 : f32 to vector<64x128xf32>
    %12 = arith.maximumf %10, %11 : vector<64x128xf32>
    %13 = vector.shape_cast %12 : vector<64x128xf32> to vector<8x8x128xf32>
    %14 = arith.truncf %13 : vector<8x8x128xf32> to vector<8x8x128xbf16>
    %c0_10 = arith.constant 0 : index
    %c0_11 = arith.constant 0 : index
    %c0_12 = arith.constant 0 : index
    %c0_13 = arith.constant 0 : index
    %15 = vector.load %arg4[%c0_10, %c0_11, %c0_12, %c0_13] : memref<1x8x8x128xbf16, #tpu.memory_space<vmem>>, vector<1x8x8x128xbf16>
    %16 = vector.shape_cast %15 : vector<1x8x8x128xbf16> to vector<8x8x128xbf16>
    %17 = vector.shape_cast %14 : vector<8x8x128xbf16> to vector<1x8x8x128xbf16>
    tpu.vector_store %arg4[%c0_10, %c0_11, %c0_12, %c0_13], %17 {strides = array<i32>} : memref<1x8x8x128xbf16, #tpu.memory_space<vmem>>, vector<1x8x8x128xbf16>,
    return
  }
  func.func @transform_0(%arg0: i32) -> (i32, i32, i32, i32) {
    %c0_i32 = arith.constant 0 : i32
    %c0_i32_0 = arith.constant 0 : i32
    %c0_i32_1 = arith.constant 0 : i32
    %c0_i32_2 = arith.constant 0 : i32
    return %arg0, %c0_i32, %c0_i32_0, %c0_i32_1 : i32, i32, i32, i32
  }
  func.func @transform_1(%arg0: i32) -> (i32, i32, i32) {
    %c0_i32 = arith.constant 0 : i32
    %c0_i32_0 = arith.constant 0 : i32
    %c0_i32_1 = arith.constant 0 : i32
    %c0_i32_2 = arith.constant 0 : i32
    return %c0_i32, %c0_i32_0, %c0_i32_1 : i32, i32, i32
  }
  func.func @transform_2(%arg0: i32) -> (i32, i32) {
    %c0_i32 = arith.constant 0 : i32
    %c0_i32_0 = arith.constant 0 : i32
    %c0_i32_1 = arith.constant 0 : i32
    return %c0_i32, %c0_i32_0 : i32, i32
  }
  func.func @transform_3(%arg0: i32) -> (i32, i32, i32, i32) {
    %c0_i32 = arith.constant 0 : i32
    %c0_i32_0 = arith.constant 0 : i32
    %c0_i32_1 = arith.constant 0 : i32
    %c0_i32_2 = arith.constant 0 : i32
    return %arg0, %c0_i32, %c0_i32_0, %c0_i32_1 : i32, i32, i32, i32
  }
}

module attributes {stable_mosaic.version = 11 : i64} {
  func.func @_conv_kernel(%arg0: i32, %arg1: memref<1x8x8x160xbf16, #tpu.memory_space<vmem>>, %arg2: memref<1x160x64xbf16, #tpu.memory_space<vmem>>, %arg3: memref<1x64xf32, #tpu.memory_space<vmem>>, %arg4: memref<64x5xbf16, #tpu.memory_space<vmem>>, %arg5: memref<1x5xf32, #tpu.memory_space<vmem>>, %arg6: memref<1x8x8x5xbf16, #tpu.memory_space<vmem>>) attributes {dimension_semantics = [#tpu.dimension_semantics<parallel>], iteration_bounds = array<i64: 2>, scalar_prefetch = 0 : i64, scratch_operands = 0 : i64, tpu.core_type = #tpu.core_type<tc>, window_params = [{transform_indices = @transform_0, window_bounds = array<i64: 1, 8, 8, 160>}, {pipeline_mode = #tpu.pipeline_mode<synchronous>, transform_indices = @transform_1, window_bounds = array<i64: 1, 160, 64>}, {pipeline_mode = #tpu.pipeline_mode<synchronous>, transform_indices = @transform_2, window_bounds = array<i64: 1, 64>}, {pipeline_mode = #tpu.pipeline_mode<synchronous>, transform_indices = @transform_3, window_bounds = array<i64: 64, 5>}, {pipeline_mode = #tpu.pipeline_mode<synchronous>, transform_indices = @transform_4, window_bounds = array<i64: 1, 5>}, {transform_indices = @transform_5, window_bounds = array<i64: 1, 8, 8, 5>}]} {
    %c0 = arith.constant 0 : index
    %c0_0 = arith.constant 0 : index
    %c0_1 = arith.constant 0 : index
    %c0_2 = arith.constant 0 : index
    %0 = vector.load %arg1[%c0, %c0_0, %c0_1, %c0_2] : memref<1x8x8x160xbf16, #tpu.memory_space<vmem>>, vector<1x8x8x160xbf16>
    %1 = vector.shape_cast %0 : vector<1x8x8x160xbf16> to vector<8x8x160xbf16>
    %cst = arith.constant 0.000000e+00 : f32
    %2 = vector.broadcast %cst : f32 to vector<64x64xf32>
    %3 = vector.shape_cast %1 : vector<8x8x160xbf16> to vector<64x160xbf16>
    %c0_3 = arith.constant 0 : index
    %c0_4 = arith.constant 0 : index
    %c0_5 = arith.constant 0 : index
    %4 = vector.load %arg2[%c0_3, %c0_4, %c0_5] : memref<1x160x64xbf16, #tpu.memory_space<vmem>>, vector<1x160x64xbf16>
    %5 = vector.shape_cast %4 : vector<1x160x64xbf16> to vector<160x64xbf16>
    %cst_6 = arith.constant dense<0.000000e+00> : vector<64x64xf32>
    %6 = tpu.matmul %3, %5, %cst_6 {dimension_numbers = #tpu.dot_dimension_numbers<[1], [0], [0], [1], [0, 0, 1, 1], [], []>} : vector<64x160xbf16>, vector<160x64xbf16>, vector<64x64xf32> -> vector<64x64xf32>
    %7 = arith.addf %2, %6 : vector<64x64xf32>
    %c0_7 = arith.constant 0 : index
    %c0_8 = arith.constant 0 : index
    %8 = vector.load %arg3[%c0_7, %c0_8] : memref<1x64xf32, #tpu.memory_space<vmem>>, vector<1x64xf32>
    %9 = vector.broadcast %8 : vector<1x64xf32> to vector<64x64xf32>
    %10 = arith.addf %7, %9 : vector<64x64xf32>
    %cst_9 = arith.constant 0.000000e+00 : f32
    %11 = vector.broadcast %cst_9 : f32 to vector<64x64xf32>
    %12 = arith.maximumf %10, %11 : vector<64x64xf32>
    %13 = arith.truncf %12 : vector<64x64xf32> to vector<64x64xbf16>
    %c0_10 = arith.constant 0 : index
    %c0_11 = arith.constant 0 : index
    %14 = vector.load %arg4[%c0_10, %c0_11] : memref<64x5xbf16, #tpu.memory_space<vmem>>, vector<64x5xbf16>
    %cst_12 = arith.constant dense<0.000000e+00> : vector<64x5xf32>
    %15 = tpu.matmul %13, %14, %cst_12 {dimension_numbers = #tpu.dot_dimension_numbers<[1], [0], [0], [1], [0, 0, 1, 1], [], []>} : vector<64x64xbf16>, vector<64x5xbf16>, vector<64x5xf32> -> vector<64x5xf32>
    %c0_13 = arith.constant 0 : index
    %c0_14 = arith.constant 0 : index
    %16 = vector.load %arg5[%c0_13, %c0_14] : memref<1x5xf32, #tpu.memory_space<vmem>>, vector<1x5xf32>
    %17 = vector.broadcast %16 : vector<1x5xf32> to vector<64x5xf32>
    %18 = arith.addf %15, %17 : vector<64x5xf32>
    %19 = vector.shape_cast %18 : vector<64x5xf32> to vector<8x8x5xf32>
    %20 = arith.truncf %19 : vector<8x8x5xf32> to vector<8x8x5xbf16>
    %c0_15 = arith.constant 0 : index
    %c0_16 = arith.constant 0 : index
    %c0_17 = arith.constant 0 : index
    %c0_18 = arith.constant 0 : index
    %21 = vector.load %arg6[%c0_15, %c0_16, %c0_17, %c0_18] : memref<1x8x8x5xbf16, #tpu.memory_space<vmem>>, vector<1x8x8x5xbf16>
    %22 = vector.shape_cast %21 : vector<1x8x8x5xbf16> to vector<8x8x5xbf16>
    %23 = vector.shape_cast %20 : vector<8x8x5xbf16> to vector<1x8x8x5xbf16>
    tpu.vector_store %arg6[%c0_15, %c0_16, %c0_17, %c0_18], %23 {strides = array<i32>} : memref<1x8x8x5xbf16, #tpu.memory_space<vmem>>, vector<1x8x8x5xbf16>,
    return
  }
  func.func @transform_0(%arg0: i32) -> (i32, i32, i32, i32) {
    %c0_i32 = arith.constant 0 : i32
    %c0_i32_0 = arith.constant 0 : i32
    %c0_i32_1 = arith.constant 0 : i32
    %c0_i32_2 = arith.constant 0 : i32
    return %arg0, %c0_i32, %c0_i32_0, %c0_i32_1 : i32, i32, i32, i32
  }
  func.func @transform_1(%arg0: i32) -> (i32, i32, i32) {
    %c0_i32 = arith.constant 0 : i32
    %c0_i32_0 = arith.constant 0 : i32
    %c0_i32_1 = arith.constant 0 : i32
    %c0_i32_2 = arith.constant 0 : i32
    return %c0_i32, %c0_i32_0, %c0_i32_1 : i32, i32, i32
  }
  func.func @transform_2(%arg0: i32) -> (i32, i32) {
    %c0_i32 = arith.constant 0 : i32
    %c0_i32_0 = arith.constant 0 : i32
    %c0_i32_1 = arith.constant 0 : i32
    return %c0_i32, %c0_i32_0 : i32, i32
  }
  func.func @transform_3(%arg0: i32) -> (i32, i32) {
    %c0_i32 = arith.constant 0 : i32
    %c0_i32_0 = arith.constant 0 : i32
    %c0_i32_1 = arith.constant 0 : i32
    return %c0_i32, %c0_i32_0 : i32, i32
  }
  func.func @transform_4(%arg0: i32) -> (i32, i32) {
    %c0_i32 = arith.constant 0 : i32
    %c0_i32_0 = arith.constant 0 : i32
    %c0_i32_1 = arith.constant 0 : i32
    return %c0_i32, %c0_i32_0 : i32, i32
  }
  func.func @transform_5(%arg0: i32) -> (i32, i32, i32, i32) {
    %c0_i32 = arith.constant 0 : i32
    %c0_i32_0 = arith.constant 0 : i32
    %c0_i32_1 = arith.constant 0 : i32
    %c0_i32_2 = arith.constant 0 : i32
    return %arg0, %c0_i32, %c0_i32_0, %c0_i32_1 : i32, i32, i32, i32
  }
}

module attributes {stable_mosaic.version = 11 : i64} {
  func.func @_resize_mm_kernel(%arg0: i32, %arg1: memref<10x64xbf16, #tpu.memory_space<vmem>>, %arg2: memref<64x512xbf16, #tpu.memory_space<vmem>>, %arg3: memref<10x512xf32, #tpu.memory_space<vmem>>) attributes {dimension_semantics = [#tpu.dimension_semantics<parallel>], iteration_bounds = array<i64: 2>, scalar_prefetch = 0 : i64, scratch_operands = 0 : i64, tpu.core_type = #tpu.core_type<tc>, window_params = [{pipeline_mode = #tpu.pipeline_mode<synchronous>, transform_indices = @transform_0, window_bounds = array<i64: 10, 64>}, {transform_indices = @transform_1, window_bounds = array<i64: 64, 512>}, {transform_indices = @transform_2, window_bounds = array<i64: 10, 512>}]} {
    %c0 = arith.constant 0 : index
    %c0_0 = arith.constant 0 : index
    %0 = vector.load %arg1[%c0, %c0_0] : memref<10x64xbf16, #tpu.memory_space<vmem>>, vector<10x64xbf16>
    %c0_1 = arith.constant 0 : index
    %c0_2 = arith.constant 0 : index
    %1 = vector.load %arg2[%c0_1, %c0_2] : memref<64x512xbf16, #tpu.memory_space<vmem>>, vector<64x512xbf16>
    %cst = arith.constant dense<0.000000e+00> : vector<10x512xf32>
    %2 = tpu.matmul %0, %1, %cst {dimension_numbers = #tpu.dot_dimension_numbers<[1], [0], [0], [1], [0, 0, 1, 1], [], []>} : vector<10x64xbf16>, vector<64x512xbf16>, vector<10x512xf32> -> vector<10x512xf32>
    %c0_3 = arith.constant 0 : index
    %c0_4 = arith.constant 0 : index
    %3 = vector.load %arg3[%c0_3, %c0_4] : memref<10x512xf32, #tpu.memory_space<vmem>>, vector<10x512xf32>
    tpu.vector_store %arg3[%c0_3, %c0_4], %2 {strides = array<i32>} : memref<10x512xf32, #tpu.memory_space<vmem>>, vector<10x512xf32>,
    return
  }
  func.func @transform_0(%arg0: i32) -> (i32, i32) {
    %c0_i32 = arith.constant 0 : i32
    %c0_i32_0 = arith.constant 0 : i32
    %c0_i32_1 = arith.constant 0 : i32
    return %c0_i32, %c0_i32_0 : i32, i32
  }
  func.func @transform_1(%arg0: i32) -> (i32, i32) {
    %c0_i32 = arith.constant 0 : i32
    %c0_i32_0 = arith.constant 0 : i32
    return %c0_i32, %arg0 : i32, i32
  }
  func.func @transform_2(%arg0: i32) -> (i32, i32) {
    %c0_i32 = arith.constant 0 : i32
    %c0_i32_0 = arith.constant 0 : i32
    return %c0_i32, %arg0 : i32, i32
  }
}

module attributes {stable_mosaic.version = 11 : i64} {
  func.func @_conv_kernel(%arg0: i32, %arg1: memref<1x10x10x32xbf16, #tpu.memory_space<vmem>>, %arg2: memref<9x32x64xbf16, #tpu.memory_space<vmem>>, %arg3: memref<1x64xf32, #tpu.memory_space<vmem>>, %arg4: memref<64x5xbf16, #tpu.memory_space<vmem>>, %arg5: memref<1x5xf32, #tpu.memory_space<vmem>>, %arg6: memref<1x8x8x5xbf16, #tpu.memory_space<vmem>>) attributes {dimension_semantics = [#tpu.dimension_semantics<parallel>], iteration_bounds = array<i64: 2>, scalar_prefetch = 0 : i64, scratch_operands = 0 : i64, tpu.core_type = #tpu.core_type<tc>, window_params = [{transform_indices = @transform_0, window_bounds = array<i64: 1, 10, 10, 32>}, {pipeline_mode = #tpu.pipeline_mode<synchronous>, transform_indices = @transform_1, window_bounds = array<i64: 9, 32, 64>}, {pipeline_mode = #tpu.pipeline_mode<synchronous>, transform_indices = @transform_2, window_bounds = array<i64: 1, 64>}, {pipeline_mode = #tpu.pipeline_mode<synchronous>, transform_indices = @transform_3, window_bounds = array<i64: 64, 5>}, {pipeline_mode = #tpu.pipeline_mode<synchronous>, transform_indices = @transform_4, window_bounds = array<i64: 1, 5>}, {transform_indices = @transform_5, window_bounds = array<i64: 1, 8, 8, 5>}]} {
    %c0 = arith.constant 0 : index
    %c0_0 = arith.constant 0 : index
    %c0_1 = arith.constant 0 : index
    %c0_2 = arith.constant 0 : index
    %0 = vector.load %arg1[%c0, %c0_0, %c0_1, %c0_2] : memref<1x10x10x32xbf16, #tpu.memory_space<vmem>>, vector<1x10x10x32xbf16>
    %1 = vector.shape_cast %0 : vector<1x10x10x32xbf16> to vector<10x10x32xbf16>
    %cst = arith.constant 0.000000e+00 : f32
    %2 = vector.broadcast %cst : f32 to vector<64x64xf32>
    %3 = vector.extract_strided_slice %1 {offsets = [0, 0, 0], sizes = [8, 8, 32], strides = [1, 1, 1]} : vector<10x10x32xbf16> to vector<8x8x32xbf16>
    %4 = vector.shape_cast %3 : vector<8x8x32xbf16> to vector<64x32xbf16>
    %c0_3 = arith.constant 0 : index
    %c0_4 = arith.constant 0 : index
    %c0_5 = arith.constant 0 : index
    %5 = vector.load %arg2[%c0_3, %c0_4, %c0_5] : memref<9x32x64xbf16, #tpu.memory_space<vmem>>, vector<1x32x64xbf16>
    %6 = vector.shape_cast %5 : vector<1x32x64xbf16> to vector<32x64xbf16>
    %cst_6 = arith.constant dense<0.000000e+00> : vector<64x64xf32>
    %7 = tpu.matmul %4, %6, %cst_6 {dimension_numbers = #tpu.dot_dimension_numbers<[1], [0], [0], [1], [0, 0, 1, 1], [], []>} : vector<64x32xbf16>, vector<32x64xbf16>, vector<64x64xf32> -> vector<64x64xf32>
    %8 = arith.addf %2, %7 : vector<64x64xf32>
    %9 = vector.extract_strided_slice %1 {offsets = [0, 1, 0], sizes = [8, 8, 32], strides = [1, 1, 1]} : vector<10x10x32xbf16> to vector<8x8x32xbf16>
    %10 = vector.shape_cast %9 : vector<8x8x32xbf16> to vector<64x32xbf16>
    %c1 = arith.constant 1 : index
    %c0_7 = arith.constant 0 : index
    %c0_8 = arith.constant 0 : index
    %11 = vector.load %arg2[%c1, %c0_7, %c0_8] : memref<9x32x64xbf16, #tpu.memory_space<vmem>>, vector<1x32x64xbf16>
    %12 = vector.shape_cast %11 : vector<1x32x64xbf16> to vector<32x64xbf16>
    %cst_9 = arith.constant dense<0.000000e+00> : vector<64x64xf32>
    %13 = tpu.matmul %10, %12, %cst_9 {dimension_numbers = #tpu.dot_dimension_numbers<[1], [0], [0], [1], [0, 0, 1, 1], [], []>} : vector<64x32xbf16>, vector<32x64xbf16>, vector<64x64xf32> -> vector<64x64xf32>
    %14 = arith.addf %8, %13 : vector<64x64xf32>
    %15 = vector.extract_strided_slice %1 {offsets = [0, 2, 0], sizes = [8, 8, 32], strides = [1, 1, 1]} : vector<10x10x32xbf16> to vector<8x8x32xbf16>
    %16 = vector.shape_cast %15 : vector<8x8x32xbf16> to vector<64x32xbf16>
    %c2 = arith.constant 2 : index
    %c0_10 = arith.constant 0 : index
    %c0_11 = arith.constant 0 : index
    %17 = vector.load %arg2[%c2, %c0_10, %c0_11] : memref<9x32x64xbf16, #tpu.memory_space<vmem>>, vector<1x32x64xbf16>
    %18 = vector.shape_cast %17 : vector<1x32x64xbf16> to vector<32x64xbf16>
    %cst_12 = arith.constant dense<0.000000e+00> : vector<64x64xf32>
    %19 = tpu.matmul %16, %18, %cst_12 {dimension_numbers = #tpu.dot_dimension_numbers<[1], [0], [0], [1], [0, 0, 1, 1], [], []>} : vector<64x32xbf16>, vector<32x64xbf16>, vector<64x64xf32> -> vector<64x64xf32>
    %20 = arith.addf %14, %19 : vector<64x64xf32>
    %21 = vector.extract_strided_slice %1 {offsets = [1, 0, 0], sizes = [8, 8, 32], strides = [1, 1, 1]} : vector<10x10x32xbf16> to vector<8x8x32xbf16>
    %22 = vector.shape_cast %21 : vector<8x8x32xbf16> to vector<64x32xbf16>
    %c3 = arith.constant 3 : index
    %c0_13 = arith.constant 0 : index
    %c0_14 = arith.constant 0 : index
    %23 = vector.load %arg2[%c3, %c0_13, %c0_14] : memref<9x32x64xbf16, #tpu.memory_space<vmem>>, vector<1x32x64xbf16>
    %24 = vector.shape_cast %23 : vector<1x32x64xbf16> to vector<32x64xbf16>
    %cst_15 = arith.constant dense<0.000000e+00> : vector<64x64xf32>
    %25 = tpu.matmul %22, %24, %cst_15 {dimension_numbers = #tpu.dot_dimension_numbers<[1], [0], [0], [1], [0, 0, 1, 1], [], []>} : vector<64x32xbf16>, vector<32x64xbf16>, vector<64x64xf32> -> vector<64x64xf32>
    %26 = arith.addf %20, %25 : vector<64x64xf32>
    %27 = vector.extract_strided_slice %1 {offsets = [1, 1, 0], sizes = [8, 8, 32], strides = [1, 1, 1]} : vector<10x10x32xbf16> to vector<8x8x32xbf16>
    %28 = vector.shape_cast %27 : vector<8x8x32xbf16> to vector<64x32xbf16>
    %c4 = arith.constant 4 : index
    %c0_16 = arith.constant 0 : index
    %c0_17 = arith.constant 0 : index
    %29 = vector.load %arg2[%c4, %c0_16, %c0_17] : memref<9x32x64xbf16, #tpu.memory_space<vmem>>, vector<1x32x64xbf16>
    %30 = vector.shape_cast %29 : vector<1x32x64xbf16> to vector<32x64xbf16>
    %cst_18 = arith.constant dense<0.000000e+00> : vector<64x64xf32>
    %31 = tpu.matmul %28, %30, %cst_18 {dimension_numbers = #tpu.dot_dimension_numbers<[1], [0], [0], [1], [0, 0, 1, 1], [], []>} : vector<64x32xbf16>, vector<32x64xbf16>, vector<64x64xf32> -> vector<64x64xf32>
    %32 = arith.addf %26, %31 : vector<64x64xf32>
    %33 = vector.extract_strided_slice %1 {offsets = [1, 2, 0], sizes = [8, 8, 32], strides = [1, 1, 1]} : vector<10x10x32xbf16> to vector<8x8x32xbf16>
    %34 = vector.shape_cast %33 : vector<8x8x32xbf16> to vector<64x32xbf16>
    %c5 = arith.constant 5 : index
    %c0_19 = arith.constant 0 : index
    %c0_20 = arith.constant 0 : index
    %35 = vector.load %arg2[%c5, %c0_19, %c0_20] : memref<9x32x64xbf16, #tpu.memory_space<vmem>>, vector<1x32x64xbf16>
    %36 = vector.shape_cast %35 : vector<1x32x64xbf16> to vector<32x64xbf16>
    %cst_21 = arith.constant dense<0.000000e+00> : vector<64x64xf32>
    %37 = tpu.matmul %34, %36, %cst_21 {dimension_numbers = #tpu.dot_dimension_numbers<[1], [0], [0], [1], [0, 0, 1, 1], [], []>} : vector<64x32xbf16>, vector<32x64xbf16>, vector<64x64xf32> -> vector<64x64xf32>
    %38 = arith.addf %32, %37 : vector<64x64xf32>
    %39 = vector.extract_strided_slice %1 {offsets = [2, 0, 0], sizes = [8, 8, 32], strides = [1, 1, 1]} : vector<10x10x32xbf16> to vector<8x8x32xbf16>
    %40 = vector.shape_cast %39 : vector<8x8x32xbf16> to vector<64x32xbf16>
    %c6 = arith.constant 6 : index
    %c0_22 = arith.constant 0 : index
    %c0_23 = arith.constant 0 : index
    %41 = vector.load %arg2[%c6, %c0_22, %c0_23] : memref<9x32x64xbf16, #tpu.memory_space<vmem>>, vector<1x32x64xbf16>
    %42 = vector.shape_cast %41 : vector<1x32x64xbf16> to vector<32x64xbf16>
    %cst_24 = arith.constant dense<0.000000e+00> : vector<64x64xf32>
    %43 = tpu.matmul %40, %42, %cst_24 {dimension_numbers = #tpu.dot_dimension_numbers<[1], [0], [0], [1], [0, 0, 1, 1], [], []>} : vector<64x32xbf16>, vector<32x64xbf16>, vector<64x64xf32> -> vector<64x64xf32>
    %44 = arith.addf %38, %43 : vector<64x64xf32>
    %45 = vector.extract_strided_slice %1 {offsets = [2, 1, 0], sizes = [8, 8, 32], strides = [1, 1, 1]} : vector<10x10x32xbf16> to vector<8x8x32xbf16>
    %46 = vector.shape_cast %45 : vector<8x8x32xbf16> to vector<64x32xbf16>
    %c7 = arith.constant 7 : index
    %c0_25 = arith.constant 0 : index
    %c0_26 = arith.constant 0 : index
    %47 = vector.load %arg2[%c7, %c0_25, %c0_26] : memref<9x32x64xbf16, #tpu.memory_space<vmem>>, vector<1x32x64xbf16>
    %48 = vector.shape_cast %47 : vector<1x32x64xbf16> to vector<32x64xbf16>
    %cst_27 = arith.constant dense<0.000000e+00> : vector<64x64xf32>
    %49 = tpu.matmul %46, %48, %cst_27 {dimension_numbers = #tpu.dot_dimension_numbers<[1], [0], [0], [1], [0, 0, 1, 1], [], []>} : vector<64x32xbf16>, vector<32x64xbf16>, vector<64x64xf32> -> vector<64x64xf32>
    %50 = arith.addf %44, %49 : vector<64x64xf32>
    %51 = vector.extract_strided_slice %1 {offsets = [2, 2, 0], sizes = [8, 8, 32], strides = [1, 1, 1]} : vector<10x10x32xbf16> to vector<8x8x32xbf16>
    %52 = vector.shape_cast %51 : vector<8x8x32xbf16> to vector<64x32xbf16>
    %c8 = arith.constant 8 : index
    %c0_28 = arith.constant 0 : index
    %c0_29 = arith.constant 0 : index
    %53 = vector.load %arg2[%c8, %c0_28, %c0_29] : memref<9x32x64xbf16, #tpu.memory_space<vmem>>, vector<1x32x64xbf16>
    %54 = vector.shape_cast %53 : vector<1x32x64xbf16> to vector<32x64xbf16>
    %cst_30 = arith.constant dense<0.000000e+00> : vector<64x64xf32>
    %55 = tpu.matmul %52, %54, %cst_30 {dimension_numbers = #tpu.dot_dimension_numbers<[1], [0], [0], [1], [0, 0, 1, 1], [], []>} : vector<64x32xbf16>, vector<32x64xbf16>, vector<64x64xf32> -> vector<64x64xf32>
    %56 = arith.addf %50, %55 : vector<64x64xf32>
    %c0_31 = arith.constant 0 : index
    %c0_32 = arith.constant 0 : index
    %57 = vector.load %arg3[%c0_31, %c0_32] : memref<1x64xf32, #tpu.memory_space<vmem>>, vector<1x64xf32>
    %58 = vector.broadcast %57 : vector<1x64xf32> to vector<64x64xf32>
    %59 = arith.addf %56, %58 : vector<64x64xf32>
    %cst_33 = arith.constant 0.000000e+00 : f32
    %60 = vector.broadcast %cst_33 : f32 to vector<64x64xf32>
    %61 = arith.maximumf %59, %60 : vector<64x64xf32>
    %62 = arith.truncf %61 : vector<64x64xf32> to vector<64x64xbf16>
    %c0_34 = arith.constant 0 : index
    %c0_35 = arith.constant 0 : index
    %63 = vector.load %arg4[%c0_34, %c0_35] : memref<64x5xbf16, #tpu.memory_space<vmem>>, vector<64x5xbf16>
    %cst_36 = arith.constant dense<0.000000e+00> : vector<64x5xf32>
    %64 = tpu.matmul %62, %63, %cst_36 {dimension_numbers = #tpu.dot_dimension_numbers<[1], [0], [0], [1], [0, 0, 1, 1], [], []>} : vector<64x64xbf16>, vector<64x5xbf16>, vector<64x5xf32> -> vector<64x5xf32>
    %c0_37 = arith.constant 0 : index
    %c0_38 = arith.constant 0 : index
    %65 = vector.load %arg5[%c0_37, %c0_38] : memref<1x5xf32, #tpu.memory_space<vmem>>, vector<1x5xf32>
    %66 = vector.broadcast %65 : vector<1x5xf32> to vector<64x5xf32>
    %67 = arith.addf %64, %66 : vector<64x5xf32>
    %68 = vector.shape_cast %67 : vector<64x5xf32> to vector<8x8x5xf32>
    %69 = arith.truncf %68 : vector<8x8x5xf32> to vector<8x8x5xbf16>
    %c0_39 = arith.constant 0 : index
    %c0_40 = arith.constant 0 : index
    %c0_41 = arith.constant 0 : index
    %c0_42 = arith.constant 0 : index
    %70 = vector.load %arg6[%c0_39, %c0_40, %c0_41, %c0_42] : memref<1x8x8x5xbf16, #tpu.memory_space<vmem>>, vector<1x8x8x5xbf16>
    %71 = vector.shape_cast %70 : vector<1x8x8x5xbf16> to vector<8x8x5xbf16>
    %72 = vector.shape_cast %69 : vector<8x8x5xbf16> to vector<1x8x8x5xbf16>
    tpu.vector_store %arg6[%c0_39, %c0_40, %c0_41, %c0_42], %72 {strides = array<i32>} : memref<1x8x8x5xbf16, #tpu.memory_space<vmem>>, vector<1x8x8x5xbf16>,
    return
  }
  func.func @transform_0(%arg0: i32) -> (i32, i32, i32, i32) {
    %c0_i32 = arith.constant 0 : i32
    %c0_i32_0 = arith.constant 0 : i32
    %c0_i32_1 = arith.constant 0 : i32
    %c0_i32_2 = arith.constant 0 : i32
    return %arg0, %c0_i32, %c0_i32_0, %c0_i32_1 : i32, i32, i32, i32
  }
  func.func @transform_1(%arg0: i32) -> (i32, i32, i32) {
    %c0_i32 = arith.constant 0 : i32
    %c0_i32_0 = arith.constant 0 : i32
    %c0_i32_1 = arith.constant 0 : i32
    %c0_i32_2 = arith.constant 0 : i32
    return %c0_i32, %c0_i32_0, %c0_i32_1 : i32, i32, i32
  }
  func.func @transform_2(%arg0: i32) -> (i32, i32) {
    %c0_i32 = arith.constant 0 : i32
    %c0_i32_0 = arith.constant 0 : i32
    %c0_i32_1 = arith.constant 0 : i32
    return %c0_i32, %c0_i32_0 : i32, i32
  }
  func.func @transform_3(%arg0: i32) -> (i32, i32) {
    %c0_i32 = arith.constant 0 : i32
    %c0_i32_0 = arith.constant 0 : i32
    %c0_i32_1 = arith.constant 0 : i32
    return %c0_i32, %c0_i32_0 : i32, i32
  }
  func.func @transform_4(%arg0: i32) -> (i32, i32) {
    %c0_i32 = arith.constant 0 : i32
    %c0_i32_0 = arith.constant 0 : i32
    %c0_i32_1 = arith.constant 0 : i32
    return %c0_i32, %c0_i32_0 : i32, i32
  }
  func.func @transform_5(%arg0: i32) -> (i32, i32, i32, i32) {
    %c0_i32 = arith.constant 0 : i32
    %c0_i32_0 = arith.constant 0 : i32
    %c0_i32_1 = arith.constant 0 : i32
    %c0_i32_2 = arith.constant 0 : i32
    return %arg0, %c0_i32, %c0_i32_0, %c0_i32_1 : i32, i32, i32, i32
  }
}

</mosaic_0001>

<bundles_post_ra>
// kernel: asp_ocnet_forward.15
= control target key start
LH: loop header
LB: loop body
LE: loop exit
PB: predicated region body
PF: predicated region fallthrough
CT: control target
= control target key end

     0   :  { %s448_s12 = smov 0   ;;  %s498_s0 = inlined_call_operand.vmem [shape: bf16[2,8,8,48], index: 0, kind: input, shape index: {}]   ;;  %s499_s1 = inlined_call_operand.vmem [shape: bf16[1,48,16], index: 1, kind: input, shape index: {}]   ;;  %s500_s2 = inlined_call_operand.vmem [shape: f32[1,16], index: 2, kind: input, shape index: {}]   ;;  %s501_s3 = inlined_call_operand.vmem [shape: bf16[2,8,8,16], index: 3, kind: output, shape index: {}]  }
   0x1 LB: > { %s350_s13 = sadd.s32 4294967295, %s426_s12   ;;  %p354_p0 = scmp.ge.s32.totalorder %s426_s12, 1  ;;  %s426_s12 = sphi %s448_s12, %s13_s12  }
   0x2   : > { %p137_p1 = scmp.lt.s32.totalorder %s426_s12, 3 }
   0x4   : > { %p138_p2 = pnand %p354_p0, %p137_p1 }
   0x5   : > { %p161_p3 = scmp.lt.s32.totalorder (!%p138_p2), %s350_s13, 1 }
   0x6   : > { %141 = sbr.rel (%p138_p2) target bundleno = 172 (0xac), region = 32 }
   0xb   : > { %v401_v0 = vld [vmem:[%s499_s1 + $0x10] sm:$0xff]  ;;  %v400_v1 = vld [vmem:[%s499_s1 + $0x8] sm:$0xff]  ;;  %s503_s13 = smov (!%p161_p3, %s350_s13), 1  ;;  %v399_v2 = vld [vmem:[%s499_s1] sm:$0xff]  ;;  %vm228_vm0 = vcmask 392192   ;;  %vm286_vm1 = vcmask 125952  }
   0xc   : > { %246 = vmatpush.bf16.msra.mxu0 %v401_v0  ;;  %402 = vmatpush.bf16.msra.mxu1 %v401_v0  ;;  %s393_s18 = sshll.u32 %s503_s13, 5  ;;  %v419_v7 = vld [vmem:[%s500_s2] ss:$0 sm:$0xff] }
   0xd   : > { %403 = vmatpush.bf16.msra.mxu2 %v401_v0  ;;  %404 = vmatpush.bf16.msra.mxu3 %v401_v0  ;;  %s165_s23 = scalar_lea.vmem %s498_s0, %s393_s18  ;;  %s477_s28 = scalar_lea.vmem %s501_s3, %s393_s18 }
   0xe   : > { %v395_v3 = vld [vmem:[%s165_s23] sm:$0xff]  ;;  %v396_v4 = vld [vmem:[%s165_s23 + $0x8] sm:$0xff]  ;;  %v397_v5 = vld [vmem:[%s165_s23 + $0x10] sm:$0xff] }
   0xf   : > { %v398_v6 = vld [vmem:[%s165_s23 + $0x18] sm:$0xff] }
  0x10   : > { %247 = vmatpush.bf16.msra.mxu0 %v400_v1  ;;  %405 = vmatpush.bf16.msra.mxu1 %v400_v1 }
  0x11   : > { %406 = vmatpush.bf16.msra.mxu2 %v400_v1  ;;  %407 = vmatpush.bf16.msra.mxu3 %v400_v1 }
  0x14   : > { %248 = vmatpush.bf16.msra.mxu0 %v399_v2  ;;  %408 = vmatpush.bf16.msra.mxu1 %v399_v2 }
  0x15   : > { %409 = vmatpush.bf16.msra.mxu2 %v399_v2  ;;  %410 = vmatpush.bf16.msra.mxu3 %v399_v2 }
  0x17   : > { %387 = vmatmul.msk.bf16.vlgmr.msra.gmra.mxu0 %vm228_vm0, %v395_v3  ;;  %388 = vmatmul.msk.bf16.vlgmr.msra.gmra.mxu1 %vm228_vm0, %v396_v4 }
  0x18   : > { %389 = vmatmul.msk.bf16.vlgmr.msra.gmra.mxu2 %vm228_vm0, %v397_v5  ;;  %390 = vmatmul.msk.bf16.vlgmr.msra.gmra.mxu3 %vm228_vm0, %v398_v6 }
  0x94   : > { %v250_v8 = vpop.f32.mrf.mxu0  ;;  %v255_v9 = vpop.f32.mrf.mxu1 }
  0x95   : > { %v251_v10 = vadd.f32 %v419_v7, %v250_v8  ;;  %v256_v11 = vadd.f32 %v419_v7, %v255_v9 }
  0x97   : > { %v270_v12 = vmax.f32 %v251_v10, 0.0  ;;  %v272_v13 = vmax.f32 %v256_v11, 0.0 }
  0x99   : > { %v278_v14 = vpack.c.bf16 %v270_v12, %v270_v12  ;;  %v280_v15 = vpack.c.bf16 %v272_v13, %v272_v13 }
  0x9b   : > { %287 = vst.msk [vmem:[%s477_s28] sm:$0xf] %vm286_vm1, %v278_v14  ;;  %v260_v16 = vpop.f32.mrf.mxu2  ;;  %v265_v17 = vpop.f32.mrf.mxu3 }
  0x9c   : > { %289 = vst.msk [vmem:[%s477_s28 + $0x8] sm:$0xf] %vm286_vm1, %v280_v15  ;;  %v261_v18 = vadd.f32 %v419_v7, %v260_v16  ;;  %v266_v19 = vadd.f32 %v419_v7, %v265_v17  ;;  %v252_v20 = vpop.f32.mrf.mxu0  ;;  %v257_v21 = vpop.f32.mrf.mxu1 }
  0x9d   : > { %v253_v22 = vadd.f32 %v419_v7, %v252_v20  ;;  %v258_v23 = vadd.f32 %v419_v7, %v257_v21 }
  0x9e   : > { %v274_v24 = vmax.f32 %v261_v18, 0.0  ;;  %v276_v25 = vmax.f32 %v266_v19, 0.0 }
  0x9f   : > { %v271_v26 = vmax.f32 %v253_v22, 0.0  ;;  %v273_v27 = vmax.f32 %v258_v23, 0.0 }
  0xa0   : > { %v282_v28 = vpack.c.bf16 %v274_v24, %v274_v24  ;;  %v284_v29 = vpack.c.bf16 %v276_v25, %v276_v25 }
  0xa1   : > { %v279_v30 = vpack.c.bf16 %v271_v26, %v271_v26  ;;  %v281_v31 = vpack.c.bf16 %v273_v27, %v273_v27 }
  0xa2   : > { %291 = vst.msk [vmem:[%s477_s28 + $0x10] sm:$0xf] %vm286_vm1, %v282_v28 }
  0xa3   : > { %293 = vst.msk [vmem:[%s477_s28 + $0x18] sm:$0xf] %vm286_vm1, %v284_v29  ;;  %v262_v32 = vpop.f32.mrf.mxu2  ;;  %v267_v33 = vpop.f32.mrf.mxu3 }
  0xa4   : > { %288 = vst.msk [vmem:[%s477_s28 + $0x4] sm:$0xf] %vm286_vm1, %v279_v30  ;;  %v263_v34 = vadd.f32 %v419_v7, %v262_v32  ;;  %v268_v35 = vadd.f32 %v419_v7, %v267_v33 }
  0xa5   : > { %290 = vst.msk [vmem:[%s477_s28 + $0xc] sm:$0xf] %vm286_vm1, %v281_v31 }
  0xa6   : > { %v275_v36 = vmax.f32 %v263_v34, 0.0  ;;  %v277_v37 = vmax.f32 %v268_v35, 0.0 }
  0xa8   : > { %v283_v38 = vpack.c.bf16 %v275_v36, %v275_v36  ;;  %v285_v39 = vpack.c.bf16 %v277_v37, %v277_v37 }
  0xaa   : > { %292 = vst.msk [vmem:[%s477_s28 + $0x14] sm:$0xf] %vm286_vm1, %v283_v38 }
  0xab   : > { %294 = vst.msk [vmem:[%s477_s28 + $0x1c] sm:$0xf] %vm286_vm1, %v285_v39 }
  0xac PF: > { %s13_s12 = sadd.s32 1, %s426_s12  }
  0xad   : > { %p10_p4 = scmp.ge.s32.totalorder %s13_s12, 4  }
  0xaf   :  { %12 = sbr.rel (!%p10_p4) target bundleno = 1 (0x1), region = 62 }

// kernel: asp_ocnet_forward.16
= control target key start
LH: loop header
LB: loop body
LE: loop exit
PB: predicated region body
PF: predicated region fallthrough
CT: control target
= control target key end

     0   :  { %s1185_s12 = smov 0   ;;  %s1573_s0 = inlined_call_operand.vmem [shape: bf16[2,10,10,16], index: 0, kind: input, shape index: {}]   ;;  %s1574_s1 = inlined_call_operand.vmem [shape: bf16[9,16,32], index: 1, kind: input, shape index: {}]   ;;  %s1575_s2 = inlined_call_operand.vmem [shape: f32[1,32], index: 2, kind: input, shape index: {}]   ;;  %s1576_s3 = inlined_call_operand.vmem [shape: bf16[2,8,8,32], index: 3, kind: output, shape index: {}]  }
   0x1 LB: > { %s1026_s13 = sadd.s32 4294967295, %s1163_s12   ;;  %p1030_p0 = scmp.ge.s32.totalorder %s1163_s12, 1  ;;  %s1163_s12 = sphi %s1185_s12, %s13_s12  }
   0x2   : > { %p137_p1 = scmp.lt.s32.totalorder %s1163_s12, 3 }
   0x4   : > { %p138_p2 = pnand %p1030_p0, %p137_p1 }
   0x5   : > { %p161_p3 = scmp.lt.s32.totalorder (!%p138_p2), %s1026_s13, 1 }
   0x6   : > { %141 = sbr.rel (%p138_p2) target bundleno = 319 (0x13f), region = 32 }
   0xb   : > { %v1136_v0 = vld [vmem:[%s1574_s1 + $0x8] sm:$0xff]  ;;  %v1137_v1 = vld [vmem:[%s1574_s1 + $0x10] sm:$0xff]  ;;  %s1582_s13 = smov (!%p161_p3, %s1026_s13), 1  ;;  %v1138_v2 = vld [vmem:[%s1574_s1 + $0x18] sm:$0xff]  ;;  %vm194_vm0 = vsmask.f32 3328 }
   0xc   : > { %1144 = vmatpush.bf16.msra.mxu1 %v1136_v0  ;;  %1145 = vmatpush.bf16.msra.mxu2 %v1136_v0  ;;  %s1147_s18 = smul.u32 80, %s1582_s13  ;;  %v1135_v3 = vld [vmem:[%s1574_s1] sm:$0xff]  ;;  %vm195_vm1 = vsmask.f32 7440  ;;  %vm330_vm2 = vcmask 130048   ;;  %vm447_vm4 = vcmask 1042432  }
   0xd   : > { %1146 = vmatpush.bf16.msra.mxu3 %v1136_v0  ;;  %350 = vmatpush.bf16.msra.mxu0 %v1136_v0  ;;  %v1139_v4 = vld [vmem:[%s1574_s1 + $0x20] sm:$0xff]  ;;  %vm1256_vm3 = vmor %vm194_vm0, %vm195_vm1  ;;  %vm448_vm5 = vcmask 1046532   ;;  %s1134_s11 = sshll.u32 %s1582_s13, 5  ;;  %vm962_vm7 = vcmask 257024  }
   0xe   : > { %s1214_s27 = scalar_lea.vmem %s1573_s0, %s1147_s18  ;;  %vm1329_vm6 = vmor %vm447_vm4, %vm448_vm5  ;;  %s1524_s16 = scalar_lea.vmem %s1576_s3, %s1134_s11 }
   0xf   : > { %v1217_v5 = vld [vmem:[%s1214_s27 + $0x10] sm:$0xf]  ;;  %v1220_v6 = vld [vmem:[%s1214_s27 + $0x14] sm:$0x1]  ;;  %v1223_v7 = vld [vmem:[%s1214_s27 + $0x18] sm:$0xf] }
  0x10   : > { %522 = vmatpush.bf16.msrb.mxu2 %v1137_v1  ;;  %417 = vmatpush.bf16.msrb.mxu1 %v1135_v3  ;;  %v1226_v8 = vld [vmem:[%s1214_s27 + $0x1c] sm:$0x1]  ;;  %v226_v9 = vshrl.u32 %v1217_v5, 16  ;;  %v229_v10 = vshll.u32 %v1217_v5, 16  ;;  %v235_v11 = vshll.u32 %v1220_v6, 16  ;;  %v240_v12 = vshrl.u32 %v1223_v7, 16 }
  0x11   : > { %586 = vmatpush.bf16.msrb.mxu3 %v1138_v2  ;;  %663 = vmatpush.bf16.msrb.mxu0 %v1139_v4  ;;  %v243_v13 = vshll.u32 %v1223_v7, 16  ;;  %v249_v14 = vshll.u32 %v1226_v8, 16  ;;  %v1235_v15 = vld [vmem:[%s1214_s27 + $0x20] sm:$0xf]  ;;  %v1238_v16 = vld [vmem:[%s1214_s27 + $0x24] sm:$0x1] }
  0x12   : > { %v228_v17 = vrot.slane %v226_v9, 4  ;;  %v231_v18 = vrot.slane %v229_v10, 5  ;;  %v237_v19 = vrot.slane %v235_v11, 5  ;;  %v242_v20 = vrot.slane %v240_v12, 4  ;;  %v1241_v21 = vld [vmem:[%s1214_s27 + $0x28] sm:$0xf] }
  0x13   : > { %v245_v22 = vrot.slane %v243_v13, 5  ;;  %v251_v23 = vrot.slane %v249_v14, 5  ;;  %v1244_v24 = vld [vmem:[%s1214_s27 + $0x2c] sm:$0x1]  ;;  %v254_v25 = vshrl.u32 %v1235_v15, 16  ;;  %v257_v26 = vshll.u32 %v1235_v15, 16 }
  0x14   : > { %v232_v27 = vor.u32 %v231_v18, %v228_v17  ;;  %v263_v28 = vshll.u32 %v1238_v16, 16  ;;  %v268_v29 = vshrl.u32 %v1241_v21, 16  ;;  %v271_v30 = vshll.u32 %v1241_v21, 16  ;;  %v1252_v31 = vld [vmem:[%s1214_s27 + $0x30] sm:$0xf]  ;;  %v1140_v11 = vld [vmem:[%s1574_s1 + $0x28] sm:$0xff] }
  0x15   : > { %v246_v33 = vor.u32 %v245_v22, %v242_v20  ;;  %v256_v34 = vrot.slane %v254_v25, 4  ;;  %v259_v35 = vrot.slane %v257_v26, 5  ;;  %v277_v36 = vshll.u32 %v1244_v24, 16  ;;  %v1262_v37 = vld [vmem:[%s1214_s27 + $0x34] sm:$0x1] }
  0x16   : > { %v233_v38 = vrot.slane %v232_v27, 4  ;;  %v265_v39 = vrot.slane %v263_v28, 5  ;;  %v270_v40 = vrot.slane %v268_v29, 4  ;;  %v273_v41 = vrot.slane %v271_v30, 5  ;;  %v1268_v48 = vld [vmem:[%s1214_s27 + $0x38] sm:$0xf] }
  0x17   : > { %v247_v42 = vrot.slane %v246_v33, 4  ;;  %v260_v43 = vor.u32 %v259_v35, %v256_v34  ;;  %v279_v44 = vrot.slane %v277_v36, 5  ;;  %v282_v45 = vshrl.u32 %v1252_v31, 16  ;;  %v1271_v49 = vld [vmem:[%s1214_s27 + $0x3c] sm:$0x1] }
  0x18   : > { %v238_v46 = vsel %vm1256_vm3, %v233_v38, %v237_v19  ;;  %v274_v47 = vor.u32 %v273_v41, %v270_v40  ;;  %v285_v50 = vshll.u32 %v1252_v31, 16  ;;  %v291_v51 = vshll.u32 %v1262_v37, 16  ;;  %v1282_v60 = vld [vmem:[%s1214_s27] sm:$0xf]  ;;  %v173_v1 = vld [vmem:[%s1214_s27 + $0x4] sm:$0x1] }
  0x19   : > { %v252_v52 = vsel %vm1256_vm3, %v247_v42, %v251_v23  ;;  %v1277_v53 = vunpack.c.l.b16 %v238_v46  ;;  %v261_v54 = vrot.slane %v260_v43, 4  ;;  %v284_v55 = vrot.slane %v282_v45, 4  ;;  %v1299_v10 = vld [vmem:[%s1214_s27 + $0x8] sm:$0xf]  ;;  %v1141_v23 = vld [vmem:[%s1574_s1 + $0x30] sm:$0xff] }
  0x1a   : > { %v1279_v56 = vunpack.c.l.b16 %v252_v52  ;;  %v275_v57 = vrot.slane %v274_v47, 4  ;;  %v287_v58 = vrot.slane %v285_v50, 5  ;;  %v293_v59 = vrot.slane %v291_v51, 5  ;;  %v175_v27 = vld [vmem:[%s1214_s27 + $0xc] sm:$0x1] }
  0x1b   : > { %v266_v61 = vsel %vm1256_vm3, %v261_v54, %v265_v39  ;;  %v296_v62 = vshrl.u32 %v1268_v48, 16  ;;  %v299_v63 = vshll.u32 %v1268_v48, 16  ;;  %v305_v0 = vshll.u32 %v1271_v49, 16 }
  0x1c   : > { %v1292_v2 = vpack.c.b16 %v1279_v56, %v1277_v53  ;;  %v280_v3 = vsel %vm1256_vm3, %v275_v57, %v279_v44  ;;  %v1296_v4 = vunpack.c.l.b16 %v266_v61  ;;  %v288_v9 = vor.u32 %v287_v58, %v284_v55 }
  0x1d   : > { %v1304_v12 = vunpack.c.l.b16 %v280_v3  ;;  %v298_v13 = vrot.slane %v296_v62, 4  ;;  %v301_v14 = vrot.slane %v299_v63, 5  ;;  %v307_v17 = vrot.slane %v305_v0, 5 }
  0x1e   : > { %1041 = vmatmul.msk.bf16.vlgmr.msra.gmra.mxu1 %vm330_vm2, %v1292_v2  ;;  %v289_v18 = vrot.slane %v288_v9, 4  ;;  %v198_v19 = vshrl.u32 %v1282_v60, 16  ;;  %v201_v20 = vshll.u32 %v1282_v60, 16  ;;  %v207_v22 = vshll.u32 %v173_v1, 16 }
  0x1f   : > { %v1315_v25 = vpack.c.b16 %v1304_v12, %v1296_v4  ;;  %v302_v26 = vor.u32 %v301_v14, %v298_v13  ;;  %v212_v28 = vshrl.u32 %v1299_v10, 16  ;;  %v215_v29 = vshll.u32 %v1299_v10, 16  ;;  %731 = vmatpush.bf16.msra.mxu1 %v1140_v11 }
  0x20   : > { %v294_v30 = vsel %vm1256_vm3, %v289_v18, %v293_v59  ;;  %v200_v33 = vrot.slane %v198_v19, 4  ;;  %v203_v34 = vrot.slane %v201_v20, 5  ;;  %v209_v36 = vrot.slane %v207_v22, 5  ;;  %v1142_v59 = vld [vmem:[%s1574_s1 + $0x38] sm:$0xff] }
  0x21   : > { %1042 = vmatmul.msk.bf16.vlgmr.msra.gmra.mxu2 %vm330_vm2, %v1315_v25  ;;  %v303_v35 = vrot.slane %v302_v26, 4  ;;  %v214_v38 = vrot.slane %v212_v28, 4  ;;  %v217_v39 = vrot.slane %v215_v29, 5  ;;  %v1324_v40 = vunpack.c.l.b16 %v294_v30 }
  0x22   : > { %v204_v41 = vor.u32 %v203_v34, %v200_v33  ;;  %v221_v42 = vshll.u32 %v175_v27, 16  ;;  %v452_v43 = vrot.slane %v173_v1, 5  ;;  %783 = vmatpush.bf16.msra.mxu2 %v1141_v23  ;;  %v456_v46 = vrot.slane %v175_v27, 5 }
  0x23   : > { %v308_v44 = vsel %vm1256_vm3, %v303_v35, %v307_v17  ;;  %v218_v45 = vor.u32 %v217_v39, %v214_v38  ;;  %v1052_v54 = vrot.slane %v1282_v60, 9  ;;  %v380_v57 = vunpack.c.l.b16 %v1282_v60 }
  0x24   : > { %v1333_v50 = vunpack.c.l.b16 %v308_v44  ;;  %v205_v51 = vrot.slane %v204_v41, 4  ;;  %v223_v52 = vrot.slane %v221_v42, 5  ;;  %v1053_v58 = vrot.slane %v1299_v10, 9 }
  0x25   : > { %v219_v55 = vrot.slane %v218_v45, 4  ;;  %v381_v63 = vunpack.c.l.b16 %v1299_v10  ;;  %v453_v0 = vsel %vm1329_vm6, %v1052_v54, %v452_v43  ;;  %v1143_v10 = vld [vmem:[%s1574_s1 + $0x40] sm:$0xff]  ;;  %v382_v19 = vunpack.c.l.b16 %v1217_v5 }
  0x26   : > { %v1343_v61 = vpack.c.b16 %v1333_v50, %v1324_v40  ;;  %v210_v62 = vsel %vm1256_vm3, %v205_v51, %v209_v36  ;;  %v1354_v3 = vsel %vm1329_vm6, %v1053_v58, %v456_v46  ;;  %v485_v11 = vunpack.c.l.b16 %v453_v0 }
  0x27   : > { %v224_v60 = vsel %vm1256_vm3, %v219_v55, %v223_v52  ;;  %v312_v1 = vunpack.c.l.b16 %v210_v62  ;;  %v486_v13 = vunpack.c.l.b16 %v1354_v3  ;;  %v388_v17 = vpack.c.b16 %v381_v63, %v380_v57  ;;  %v190_v3 = vld [vmem:[%s1214_s27 + $0x48] sm:$0xf] }
  0x28   : > { %1043 = vmatmul.msk.bf16.vlgmr.msra.gmra.mxu3 %vm330_vm2, %v1343_v61  ;;  %v313_v9 = vunpack.c.l.b16 %v224_v60  ;;  %v1054_v20 = vrot.slane %v1217_v5, 9  ;;  %v460_v22 = vrot.slane %v1220_v6, 5  ;;  %v1055_v23 = vrot.slane %v1223_v7, 9  ;;  %v189_v60 = vld [vmem:[%s1214_s27 + $0x44] sm:$0x1] }
  0x29   : > { %848 = vmatpush.bf16.msra.mxu3 %v1142_v59  ;;  %v493_v18 = vpack.c.b16 %v486_v13, %v485_v11  ;;  %v464_v26 = vrot.slane %v1226_v8, 5  ;;  %v557_v27 = vpack.c.b16 %v382_v19, %v381_v63  ;;  %v383_v28 = vunpack.c.l.b16 %v1223_v7 }
  0x2a   : > { %v320_v14 = vpack.c.b16 %v313_v9, %v312_v1  ;;  %v1375_v29 = vsel %vm1329_vm6, %v1054_v20, %v460_v22  ;;  %v634_v5 = vpack.c.b16 %v1277_v53, %v313_v9  ;;  %v384_v34 = vunpack.c.l.b16 %v1235_v15 }
  0x2b   : > { %v1379_v30 = vsel %vm1329_vm6, %v1055_v23, %v464_v26  ;;  %v487_v6 = vunpack.c.l.b16 %v1375_v29  ;;  %v389_v8 = vpack.c.b16 %v383_v28, %v382_v19  ;;  %v1056_v35 = vrot.slane %v1235_v15, 9  ;;  %v191_v29 = vld [vmem:[%s1214_s27 + $0x4c] sm:$0x1] }
  0x2c   : > { %1040 = vmatmul.msk.bf16.vlgmr.msra.gmra.mxu0 %vm330_vm2, %v320_v14  ;;  %v488_v33 = vunpack.c.l.b16 %v1379_v30  ;;  %v468_v53 = vrot.slane %v1238_v16, 5  ;;  %v1057_v36 = vrot.slane %v1241_v21, 9  ;;  %v472_v38 = vrot.slane %v1244_v24, 5 }
  0x2d   : > { %904 = vmatpush.bf16.msra.mxu0 %v1143_v10  ;;  %v558_v39 = vpack.c.b16 %v384_v34, %v383_v28  ;;  %v385_v41 = vunpack.c.l.b16 %v1241_v21  ;;  %v635_v15 = vpack.c.b16 %v1296_v4, %v1279_v56  ;;  %v1406_v21 = vld [vmem:[%s1214_s27 + $0x40] sm:$0xf]  ;;  %v386_v46 = vunpack.c.l.b16 %v1252_v31 }
  0x2e   : > { %1048 = vmatmul.msk.bf16.vlgmr.msrb.gmra.mxu1 %vm330_vm2, %v388_v17  ;;  %v494_v7 = vpack.c.b16 %v488_v33, %v487_v6  ;;  %v469_v42 = vsel %vm1329_vm6, %v1056_v35, %v468_v53  ;;  %v473_v43 = vsel %vm1329_vm6, %v1057_v36, %v472_v38  ;;  %v617_v51 = vshrl.u32 %v1406_v21, 16 }
  0x2f   : > { %v489_v44 = vunpack.c.l.b16 %v469_v42  ;;  %v490_v16 = vunpack.c.l.b16 %v473_v43  ;;  %v390_v45 = vpack.c.b16 %v385_v41, %v384_v34  ;;  %v620_v52 = vshll.u32 %v1406_v21, 16 }
  0x30   : > { %v1058_v56 = vrot.slane %v1252_v31, 9  ;;  %v476_v4 = vrot.slane %v1262_v37, 5  ;;  %v1059_v54 = vrot.slane %v1268_v48, 9  ;;  %v480_v55 = vrot.slane %v1271_v49, 5 }
  0x31   : > { %1066 = vmatmul.msk.bf16.vlgmr.msrb.gmra.mxu2 %vm330_vm2, %v493_v18  ;;  %v495_v24 = vpack.c.b16 %v490_v16, %v489_v44  ;;  %v559_v57 = vpack.c.b16 %v386_v46, %v385_v41  ;;  %v619_v58 = vrot.slane %v617_v51, 4  ;;  %v622_v59 = vrot.slane %v620_v52, 5 }
  0x32   : > { %v387_v62 = vunpack.c.l.b16 %v1268_v48  ;;  %v477_v63 = vsel %vm1329_vm6, %v1058_v56, %v476_v4  ;;  %v481_v0 = vsel %vm1329_vm6, %v1059_v54, %v480_v55  ;;  %v636_v31 = vpack.c.b16 %v1324_v40, %v1304_v12 }
  0x33   : > { %v491_v37 = vunpack.c.l.b16 %v477_v63  ;;  %v492_v1 = vunpack.c.l.b16 %v481_v0  ;;  %v623_v49 = vor.u32 %v622_v59, %v619_v58  ;;  %v626_v9 = vshll.u32 %v189_v60, 16 }
  0x34   : > { %v391_v11 = vpack.c.b16 %v387_v62, %v386_v46  ;;  %v556_v17 = vunpack.c.l.b16 %v1406_v21  ;;  %v702_v20 = vpack.c.b16 %v487_v6, %v486_v13  ;;  %v703_v22 = vpack.c.b16 %v489_v44, %v488_v33 }
  0x35   : > { %v496_v48 = vpack.c.b16 %v492_v1, %v491_v37  ;;  %v624_v10 = vrot.slane %v623_v49, 4  ;;  %v628_v14 = vrot.slane %v626_v9, 5  ;;  %v814_v13 = vshrl.u32 %v190_v3, 16 }
  0x36   : > { %v560_v12 = vpack.c.b16 %v556_v17, %v387_v62  ;;  %v817_v23 = vshll.u32 %v190_v3, 16  ;;  %v696_v26 = vrot.slane %v189_v60, 5  ;;  %v765_v33 = vunpack.c.l.b16 %v190_v3 }
  0x37   : > { %v629_v18 = vsel %vm1256_vm3, %v624_v10, %v628_v14  ;;  %v1121_v38 = vrot.slane %v190_v3, 9 }
  0x38   : > { %1076 = vmatmul.msk.bf16.vlgmr.msrb.gmra.mxu3 %vm330_vm2, %v557_v27  ;;  %v633_v40 = vunpack.c.l.b16 %v629_v18  ;;  %v816_v27 = vrot.slane %v814_v13, 4  ;;  %v819_v28 = vrot.slane %v817_v23, 5  ;;  %v766_v53 = vpack.c.b16 %v765_v33, %v556_v17 }
  0x3a   : > { %v637_v19 = vpack.c.b16 %v633_v40, %v1333_v50  ;;  %v704_v50 = vpack.c.b16 %v491_v37, %v490_v16 }
  0x3c   : > { %1086 = vmatmul.msk.bf16.vlgmr.msrb.gmra.mxu0 %vm330_vm2, %v634_v5  ;;  %v823_v5 = vshll.u32 %v191_v29, 16 }
  0x3e   : > { %1049 = vmatmul.msk.bf16.gmra.mxu1 %vm330_vm2, %v389_v8 }
  0x41   : > { %1067 = vmatmul.msk.bf16.gmra.mxu2 %vm330_vm2, %v494_v7 }
  0x48   : > { %1077 = vmatmul.msk.bf16.gmra.mxu3 %vm330_vm2, %v558_v39  ;;  %v881_v39 = vrot.slane %v191_v29, 5 }
  0x4c   : > { %1087 = vmatmul.msk.bf16.gmra.mxu0 %vm330_vm2, %v635_v15 }
  0x4e   : > { %1050 = vmatmul.msk.bf16.gmra.mxu1 %vm330_vm2, %v390_v45 }
  0x51   : > { %1068 = vmatmul.msk.bf16.gmra.mxu2 %vm330_vm2, %v495_v24 }
  0x58   : > { %1078 = vmatmul.msk.bf16.gmra.mxu3 %vm330_vm2, %v559_v57 }
  0x5c   : > { %1088 = vmatmul.msk.bf16.gmra.mxu0 %vm330_vm2, %v636_v31 }
  0x5e   : > { %1051 = vmatmul.msk.bf16.gmra.mxu1 %vm330_vm2, %v391_v11 }
  0x61   : > { %1069 = vmatmul.msk.bf16.gmra.mxu2 %vm330_vm2, %v496_v48 }
  0x68   : > { %1079 = vmatmul.msk.bf16.gmra.mxu3 %vm330_vm2, %v560_v12 }
  0x6c   : > { %1089 = vmatmul.msk.bf16.gmra.mxu0 %vm330_vm2, %v637_v19 }
  0x6e   : > { %1097 = vmatmul.msk.bf16.vlgmr.msra.gmra.mxu1 %vm330_vm2, %v702_v20 }
  0x71   : > { %1107 = vmatmul.msk.bf16.vlgmr.msra.gmra.mxu2 %vm330_vm2, %v389_v8 }
  0x78   : > { %1117 = vmatmul.msk.bf16.vlgmr.msra.gmra.mxu3 %vm330_vm2, %v1292_v2  ;;  %v1090_v2 = vrot.slane %v1406_v21, 9 }
  0x7a   : > { %v697_v30 = vsel %vm1329_vm6, %v1090_v2, %v696_v26 }
  0x7b   : > { %v701_v6 = vunpack.c.l.b16 %v697_v30 }
  0x7c   : > { %1128 = vmatmul.msk.bf16.vlgmr.msra.gmra.mxu0 %vm330_vm2, %v494_v7  ;;  %v825_v7 = vrot.slane %v823_v5, 5 }
  0x7d   : > { %v705_v34 = vpack.c.b16 %v701_v6, %v492_v1 }
  0x7e   : > { %1098 = vmatmul.msk.bf16.gmra.mxu1 %vm330_vm2, %v703_v22 }
  0x81   : > { %1108 = vmatmul.msk.bf16.gmra.mxu2 %vm330_vm2, %v390_v45 }
  0x88   : > { %1118 = vmatmul.msk.bf16.gmra.mxu3 %vm330_vm2, %v1315_v25  ;;  %v820_v25 = vor.u32 %v819_v28, %v816_v27 }
  0x8a   : > { %v821_v8 = vrot.slane %v820_v25, 4 }
  0x8c   : > { %1129 = vmatmul.msk.bf16.gmra.mxu0 %vm330_vm2, %v495_v24  ;;  %v826_v36 = vsel %vm1256_vm3, %v821_v8, %v825_v7 }
  0x8d   : > { %v830_v41 = vunpack.c.l.b16 %v826_v36 }
  0x8e   : > { %1099 = vmatmul.msk.bf16.gmra.mxu1 %vm330_vm2, %v704_v50 }
  0x8f   : > { %v831_v43 = vpack.c.b16 %v830_v41, %v633_v40 }
  0x91   : > { %1109 = vmatmul.msk.bf16.gmra.mxu2 %vm330_vm2, %v391_v11 }
  0x98   : > { %1119 = vmatmul.msk.bf16.gmra.mxu3 %vm330_vm2, %v1343_v61  ;;  %v882_v61 = vsel %vm1329_vm6, %v1121_v38, %v881_v39  ;;  %v1516_v39 = vld [vmem:[%s1575_s2] ss:$0 sm:$0xff] }
  0x99   : > { %v886_v15 = vunpack.c.l.b16 %v882_v61 }
  0x9b   : > { %v1457_v35 = vpop.f32.mrf.mxu1  ;;  %v887_v32 = vpack.c.b16 %v886_v15, %v701_v6 }
  0x9c   : > { %1130 = vmatmul.msk.bf16.gmra.mxu0 %vm330_vm2, %v496_v48 }
  0x9e   : > { %1100 = vmatmul.msk.bf16.gmra.mxu1 %vm330_vm2, %v705_v34 }
  0xa1   : > { %1110 = vmatmul.msk.bf16.gmra.mxu2 %vm330_vm2, %v766_v53 }
  0xa3   : > { %v1466_v42 = vpop.f32.mrf.mxu1 }
  0xa4   : > { %v1468_v44 = vpop.f32.mrf.mxu2 }
  0xa8   : > { %1120 = vmatmul.msk.bf16.gmra.mxu3 %vm330_vm2, %v831_v43 }
  0xa9   : > { %v352_v16 = vpop.f32.mrf.mxu0 }
  0xab   : > { %v1471_v45 = vpop.f32.mrf.mxu3  ;;  %v419_v24 = vpop.f32.mrf.mxu1 }
  0xac   : > { %1131 = vmatmul.msk.bf16.gmra.mxu0 %vm330_vm2, %v887_v32  ;;  %v1474_v21 = vpop.f32.mrf.mxu2  ;;  %v420_v20 = vadd.f32 %v419_v24, %v352_v16 }
  0xb1   : > { %v354_v46 = vpop.f32.mrf.mxu0 }
  0xb3   : > { %v1476_v47 = vpop.f32.mrf.mxu3  ;;  %v421_v51 = vpop.f32.mrf.mxu1 }
  0xb4   : > { %v524_v52 = vpop.f32.mrf.mxu2  ;;  %v422_v26 = vadd.f32 %v421_v51, %v354_v46 }
  0xb5   : > { %v544_v3 = vadd.f32 %v524_v52, %v420_v20 }
  0xb9   : > { %v665_v56 = vpop.f32.mrf.mxu0 }
  0xbb   : > { %v588_v4 = vpop.f32.mrf.mxu3  ;;  %v424_v54 = vpop.f32.mrf.mxu1 }
  0xbc   : > { %v526_v55 = vpop.f32.mrf.mxu2  ;;  %v608_v23 = vadd.f32 %v588_v4, %v544_v3  ;;  %v425_v7 = vadd.f32 %v424_v54, %v1457_v35 }
  0xbd   : > { %v545_v29 = vadd.f32 %v526_v55, %v422_v26 }
  0xbe   : > { %v685_v30 = vadd.f32 %v665_v56, %v608_v23 }
  0xc1   : > { %v667_v57 = vpop.f32.mrf.mxu0 }
  0xc3   : > { %v590_v58 = vpop.f32.mrf.mxu3  ;;  %v426_v59 = vpop.f32.mrf.mxu1 }
  0xc4   : > { %v529_v62 = vpop.f32.mrf.mxu2  ;;  %v609_v6 = vadd.f32 %v590_v58, %v545_v29  ;;  %v427_v35 = vadd.f32 %v426_v59, %v1466_v42 }
  0xc5   : > { %v546_v36 = vadd.f32 %v529_v62, %v425_v7 }
  0xc6   : > { %v686_v41 = vadd.f32 %v667_v57, %v609_v6 }
  0xc9   : > { %v670_v63 = vpop.f32.mrf.mxu0 }
  0xcb   : > { %v593_v0 = vpop.f32.mrf.mxu3  ;;  %v1478_v60 = vpop.f32.mrf.mxu1 }
  0xcc   : > { %v531_v31 = vpop.f32.mrf.mxu2  ;;  %v610_v32 = vadd.f32 %v593_v0, %v546_v36  ;;  %v430_v3 = vadd.f32 %v1478_v60, %v1468_v44 }
  0xcd   : > { %v547_v4 = vadd.f32 %v531_v31, %v427_v35 }
  0xce   : > { %v687_v57 = vadd.f32 %v670_v63, %v610_v32 }
  0xd1   : > { %v1480_v37 = vpop.f32.mrf.mxu0 }
  0xd3   : > { %v595_v1 = vpop.f32.mrf.mxu3  ;;  %v1482_v49 = vpop.f32.mrf.mxu1 }
  0xd4   : > { %v1484_v9 = vpop.f32.mrf.mxu2  ;;  %v611_v59 = vadd.f32 %v595_v1, %v547_v4 }
  0xd5   : > { %v548_v31 = vadd.f32 %v1484_v9, %v430_v3  ;;  %v432_v9 = vadd.f32 %v1482_v49, %v1474_v21 }
  0xd6   : > { %v688_v29 = vadd.f32 %v1480_v37, %v611_v59 }
  0xd9   : > { %v1486_v11 = vpop.f32.mrf.mxu0 }
  0xdb   : > { %v1488_v48 = vpop.f32.mrf.mxu3  ;;  %v1490_v10 = vpop.f32.mrf.mxu1 }
  0xdc   : > { %v1492_v14 = vpop.f32.mrf.mxu2  ;;  %v612_v6 = vadd.f32 %v1488_v48, %v548_v31 }
  0xdd   : > { %v549_v37 = vadd.f32 %v1492_v14, %v432_v9  ;;  %v435_v14 = vadd.f32 %v1490_v10, %v1471_v45 }
  0xde   : > { %v689_v36 = vadd.f32 %v1486_v11, %v612_v6 }
  0xe1   : > { %v1494_v17 = vpop.f32.mrf.mxu0 }
  0xe3   : > { %v1496_v18 = vpop.f32.mrf.mxu3  ;;  %v1498_v12 = vpop.f32.mrf.mxu1 }
  0xe4   : > { %v1500_v40 = vpop.f32.mrf.mxu2 }
  0xe5   : > { %v550_v11 = vadd.f32 %v1500_v40, %v435_v14  ;;  %v437_v40 = vadd.f32 %v1498_v12, %v1476_v47 }
  0xe9   : > { %v1502_v19 = vpop.f32.mrf.mxu0 }
  0xeb   : > { %v1504_v22 = vpop.f32.mrf.mxu3  ;;  %v733_v50 = vpop.f32.mrf.mxu1 }
  0xec   : > { %v1506_v13 = vpop.f32.mrf.mxu2  ;;  %v753_v5 = vadd.f32 %v733_v50, %v685_v30 }
  0xf1   : > { %v1508_v2 = vpop.f32.mrf.mxu0 }
  0xf3   : > { %v1510_v27 = vpop.f32.mrf.mxu3  ;;  %v735_v28 = vpop.f32.mrf.mxu1 }
  0xf4   : > { %v785_v25 = vpop.f32.mrf.mxu2  ;;  %v754_v15 = vadd.f32 %v735_v28, %v686_v41 }
  0xf5   : > { %v805_v33 = vadd.f32 %v785_v25, %v753_v5 }
  0xf9   : > { %v906_v8 = vpop.f32.mrf.mxu0 }
  0xfb   : > { %v850_v34 = vpop.f32.mrf.mxu3  ;;  %v738_v53 = vpop.f32.mrf.mxu1 }
  0xfc   : > { %v870_v38 = vadd.f32 %v850_v34, %v805_v33  ;;  %v787_v61 = vpop.f32.mrf.mxu2  ;;  %v755_v42 = vadd.f32 %v738_v53, %v687_v57 }
  0xfd   : > { %v806_v24 = vadd.f32 %v787_v61, %v754_v15 }
  0xfe   : > { %v926_v43 = vadd.f32 %v906_v8, %v870_v38 }
 0x100   : > { %v938_v16 = vadd.f32 %v1516_v39, %v926_v43  ;;  %v613_v43 = vadd.f32 %v1496_v18, %v549_v37 }
 0x101   : > { %v908_v46 = vpop.f32.mrf.mxu0 }
 0x102   : > { %v946_v51 = vmax.f32 %v938_v16, 0.0  ;;  %v690_v35 = vadd.f32 %v1494_v17, %v613_v43  ;;  %v551_v17 = vadd.f32 %v1506_v13, %v437_v40 }
 0x103   : > { %v852_v52 = vpop.f32.mrf.mxu3  ;;  %v740_v56 = vpop.f32.mrf.mxu1 }
 0x104   : > { %v954_v54 = vpack.c.bf16 %v946_v51, %v946_v51  ;;  %v871_v55 = vadd.f32 %v852_v52, %v806_v24  ;;  %v790_v58 = vpop.f32.mrf.mxu2  ;;  %v756_v5 = vadd.f32 %v740_v56, %v688_v29  ;;  %v614_v56 = vadd.f32 %v1504_v22, %v550_v11 }
 0x105   : > { %v807_v20 = vadd.f32 %v790_v58, %v755_v42 }
 0x106   : > { %963 = vst.msk [vmem:[%s1524_s16] sm:$0xf] %vm962_vm7, %v954_v54  ;;  %v927_v62 = vadd.f32 %v908_v46, %v871_v55  ;;  %v691_v42 = vadd.f32 %v1502_v19, %v614_v56 }
 0x108   : > { %v939_v0 = vadd.f32 %v1516_v39, %v927_v62 }
 0x109   : > { %v911_v50 = vpop.f32.mrf.mxu0 }
 0x10a   : > { %v947_v23 = vmax.f32 %v939_v0, 0.0 }
 0x10b   : > { %v855_v26 = vpop.f32.mrf.mxu3  ;;  %v743_v25 = vpop.f32.mrf.mxu1 }
 0x10c   : > { %v955_v28 = vpack.c.bf16 %v947_v23, %v947_v23  ;;  %v872_v63 = vadd.f32 %v855_v26, %v807_v20  ;;  %v792_v30 = vpop.f32.mrf.mxu2  ;;  %v757_v41 = vadd.f32 %v743_v25, %v689_v36  ;;  %v615_v20 = vadd.f32 %v1510_v27, %v551_v17 }
 0x10d   : > { %v808_v44 = vadd.f32 %v792_v30, %v756_v5 }
 0x10e   : > { %964 = vst.msk [vmem:[%s1524_s16 + $0x4] sm:$0xf] %vm962_vm7, %v955_v28  ;;  %v928_v1 = vadd.f32 %v911_v50, %v872_v63  ;;  %v692_v19 = vadd.f32 %v1508_v2, %v615_v20 }
 0x110   : > { %v940_v33 = vadd.f32 %v1516_v39, %v928_v1 }
 0x111   : > { %v913_v60 = vpop.f32.mrf.mxu0 }
 0x112   : > { %v948_v8 = vmax.f32 %v940_v33, 0.0 }
 0x113   : > { %v857_v7 = vpop.f32.mrf.mxu3  ;;  %v745_v61 = vpop.f32.mrf.mxu1 }
 0x114   : > { %v956_v34 = vpack.c.bf16 %v948_v8, %v948_v8  ;;  %v873_v53 = vadd.f32 %v857_v7, %v808_v44  ;;  %v795_v38 = vpop.f32.mrf.mxu2  ;;  %v758_v52 = vadd.f32 %v745_v61, %v690_v35 }
 0x115   : > { %v809_v21 = vadd.f32 %v795_v38, %v757_v41 }
 0x116   : > { %965 = vst.msk [vmem:[%s1524_s16 + $0x8] sm:$0xf] %vm962_vm7, %v956_v34  ;;  %v929_v48 = vadd.f32 %v913_v60, %v873_v53 }
 0x118   : > { %v941_v15 = vadd.f32 %v1516_v39, %v929_v48 }
 0x119   : > { %v916_v49 = vpop.f32.mrf.mxu0 }
 0x11a   : > { %v949_v32 = vmax.f32 %v941_v15, 0.0 }
 0x11b   : > { %v860_v16 = vpop.f32.mrf.mxu3  ;;  %v748_v45 = vpop.f32.mrf.mxu1 }
 0x11c   : > { %v957_v24 = vpack.c.bf16 %v949_v32, %v949_v32  ;;  %v874_v46 = vadd.f32 %v860_v16, %v809_v21  ;;  %v797_v51 = vpop.f32.mrf.mxu2  ;;  %v759_v0 = vadd.f32 %v748_v45, %v691_v42 }
 0x11d   : > { %v810_v54 = vadd.f32 %v797_v51, %v758_v52 }
 0x11e   : > { %966 = vst.msk [vmem:[%s1524_s16 + $0xc] sm:$0xf] %vm962_vm7, %v957_v24  ;;  %v930_v18 = vadd.f32 %v916_v49, %v874_v46 }
 0x120   : > { %v942_v4 = vadd.f32 %v1516_v39, %v930_v18 }
 0x121   : > { %v918_v10 = vpop.f32.mrf.mxu0 }
 0x122   : > { %v950_v55 = vmax.f32 %v942_v4, 0.0 }
 0x123   : > { %v862_v57 = vpop.f32.mrf.mxu3  ;;  %v750_v12 = vpop.f32.mrf.mxu1 }
 0x124   : > { %v958_v58 = vpack.c.bf16 %v950_v55, %v950_v55  ;;  %v875_v62 = vadd.f32 %v862_v57, %v810_v54  ;;  %v800_v59 = vpop.f32.mrf.mxu2  ;;  %v760_v29 = vadd.f32 %v750_v12, %v692_v19 }
 0x125   : > { %v811_v3 = vadd.f32 %v800_v59, %v759_v0 }
 0x126   : > { %967 = vst.msk [vmem:[%s1524_s16 + $0x10] sm:$0xf] %vm962_vm7, %v958_v58  ;;  %v931_v22 = vadd.f32 %v918_v10, %v875_v62 }
 0x128   : > { %v943_v50 = vadd.f32 %v1516_v39, %v931_v22 }
 0x129   : > { %v921_v23 = vpop.f32.mrf.mxu0 }
 0x12a   : > { %v951_v47 = vmax.f32 %v943_v50, 0.0 }
 0x12b   : > { %v865_v13 = vpop.f32.mrf.mxu3 }
 0x12c   : > { %v959_v26 = vpack.c.bf16 %v951_v47, %v951_v47  ;;  %v876_v31 = vadd.f32 %v865_v13, %v811_v3  ;;  %v802_v28 = vpop.f32.mrf.mxu2 }
 0x12d   : > { %v812_v30 = vadd.f32 %v802_v28, %v760_v29 }
 0x12e   : > { %968 = vst.msk [vmem:[%s1524_s16 + $0x14] sm:$0xf] %vm962_vm7, %v959_v26  ;;  %v932_v63 = vadd.f32 %v921_v23, %v876_v31 }
 0x130   : > { %v944_v27 = vadd.f32 %v1516_v39, %v932_v63 }
 0x131   : > { %v923_v33 = vpop.f32.mrf.mxu0 }
 0x132   : > { %v952_v25 = vmax.f32 %v944_v27, 0.0 }
 0x133   : > { %v867_v1 = vpop.f32.mrf.mxu3 }
 0x134   : > { %v960_v5 = vpack.c.bf16 %v952_v25, %v952_v25  ;;  %v877_v6 = vadd.f32 %v867_v1, %v812_v30 }
 0x136   : > { %969 = vst.msk [vmem:[%s1524_s16 + $0x18] sm:$0xf] %vm962_vm7, %v960_v5  ;;  %v933_v44 = vadd.f32 %v923_v33, %v877_v6 }
 0x138   : > { %v945_v60 = vadd.f32 %v1516_v39, %v933_v44 }
 0x13a   : > { %v953_v2 = vmax.f32 %v945_v60, 0.0 }
 0x13c   : > { %v961_v9 = vpack.c.bf16 %v953_v2, %v953_v2 }
 0x13e   : > { %970 = vst.msk [vmem:[%s1524_s16 + $0x1c] sm:$0xf] %vm962_vm7, %v961_v9 }
 0x13f PF: > { %s13_s12 = sadd.s32 1, %s1163_s12  }
 0x140   : > { %p10_p4 = scmp.ge.s32.totalorder %s13_s12, 4  }
 0x142   :  { %12 = sbr.rel (!%p10_p4) target bundleno = 1 (0x1), region = 70 }

// kernel: asp_ocnet_forward.17
= control target key start
LH: loop header
LB: loop body
LE: loop exit
PB: predicated region body
PF: predicated region fallthrough
CT: control target
= control target key end

     0   :  { %s1321_s12 = smov 0   ;;  %s1748_s0 = inlined_call_operand.vmem [shape: bf16[2,10,10,32], index: 0, kind: input, shape index: {}]   ;;  %s1749_s1 = inlined_call_operand.vmem [shape: bf16[9,32,64], index: 1, kind: input, shape index: {}]   ;;  %s1750_s2 = inlined_call_operand.vmem [shape: f32[1,64], index: 2, kind: input, shape index: {}]   ;;  %s1751_s3 = inlined_call_operand.vmem [shape: bf16[2,8,8,64], index: 3, kind: output, shape index: {}]  }
   0x1 LB: > { %s1098_s13 = sadd.s32 4294967295, %s1299_s12   ;;  %p1102_p0 = scmp.ge.s32.totalorder %s1299_s12, 1  ;;  %s1299_s12 = sphi %s1321_s12, %s13_s12  }
   0x2   : > { %p137_p1 = scmp.lt.s32.totalorder %s1299_s12, 3 }
   0x4   : > { %p138_p2 = pnand %p1102_p0, %p137_p1 }
   0x5   : > { %p161_p3 = scmp.lt.s32.totalorder (!%p138_p2), %s1098_s13, 1 }
   0x6   : > { %141 = sbr.rel (%p138_p2) target bundleno = 319 (0x13f), region = 32 }
   0xb   : > { %v1262_v0 = vld [vmem:[%s1749_s1 + $0x18] sm:$0xff]  ;;  %v1261_v1 = vld [vmem:[%s1749_s1 + $0x10] sm:$0xff]  ;;  %s1757_s13 = smov (!%p161_p3, %s1098_s13), 1  ;;  %v1264_v2 = vld [vmem:[%s1749_s1 + $0x28] sm:$0xff]  ;;  %vm196_vm0 = vsmask.f32 3328 }
   0xc   : > { %1277 = vmatpush.bf16.msra.mxu1 %v1262_v0  ;;  %1278 = vmatpush.bf16.msra.mxu2 %v1262_v0  ;;  %s1283_s18 = smul.u32 80, %s1757_s13  ;;  %v1266_v3 = vld [vmem:[%s1749_s1 + $0x38] sm:$0xff]  ;;  %v1260_v4 = vld [vmem:[%s1749_s1 + $0x8] sm:$0xff]  ;;  %vm197_vm1 = vsmask.f32 7440  ;;  %v1263_v6 = vld [vmem:[%s1749_s1 + $0x20] sm:$0xff] }
   0xd   : > { %1279 = vmatpush.bf16.msra.mxu3 %v1262_v0  ;;  %359 = vmatpush.bf16.msra.mxu0 %v1262_v0  ;;  %v1268_v5 = vld [vmem:[%s1749_s1 + $0x48] sm:$0xff]  ;;  %v1265_v7 = vld [vmem:[%s1749_s1 + $0x30] sm:$0xff]  ;;  %v1259_v11 = vld [vmem:[%s1749_s1] sm:$0xff]  ;;  %vm340_vm2 = vcmask 261120   ;;  %vm463_vm4 = vcmask 1042432   ;;  %vm464_vm5 = vcmask 1046532  }
   0xe   : > { %s1353_s29 = scalar_lea.vmem %s1748_s0, %s1283_s18  ;;  %v1267_v12 = vld [vmem:[%s1749_s1 + $0x40] sm:$0xff]  ;;  %vm1407_vm3 = vmor %vm196_vm0, %vm197_vm1  ;;  %s1258_s4 = sshll.u32 %s1757_s13, 5  ;;  %vm1034_vm7 = vcmask 519168  }
   0xf   : > { %v1362_v8 = vld [vmem:[%s1353_s29 + $0x10] sm:$0xf]  ;;  %v1365_v9 = vld [vmem:[%s1353_s29 + $0x14] sm:$0x1]  ;;  %v1368_v10 = vld [vmem:[%s1353_s29 + $0x18] sm:$0xf]  ;;  %s1699_s7 = scalar_lea.vmem %s1751_s3, %s1258_s4 }
  0x10   : > { %1280 = vmatpush.bf16.msra.mxu1 %v1261_v1  ;;  %1281 = vmatpush.bf16.msra.mxu2 %v1261_v1  ;;  %v1377_v13 = vld [vmem:[%s1353_s29 + $0x1c] sm:$0x1]  ;;  %v228_v14 = vshrl.u32 %v1362_v8, 16  ;;  %v231_v15 = vshll.u32 %v1362_v8, 16  ;;  %v237_v16 = vshll.u32 %v1365_v9, 16  ;;  %v242_v17 = vshrl.u32 %v1368_v10, 16  ;;  %vm1480_vm6 = vmor %vm463_vm4, %vm464_vm5 }
  0x11   : > { %1282 = vmatpush.bf16.msra.mxu3 %v1261_v1  ;;  %360 = vmatpush.bf16.msra.mxu0 %v1261_v1  ;;  %v245_v18 = vshll.u32 %v1368_v10, 16  ;;  %v251_v19 = vshll.u32 %v1377_v13, 16  ;;  %v1386_v20 = vld [vmem:[%s1353_s29 + $0x20] sm:$0xf]  ;;  %v1389_v21 = vld [vmem:[%s1353_s29 + $0x24] sm:$0x1] }
  0x12   : > { %v230_v22 = vrot.slane %v228_v14, 4  ;;  %v233_v23 = vrot.slane %v231_v15, 5  ;;  %v239_v24 = vrot.slane %v237_v16, 5  ;;  %v244_v25 = vrot.slane %v242_v17, 4  ;;  %v1392_v26 = vld [vmem:[%s1353_s29 + $0x28] sm:$0xf] }
  0x13   : > { %v247_v27 = vrot.slane %v245_v18, 5  ;;  %v253_v28 = vrot.slane %v251_v19, 5  ;;  %v1395_v29 = vld [vmem:[%s1353_s29 + $0x2c] sm:$0x1]  ;;  %v256_v30 = vshrl.u32 %v1386_v20, 16  ;;  %v259_v31 = vshll.u32 %v1386_v20, 16 }
  0x14   : > { %545 = vmatpush.bf16.msrb.mxu2 %v1264_v2  ;;  %432 = vmatpush.bf16.msrb.mxu1 %v1260_v4  ;;  %v234_v32 = vor.u32 %v233_v23, %v230_v22  ;;  %v265_v33 = vshll.u32 %v1389_v21, 16  ;;  %v270_v34 = vshrl.u32 %v1392_v26, 16  ;;  %v273_v35 = vshll.u32 %v1392_v26, 16  ;;  %v1403_v36 = vld [vmem:[%s1353_s29 + $0x30] sm:$0xf]  ;;  %v1270_v16 = vld [vmem:[%s1749_s1 + $0x58] sm:$0xff] }
  0x15   : > { %617 = vmatpush.bf16.msrb.mxu3 %v1266_v3  ;;  %702 = vmatpush.bf16.msrb.mxu0 %v1268_v5  ;;  %v248_v38 = vor.u32 %v247_v27, %v244_v25  ;;  %v258_v39 = vrot.slane %v256_v30, 4  ;;  %v261_v40 = vrot.slane %v259_v31, 5  ;;  %v279_v41 = vshll.u32 %v1395_v29, 16  ;;  %v1413_v42 = vld [vmem:[%s1353_s29 + $0x34] sm:$0x1] }
  0x16   : > { %v235_v43 = vrot.slane %v234_v32, 4  ;;  %v267_v44 = vrot.slane %v265_v33, 5  ;;  %v272_v45 = vrot.slane %v270_v34, 4  ;;  %v275_v46 = vrot.slane %v273_v35, 5  ;;  %v1419_v53 = vld [vmem:[%s1353_s29 + $0x38] sm:$0xf] }
  0x17   : > { %v249_v47 = vrot.slane %v248_v38, 4  ;;  %v262_v48 = vor.u32 %v261_v40, %v258_v39  ;;  %v281_v49 = vrot.slane %v279_v41, 5  ;;  %v284_v50 = vshrl.u32 %v1403_v36, 16  ;;  %v1422_v54 = vld [vmem:[%s1353_s29 + $0x3c] sm:$0x1] }
  0x18   : > { %546 = vmatpush.bf16.msrb.mxu2 %v1263_v6  ;;  %433 = vmatpush.bf16.msrb.mxu1 %v1259_v11  ;;  %v240_v51 = vsel %vm1407_vm3, %v235_v43, %v239_v24  ;;  %v276_v52 = vor.u32 %v275_v46, %v272_v45  ;;  %v287_v55 = vshll.u32 %v1403_v36, 16  ;;  %v293_v56 = vshll.u32 %v1413_v42, 16  ;;  %v1433_v1 = vld [vmem:[%s1353_s29] sm:$0xf]  ;;  %v173_v6 = vld [vmem:[%s1353_s29 + $0x4] sm:$0x1] }
  0x19   : > { %618 = vmatpush.bf16.msrb.mxu3 %v1265_v7  ;;  %703 = vmatpush.bf16.msrb.mxu0 %v1267_v12  ;;  %v254_v57 = vsel %vm1407_vm3, %v249_v47, %v253_v28  ;;  %v1428_v58 = vunpack.c.l.b16 %v240_v51  ;;  %v263_v59 = vrot.slane %v262_v48, 4  ;;  %v286_v60 = vrot.slane %v284_v50, 4  ;;  %v1450_v15 = vld [vmem:[%s1353_s29 + $0x8] sm:$0xf]  ;;  %v175_v32 = vld [vmem:[%s1353_s29 + $0xc] sm:$0x1] }
  0x1a   : > { %v1430_v61 = vunpack.c.l.b16 %v254_v57  ;;  %v277_v62 = vrot.slane %v276_v52, 4  ;;  %v289_v63 = vrot.slane %v287_v55, 5  ;;  %v295_v0 = vrot.slane %v293_v56, 5  ;;  %v1272_v28 = vld [vmem:[%s1749_s1 + $0x68] sm:$0xff] }
  0x1b   : > { %v268_v2 = vsel %vm1407_vm3, %v263_v59, %v267_v44  ;;  %v298_v3 = vshrl.u32 %v1419_v53, 16  ;;  %v301_v4 = vshll.u32 %v1419_v53, 16  ;;  %v307_v5 = vshll.u32 %v1422_v54, 16 }
  0x1c   : > { %v1443_v7 = vpack.c.b16 %v1430_v61, %v1428_v58  ;;  %v282_v11 = vsel %vm1407_vm3, %v277_v62, %v281_v49  ;;  %v1447_v12 = vunpack.c.l.b16 %v268_v2  ;;  %v290_v14 = vor.u32 %v289_v63, %v286_v60 }
  0x1d   : > { %v1455_v17 = vunpack.c.l.b16 %v282_v11  ;;  %v300_v18 = vrot.slane %v298_v3, 4  ;;  %v303_v19 = vrot.slane %v301_v4, 5  ;;  %v309_v22 = vrot.slane %v307_v5, 5 }
  0x1e   : > { %1119 = vmatmul.msk.bf16.vlgmr.msra.gmra.mxu1 %vm340_vm2, %v1443_v7  ;;  %v291_v23 = vrot.slane %v290_v14, 4  ;;  %v200_v24 = vshrl.u32 %v1433_v1, 16  ;;  %v203_v25 = vshll.u32 %v1433_v1, 16  ;;  %v209_v27 = vshll.u32 %v173_v6, 16 }
  0x1f   : > { %v1466_v30 = vpack.c.b16 %v1455_v17, %v1447_v12  ;;  %v304_v31 = vor.u32 %v303_v19, %v300_v18  ;;  %v214_v33 = vshrl.u32 %v1450_v15, 16  ;;  %v217_v34 = vshll.u32 %v1450_v15, 16  ;;  %778 = vmatpush.bf16.msra.mxu1 %v1270_v16 }
  0x20   : > { %v296_v35 = vsel %vm1407_vm3, %v291_v23, %v295_v0  ;;  %v202_v38 = vrot.slane %v200_v24, 4  ;;  %v205_v39 = vrot.slane %v203_v25, 5  ;;  %v211_v41 = vrot.slane %v209_v27, 5  ;;  %v1274_v0 = vld [vmem:[%s1749_s1 + $0x78] sm:$0xff] }
  0x21   : > { %1120 = vmatmul.msk.bf16.vlgmr.msra.gmra.mxu2 %vm340_vm2, %v1466_v30  ;;  %v305_v40 = vrot.slane %v304_v31, 4  ;;  %v216_v43 = vrot.slane %v214_v33, 4  ;;  %v219_v44 = vrot.slane %v217_v34, 5  ;;  %v1475_v45 = vunpack.c.l.b16 %v296_v35 }
  0x22   : > { %v206_v46 = vor.u32 %v205_v39, %v202_v38  ;;  %v223_v47 = vshll.u32 %v175_v32, 16  ;;  %v468_v48 = vrot.slane %v173_v6, 5  ;;  %838 = vmatpush.bf16.msra.mxu2 %v1272_v28  ;;  %v472_v51 = vrot.slane %v175_v32, 5  ;;  %v1273_v39 = vld [vmem:[%s1749_s1 + $0x70] sm:$0xff] }
  0x23   : > { %v310_v49 = vsel %vm1407_vm3, %v305_v40, %v309_v22  ;;  %v220_v50 = vor.u32 %v219_v44, %v216_v43  ;;  %v1134_v59 = vrot.slane %v1433_v1, 9  ;;  %v390_v62 = vunpack.c.l.b16 %v1433_v1  ;;  %v1275_v40 = vld [vmem:[%s1749_s1 + $0x80] sm:$0xff] }
  0x24   : > { %v1484_v55 = vunpack.c.l.b16 %v310_v49  ;;  %v207_v56 = vrot.slane %v206_v46, 4  ;;  %v225_v57 = vrot.slane %v223_v47, 5  ;;  %v1135_v63 = vrot.slane %v1450_v15, 9 }
  0x25   : > { %v221_v60 = vrot.slane %v220_v50, 4  ;;  %v391_v4 = vunpack.c.l.b16 %v1450_v15  ;;  %v469_v5 = vsel %vm1480_vm6, %v1134_v59, %v468_v48  ;;  %v1276_v15 = vld [vmem:[%s1749_s1 + $0x88] sm:$0xff]  ;;  %v392_v24 = vunpack.c.l.b16 %v1362_v8 }
  0x26   : > { %v1494_v2 = vpack.c.b16 %v1484_v55, %v1475_v45  ;;  %v212_v3 = vsel %vm1407_vm3, %v207_v56, %v211_v41  ;;  %v1505_v11 = vsel %vm1480_vm6, %v1135_v63, %v472_v51  ;;  %v503_v16 = vunpack.c.l.b16 %v469_v5 }
  0x27   : > { %v226_v1 = vsel %vm1407_vm3, %v221_v60, %v225_v57  ;;  %v316_v6 = vunpack.c.l.b16 %v212_v3  ;;  %v504_v18 = vunpack.c.l.b16 %v1505_v11  ;;  %v398_v22 = vpack.c.b16 %v391_v4, %v390_v62  ;;  %v190_v11 = vld [vmem:[%s1353_s29 + $0x48] sm:$0xf] }
  0x28   : > { %1121 = vmatmul.msk.bf16.vlgmr.msra.gmra.mxu3 %vm340_vm2, %v1494_v2  ;;  %v317_v14 = vunpack.c.l.b16 %v226_v1  ;;  %v1136_v25 = vrot.slane %v1362_v8, 9  ;;  %v476_v27 = vrot.slane %v1365_v9, 5  ;;  %v1137_v28 = vrot.slane %v1368_v10, 9  ;;  %v1271_v9 = vld [vmem:[%s1749_s1 + $0x60] sm:$0xff] }
  0x29   : > { %911 = vmatpush.bf16.msra.mxu3 %v1274_v0  ;;  %v511_v23 = vpack.c.b16 %v504_v18, %v503_v16  ;;  %v480_v31 = vrot.slane %v1377_v13, 5  ;;  %v583_v32 = vpack.c.b16 %v392_v24, %v391_v4  ;;  %v393_v33 = vunpack.c.l.b16 %v1368_v10  ;;  %839 = vmatpush.bf16.msra.mxu2 %v1271_v9 }
  0x2a   : > { %v324_v19 = vpack.c.b16 %v317_v14, %v316_v6  ;;  %v1526_v34 = vsel %vm1480_vm6, %v1136_v25, %v476_v27  ;;  %v668_v8 = vpack.c.b16 %v1428_v58, %v317_v14  ;;  %v1269_v58 = vld [vmem:[%s1749_s1 + $0x50] sm:$0xff]  ;;  %v394_v43 = vunpack.c.l.b16 %v1386_v20 }
  0x2b   : > { %v1530_v35 = vsel %vm1480_vm6, %v1137_v28, %v480_v31  ;;  %v505_v13 = vunpack.c.l.b16 %v1526_v34  ;;  %v1539_v38 = vpack.c.b16 %v393_v33, %v392_v24  ;;  %779 = vmatpush.bf16.msra.mxu1 %v1269_v58  ;;  %v1138_v44 = vrot.slane %v1386_v20, 9 }
  0x2c   : > { %1118 = vmatmul.msk.bf16.vlgmr.msra.gmra.mxu0 %vm340_vm2, %v324_v19  ;;  %v506_v10 = vunpack.c.l.b16 %v1530_v35  ;;  %v484_v46 = vrot.slane %v1389_v21, 5  ;;  %v1139_v47 = vrot.slane %v1392_v26, 9  ;;  %v488_v48 = vrot.slane %v1395_v29, 5 }
  0x2d   : > { %975 = vmatpush.bf16.msra.mxu0 %v1276_v15  ;;  %912 = vmatpush.bf16.msra.mxu3 %v1273_v39  ;;  %v584_v49 = vpack.c.b16 %v394_v43, %v393_v33  ;;  %v395_v50 = vunpack.c.l.b16 %v1392_v26  ;;  %v669_v20 = vpack.c.b16 %v1447_v12, %v1430_v61  ;;  %v1577_v26 = vld [vmem:[%s1353_s29 + $0x40] sm:$0xf]  ;;  %v396_v60 = vunpack.c.l.b16 %v1403_v36  ;;  %v189_v15 = vld [vmem:[%s1353_s29 + $0x44] sm:$0x1] }
  0x2e   : > { %1130 = vmatmul.msk.bf16.vlgmr.msrb.gmra.mxu1 %vm340_vm2, %v398_v22  ;;  %v1555_v41 = vpack.c.b16 %v506_v10, %v505_v13  ;;  %v485_v51 = vsel %vm1480_vm6, %v1138_v44, %v484_v46  ;;  %v489_v56 = vsel %vm1480_vm6, %v1139_v47, %v488_v48  ;;  %v649_v62 = vshrl.u32 %v1577_v26, 16 }
  0x2f   : > { %v507_v57 = vunpack.c.l.b16 %v485_v51  ;;  %v508_v21 = vunpack.c.l.b16 %v489_v56  ;;  %v400_v59 = vpack.c.b16 %v395_v50, %v394_v43  ;;  %v652_v63 = vshll.u32 %v1577_v26, 16 }
  0x30   : > { %v1140_v61 = vrot.slane %v1403_v36, 9  ;;  %v492_v12 = vrot.slane %v1413_v42, 5  ;;  %v1141_v0 = vrot.slane %v1419_v53, 9  ;;  %v496_v3 = vrot.slane %v1422_v54, 5 }
  0x31   : > { %1154 = vmatmul.msk.bf16.vlgmr.msrb.gmra.mxu2 %vm340_vm2, %v511_v23  ;;  %976 = vmatpush.bf16.msra.mxu0 %v1275_v40  ;;  %v513_v29 = vpack.c.b16 %v508_v21, %v507_v57  ;;  %v585_v4 = vpack.c.b16 %v396_v60, %v395_v50  ;;  %v651_v5 = vrot.slane %v649_v62, 4  ;;  %v654_v1 = vrot.slane %v652_v63, 5 }
  0x32   : > { %v397_v6 = vunpack.c.l.b16 %v1419_v53  ;;  %v493_v14 = vsel %vm1480_vm6, %v1140_v61, %v492_v12  ;;  %v497_v16 = vsel %vm1480_vm6, %v1141_v0, %v496_v3  ;;  %v670_v36 = vpack.c.b16 %v1475_v45, %v1455_v17 }
  0x33   : > { %v509_v42 = vunpack.c.l.b16 %v493_v14  ;;  %v510_v19 = vunpack.c.l.b16 %v497_v16  ;;  %v655_v54 = vor.u32 %v654_v1, %v651_v5  ;;  %v658_v22 = vshll.u32 %v189_v15, 16 }
  0x34   : > { %v401_v23 = vpack.c.b16 %v397_v6, %v396_v60  ;;  %v582_v27 = vunpack.c.l.b16 %v1577_v26  ;;  %v745_v33 = vpack.c.b16 %v507_v57, %v506_v10  ;;  %v1190_v34 = vrot.slane %v1577_v26, 9 }
  0x35   : > { %v514_v53 = vpack.c.b16 %v510_v19, %v509_v42  ;;  %v656_v24 = vrot.slane %v655_v54, 4  ;;  %v660_v25 = vrot.slane %v658_v22, 5  ;;  %v736_v35 = vrot.slane %v189_v15, 5 }
  0x36   : > { %v586_v17 = vpack.c.b16 %v582_v27, %v397_v6  ;;  %v815_v58 = vunpack.c.l.b16 %v190_v11  ;;  %v1239_v48 = vrot.slane %v190_v11, 9 }
  0x37   : > { %v661_v28 = vsel %vm1407_vm3, %v656_v24, %v660_v25  ;;  %v737_v10 = vsel %vm1480_vm6, %v1190_v34, %v736_v35 }
  0x38   : > { %1170 = vmatmul.msk.bf16.vlgmr.msrb.gmra.mxu3 %vm340_vm2, %v583_v32  ;;  %v667_v45 = vunpack.c.l.b16 %v661_v28  ;;  %v744_v32 = vpack.c.b16 %v505_v13, %v504_v18  ;;  %v870_v18 = vshrl.u32 %v190_v11, 16  ;;  %v191_v13 = vld [vmem:[%s1353_s29 + $0x4c] sm:$0x1]  ;;  %v743_v39 = vunpack.c.l.b16 %v737_v10 }
  0x39   : > { %v816_v46 = vpack.c.b16 %v815_v58, %v582_v27 }
  0x3a   : > { %v671_v31 = vpack.c.b16 %v667_v45, %v1484_v55  ;;  %v746_v55 = vpack.c.b16 %v509_v42, %v508_v21  ;;  %v747_v43 = vpack.c.b16 %v743_v39, %v510_v19 }
  0x3c   : > { %1186 = vmatmul.msk.bf16.vlgmr.msrb.gmra.mxu0 %vm340_vm2, %v668_v8  ;;  %v872_v8 = vrot.slane %v870_v18, 4 }
  0x3e   : > { %1131 = vmatmul.msk.bf16.gmra.mxu1 %vm340_vm2, %v1539_v38 }
  0x41   : > { %1155 = vmatmul.msk.bf16.gmra.mxu2 %vm340_vm2, %v1555_v41 }
  0x48   : > { %1171 = vmatmul.msk.bf16.gmra.mxu3 %vm340_vm2, %v584_v49  ;;  %v945_v49 = vrot.slane %v191_v13, 5 }
  0x4c   : > { %1187 = vmatmul.msk.bf16.gmra.mxu0 %vm340_vm2, %v669_v20 }
  0x4e   : > { %1132 = vmatmul.msk.bf16.gmra.mxu1 %vm340_vm2, %v400_v59 }
  0x51   : > { %1156 = vmatmul.msk.bf16.gmra.mxu2 %vm340_vm2, %v513_v29 }
  0x58   : > { %1172 = vmatmul.msk.bf16.gmra.mxu3 %vm340_vm2, %v585_v4 }
  0x5c   : > { %1188 = vmatmul.msk.bf16.gmra.mxu0 %vm340_vm2, %v670_v36 }
  0x5e   : > { %1133 = vmatmul.msk.bf16.gmra.mxu1 %vm340_vm2, %v401_v23 }
  0x61   : > { %1157 = vmatmul.msk.bf16.gmra.mxu2 %vm340_vm2, %v514_v53 }
  0x68   : > { %1173 = vmatmul.msk.bf16.gmra.mxu3 %vm340_vm2, %v586_v17 }
  0x6c   : > { %1189 = vmatmul.msk.bf16.gmra.mxu0 %vm340_vm2, %v671_v31 }
  0x6e   : > { %1203 = vmatmul.msk.bf16.vlgmr.msra.gmra.mxu1 %vm340_vm2, %v744_v32 }
  0x71   : > { %1219 = vmatmul.msk.bf16.vlgmr.msra.gmra.mxu2 %vm340_vm2, %v1539_v38  ;;  %v879_v38 = vshll.u32 %v191_v13, 16 }
  0x78   : > { %1235 = vmatmul.msk.bf16.vlgmr.msra.gmra.mxu3 %vm340_vm2, %v1443_v7  ;;  %v873_v7 = vshll.u32 %v190_v11, 16 }
  0x7a   : > { %v875_v9 = vrot.slane %v873_v7, 5 }
  0x7c   : > { %1252 = vmatmul.msk.bf16.vlgmr.msra.gmra.mxu0 %vm340_vm2, %v1555_v41  ;;  %v881_v41 = vrot.slane %v879_v38, 5 }
  0x7e   : > { %1204 = vmatmul.msk.bf16.gmra.mxu1 %vm340_vm2, %v745_v33 }
  0x81   : > { %1220 = vmatmul.msk.bf16.gmra.mxu2 %vm340_vm2, %v400_v59 }
  0x88   : > { %1236 = vmatmul.msk.bf16.gmra.mxu3 %vm340_vm2, %v1466_v30  ;;  %v876_v30 = vor.u32 %v875_v9, %v872_v8 }
  0x8a   : > { %v877_v40 = vrot.slane %v876_v30, 4 }
  0x8c   : > { %1253 = vmatmul.msk.bf16.gmra.mxu0 %vm340_vm2, %v513_v29  ;;  %v882_v47 = vsel %vm1407_vm3, %v877_v40, %v881_v41 }
  0x8d   : > { %v888_v50 = vunpack.c.l.b16 %v882_v47 }
  0x8e   : > { %1205 = vmatmul.msk.bf16.gmra.mxu1 %vm340_vm2, %v746_v55 }
  0x8f   : > { %v889_v56 = vpack.c.b16 %v888_v50, %v667_v45 }
  0x91   : > { %1221 = vmatmul.msk.bf16.gmra.mxu2 %vm340_vm2, %v401_v23 }
  0x98   : > { %1237 = vmatmul.msk.bf16.gmra.mxu3 %vm340_vm2, %v1494_v2  ;;  %v946_v2 = vsel %vm1480_vm6, %v1239_v48, %v945_v49  ;;  %v1691_v49 = vld [vmem:[%s1750_s2] ss:$0 sm:$0xff] }
  0x99   : > { %v952_v20 = vunpack.c.l.b16 %v946_v2 }
  0x9b   : > { %v1632_v44 = vpop.f32.mrf.mxu1  ;;  %v953_v37 = vpack.c.b16 %v952_v20, %v743_v39 }
  0x9c   : > { %1254 = vmatmul.msk.bf16.gmra.mxu0 %vm340_vm2, %v514_v53 }
  0x9e   : > { %1206 = vmatmul.msk.bf16.gmra.mxu1 %vm340_vm2, %v747_v43 }
  0xa1   : > { %1222 = vmatmul.msk.bf16.gmra.mxu2 %vm340_vm2, %v816_v46 }
  0xa3   : > { %v1641_v51 = vpop.f32.mrf.mxu1 }
  0xa4   : > { %v1643_v57 = vpop.f32.mrf.mxu2 }
  0xa8   : > { %1238 = vmatmul.msk.bf16.gmra.mxu3 %vm340_vm2, %v889_v56 }
  0xa9   : > { %v362_v21 = vpop.f32.mrf.mxu0 }
  0xab   : > { %v1646_v59 = vpop.f32.mrf.mxu3  ;;  %v435_v29 = vpop.f32.mrf.mxu1 }
  0xac   : > { %1255 = vmatmul.msk.bf16.gmra.mxu0 %vm340_vm2, %v953_v37  ;;  %v1649_v26 = vpop.f32.mrf.mxu2  ;;  %v436_v32 = vadd.f32 %v435_v29, %v362_v21 }
  0xb1   : > { %v364_v60 = vpop.f32.mrf.mxu0 }
  0xb3   : > { %v1651_v52 = vpop.f32.mrf.mxu3  ;;  %v437_v62 = vpop.f32.mrf.mxu1 }
  0xb4   : > { %v548_v63 = vpop.f32.mrf.mxu2  ;;  %v438_v35 = vadd.f32 %v437_v62, %v364_v60 }
  0xb5   : > { %v568_v11 = vadd.f32 %v548_v63, %v436_v32 }
  0xb9   : > { %v705_v61 = vpop.f32.mrf.mxu0 }
  0xbb   : > { %v620_v12 = vpop.f32.mrf.mxu3  ;;  %v440_v0 = vpop.f32.mrf.mxu1 }
  0xbc   : > { %v550_v3 = vpop.f32.mrf.mxu2  ;;  %v640_v7 = vadd.f32 %v620_v12, %v568_v11  ;;  %v441_v41 = vadd.f32 %v440_v0, %v1632_v44 }
  0xbd   : > { %v569_v13 = vadd.f32 %v550_v3, %v438_v35 }
  0xbe   : > { %v725_v10 = vadd.f32 %v705_v61, %v640_v7 }
  0xc1   : > { %v707_v4 = vpop.f32.mrf.mxu0 }
  0xc3   : > { %v622_v5 = vpop.f32.mrf.mxu3  ;;  %v442_v1 = vpop.f32.mrf.mxu1 }
  0xc4   : > { %v553_v6 = vpop.f32.mrf.mxu2  ;;  %v641_v39 = vadd.f32 %v622_v5, %v569_v13  ;;  %v443_v44 = vadd.f32 %v442_v1, %v1641_v51 }
  0xc5   : > { %v570_v47 = vadd.f32 %v553_v6, %v441_v41 }
  0xc6   : > { %v726_v50 = vadd.f32 %v707_v4, %v641_v39 }
  0xc9   : > { %v710_v14 = vpop.f32.mrf.mxu0 }
  0xcb   : > { %v625_v16 = vpop.f32.mrf.mxu3  ;;  %v1653_v15 = vpop.f32.mrf.mxu1 }
  0xcc   : > { %v555_v36 = vpop.f32.mrf.mxu2  ;;  %v642_v37 = vadd.f32 %v625_v16, %v570_v47  ;;  %v446_v11 = vadd.f32 %v1653_v15, %v1643_v57 }
  0xcd   : > { %v571_v12 = vadd.f32 %v555_v36, %v443_v44 }
  0xce   : > { %v727_v4 = vadd.f32 %v710_v14, %v642_v37 }
  0xd1   : > { %v1655_v42 = vpop.f32.mrf.mxu0 }
  0xd3   : > { %v627_v19 = vpop.f32.mrf.mxu3  ;;  %v1657_v54 = vpop.f32.mrf.mxu1 }
  0xd4   : > { %v1659_v22 = vpop.f32.mrf.mxu2  ;;  %v643_v1 = vadd.f32 %v627_v19, %v571_v12 }
  0xd5   : > { %v572_v36 = vadd.f32 %v1659_v22, %v446_v11  ;;  %v448_v22 = vadd.f32 %v1657_v54, %v1649_v26 }
  0xd6   : > { %v728_v13 = vadd.f32 %v1655_v42, %v643_v1 }
  0xd9   : > { %v1661_v23 = vpop.f32.mrf.mxu0 }
  0xdb   : > { %v1663_v53 = vpop.f32.mrf.mxu3  ;;  %v1665_v24 = vpop.f32.mrf.mxu1 }
  0xdc   : > { %v1667_v25 = vpop.f32.mrf.mxu2  ;;  %v644_v39 = vadd.f32 %v1663_v53, %v572_v36 }
  0xdd   : > { %v573_v42 = vadd.f32 %v1667_v25, %v448_v22  ;;  %v451_v25 = vadd.f32 %v1665_v24, %v1646_v59 }
  0xde   : > { %v729_v47 = vadd.f32 %v1661_v23, %v644_v39 }
  0xe1   : > { %v1669_v27 = vpop.f32.mrf.mxu0 }
  0xe3   : > { %v1671_v28 = vpop.f32.mrf.mxu3  ;;  %v1673_v17 = vpop.f32.mrf.mxu1 }
  0xe4   : > { %v1675_v45 = vpop.f32.mrf.mxu2 }
  0xe5   : > { %v574_v23 = vadd.f32 %v1675_v45, %v451_v25  ;;  %v453_v45 = vadd.f32 %v1673_v17, %v1651_v52 }
  0xe9   : > { %v1677_v31 = vpop.f32.mrf.mxu0 }
  0xeb   : > { %v1679_v33 = vpop.f32.mrf.mxu3  ;;  %v781_v55 = vpop.f32.mrf.mxu1 }
  0xec   : > { %v1681_v18 = vpop.f32.mrf.mxu2  ;;  %v801_v38 = vadd.f32 %v781_v55, %v725_v10 }
  0xf1   : > { %v1683_v34 = vpop.f32.mrf.mxu0 }
  0xf3   : > { %v1685_v8 = vpop.f32.mrf.mxu3  ;;  %v783_v9 = vpop.f32.mrf.mxu1 }
  0xf4   : > { %v841_v30 = vpop.f32.mrf.mxu2  ;;  %v802_v20 = vadd.f32 %v783_v9, %v726_v50 }
  0xf5   : > { %v861_v58 = vadd.f32 %v841_v30, %v801_v38 }
  0xf9   : > { %v978_v40 = vpop.f32.mrf.mxu0 }
  0xfb   : > { %v914_v43 = vpop.f32.mrf.mxu3  ;;  %v786_v46 = vpop.f32.mrf.mxu1 }
  0xfc   : > { %v934_v48 = vadd.f32 %v914_v43, %v861_v58  ;;  %v843_v2 = vpop.f32.mrf.mxu2  ;;  %v803_v51 = vadd.f32 %v786_v46, %v727_v4 }
  0xfd   : > { %v862_v29 = vadd.f32 %v843_v2, %v802_v20 }
  0xfe   : > { %v998_v56 = vadd.f32 %v978_v40, %v934_v48 }
 0x100   : > { %v1010_v21 = vadd.f32 %v1691_v49, %v998_v56  ;;  %v645_v56 = vadd.f32 %v1671_v28, %v573_v42 }
 0x101   : > { %v980_v60 = vpop.f32.mrf.mxu0 }
 0x102   : > { %v1018_v62 = vmax.f32 %v1010_v21, 0.0  ;;  %v730_v44 = vadd.f32 %v1669_v27, %v645_v56  ;;  %v575_v27 = vadd.f32 %v1681_v18, %v453_v45 }
 0x103   : > { %v916_v63 = vpop.f32.mrf.mxu3  ;;  %v788_v61 = vpop.f32.mrf.mxu1 }
 0x104   : > { %v1026_v0 = vpack.c.bf16 %v1018_v62, %v1018_v62  ;;  %v935_v3 = vadd.f32 %v916_v63, %v862_v29  ;;  %v846_v5 = vpop.f32.mrf.mxu2  ;;  %v804_v38 = vadd.f32 %v788_v61, %v728_v13  ;;  %v646_v61 = vadd.f32 %v1679_v33, %v574_v23 }
 0x105   : > { %v863_v32 = vadd.f32 %v846_v5, %v803_v51 }
 0x106   : > { %1035 = vst.msk [vmem:[%s1699_s7] sm:$0xf] %vm1034_vm7, %v1026_v0  ;;  %v999_v6 = vadd.f32 %v980_v60, %v935_v3  ;;  %v731_v51 = vadd.f32 %v1677_v31, %v646_v61 }
 0x108   : > { %v1011_v16 = vadd.f32 %v1691_v49, %v999_v6 }
 0x109   : > { %v983_v55 = vpop.f32.mrf.mxu0 }
 0x10a   : > { %v1019_v7 = vmax.f32 %v1011_v16, 0.0 }
 0x10b   : > { %v919_v35 = vpop.f32.mrf.mxu3  ;;  %v791_v30 = vpop.f32.mrf.mxu1 }
 0x10c   : > { %v1027_v9 = vpack.c.bf16 %v1019_v7, %v1019_v7  ;;  %v936_v14 = vadd.f32 %v919_v35, %v863_v32  ;;  %v848_v10 = vpop.f32.mrf.mxu2  ;;  %v805_v50 = vadd.f32 %v791_v30, %v729_v47  ;;  %v647_v32 = vadd.f32 %v1685_v8, %v575_v27 }
 0x10d   : > { %v864_v57 = vadd.f32 %v848_v10, %v804_v38 }
 0x10e   : > { %1036 = vst.msk [vmem:[%s1699_s7 + $0x4] sm:$0xf] %vm1034_vm7, %v1027_v9  ;;  %v1000_v19 = vadd.f32 %v983_v55, %v936_v14  ;;  %v732_v31 = vadd.f32 %v1683_v34, %v647_v32 }
 0x110   : > { %v1012_v58 = vadd.f32 %v1691_v49, %v1000_v19 }
 0x111   : > { %v985_v15 = vpop.f32.mrf.mxu0 }
 0x112   : > { %v1020_v40 = vmax.f32 %v1012_v58, 0.0 }
 0x113   : > { %v921_v41 = vpop.f32.mrf.mxu3  ;;  %v793_v2 = vpop.f32.mrf.mxu1 }
 0x114   : > { %v1028_v43 = vpack.c.bf16 %v1020_v40, %v1020_v40  ;;  %v937_v46 = vadd.f32 %v921_v41, %v864_v57  ;;  %v851_v48 = vpop.f32.mrf.mxu2  ;;  %v806_v63 = vadd.f32 %v793_v2, %v730_v44 }
 0x115   : > { %v865_v26 = vadd.f32 %v851_v48, %v805_v50 }
 0x116   : > { %1037 = vst.msk [vmem:[%s1699_s7 + $0x8] sm:$0xf] %vm1034_vm7, %v1028_v43  ;;  %v1001_v53 = vadd.f32 %v985_v15, %v937_v46 }
 0x118   : > { %v1013_v20 = vadd.f32 %v1691_v49, %v1001_v53 }
 0x119   : > { %v988_v54 = vpop.f32.mrf.mxu0 }
 0x11a   : > { %v1021_v37 = vmax.f32 %v1013_v20, 0.0 }
 0x11b   : > { %v924_v21 = vpop.f32.mrf.mxu3  ;;  %v796_v59 = vpop.f32.mrf.mxu1 }
 0x11c   : > { %v1029_v29 = vpack.c.bf16 %v1021_v37, %v1021_v37  ;;  %v938_v60 = vadd.f32 %v924_v21, %v865_v26  ;;  %v853_v62 = vpop.f32.mrf.mxu2  ;;  %v807_v16 = vadd.f32 %v796_v59, %v731_v51 }
 0x11d   : > { %v866_v0 = vadd.f32 %v853_v62, %v806_v63 }
 0x11e   : > { %1038 = vst.msk [vmem:[%s1699_s7 + $0xc] sm:$0xf] %vm1034_vm7, %v1029_v29  ;;  %v1002_v28 = vadd.f32 %v988_v54, %v938_v60 }
 0x120   : > { %v1014_v12 = vadd.f32 %v1691_v49, %v1002_v28 }
 0x121   : > { %v990_v24 = vpop.f32.mrf.mxu0 }
 0x122   : > { %v1022_v3 = vmax.f32 %v1014_v12, 0.0 }
 0x123   : > { %v926_v4 = vpop.f32.mrf.mxu3  ;;  %v798_v17 = vpop.f32.mrf.mxu1 }
 0x124   : > { %v1030_v5 = vpack.c.bf16 %v1022_v3, %v1022_v3  ;;  %v939_v6 = vadd.f32 %v926_v4, %v866_v0  ;;  %v856_v1 = vpop.f32.mrf.mxu2  ;;  %v808_v13 = vadd.f32 %v798_v17, %v732_v31 }
 0x125   : > { %v867_v11 = vadd.f32 %v856_v1, %v807_v16 }
 0x126   : > { %1039 = vst.msk [vmem:[%s1699_s7 + $0x10] sm:$0xf] %vm1034_vm7, %v1030_v5  ;;  %v1003_v33 = vadd.f32 %v990_v24, %v939_v6 }
 0x128   : > { %v1015_v55 = vadd.f32 %v1691_v49, %v1003_v33 }
 0x129   : > { %v993_v7 = vpop.f32.mrf.mxu0 }
 0x12a   : > { %v1023_v52 = vmax.f32 %v1015_v55, 0.0 }
 0x12b   : > { %v929_v18 = vpop.f32.mrf.mxu3 }
 0x12c   : > { %v1031_v35 = vpack.c.bf16 %v1023_v52, %v1023_v52  ;;  %v940_v36 = vadd.f32 %v929_v18, %v867_v11  ;;  %v858_v9 = vpop.f32.mrf.mxu2 }
 0x12d   : > { %v868_v10 = vadd.f32 %v858_v9, %v808_v13 }
 0x12e   : > { %1040 = vst.msk [vmem:[%s1699_s7 + $0x14] sm:$0xf] %vm1034_vm7, %v1031_v35  ;;  %v1004_v14 = vadd.f32 %v993_v7, %v940_v36 }
 0x130   : > { %v1016_v8 = vadd.f32 %v1691_v49, %v1004_v14 }
 0x131   : > { %v995_v58 = vpop.f32.mrf.mxu0 }
 0x132   : > { %v1024_v30 = vmax.f32 %v1016_v8, 0.0 }
 0x133   : > { %v931_v19 = vpop.f32.mrf.mxu3 }
 0x134   : > { %v1032_v38 = vpack.c.bf16 %v1024_v30, %v1024_v30  ;;  %v941_v39 = vadd.f32 %v931_v19, %v868_v10 }
 0x136   : > { %1041 = vst.msk [vmem:[%s1699_s7 + $0x18] sm:$0xf] %vm1034_vm7, %v1032_v38  ;;  %v1005_v57 = vadd.f32 %v995_v58, %v941_v39 }
 0x138   : > { %v1017_v15 = vadd.f32 %v1691_v49, %v1005_v57 }
 0x13a   : > { %v1025_v34 = vmax.f32 %v1017_v15, 0.0 }
 0x13c   : > { %v1033_v22 = vpack.c.bf16 %v1025_v34, %v1025_v34 }
 0x13e   : > { %1042 = vst.msk [vmem:[%s1699_s7 + $0x1c] sm:$0xf] %vm1034_vm7, %v1033_v22 }
 0x13f PF: > { %s13_s12 = sadd.s32 1, %s1299_s12  }
 0x140   : > { %p10_p4 = scmp.ge.s32.totalorder %s13_s12, 4  }
 0x142   :  { %12 = sbr.rel (!%p10_p4) target bundleno = 1 (0x1), region = 70 }

// kernel: asp_ocnet_forward.19
= control target key start
LH: loop header
LB: loop body
LE: loop exit
PB: predicated region body
PF: predicated region fallthrough
CT: control target
= control target key end

     0   :  { %s1593_s12 = smov 0   ;;  %s2082_s0 = inlined_call_operand.vmem [shape: bf16[2,10,10,64], index: 0, kind: input, shape index: {}]   ;;  %s2083_s1 = inlined_call_operand.vmem [shape: bf16[9,64,64], index: 1, kind: input, shape index: {}]   ;;  %s2084_s2 = inlined_call_operand.vmem [shape: f32[1,64], index: 2, kind: input, shape index: {}]   ;;  %s2085_s3 = inlined_call_operand.vmem [shape: bf16[2,8,8,64], index: 3, kind: output, shape index: {}]  }
   0x1 LB: > { %s1242_s13 = sadd.s32 4294967295, %s1571_s12   ;;  %p1246_p0 = scmp.ge.s32.totalorder %s1571_s12, 1  ;;  %s1571_s12 = sphi %s1593_s12, %s13_s12  }
   0x2   : > { %p137_p1 = scmp.lt.s32.totalorder %s1571_s12, 3 }
   0x4   : > { %p138_p2 = pnand %p1246_p0, %p137_p1 }
   0x5   : > { %p161_p3 = scmp.lt.s32.totalorder (!%p138_p2), %s1242_s13, 1 }
   0x6   : > { %141 = sbr.rel (%p138_p2) target bundleno = 321 (0x141), region = 32 }
   0xb   : > { %v1514_v0 = vld [vmem:[%s2083_s1 + $0x38] sm:$0xff]  ;;  %v1513_v1 = vld [vmem:[%s2083_s1 + $0x30] sm:$0xff]  ;;  %s2091_s13 = smov (!%p161_p3, %s1242_s13), 1  ;;  %v1512_v2 = vld [vmem:[%s2083_s1 + $0x28] sm:$0xff]  ;;  %vm200_vm0 = vsmask.f32 3328 }
   0xc   : > { %1543 = vmatpush.bf16.msra.mxu1 %v1514_v0  ;;  %1544 = vmatpush.bf16.msra.mxu2 %v1514_v0  ;;  %s1555_s18 = smul.u32 80, %s2091_s13  ;;  %vm201_vm1 = vsmask.f32 7440  ;;  %v1511_v6 = vld [vmem:[%s2083_s1 + $0x20] sm:$0xff]  ;;  %v1518_v21 = vld [vmem:[%s2083_s1 + $0x58] sm:$0xff]  ;;  %vm360_vm2 = vcmask 523264  }
   0xd   : > { %1545 = vmatpush.bf16.msra.mxu3 %v1514_v0  ;;  %377 = vmatpush.bf16.msra.mxu0 %v1514_v0  ;;  %v1510_v22 = vld [vmem:[%s2083_s1 + $0x18] sm:$0xff]  ;;  %vm1670_vm3 = vmor %vm200_vm0, %vm201_vm1  ;;  %v1517_v49 = vld [vmem:[%s2083_s1 + $0x50] sm:$0xff]  ;;  %vm495_vm4 = vcmask 1042432   ;;  %vm496_vm5 = vcmask 1046532   ;;  %vm1178_vm7 = vcmask 519168  }
   0xe   : > { %s1616_s23 = scalar_lea.vmem %s2082_s0, %s1555_s18  ;;  %v1522_v33 = vld [vmem:[%s2083_s1 + $0x78] sm:$0xff]  ;;  %v1509_v50 = vld [vmem:[%s2083_s1 + $0x10] sm:$0xff]  ;;  %vm1787_vm6 = vmor %vm495_vm4, %vm496_vm5  ;;  %s1506_s18 = sshll.u32 %s2091_s13, 5 }
   0xf   : > { %v1619_v3 = vld [vmem:[%s1616_s23 + $0x10] sm:$0xf]  ;;  %v1622_v4 = vld [vmem:[%s1616_s23 + $0x14] sm:$0x1]  ;;  %v1625_v5 = vld [vmem:[%s1616_s23 + $0x18] sm:$0xf]  ;;  %s2033_s21 = scalar_lea.vmem %s2085_s3, %s1506_s18 }
  0x10   : > { %1546 = vmatpush.bf16.msra.mxu1 %v1513_v1  ;;  %1547 = vmatpush.bf16.msra.mxu2 %v1513_v1  ;;  %v1631_v7 = vld [vmem:[%s1616_s23 + $0x1c] sm:$0x1]  ;;  %v232_v8 = vshrl.u32 %v1619_v3, 16  ;;  %v235_v9 = vshll.u32 %v1619_v3, 16  ;;  %v241_v10 = vshll.u32 %v1622_v4, 16  ;;  %v246_v11 = vshrl.u32 %v1625_v5, 16 }
  0x11   : > { %1548 = vmatpush.bf16.msra.mxu3 %v1513_v1  ;;  %378 = vmatpush.bf16.msra.mxu0 %v1513_v1  ;;  %v249_v12 = vshll.u32 %v1625_v5, 16  ;;  %v255_v13 = vshll.u32 %v1631_v7, 16  ;;  %v1640_v14 = vld [vmem:[%s1616_s23 + $0x20] sm:$0xf]  ;;  %v1643_v15 = vld [vmem:[%s1616_s23 + $0x24] sm:$0x1] }
  0x12   : > { %v234_v16 = vrot.slane %v232_v8, 4  ;;  %v237_v17 = vrot.slane %v235_v9, 5  ;;  %v243_v18 = vrot.slane %v241_v10, 5  ;;  %v248_v19 = vrot.slane %v246_v11, 4  ;;  %v1646_v20 = vld [vmem:[%s1616_s23 + $0x28] sm:$0xf] }
  0x13   : > { %v251_v23 = vrot.slane %v249_v12, 5  ;;  %v257_v24 = vrot.slane %v255_v13, 5  ;;  %v1655_v25 = vld [vmem:[%s1616_s23 + $0x2c] sm:$0x1]  ;;  %v260_v26 = vshrl.u32 %v1640_v14, 16  ;;  %v263_v27 = vshll.u32 %v1640_v14, 16 }
  0x14   : > { %1549 = vmatpush.bf16.msra.mxu1 %v1512_v2  ;;  %1550 = vmatpush.bf16.msra.mxu2 %v1512_v2  ;;  %v238_v28 = vor.u32 %v237_v17, %v234_v16  ;;  %v269_v29 = vshll.u32 %v1643_v15, 16  ;;  %v274_v30 = vshrl.u32 %v1646_v20, 16  ;;  %v277_v31 = vshll.u32 %v1646_v20, 16  ;;  %v1663_v32 = vld [vmem:[%s1616_s23 + $0x30] sm:$0xf]  ;;  %v1526_v40 = vld [vmem:[%s2083_s1 + $0x98] sm:$0xff] }
  0x15   : > { %1551 = vmatpush.bf16.msra.mxu3 %v1512_v2  ;;  %379 = vmatpush.bf16.msra.mxu0 %v1512_v2  ;;  %v252_v35 = vor.u32 %v251_v23, %v248_v19  ;;  %v262_v36 = vrot.slane %v260_v26, 4  ;;  %v265_v37 = vrot.slane %v263_v27, 5  ;;  %v283_v38 = vshll.u32 %v1655_v25, 16  ;;  %v1676_v39 = vld [vmem:[%s1616_s23 + $0x34] sm:$0x1] }
  0x16   : > { %v239_v41 = vrot.slane %v238_v28, 4  ;;  %v271_v42 = vrot.slane %v269_v29, 5  ;;  %v276_v43 = vrot.slane %v274_v30, 4  ;;  %v279_v44 = vrot.slane %v277_v31, 5  ;;  %v1691_v53 = vld [vmem:[%s1616_s23 + $0x38] sm:$0xf] }
  0x17   : > { %v253_v45 = vrot.slane %v252_v35, 4  ;;  %v266_v46 = vor.u32 %v265_v37, %v262_v36  ;;  %v285_v47 = vrot.slane %v283_v38, 5  ;;  %v288_v48 = vshrl.u32 %v1663_v32, 16  ;;  %v1694_v54 = vld [vmem:[%s1616_s23 + $0x3c] sm:$0x1]  ;;  %v1521_v61 = vld [vmem:[%s2083_s1 + $0x70] sm:$0xff] }
  0x18   : > { %1552 = vmatpush.bf16.msra.mxu1 %v1511_v6  ;;  %1553 = vmatpush.bf16.msra.mxu2 %v1511_v6  ;;  %v244_v51 = vsel %vm1670_vm3, %v239_v41, %v243_v18  ;;  %v280_v52 = vor.u32 %v279_v44, %v276_v43  ;;  %v291_v55 = vshll.u32 %v1663_v32, 16  ;;  %v297_v56 = vshll.u32 %v1676_v39, 16  ;;  %v1525_v62 = vld [vmem:[%s2083_s1 + $0x90] sm:$0xff]  ;;  %v1719_v12 = vld [vmem:[%s1616_s23 + $0x4] sm:$0x1]  ;;  %v1520_v28 = vld [vmem:[%s2083_s1 + $0x68] sm:$0xff] }
  0x19   : > { %1554 = vmatpush.bf16.msra.mxu3 %v1511_v6  ;;  %380 = vmatpush.bf16.msra.mxu0 %v1511_v6  ;;  %v258_v57 = vsel %vm1670_vm3, %v253_v45, %v257_v24  ;;  %v1700_v58 = vunpack.c.l.b16 %v244_v51  ;;  %v267_v59 = vrot.slane %v266_v46, 4  ;;  %v290_v60 = vrot.slane %v288_v48, 4  ;;  %v1711_v6 = vld [vmem:[%s1616_s23] sm:$0xf]  ;;  %v1730_v19 = vld [vmem:[%s1616_s23 + $0x8] sm:$0xf] }
  0x1a   : > { %v1708_v63 = vunpack.c.l.b16 %v258_v57  ;;  %v281_v0 = vrot.slane %v280_v52, 4  ;;  %v293_v1 = vrot.slane %v291_v55, 5  ;;  %v299_v2 = vrot.slane %v297_v56, 5  ;;  %v1524_v35 = vld [vmem:[%s2083_s1 + $0x88] sm:$0xff]  ;;  %v1515_v45 = vld [vmem:[%s2083_s1 + $0x40] sm:$0xff]  ;;  %v1534_v52 = vld [vmem:[%s2083_s1 + $0xd8] sm:$0xff] }
  0x1b   : > { %v272_v8 = vsel %vm1670_vm3, %v267_v59, %v271_v42  ;;  %v302_v9 = vshrl.u32 %v1691_v53, 16  ;;  %v305_v10 = vshll.u32 %v1691_v53, 16  ;;  %v311_v11 = vshll.u32 %v1694_v54, 16  ;;  %v175_v38 = vld [vmem:[%s1616_s23 + $0xc] sm:$0x1]  ;;  %v1507_v46 = vld [vmem:[%s2083_s1] sm:$0xff] }
  0x1c   : > { %591 = vmatpush.bf16.msrb.mxu2 %v1518_v21  ;;  %462 = vmatpush.bf16.msrb.mxu1 %v1510_v22  ;;  %v1723_v13 = vpack.c.b16 %v1708_v63, %v1700_v58  ;;  %v286_v16 = vsel %vm1670_vm3, %v281_v0, %v285_v47  ;;  %v1727_v17 = vunpack.c.l.b16 %v272_v8  ;;  %v294_v18 = vor.u32 %v293_v1, %v290_v60  ;;  %v1516_v21 = vld [vmem:[%s2083_s1 + $0x48] sm:$0xff]  ;;  %v1519_v51 = vld [vmem:[%s2083_s1 + $0x60] sm:$0xff] }
  0x1d   : > { %679 = vmatpush.bf16.msrb.mxu3 %v1522_v33  ;;  %780 = vmatpush.bf16.msrb.mxu0 %v1526_v40  ;;  %v1508_v22 = vld [vmem:[%s2083_s1 + $0x8] sm:$0xff]  ;;  %v1738_v23 = vunpack.c.l.b16 %v286_v16  ;;  %v304_v24 = vrot.slane %v302_v9, 4  ;;  %v307_v26 = vrot.slane %v305_v10, 5  ;;  %v313_v27 = vrot.slane %v311_v11, 5  ;;  %v1523_v60 = vld [vmem:[%s2083_s1 + $0x80] sm:$0xff] }
  0x1e   : > { %1275 = vmatmul.msk.bf16.vlgmr.msra.gmra.mxu1 %vm360_vm2, %v1723_v13  ;;  %v295_v29 = vrot.slane %v294_v18, 4  ;;  %v204_v30 = vshrl.u32 %v1711_v6, 16  ;;  %v207_v31 = vshll.u32 %v1711_v6, 16  ;;  %v213_v33 = vshll.u32 %v1719_v12, 16 }
  0x1f   : > { %v1753_v36 = vpack.c.b16 %v1738_v23, %v1727_v17  ;;  %v308_v37 = vor.u32 %v307_v26, %v304_v24  ;;  %v218_v40 = vshrl.u32 %v1730_v19, 16  ;;  %v221_v41 = vshll.u32 %v1730_v19, 16 }
  0x20   : > { %592 = vmatpush.bf16.msrb.mxu2 %v1517_v49  ;;  %463 = vmatpush.bf16.msrb.mxu1 %v1509_v50  ;;  %v300_v42 = vsel %vm1670_vm3, %v295_v29, %v299_v2  ;;  %v206_v43 = vrot.slane %v204_v30, 4  ;;  %v209_v44 = vrot.slane %v207_v31, 5  ;;  %v215_v48 = vrot.slane %v213_v33, 5 }
  0x21   : > { %680 = vmatpush.bf16.msrb.mxu3 %v1521_v61  ;;  %781 = vmatpush.bf16.msrb.mxu0 %v1525_v62  ;;  %v309_v47 = vrot.slane %v308_v37, 4  ;;  %v220_v49 = vrot.slane %v218_v40, 4  ;;  %v223_v50 = vrot.slane %v221_v41, 5  ;;  %v1774_v55 = vunpack.c.l.b16 %v300_v42  ;;  %v1530_v61 = vld [vmem:[%s2083_s1 + $0xb8] sm:$0xff]  ;;  %v1537_v40 = vld [vmem:[%s2083_s1 + $0xf0] sm:$0xff] }
  0x22   : > { %1276 = vmatmul.msk.bf16.vlgmr.msra.gmra.mxu2 %vm360_vm2, %v1753_v36  ;;  %v210_v56 = vor.u32 %v209_v44, %v206_v43  ;;  %v227_v57 = vshll.u32 %v175_v38, 16  ;;  %v500_v59 = vrot.slane %v1719_v12, 5  ;;  %v504_v1 = vrot.slane %v175_v38, 5  ;;  %v1529_v41 = vld [vmem:[%s2083_s1 + $0xb0] sm:$0xff] }
  0x23   : > { %v314_v62 = vsel %vm1670_vm3, %v309_v47, %v313_v27  ;;  %v224_v0 = vor.u32 %v223_v50, %v220_v49  ;;  %v1298_v11 = vrot.slane %v1711_v6, 9  ;;  %v410_v16 = vunpack.c.l.b16 %v1711_v6  ;;  %v1541_v43 = vld [vmem:[%s2083_s1 + $0x110] sm:$0xff] }
  0x24   : > { %593 = vmatpush.bf16.msrb.mxu2 %v1516_v21  ;;  %464 = vmatpush.bf16.msrb.mxu1 %v1508_v22  ;;  %v1791_v8 = vunpack.c.l.b16 %v314_v62  ;;  %v211_v9 = vrot.slane %v210_v56, 4  ;;  %v229_v10 = vrot.slane %v227_v57, 5  ;;  %v1299_v18 = vrot.slane %v1730_v19, 9  ;;  %v1538_v21 = vld [vmem:[%s2083_s1 + $0xf8] sm:$0xff]  ;;  %v1536_v57 = vld [vmem:[%s2083_s1 + $0xe8] sm:$0xff] }
  0x25   : > { %681 = vmatpush.bf16.msrb.mxu3 %v1520_v28  ;;  %782 = vmatpush.bf16.msrb.mxu0 %v1524_v35  ;;  %v225_v12 = vrot.slane %v224_v0, 4  ;;  %v411_v26 = vunpack.c.l.b16 %v1730_v19  ;;  %v501_v6 = vsel %vm1787_vm6, %v1298_v11, %v500_v59  ;;  %v1533_v19 = vld [vmem:[%s2083_s1 + $0xd0] sm:$0xff]  ;;  %v1542_v35 = vld [vmem:[%s2083_s1 + $0x118] sm:$0xff]  ;;  %v412_v44 = vunpack.c.l.b16 %v1619_v3  ;;  %v1540_v59 = vld [vmem:[%s2083_s1 + $0x108] sm:$0xff] }
  0x26   : > { %v1801_v22 = vpack.c.b16 %v1791_v8, %v1774_v55  ;;  %v216_v24 = vsel %vm1670_vm3, %v211_v9, %v215_v48  ;;  %v1812_v29 = vsel %vm1787_vm6, %v1299_v18, %v504_v1  ;;  %v539_v31 = vunpack.c.l.b16 %v501_v6 }
  0x27   : > { %v230_v27 = vsel %vm1670_vm3, %v225_v12, %v229_v10  ;;  %v324_v28 = vunpack.c.l.b16 %v216_v24  ;;  %v540_v33 = vunpack.c.l.b16 %v1812_v29  ;;  %v418_v38 = vpack.c.b16 %v411_v26, %v410_v16  ;;  %v1527_v24 = vld [vmem:[%s2083_s1 + $0xa0] sm:$0xff]  ;;  %v190_v29 = vld [vmem:[%s1616_s23 + $0x48] sm:$0xf] }
  0x28   : > { %594 = vmatpush.bf16.msrb.mxu2 %v1515_v45  ;;  %465 = vmatpush.bf16.msrb.mxu1 %v1507_v46  ;;  %v325_v30 = vunpack.c.l.b16 %v230_v27  ;;  %v1300_v45 = vrot.slane %v1619_v3, 9  ;;  %v508_v46 = vrot.slane %v1622_v4, 5  ;;  %v1301_v47 = vrot.slane %v1625_v5, 9  ;;  %v1532_v4 = vld [vmem:[%s2083_s1 + $0xc8] sm:$0xff] }
  0x29   : > { %682 = vmatpush.bf16.msrb.mxu3 %v1519_v51  ;;  %783 = vmatpush.bf16.msrb.mxu0 %v1523_v60  ;;  %v547_v42 = vpack.c.b16 %v540_v33, %v539_v31  ;;  %v512_v48 = vrot.slane %v1631_v7, 5  ;;  %v635_v49 = vpack.c.b16 %v412_v44, %v411_v26  ;;  %v413_v50 = vunpack.c.l.b16 %v1625_v5  ;;  %v1911_v26 = vld [vmem:[%s1616_s23 + $0x40] sm:$0xf] }
  0x2a   : > { %1277 = vmatmul.msk.bf16.vlgmr.msra.gmra.mxu3 %vm360_vm2, %v1801_v22  ;;  %v332_v37 = vpack.c.b16 %v325_v30, %v324_v28  ;;  %v1845_v51 = vsel %vm1787_vm6, %v1300_v45, %v508_v46  ;;  %v736_v3 = vpack.c.b16 %v1700_v58, %v325_v30  ;;  %v1528_v58 = vld [vmem:[%s2083_s1 + $0xa8] sm:$0xff]  ;;  %v1302_v62 = vrot.slane %v1640_v14, 9 }
  0x2b   : > { %v541_v7 = vunpack.c.l.b16 %v1845_v51  ;;  %v1858_v56 = vpack.c.b16 %v413_v50, %v412_v44  ;;  %v516_v0 = vrot.slane %v1643_v15, 5  ;;  %v1303_v1 = vrot.slane %v1646_v20, 9  ;;  %v1531_v15 = vld [vmem:[%s2083_s1 + $0xc0] sm:$0xff] }
  0x2c   : > { %948 = vmatpush.bf16.msra.mxu2 %v1534_v52  ;;  %872 = vmatpush.bf16.msra.mxu1 %v1530_v61  ;;  %v1849_v52 = vsel %vm1787_vm6, %v1301_v47, %v512_v48  ;;  %v414_v61 = vunpack.c.l.b16 %v1640_v14  ;;  %v520_v9 = vrot.slane %v1655_v25, 5  ;;  %v415_v11 = vunpack.c.l.b16 %v1646_v20  ;;  %v189_v44 = vld [vmem:[%s1616_s23 + $0x44] sm:$0x1] }
  0x2d   : > { %1037 = vmatpush.bf16.msra.mxu3 %v1538_v21  ;;  %1274 = vmatmul.msk.bf16.vlgmr.msra.gmra.mxu0 %vm360_vm2, %v332_v37  ;;  %v542_v5 = vunpack.c.l.b16 %v1849_v52  ;;  %v517_v12 = vsel %vm1787_vm6, %v1302_v62, %v516_v0  ;;  %v737_v14 = vpack.c.b16 %v1727_v17, %v1708_v63  ;;  %v1535_v21 = vld [vmem:[%s2083_s1 + $0xe0] sm:$0xff]  ;;  %v416_v6 = vunpack.c.l.b16 %v1663_v32 }
  0x2e   : > { %1117 = vmatpush.bf16.msra.mxu0 %v1542_v35  ;;  %1294 = vmatmul.msk.bf16.vlgmr.msrb.gmra.mxu1 %vm360_vm2, %v418_v38  ;;  %v636_v10 = vpack.c.b16 %v414_v61, %v413_v50  ;;  %v1890_v16 = vsel %vm1787_vm6, %v1303_v1, %v520_v9  ;;  %v543_v25 = vunpack.c.l.b16 %v517_v12  ;;  %v420_v18 = vpack.c.b16 %v415_v11, %v414_v61  ;;  %v1539_v63 = vld [vmem:[%s2083_s1 + $0x100] sm:$0xff] }
  0x2f   : > { %v1874_v60 = vpack.c.b16 %v542_v5, %v541_v7  ;;  %v544_v20 = vunpack.c.l.b16 %v1890_v16  ;;  %v713_v27 = vshrl.u32 %v1911_v26, 16  ;;  %v716_v28 = vshll.u32 %v1911_v26, 16 }
  0x30   : > { %949 = vmatpush.bf16.msra.mxu2 %v1533_v19  ;;  %873 = vmatpush.bf16.msra.mxu1 %v1529_v41  ;;  %v1304_v30 = vrot.slane %v1663_v32, 9  ;;  %v524_v19 = vrot.slane %v1676_v39, 5  ;;  %v1305_v31 = vrot.slane %v1691_v53, 9  ;;  %v528_v35 = vrot.slane %v1694_v54, 5 }
  0x31   : > { %1038 = vmatpush.bf16.msra.mxu3 %v1537_v40  ;;  %v549_v17 = vpack.c.b16 %v544_v20, %v543_v25  ;;  %v637_v37 = vpack.c.b16 %v416_v6, %v415_v11  ;;  %v715_v38 = vrot.slane %v713_v27, 4  ;;  %v718_v40 = vrot.slane %v716_v28, 5 }
  0x32   : > { %1330 = vmatmul.msk.bf16.vlgmr.msrb.gmra.mxu2 %vm360_vm2, %v547_v42  ;;  %1118 = vmatpush.bf16.msra.mxu0 %v1541_v43  ;;  %v417_v41 = vunpack.c.l.b16 %v1691_v53  ;;  %v525_v42 = vsel %vm1787_vm6, %v1304_v30, %v524_v19  ;;  %v529_v43 = vsel %vm1787_vm6, %v1305_v31, %v528_v35  ;;  %v738_v32 = vpack.c.b16 %v1774_v55, %v1738_v23 }
  0x33   : > { %v545_v39 = vunpack.c.l.b16 %v525_v42  ;;  %v546_v45 = vunpack.c.l.b16 %v529_v43  ;;  %v719_v54 = vor.u32 %v718_v40, %v715_v38  ;;  %v722_v46 = vshll.u32 %v189_v44, 16 }
  0x34   : > { %950 = vmatpush.bf16.msra.mxu2 %v1532_v4  ;;  %874 = vmatpush.bf16.msra.mxu1 %v1528_v58  ;;  %v421_v47 = vpack.c.b16 %v417_v41, %v416_v6  ;;  %v634_v50 = vunpack.c.l.b16 %v1911_v26  ;;  %v829_v58 = vpack.c.b16 %v543_v25, %v542_v5  ;;  %v1390_v51 = vrot.slane %v1911_v26, 9 }
  0x35   : > { %1039 = vmatpush.bf16.msra.mxu3 %v1536_v57  ;;  %v550_v53 = vpack.c.b16 %v546_v45, %v545_v39  ;;  %v720_v48 = vrot.slane %v719_v54, 4  ;;  %v828_v57 = vpack.c.b16 %v541_v7, %v540_v33  ;;  %v982_v33 = vshrl.u32 %v190_v29, 16 }
  0x36   : > { %1119 = vmatpush.bf16.msra.mxu0 %v1540_v59  ;;  %v638_v23 = vpack.c.b16 %v634_v50, %v417_v41  ;;  %v816_v52 = vrot.slane %v189_v44, 5  ;;  %v915_v62 = vunpack.c.l.b16 %v190_v29  ;;  %v1475_v16 = vrot.slane %v190_v29, 9 }
  0x37   : > { %v984_v7 = vrot.slane %v982_v33, 4 }
  0x38   : > { %951 = vmatpush.bf16.msra.mxu2 %v1531_v15  ;;  %875 = vmatpush.bf16.msra.mxu1 %v1527_v24  ;;  %v817_v59 = vsel %vm1787_vm6, %v1390_v51, %v816_v52  ;;  %v916_v11 = vpack.c.b16 %v915_v62, %v634_v50 }
  0x39   : > { %1040 = vmatpush.bf16.msra.mxu3 %v1535_v21  ;;  %v827_v61 = vunpack.c.l.b16 %v817_v59 }
  0x3a   : > { %1358 = vmatmul.msk.bf16.vlgmr.msrb.gmra.mxu3 %vm360_vm2, %v635_v49  ;;  %1120 = vmatpush.bf16.msra.mxu0 %v1539_v63  ;;  %v724_v49 = vrot.slane %v722_v46, 5 }
  0x3b   : > { %v831_v9 = vpack.c.b16 %v827_v61, %v546_v45 }
  0x3d   : > { %1386 = vmatmul.msk.bf16.vlgmr.msrb.gmra.mxu0 %vm360_vm2, %v736_v3  ;;  %v725_v3 = vsel %vm1670_vm3, %v720_v48, %v724_v49 }
  0x3e   : > { %1295 = vmatmul.msk.bf16.gmra.mxu1 %vm360_vm2, %v1858_v56  ;;  %v735_v55 = vunpack.c.l.b16 %v725_v3 }
  0x40   : > { %v739_v4 = vpack.c.b16 %v735_v55, %v1791_v8  ;;  %v830_v8 = vpack.c.b16 %v545_v39, %v544_v20 }
  0x42   : > { %1331 = vmatmul.msk.bf16.gmra.mxu2 %vm360_vm2, %v1874_v60 }
  0x4a   : > { %1359 = vmatmul.msk.bf16.gmra.mxu3 %vm360_vm2, %v636_v10 }
  0x4d   : > { %1387 = vmatmul.msk.bf16.gmra.mxu0 %vm360_vm2, %v737_v14 }
  0x4e   : > { %1296 = vmatmul.msk.bf16.gmra.mxu1 %vm360_vm2, %v420_v18 }
  0x52   : > { %1332 = vmatmul.msk.bf16.gmra.mxu2 %vm360_vm2, %v549_v17 }
  0x5a   : > { %1360 = vmatmul.msk.bf16.gmra.mxu3 %vm360_vm2, %v637_v37 }
  0x5d   : > { %1388 = vmatmul.msk.bf16.gmra.mxu0 %vm360_vm2, %v738_v32 }
  0x5e   : > { %1297 = vmatmul.msk.bf16.gmra.mxu1 %vm360_vm2, %v421_v47 }
  0x62   : > { %1333 = vmatmul.msk.bf16.gmra.mxu2 %vm360_vm2, %v550_v53 }
  0x6a   : > { %1361 = vmatmul.msk.bf16.gmra.mxu3 %vm360_vm2, %v638_v23 }
  0x6d   : > { %1389 = vmatmul.msk.bf16.gmra.mxu0 %vm360_vm2, %v739_v4 }
  0x6e   : > { %1415 = vmatmul.msk.bf16.vlgmr.msra.gmra.mxu1 %vm360_vm2, %v828_v57 }
  0x72   : > { %1443 = vmatmul.msk.bf16.vlgmr.msra.gmra.mxu2 %vm360_vm2, %v1858_v56  ;;  %v191_v56 = vld [vmem:[%s1616_s23 + $0x4c] sm:$0x1] }
  0x73   : > { %v1073_v14 = vrot.slane %v191_v56, 5 }
  0x7a   : > { %1471 = vmatmul.msk.bf16.vlgmr.msra.gmra.mxu3 %vm360_vm2, %v1723_v13  ;;  %v985_v13 = vshll.u32 %v190_v29, 16 }
  0x7c   : > { %v987_v5 = vrot.slane %v985_v13, 5 }
  0x7d   : > { %1500 = vmatmul.msk.bf16.vlgmr.msra.gmra.mxu0 %vm360_vm2, %v1874_v60  ;;  %v991_v60 = vshll.u32 %v191_v56, 16 }
  0x7e   : > { %1416 = vmatmul.msk.bf16.gmra.mxu1 %vm360_vm2, %v829_v58 }
  0x7f   : > { %v993_v1 = vrot.slane %v991_v60, 5 }
  0x82   : > { %1444 = vmatmul.msk.bf16.gmra.mxu2 %vm360_vm2, %v420_v18 }
  0x8a   : > { %1472 = vmatmul.msk.bf16.gmra.mxu3 %vm360_vm2, %v1753_v36  ;;  %v988_v36 = vor.u32 %v987_v5, %v984_v7 }
  0x8c   : > { %v989_v0 = vrot.slane %v988_v36, 4 }
  0x8d   : > { %1501 = vmatmul.msk.bf16.gmra.mxu0 %vm360_vm2, %v549_v17 }
  0x8e   : > { %1417 = vmatmul.msk.bf16.gmra.mxu1 %vm360_vm2, %v830_v8  ;;  %v994_v12 = vsel %vm1670_vm3, %v989_v0, %v993_v1 }
  0x8f   : > { %v1004_v15 = vunpack.c.l.b16 %v994_v12 }
  0x91   : > { %v1005_v20 = vpack.c.b16 %v1004_v15, %v735_v55 }
  0x92   : > { %1445 = vmatmul.msk.bf16.gmra.mxu2 %vm360_vm2, %v421_v47 }
  0x9a   : > { %1473 = vmatmul.msk.bf16.gmra.mxu3 %vm360_vm2, %v1801_v22  ;;  %v1074_v22 = vsel %vm1787_vm6, %v1475_v16, %v1073_v14  ;;  %v2025_v14 = vld [vmem:[%s2084_s2] ss:$0 sm:$0xff] }
  0x9b   : > { %v1966_v10 = vpop.f32.mrf.mxu1  ;;  %v1084_v18 = vunpack.c.l.b16 %v1074_v22 }
  0x9d   : > { %1502 = vmatmul.msk.bf16.gmra.mxu0 %vm360_vm2, %v550_v53  ;;  %v1085_v34 = vpack.c.b16 %v1084_v18, %v827_v61 }
  0x9e   : > { %1418 = vmatmul.msk.bf16.gmra.mxu1 %vm360_vm2, %v831_v9 }
  0xa2   : > { %1446 = vmatmul.msk.bf16.gmra.mxu2 %vm360_vm2, %v916_v11 }
  0xa3   : > { %v1975_v25 = vpop.f32.mrf.mxu1 }
  0xa5   : > { %v1977_v21 = vpop.f32.mrf.mxu2 }
  0xaa   : > { %1474 = vmatmul.msk.bf16.gmra.mxu3 %vm360_vm2, %v1005_v20  ;;  %v382_v24 = vpop.f32.mrf.mxu0 }
  0xab   : > { %v467_v17 = vpop.f32.mrf.mxu1 }
  0xac   : > { %v468_v57 = vadd.f32 %v467_v17, %v382_v24 }
  0xad   : > { %v1980_v63 = vpop.f32.mrf.mxu3  ;;  %1503 = vmatmul.msk.bf16.gmra.mxu0 %vm360_vm2, %v1085_v34  ;;  %v1983_v26 = vpop.f32.mrf.mxu2 }
  0xb2   : > { %v384_v6 = vpop.f32.mrf.mxu0 }
  0xb3   : > { %v469_v27 = vpop.f32.mrf.mxu1 }
  0xb4   : > { %v470_v52 = vadd.f32 %v469_v27, %v384_v6 }
  0xb5   : > { %v1985_v2 = vpop.f32.mrf.mxu3  ;;  %v596_v28 = vpop.f32.mrf.mxu2 }
  0xb6   : > { %v616_v29 = vadd.f32 %v596_v28, %v468_v57 }
  0xba   : > { %v785_v30 = vpop.f32.mrf.mxu0 }
  0xbb   : > { %v472_v31 = vpop.f32.mrf.mxu1 }
  0xbc   : > { %v473_v1 = vadd.f32 %v472_v31, %v1966_v10 }
  0xbd   : > { %v684_v19 = vpop.f32.mrf.mxu3  ;;  %v598_v35 = vpop.f32.mrf.mxu2 }
  0xbe   : > { %v704_v13 = vadd.f32 %v684_v19, %v616_v29  ;;  %v617_v56 = vadd.f32 %v598_v35, %v470_v52 }
  0xc0   : > { %v805_v59 = vadd.f32 %v785_v30, %v704_v13 }
  0xc2   : > { %v787_v37 = vpop.f32.mrf.mxu0 }
  0xc3   : > { %v474_v40 = vpop.f32.mrf.mxu1 }
  0xc4   : > { %v475_v10 = vadd.f32 %v474_v40, %v1975_v25 }
  0xc5   : > { %v686_v38 = vpop.f32.mrf.mxu3  ;;  %v601_v41 = vpop.f32.mrf.mxu2 }
  0xc6   : > { %v705_v61 = vadd.f32 %v686_v38, %v617_v56  ;;  %v618_v12 = vadd.f32 %v601_v41, %v473_v1 }
  0xc8   : > { %v806_v15 = vadd.f32 %v787_v37, %v705_v61 }
  0xca   : > { %v790_v42 = vpop.f32.mrf.mxu0 }
  0xcb   : > { %v1987_v44 = vpop.f32.mrf.mxu1 }
  0xcc   : > { %v478_v29 = vadd.f32 %v1987_v44, %v1977_v21 }
  0xcd   : > { %v689_v43 = vpop.f32.mrf.mxu3  ;;  %v603_v32 = vpop.f32.mrf.mxu2 }
  0xce   : > { %v706_v34 = vadd.f32 %v689_v43, %v618_v12  ;;  %v619_v19 = vadd.f32 %v603_v32, %v475_v10 }
  0xd0   : > { %v807_v37 = vadd.f32 %v790_v42, %v706_v34 }
  0xd2   : > { %v1989_v39 = vpop.f32.mrf.mxu0 }
  0xd3   : > { %v1991_v54 = vpop.f32.mrf.mxu1 }
  0xd5   : > { %v691_v45 = vpop.f32.mrf.mxu3  ;;  %v1993_v46 = vpop.f32.mrf.mxu2 }
  0xd6   : > { %v707_v40 = vadd.f32 %v691_v45, %v619_v19  ;;  %v620_v32 = vadd.f32 %v1993_v46, %v478_v29  ;;  %v480_v46 = vadd.f32 %v1991_v54, %v1983_v26 }
  0xd8   : > { %v808_v56 = vadd.f32 %v1989_v39, %v707_v40 }
  0xda   : > { %v1995_v47 = vpop.f32.mrf.mxu0 }
  0xdb   : > { %v1999_v48 = vpop.f32.mrf.mxu1 }
  0xdd   : > { %v1997_v53 = vpop.f32.mrf.mxu3  ;;  %v2001_v49 = vpop.f32.mrf.mxu2 }
  0xde   : > { %v708_v61 = vadd.f32 %v1997_v53, %v620_v32  ;;  %v621_v39 = vadd.f32 %v2001_v49, %v480_v46  ;;  %v483_v49 = vadd.f32 %v1999_v48, %v1980_v63 }
  0xe0   : > { %v809_v12 = vadd.f32 %v1995_v47, %v708_v61 }
  0xe2   : > { %v2003_v50 = vpop.f32.mrf.mxu0 }
  0xe3   : > { %v2007_v23 = vpop.f32.mrf.mxu1 }
  0xe5   : > { %v2005_v3 = vpop.f32.mrf.mxu3  ;;  %v2009_v55 = vpop.f32.mrf.mxu2 }
  0xe6   : > { %v622_v47 = vadd.f32 %v2009_v55, %v483_v49  ;;  %v485_v55 = vadd.f32 %v2007_v23, %v1985_v2 }
  0xea   : > { %v2011_v4 = vpop.f32.mrf.mxu0 }
  0xeb   : > { %v877_v8 = vpop.f32.mrf.mxu1 }
  0xec   : > { %v897_v60 = vadd.f32 %v877_v8, %v805_v59 }
  0xed   : > { %v2013_v58 = vpop.f32.mrf.mxu3  ;;  %v2015_v33 = vpop.f32.mrf.mxu2 }
  0xf2   : > { %v2017_v51 = vpop.f32.mrf.mxu0 }
  0xf3   : > { %v879_v5 = vpop.f32.mrf.mxu1 }
  0xf4   : > { %v898_v18 = vadd.f32 %v879_v5, %v806_v15 }
  0xf5   : > { %v2019_v7 = vpop.f32.mrf.mxu3  ;;  %v953_v36 = vpop.f32.mrf.mxu2 }
  0xf6   : > { %v973_v62 = vadd.f32 %v953_v36, %v897_v60 }
  0xfa   : > { %v1122_v0 = vpop.f32.mrf.mxu0 }
  0xfb   : > { %v882_v11 = vpop.f32.mrf.mxu1 }
  0xfc   : > { %v899_v25 = vadd.f32 %v882_v11, %v807_v37 }
  0xfd   : > { %v1042_v9 = vpop.f32.mrf.mxu3  ;;  %v955_v22 = vpop.f32.mrf.mxu2 }
  0xfe   : > { %v1062_v16 = vadd.f32 %v1042_v9, %v973_v62  ;;  %v974_v17 = vadd.f32 %v955_v22, %v898_v18 }
 0x100   : > { %v1142_v20 = vadd.f32 %v1122_v0, %v1062_v16 }
 0x102   : > { %v1154_v24 = vadd.f32 %v2025_v14, %v1142_v20  ;;  %v1124_v6 = vpop.f32.mrf.mxu0  ;;  %v709_v20 = vadd.f32 %v2005_v3, %v621_v39 }
 0x103   : > { %v884_v30 = vpop.f32.mrf.mxu1 }
 0x104   : > { %v1162_v27 = vmax.f32 %v1154_v24, 0.0  ;;  %v900_v60 = vadd.f32 %v884_v30, %v808_v56  ;;  %v810_v10 = vadd.f32 %v2003_v50, %v709_v20  ;;  %v710_v30 = vadd.f32 %v2013_v58, %v622_v47 }
 0x105   : > { %v1044_v28 = vpop.f32.mrf.mxu3  ;;  %v958_v38 = vpop.f32.mrf.mxu2  ;;  %v623_v50 = vadd.f32 %v2015_v33, %v485_v55 }
 0x106   : > { %v1170_v31 = vpack.c.bf16 %v1162_v27, %v1162_v27  ;;  %v1063_v35 = vadd.f32 %v1044_v28, %v974_v17  ;;  %v975_v57 = vadd.f32 %v958_v38, %v899_v25  ;;  %v811_v25 = vadd.f32 %v2011_v4, %v710_v30 }
 0x108   : > { %1179 = vst.msk [vmem:[%s2033_s21] sm:$0xf] %vm1178_vm7, %v1170_v31  ;;  %v1143_v41 = vadd.f32 %v1124_v6, %v1063_v35 }
 0x10a   : > { %v1155_v43 = vadd.f32 %v2025_v14, %v1143_v41  ;;  %v1127_v8 = vpop.f32.mrf.mxu0 }
 0x10b   : > { %v887_v36 = vpop.f32.mrf.mxu1 }
 0x10c   : > { %v1163_v13 = vmax.f32 %v1155_v43, 0.0  ;;  %v901_v15 = vadd.f32 %v887_v36, %v809_v12 }
 0x10d   : > { %v1047_v52 = vpop.f32.mrf.mxu3  ;;  %v960_v59 = vpop.f32.mrf.mxu2 }
 0x10e   : > { %v1171_v5 = vpack.c.bf16 %v1163_v13, %v1163_v13  ;;  %v1064_v42 = vadd.f32 %v1047_v52, %v975_v57  ;;  %v976_v21 = vadd.f32 %v960_v59, %v900_v60  ;;  %v711_v57 = vadd.f32 %v2019_v7, %v623_v50 }
 0x110   : > { %1180 = vst.msk [vmem:[%s2033_s21 + $0x4] sm:$0xf] %vm1178_vm7, %v1171_v5  ;;  %v1144_v45 = vadd.f32 %v1127_v8, %v1064_v42  ;;  %v812_v4 = vadd.f32 %v2017_v51, %v711_v57 }
 0x112   : > { %v1156_v62 = vadd.f32 %v2025_v14, %v1144_v45  ;;  %v1129_v44 = vpop.f32.mrf.mxu0 }
 0x113   : > { %v889_v22 = vpop.f32.mrf.mxu1 }
 0x114   : > { %v1164_v0 = vmax.f32 %v1156_v62, 0.0  ;;  %v902_v28 = vadd.f32 %v889_v22, %v810_v10 }
 0x115   : > { %v1049_v1 = vpop.f32.mrf.mxu3  ;;  %v963_v16 = vpop.f32.mrf.mxu2 }
 0x116   : > { %v1172_v9 = vpack.c.bf16 %v1164_v0, %v1164_v0  ;;  %v1065_v11 = vadd.f32 %v1049_v1, %v976_v21  ;;  %v977_v26 = vadd.f32 %v963_v16, %v901_v15 }
 0x118   : > { %1181 = vst.msk [vmem:[%s2033_s21 + $0x8] sm:$0xf] %vm1178_vm7, %v1172_v9  ;;  %v1145_v53 = vadd.f32 %v1129_v44, %v1065_v11 }
 0x11a   : > { %v1157_v18 = vadd.f32 %v2025_v14, %v1145_v53  ;;  %v1132_v54 = vpop.f32.mrf.mxu0 }
 0x11b   : > { %v892_v63 = vpop.f32.mrf.mxu1 }
 0x11c   : > { %v1165_v34 = vmax.f32 %v1157_v18, 0.0  ;;  %v903_v43 = vadd.f32 %v892_v63, %v811_v25 }
 0x11d   : > { %v1052_v24 = vpop.f32.mrf.mxu3  ;;  %v965_v27 = vpop.f32.mrf.mxu2 }
 0x11e   : > { %v1173_v17 = vpack.c.bf16 %v1165_v34, %v1165_v34  ;;  %v1066_v6 = vadd.f32 %v1052_v24, %v977_v26  ;;  %v978_v31 = vadd.f32 %v965_v27, %v902_v28 }
 0x120   : > { %1182 = vst.msk [vmem:[%s2033_s21 + $0xc] sm:$0xf] %vm1178_vm7, %v1173_v17  ;;  %v1146_v3 = vadd.f32 %v1132_v54, %v1066_v6 }
 0x122   : > { %v1158_v19 = vadd.f32 %v2025_v14, %v1146_v3  ;;  %v1134_v48 = vpop.f32.mrf.mxu0 }
 0x123   : > { %v894_v23 = vpop.f32.mrf.mxu1 }
 0x124   : > { %v1166_v35 = vmax.f32 %v1158_v19, 0.0  ;;  %v904_v56 = vadd.f32 %v894_v23, %v812_v4 }
 0x125   : > { %v1054_v37 = vpop.f32.mrf.mxu3  ;;  %v968_v40 = vpop.f32.mrf.mxu2 }
 0x126   : > { %v1174_v38 = vpack.c.bf16 %v1166_v35, %v1166_v35  ;;  %v1067_v41 = vadd.f32 %v1054_v37, %v978_v31  ;;  %v979_v29 = vadd.f32 %v968_v40, %v903_v43 }
 0x128   : > { %1183 = vst.msk [vmem:[%s2033_s21 + $0x10] sm:$0xf] %vm1178_vm7, %v1174_v38  ;;  %v1147_v58 = vadd.f32 %v1134_v48, %v1067_v41 }
 0x12a   : > { %v1159_v8 = vadd.f32 %v2025_v14, %v1147_v58  ;;  %v1137_v13 = vpop.f32.mrf.mxu0 }
 0x12c   : > { %v1167_v2 = vmax.f32 %v1159_v8, 0.0 }
 0x12d   : > { %v1057_v33 = vpop.f32.mrf.mxu3  ;;  %v970_v5 = vpop.f32.mrf.mxu2 }
 0x12e   : > { %v1175_v52 = vpack.c.bf16 %v1167_v2, %v1167_v2  ;;  %v1068_v32 = vadd.f32 %v1057_v33, %v979_v29  ;;  %v980_v59 = vadd.f32 %v970_v5, %v904_v56 }
 0x130   : > { %1184 = vst.msk [vmem:[%s2033_s21 + $0x14] sm:$0xf] %vm1178_vm7, %v1175_v52  ;;  %v1148_v42 = vadd.f32 %v1137_v13, %v1068_v32 }
 0x132   : > { %v1160_v7 = vadd.f32 %v2025_v14, %v1148_v42  ;;  %v1139_v62 = vpop.f32.mrf.mxu0 }
 0x134   : > { %v1168_v36 = vmax.f32 %v1160_v7, 0.0 }
 0x135   : > { %v1059_v45 = vpop.f32.mrf.mxu3 }
 0x136   : > { %v1176_v60 = vpack.c.bf16 %v1168_v36, %v1168_v36  ;;  %v1069_v61 = vadd.f32 %v1059_v45, %v980_v59 }
 0x138   : > { %1185 = vst.msk [vmem:[%s2033_s21 + $0x18] sm:$0xf] %vm1178_vm7, %v1176_v60  ;;  %v1149_v21 = vadd.f32 %v1139_v62, %v1069_v61 }
 0x13a   : > { %v1161_v44 = vadd.f32 %v2025_v14, %v1149_v21 }
 0x13c   : > { %v1169_v51 = vmax.f32 %v1161_v44, 0.0 }
 0x13e   : > { %v1177_v46 = vpack.c.bf16 %v1169_v51, %v1169_v51 }
 0x140   : > { %1186 = vst.msk [vmem:[%s2033_s21 + $0x1c] sm:$0xf] %vm1178_vm7, %v1177_v46 }
 0x141 PF: > { %s13_s12 = sadd.s32 1, %s1571_s12  }
 0x142   : > { %p10_p4 = scmp.ge.s32.totalorder %s13_s12, 4  }
 0x144   :  { %12 = sbr.rel (!%p10_p4) target bundleno = 1 (0x1), region = 70 }

// kernel: asp_ocnet_forward.21
= control target key start
LH: loop header
LB: loop body
LE: loop exit
PB: predicated region body
PF: predicated region fallthrough
CT: control target
= control target key end

     0   :  { %s358_s12 = smov 0   ;;  %s384_s0 = inlined_call_operand.vmem [shape: bf16[2,4,4,32], index: 0, kind: input, shape index: {}]   ;;  %s385_s1 = inlined_call_operand.vmem [shape: bf16[1,32,16], index: 1, kind: input, shape index: {}]   ;;  %s386_s2 = inlined_call_operand.vmem [shape: f32[1,16], index: 2, kind: input, shape index: {}]   ;;  %s387_s3 = inlined_call_operand.vmem [shape: bf16[2,4,4,16], index: 3, kind: output, shape index: {}]  }
   0x1 LB: > { %s297_s13 = sadd.s32 4294967295, %s336_s12   ;;  %p301_p0 = scmp.ge.s32.totalorder %s336_s12, 1  ;;  %s336_s12 = sphi %s358_s12, %s13_s12  }
   0x2   : > { %p137_p1 = scmp.lt.s32.totalorder %s336_s12, 3 }
   0x4   : > { %p138_p2 = pnand %p301_p0, %p137_p1 }
   0x5   : > { %p161_p3 = scmp.lt.s32.totalorder (!%p138_p2), %s297_s13, 1 }
   0x6   : > { %141 = sbr.rel (%p138_p2) target bundleno = 169 (0xa9), region = 32 }
   0xb   : > { %v320_v0 = vld [vmem:[%s385_s1 + $0x8] sm:$0xff]  ;;  %v319_v1 = vld [vmem:[%s385_s1] sm:$0xff]  ;;  %s389_s13 = smov (!%p161_p3, %s297_s13), 1  ;;  %vm208_vm0 = vcmask 261120   ;;  %vm237_vm1 = vcmask 123904  }
   0xc   : > { %217 = vmatpush.bf16.msra.mxu0 %v320_v0  ;;  %s317_s18 = sshll.u32 %s389_s13, 3  ;;  %v329_v7 = vld [vmem:[%s386_s2] ss:$0 sm:$0xff] }
   0xd   : > { %s165_s21 = scalar_lea.vmem %s384_s0, %s317_s18  ;;  %s170_s26 = scalar_lea.vmem %s387_s3, %s317_s18 }
   0xe   : > { %v172_v2 = vld [vmem:[%s165_s21] sm:$0x3]  ;;  %v173_v3 = vld [vmem:[%s165_s21 + $0x2] sm:$0x3]  ;;  %v174_v4 = vld [vmem:[%s165_s21 + $0x4] sm:$0x3] }
   0xf   : > { %v175_v5 = vld [vmem:[%s165_s21 + $0x6] sm:$0x3]  ;;  %185 = vst [vmem:[#allocation1] ss:$4 sm:$0xff] %v172_v2 }
  0x10   : > { %218 = vmatpush.bf16.msra.mxu0 %v319_v1  ;;  %188 = vst [vmem:[#allocation1 + $0x1] ss:$4 sm:$0xff] %v173_v3 }
  0x11   : > { %191 = vst [vmem:[#allocation1 + $0x2] ss:$4 sm:$0xff] %v174_v4 }
  0x12   : > { %194 = vst [vmem:[#allocation1 + $0x3] ss:$4 sm:$0xff] %v175_v5 }
  0x19   : > { %v195_v6 = vld.sshfl [vmem:[#allocation1] sm:$0xff pattern:$0x73625140] }
  0x1a   : > { %314 = vmatmul.msk.bf16.vlgmr.msra.gmra.mxu0 %vm208_vm0, %v195_v6 }
  0x97   : > { %v220_v8 = vpop.f32.mrf.mxu0 }
  0x98   : > { %v221_v9 = vadd.f32 %v329_v7, %v220_v8 }
  0x9a   : > { %v225_v10 = vmax.f32 %v221_v9, 0.0 }
  0x9c   : > { %v229_v11 = vrot.slane %v225_v10, 4  ;;  %v233_v12 = vpack.c.bf16 %v225_v10, %v225_v10 }
  0x9e   : > { %v234_v13 = vpack.c.bf16 %v229_v11, %v229_v11  ;;  %238 = vst.msk [vmem:[%s170_s26] sm:$0x3] %vm237_vm1, %v233_v12 }
  0x9f   : > { %v222_v14 = vpop.f32.mrf.mxu0 }
  0xa0   : > { %239 = vst.msk [vmem:[%s170_s26 + $0x2] sm:$0x3] %vm237_vm1, %v234_v13  ;;  %v223_v15 = vadd.f32 %v329_v7, %v222_v14 }
  0xa2   : > { %v226_v16 = vmax.f32 %v223_v15, 0.0 }
  0xa4   : > { %v230_v17 = vrot.slane %v226_v16, 4  ;;  %v235_v18 = vpack.c.bf16 %v226_v16, %v226_v16 }
  0xa6   : > { %v236_v19 = vpack.c.bf16 %v230_v17, %v230_v17  ;;  %240 = vst.msk [vmem:[%s170_s26 + $0x4] sm:$0x3] %vm237_vm1, %v235_v18 }
  0xa8   : > { %241 = vst.msk [vmem:[%s170_s26 + $0x6] sm:$0x3] %vm237_vm1, %v236_v19 }
  0xa9 PF: > { %s13_s12 = sadd.s32 1, %s336_s12  }
  0xaa   : > { %p10_p4 = scmp.ge.s32.totalorder %s13_s12, 4  }
  0xac   :  { %12 = sbr.rel (!%p10_p4) target bundleno = 1 (0x1), region = 65 }

// kernel: asp_ocnet_forward.20
= control target key start
LH: loop header
LB: loop body
LE: loop exit
PB: predicated region body
PF: predicated region fallthrough
CT: control target
= control target key end

     0   :  { %s1593_s12 = smov 0   ;;  %s2082_s0 = inlined_call_operand.vmem [shape: bf16[2,10,10,64], index: 0, kind: input, shape index: {}]   ;;  %s2083_s1 = inlined_call_operand.vmem [shape: bf16[9,64,32], index: 1, kind: input, shape index: {}]   ;;  %s2084_s2 = inlined_call_operand.vmem [shape: f32[1,32], index: 2, kind: input, shape index: {}]   ;;  %s2085_s3 = inlined_call_operand.vmem [shape: bf16[2,8,8,32], index: 3, kind: output, shape index: {}]  }
   0x1 LB: > { %s1242_s13 = sadd.s32 4294967295, %s1571_s12   ;;  %p1246_p0 = scmp.ge.s32.totalorder %s1571_s12, 1  ;;  %s1571_s12 = sphi %s1593_s12, %s13_s12  }
   0x2   : > { %p137_p1 = scmp.lt.s32.totalorder %s1571_s12, 3 }
   0x4   : > { %p138_p2 = pnand %p1246_p0, %p137_p1 }
   0x5   : > { %p161_p3 = scmp.lt.s32.totalorder (!%p138_p2), %s1242_s13, 1 }
   0x6   : > { %141 = sbr.rel (%p138_p2) target bundleno = 321 (0x141), region = 32 }
   0xb   : > { %v1514_v0 = vld [vmem:[%s2083_s1 + $0x38] sm:$0xff]  ;;  %v1513_v1 = vld [vmem:[%s2083_s1 + $0x30] sm:$0xff]  ;;  %s2091_s13 = smov (!%p161_p3, %s1242_s13), 1  ;;  %v1512_v2 = vld [vmem:[%s2083_s1 + $0x28] sm:$0xff]  ;;  %vm200_vm0 = vsmask.f32 3328 }
   0xc   : > { %1543 = vmatpush.bf16.msra.mxu1 %v1514_v0  ;;  %1544 = vmatpush.bf16.msra.mxu2 %v1514_v0  ;;  %s1555_s18 = smul.u32 80, %s2091_s13  ;;  %vm201_vm1 = vsmask.f32 7440  ;;  %v1511_v6 = vld [vmem:[%s2083_s1 + $0x20] sm:$0xff]  ;;  %v1518_v21 = vld [vmem:[%s2083_s1 + $0x58] sm:$0xff]  ;;  %vm360_vm2 = vcmask 523264  }
   0xd   : > { %1545 = vmatpush.bf16.msra.mxu3 %v1514_v0  ;;  %377 = vmatpush.bf16.msra.mxu0 %v1514_v0  ;;  %v1510_v22 = vld [vmem:[%s2083_s1 + $0x18] sm:$0xff]  ;;  %vm1670_vm3 = vmor %vm200_vm0, %vm201_vm1  ;;  %v1517_v49 = vld [vmem:[%s2083_s1 + $0x50] sm:$0xff]  ;;  %vm495_vm4 = vcmask 1042432   ;;  %vm496_vm5 = vcmask 1046532   ;;  %vm1178_vm7 = vcmask 257024  }
   0xe   : > { %s1616_s23 = scalar_lea.vmem %s2082_s0, %s1555_s18  ;;  %v1522_v33 = vld [vmem:[%s2083_s1 + $0x78] sm:$0xff]  ;;  %v1509_v50 = vld [vmem:[%s2083_s1 + $0x10] sm:$0xff]  ;;  %vm1787_vm6 = vmor %vm495_vm4, %vm496_vm5  ;;  %s1506_s18 = sshll.u32 %s2091_s13, 5 }
   0xf   : > { %v1619_v3 = vld [vmem:[%s1616_s23 + $0x10] sm:$0xf]  ;;  %v1622_v4 = vld [vmem:[%s1616_s23 + $0x14] sm:$0x1]  ;;  %v1625_v5 = vld [vmem:[%s1616_s23 + $0x18] sm:$0xf]  ;;  %s2033_s21 = scalar_lea.vmem %s2085_s3, %s1506_s18 }
  0x10   : > { %1546 = vmatpush.bf16.msra.mxu1 %v1513_v1  ;;  %1547 = vmatpush.bf16.msra.mxu2 %v1513_v1  ;;  %v1631_v7 = vld [vmem:[%s1616_s23 + $0x1c] sm:$0x1]  ;;  %v232_v8 = vshrl.u32 %v1619_v3, 16  ;;  %v235_v9 = vshll.u32 %v1619_v3, 16  ;;  %v241_v10 = vshll.u32 %v1622_v4, 16  ;;  %v246_v11 = vshrl.u32 %v1625_v5, 16 }
  0x11   : > { %1548 = vmatpush.bf16.msra.mxu3 %v1513_v1  ;;  %378 = vmatpush.bf16.msra.mxu0 %v1513_v1  ;;  %v249_v12 = vshll.u32 %v1625_v5, 16  ;;  %v255_v13 = vshll.u32 %v1631_v7, 16  ;;  %v1640_v14 = vld [vmem:[%s1616_s23 + $0x20] sm:$0xf]  ;;  %v1643_v15 = vld [vmem:[%s1616_s23 + $0x24] sm:$0x1] }
  0x12   : > { %v234_v16 = vrot.slane %v232_v8, 4  ;;  %v237_v17 = vrot.slane %v235_v9, 5  ;;  %v243_v18 = vrot.slane %v241_v10, 5  ;;  %v248_v19 = vrot.slane %v246_v11, 4  ;;  %v1646_v20 = vld [vmem:[%s1616_s23 + $0x28] sm:$0xf] }
  0x13   : > { %v251_v23 = vrot.slane %v249_v12, 5  ;;  %v257_v24 = vrot.slane %v255_v13, 5  ;;  %v1655_v25 = vld [vmem:[%s1616_s23 + $0x2c] sm:$0x1]  ;;  %v260_v26 = vshrl.u32 %v1640_v14, 16  ;;  %v263_v27 = vshll.u32 %v1640_v14, 16 }
  0x14   : > { %1549 = vmatpush.bf16.msra.mxu1 %v1512_v2  ;;  %1550 = vmatpush.bf16.msra.mxu2 %v1512_v2  ;;  %v238_v28 = vor.u32 %v237_v17, %v234_v16  ;;  %v269_v29 = vshll.u32 %v1643_v15, 16  ;;  %v274_v30 = vshrl.u32 %v1646_v20, 16  ;;  %v277_v31 = vshll.u32 %v1646_v20, 16  ;;  %v1663_v32 = vld [vmem:[%s1616_s23 + $0x30] sm:$0xf]  ;;  %v1526_v40 = vld [vmem:[%s2083_s1 + $0x98] sm:$0xff] }
  0x15   : > { %1551 = vmatpush.bf16.msra.mxu3 %v1512_v2  ;;  %379 = vmatpush.bf16.msra.mxu0 %v1512_v2  ;;  %v252_v35 = vor.u32 %v251_v23, %v248_v19  ;;  %v262_v36 = vrot.slane %v260_v26, 4  ;;  %v265_v37 = vrot.slane %v263_v27, 5  ;;  %v283_v38 = vshll.u32 %v1655_v25, 16  ;;  %v1676_v39 = vld [vmem:[%s1616_s23 + $0x34] sm:$0x1] }
  0x16   : > { %v239_v41 = vrot.slane %v238_v28, 4  ;;  %v271_v42 = vrot.slane %v269_v29, 5  ;;  %v276_v43 = vrot.slane %v274_v30, 4  ;;  %v279_v44 = vrot.slane %v277_v31, 5  ;;  %v1691_v53 = vld [vmem:[%s1616_s23 + $0x38] sm:$0xf] }
  0x17   : > { %v253_v45 = vrot.slane %v252_v35, 4  ;;  %v266_v46 = vor.u32 %v265_v37, %v262_v36  ;;  %v285_v47 = vrot.slane %v283_v38, 5  ;;  %v288_v48 = vshrl.u32 %v1663_v32, 16  ;;  %v1694_v54 = vld [vmem:[%s1616_s23 + $0x3c] sm:$0x1]  ;;  %v1521_v61 = vld [vmem:[%s2083_s1 + $0x70] sm:$0xff] }
  0x18   : > { %1552 = vmatpush.bf16.msra.mxu1 %v1511_v6  ;;  %1553 = vmatpush.bf16.msra.mxu2 %v1511_v6  ;;  %v244_v51 = vsel %vm1670_vm3, %v239_v41, %v243_v18  ;;  %v280_v52 = vor.u32 %v279_v44, %v276_v43  ;;  %v291_v55 = vshll.u32 %v1663_v32, 16  ;;  %v297_v56 = vshll.u32 %v1676_v39, 16  ;;  %v1525_v62 = vld [vmem:[%s2083_s1 + $0x90] sm:$0xff]  ;;  %v1719_v12 = vld [vmem:[%s1616_s23 + $0x4] sm:$0x1]  ;;  %v1520_v28 = vld [vmem:[%s2083_s1 + $0x68] sm:$0xff] }
  0x19   : > { %1554 = vmatpush.bf16.msra.mxu3 %v1511_v6  ;;  %380 = vmatpush.bf16.msra.mxu0 %v1511_v6  ;;  %v258_v57 = vsel %vm1670_vm3, %v253_v45, %v257_v24  ;;  %v1700_v58 = vunpack.c.l.b16 %v244_v51  ;;  %v267_v59 = vrot.slane %v266_v46, 4  ;;  %v290_v60 = vrot.slane %v288_v48, 4  ;;  %v1711_v6 = vld [vmem:[%s1616_s23] sm:$0xf]  ;;  %v1730_v19 = vld [vmem:[%s1616_s23 + $0x8] sm:$0xf] }
  0x1a   : > { %v1708_v63 = vunpack.c.l.b16 %v258_v57  ;;  %v281_v0 = vrot.slane %v280_v52, 4  ;;  %v293_v1 = vrot.slane %v291_v55, 5  ;;  %v299_v2 = vrot.slane %v297_v56, 5  ;;  %v1524_v35 = vld [vmem:[%s2083_s1 + $0x88] sm:$0xff]  ;;  %v1515_v45 = vld [vmem:[%s2083_s1 + $0x40] sm:$0xff]  ;;  %v1534_v52 = vld [vmem:[%s2083_s1 + $0xd8] sm:$0xff] }
  0x1b   : > { %v272_v8 = vsel %vm1670_vm3, %v267_v59, %v271_v42  ;;  %v302_v9 = vshrl.u32 %v1691_v53, 16  ;;  %v305_v10 = vshll.u32 %v1691_v53, 16  ;;  %v311_v11 = vshll.u32 %v1694_v54, 16  ;;  %v175_v38 = vld [vmem:[%s1616_s23 + $0xc] sm:$0x1]  ;;  %v1507_v46 = vld [vmem:[%s2083_s1] sm:$0xff] }
  0x1c   : > { %591 = vmatpush.bf16.msrb.mxu2 %v1518_v21  ;;  %462 = vmatpush.bf16.msrb.mxu1 %v1510_v22  ;;  %v1723_v13 = vpack.c.b16 %v1708_v63, %v1700_v58  ;;  %v286_v16 = vsel %vm1670_vm3, %v281_v0, %v285_v47  ;;  %v1727_v17 = vunpack.c.l.b16 %v272_v8  ;;  %v294_v18 = vor.u32 %v293_v1, %v290_v60  ;;  %v1516_v21 = vld [vmem:[%s2083_s1 + $0x48] sm:$0xff]  ;;  %v1519_v51 = vld [vmem:[%s2083_s1 + $0x60] sm:$0xff] }
  0x1d   : > { %679 = vmatpush.bf16.msrb.mxu3 %v1522_v33  ;;  %780 = vmatpush.bf16.msrb.mxu0 %v1526_v40  ;;  %v1508_v22 = vld [vmem:[%s2083_s1 + $0x8] sm:$0xff]  ;;  %v1738_v23 = vunpack.c.l.b16 %v286_v16  ;;  %v304_v24 = vrot.slane %v302_v9, 4  ;;  %v307_v26 = vrot.slane %v305_v10, 5  ;;  %v313_v27 = vrot.slane %v311_v11, 5  ;;  %v1523_v60 = vld [vmem:[%s2083_s1 + $0x80] sm:$0xff] }
  0x1e   : > { %1275 = vmatmul.msk.bf16.vlgmr.msra.gmra.mxu1 %vm360_vm2, %v1723_v13  ;;  %v295_v29 = vrot.slane %v294_v18, 4  ;;  %v204_v30 = vshrl.u32 %v1711_v6, 16  ;;  %v207_v31 = vshll.u32 %v1711_v6, 16  ;;  %v213_v33 = vshll.u32 %v1719_v12, 16 }
  0x1f   : > { %v1753_v36 = vpack.c.b16 %v1738_v23, %v1727_v17  ;;  %v308_v37 = vor.u32 %v307_v26, %v304_v24  ;;  %v218_v40 = vshrl.u32 %v1730_v19, 16  ;;  %v221_v41 = vshll.u32 %v1730_v19, 16 }
  0x20   : > { %592 = vmatpush.bf16.msrb.mxu2 %v1517_v49  ;;  %463 = vmatpush.bf16.msrb.mxu1 %v1509_v50  ;;  %v300_v42 = vsel %vm1670_vm3, %v295_v29, %v299_v2  ;;  %v206_v43 = vrot.slane %v204_v30, 4  ;;  %v209_v44 = vrot.slane %v207_v31, 5  ;;  %v215_v48 = vrot.slane %v213_v33, 5 }
  0x21   : > { %680 = vmatpush.bf16.msrb.mxu3 %v1521_v61  ;;  %781 = vmatpush.bf16.msrb.mxu0 %v1525_v62  ;;  %v309_v47 = vrot.slane %v308_v37, 4  ;;  %v220_v49 = vrot.slane %v218_v40, 4  ;;  %v223_v50 = vrot.slane %v221_v41, 5  ;;  %v1774_v55 = vunpack.c.l.b16 %v300_v42  ;;  %v1530_v61 = vld [vmem:[%s2083_s1 + $0xb8] sm:$0xff]  ;;  %v1537_v40 = vld [vmem:[%s2083_s1 + $0xf0] sm:$0xff] }
  0x22   : > { %1276 = vmatmul.msk.bf16.vlgmr.msra.gmra.mxu2 %vm360_vm2, %v1753_v36  ;;  %v210_v56 = vor.u32 %v209_v44, %v206_v43  ;;  %v227_v57 = vshll.u32 %v175_v38, 16  ;;  %v500_v59 = vrot.slane %v1719_v12, 5  ;;  %v504_v1 = vrot.slane %v175_v38, 5  ;;  %v1529_v41 = vld [vmem:[%s2083_s1 + $0xb0] sm:$0xff] }
  0x23   : > { %v314_v62 = vsel %vm1670_vm3, %v309_v47, %v313_v27  ;;  %v224_v0 = vor.u32 %v223_v50, %v220_v49  ;;  %v1298_v11 = vrot.slane %v1711_v6, 9  ;;  %v410_v16 = vunpack.c.l.b16 %v1711_v6  ;;  %v1541_v43 = vld [vmem:[%s2083_s1 + $0x110] sm:$0xff] }
  0x24   : > { %593 = vmatpush.bf16.msrb.mxu2 %v1516_v21  ;;  %464 = vmatpush.bf16.msrb.mxu1 %v1508_v22  ;;  %v1791_v8 = vunpack.c.l.b16 %v314_v62  ;;  %v211_v9 = vrot.slane %v210_v56, 4  ;;  %v229_v10 = vrot.slane %v227_v57, 5  ;;  %v1299_v18 = vrot.slane %v1730_v19, 9  ;;  %v1538_v21 = vld [vmem:[%s2083_s1 + $0xf8] sm:$0xff]  ;;  %v1536_v57 = vld [vmem:[%s2083_s1 + $0xe8] sm:$0xff] }
  0x25   : > { %681 = vmatpush.bf16.msrb.mxu3 %v1520_v28  ;;  %782 = vmatpush.bf16.msrb.mxu0 %v1524_v35  ;;  %v225_v12 = vrot.slane %v224_v0, 4  ;;  %v411_v26 = vunpack.c.l.b16 %v1730_v19  ;;  %v501_v6 = vsel %vm1787_vm6, %v1298_v11, %v500_v59  ;;  %v1533_v19 = vld [vmem:[%s2083_s1 + $0xd0] sm:$0xff]  ;;  %v1542_v35 = vld [vmem:[%s2083_s1 + $0x118] sm:$0xff]  ;;  %v412_v44 = vunpack.c.l.b16 %v1619_v3  ;;  %v1540_v59 = vld [vmem:[%s2083_s1 + $0x108] sm:$0xff] }
  0x26   : > { %v1801_v22 = vpack.c.b16 %v1791_v8, %v1774_v55  ;;  %v216_v24 = vsel %vm1670_vm3, %v211_v9, %v215_v48  ;;  %v1812_v29 = vsel %vm1787_vm6, %v1299_v18, %v504_v1  ;;  %v539_v31 = vunpack.c.l.b16 %v501_v6 }
  0x27   : > { %v230_v27 = vsel %vm1670_vm3, %v225_v12, %v229_v10  ;;  %v324_v28 = vunpack.c.l.b16 %v216_v24  ;;  %v540_v33 = vunpack.c.l.b16 %v1812_v29  ;;  %v418_v38 = vpack.c.b16 %v411_v26, %v410_v16  ;;  %v1527_v24 = vld [vmem:[%s2083_s1 + $0xa0] sm:$0xff]  ;;  %v190_v29 = vld [vmem:[%s1616_s23 + $0x48] sm:$0xf] }
  0x28   : > { %594 = vmatpush.bf16.msrb.mxu2 %v1515_v45  ;;  %465 = vmatpush.bf16.msrb.mxu1 %v1507_v46  ;;  %v325_v30 = vunpack.c.l.b16 %v230_v27  ;;  %v1300_v45 = vrot.slane %v1619_v3, 9  ;;  %v508_v46 = vrot.slane %v1622_v4, 5  ;;  %v1301_v47 = vrot.slane %v1625_v5, 9  ;;  %v1532_v4 = vld [vmem:[%s2083_s1 + $0xc8] sm:$0xff] }
  0x29   : > { %682 = vmatpush.bf16.msrb.mxu3 %v1519_v51  ;;  %783 = vmatpush.bf16.msrb.mxu0 %v1523_v60  ;;  %v547_v42 = vpack.c.b16 %v540_v33, %v539_v31  ;;  %v512_v48 = vrot.slane %v1631_v7, 5  ;;  %v635_v49 = vpack.c.b16 %v412_v44, %v411_v26  ;;  %v413_v50 = vunpack.c.l.b16 %v1625_v5  ;;  %v1911_v26 = vld [vmem:[%s1616_s23 + $0x40] sm:$0xf] }
  0x2a   : > { %1277 = vmatmul.msk.bf16.vlgmr.msra.gmra.mxu3 %vm360_vm2, %v1801_v22  ;;  %v332_v37 = vpack.c.b16 %v325_v30, %v324_v28  ;;  %v1845_v51 = vsel %vm1787_vm6, %v1300_v45, %v508_v46  ;;  %v736_v3 = vpack.c.b16 %v1700_v58, %v325_v30  ;;  %v1528_v58 = vld [vmem:[%s2083_s1 + $0xa8] sm:$0xff]  ;;  %v1302_v62 = vrot.slane %v1640_v14, 9 }
  0x2b   : > { %v541_v7 = vunpack.c.l.b16 %v1845_v51  ;;  %v1858_v56 = vpack.c.b16 %v413_v50, %v412_v44  ;;  %v516_v0 = vrot.slane %v1643_v15, 5  ;;  %v1303_v1 = vrot.slane %v1646_v20, 9  ;;  %v1531_v15 = vld [vmem:[%s2083_s1 + $0xc0] sm:$0xff] }
  0x2c   : > { %948 = vmatpush.bf16.msra.mxu2 %v1534_v52  ;;  %872 = vmatpush.bf16.msra.mxu1 %v1530_v61  ;;  %v1849_v52 = vsel %vm1787_vm6, %v1301_v47, %v512_v48  ;;  %v414_v61 = vunpack.c.l.b16 %v1640_v14  ;;  %v520_v9 = vrot.slane %v1655_v25, 5  ;;  %v415_v11 = vunpack.c.l.b16 %v1646_v20  ;;  %v189_v44 = vld [vmem:[%s1616_s23 + $0x44] sm:$0x1] }
  0x2d   : > { %1037 = vmatpush.bf16.msra.mxu3 %v1538_v21  ;;  %1274 = vmatmul.msk.bf16.vlgmr.msra.gmra.mxu0 %vm360_vm2, %v332_v37  ;;  %v542_v5 = vunpack.c.l.b16 %v1849_v52  ;;  %v517_v12 = vsel %vm1787_vm6, %v1302_v62, %v516_v0  ;;  %v737_v14 = vpack.c.b16 %v1727_v17, %v1708_v63  ;;  %v1535_v21 = vld [vmem:[%s2083_s1 + $0xe0] sm:$0xff]  ;;  %v416_v6 = vunpack.c.l.b16 %v1663_v32 }
  0x2e   : > { %1117 = vmatpush.bf16.msra.mxu0 %v1542_v35  ;;  %1294 = vmatmul.msk.bf16.vlgmr.msrb.gmra.mxu1 %vm360_vm2, %v418_v38  ;;  %v636_v10 = vpack.c.b16 %v414_v61, %v413_v50  ;;  %v1890_v16 = vsel %vm1787_vm6, %v1303_v1, %v520_v9  ;;  %v543_v25 = vunpack.c.l.b16 %v517_v12  ;;  %v420_v18 = vpack.c.b16 %v415_v11, %v414_v61  ;;  %v1539_v63 = vld [vmem:[%s2083_s1 + $0x100] sm:$0xff] }
  0x2f   : > { %v1874_v60 = vpack.c.b16 %v542_v5, %v541_v7  ;;  %v544_v20 = vunpack.c.l.b16 %v1890_v16  ;;  %v713_v27 = vshrl.u32 %v1911_v26, 16  ;;  %v716_v28 = vshll.u32 %v1911_v26, 16 }
  0x30   : > { %949 = vmatpush.bf16.msra.mxu2 %v1533_v19  ;;  %873 = vmatpush.bf16.msra.mxu1 %v1529_v41  ;;  %v1304_v30 = vrot.slane %v1663_v32, 9  ;;  %v524_v19 = vrot.slane %v1676_v39, 5  ;;  %v1305_v31 = vrot.slane %v1691_v53, 9  ;;  %v528_v35 = vrot.slane %v1694_v54, 5 }
  0x31   : > { %1038 = vmatpush.bf16.msra.mxu3 %v1537_v40  ;;  %v549_v17 = vpack.c.b16 %v544_v20, %v543_v25  ;;  %v637_v37 = vpack.c.b16 %v416_v6, %v415_v11  ;;  %v715_v38 = vrot.slane %v713_v27, 4  ;;  %v718_v40 = vrot.slane %v716_v28, 5 }
  0x32   : > { %1330 = vmatmul.msk.bf16.vlgmr.msrb.gmra.mxu2 %vm360_vm2, %v547_v42  ;;  %1118 = vmatpush.bf16.msra.mxu0 %v1541_v43  ;;  %v417_v41 = vunpack.c.l.b16 %v1691_v53  ;;  %v525_v42 = vsel %vm1787_vm6, %v1304_v30, %v524_v19  ;;  %v529_v43 = vsel %vm1787_vm6, %v1305_v31, %v528_v35  ;;  %v738_v32 = vpack.c.b16 %v1774_v55, %v1738_v23 }
  0x33   : > { %v545_v39 = vunpack.c.l.b16 %v525_v42  ;;  %v546_v45 = vunpack.c.l.b16 %v529_v43  ;;  %v719_v54 = vor.u32 %v718_v40, %v715_v38  ;;  %v722_v46 = vshll.u32 %v189_v44, 16 }
  0x34   : > { %950 = vmatpush.bf16.msra.mxu2 %v1532_v4  ;;  %874 = vmatpush.bf16.msra.mxu1 %v1528_v58  ;;  %v421_v47 = vpack.c.b16 %v417_v41, %v416_v6  ;;  %v634_v50 = vunpack.c.l.b16 %v1911_v26  ;;  %v829_v58 = vpack.c.b16 %v543_v25, %v542_v5  ;;  %v1390_v51 = vrot.slane %v1911_v26, 9 }
  0x35   : > { %1039 = vmatpush.bf16.msra.mxu3 %v1536_v57  ;;  %v550_v53 = vpack.c.b16 %v546_v45, %v545_v39  ;;  %v720_v48 = vrot.slane %v719_v54, 4  ;;  %v828_v57 = vpack.c.b16 %v541_v7, %v540_v33  ;;  %v982_v33 = vshrl.u32 %v190_v29, 16 }
  0x36   : > { %1119 = vmatpush.bf16.msra.mxu0 %v1540_v59  ;;  %v638_v23 = vpack.c.b16 %v634_v50, %v417_v41  ;;  %v816_v52 = vrot.slane %v189_v44, 5  ;;  %v915_v62 = vunpack.c.l.b16 %v190_v29  ;;  %v1475_v16 = vrot.slane %v190_v29, 9 }
  0x37   : > { %v984_v7 = vrot.slane %v982_v33, 4 }
  0x38   : > { %951 = vmatpush.bf16.msra.mxu2 %v1531_v15  ;;  %875 = vmatpush.bf16.msra.mxu1 %v1527_v24  ;;  %v817_v59 = vsel %vm1787_vm6, %v1390_v51, %v816_v52  ;;  %v916_v11 = vpack.c.b16 %v915_v62, %v634_v50 }
  0x39   : > { %1040 = vmatpush.bf16.msra.mxu3 %v1535_v21  ;;  %v827_v61 = vunpack.c.l.b16 %v817_v59 }
  0x3a   : > { %1358 = vmatmul.msk.bf16.vlgmr.msrb.gmra.mxu3 %vm360_vm2, %v635_v49  ;;  %1120 = vmatpush.bf16.msra.mxu0 %v1539_v63  ;;  %v724_v49 = vrot.slane %v722_v46, 5 }
  0x3b   : > { %v831_v9 = vpack.c.b16 %v827_v61, %v546_v45 }
  0x3d   : > { %1386 = vmatmul.msk.bf16.vlgmr.msrb.gmra.mxu0 %vm360_vm2, %v736_v3  ;;  %v725_v3 = vsel %vm1670_vm3, %v720_v48, %v724_v49 }
  0x3e   : > { %1295 = vmatmul.msk.bf16.gmra.mxu1 %vm360_vm2, %v1858_v56  ;;  %v735_v55 = vunpack.c.l.b16 %v725_v3 }
  0x40   : > { %v739_v4 = vpack.c.b16 %v735_v55, %v1791_v8  ;;  %v830_v8 = vpack.c.b16 %v545_v39, %v544_v20 }
  0x42   : > { %1331 = vmatmul.msk.bf16.gmra.mxu2 %vm360_vm2, %v1874_v60 }
  0x4a   : > { %1359 = vmatmul.msk.bf16.gmra.mxu3 %vm360_vm2, %v636_v10 }
  0x4d   : > { %1387 = vmatmul.msk.bf16.gmra.mxu0 %vm360_vm2, %v737_v14 }
  0x4e   : > { %1296 = vmatmul.msk.bf16.gmra.mxu1 %vm360_vm2, %v420_v18 }
  0x52   : > { %1332 = vmatmul.msk.bf16.gmra.mxu2 %vm360_vm2, %v549_v17 }
  0x5a   : > { %1360 = vmatmul.msk.bf16.gmra.mxu3 %vm360_vm2, %v637_v37 }
  0x5d   : > { %1388 = vmatmul.msk.bf16.gmra.mxu0 %vm360_vm2, %v738_v32 }
  0x5e   : > { %1297 = vmatmul.msk.bf16.gmra.mxu1 %vm360_vm2, %v421_v47 }
  0x62   : > { %1333 = vmatmul.msk.bf16.gmra.mxu2 %vm360_vm2, %v550_v53 }
  0x6a   : > { %1361 = vmatmul.msk.bf16.gmra.mxu3 %vm360_vm2, %v638_v23 }
  0x6d   : > { %1389 = vmatmul.msk.bf16.gmra.mxu0 %vm360_vm2, %v739_v4 }
  0x6e   : > { %1415 = vmatmul.msk.bf16.vlgmr.msra.gmra.mxu1 %vm360_vm2, %v828_v57 }
  0x72   : > { %1443 = vmatmul.msk.bf16.vlgmr.msra.gmra.mxu2 %vm360_vm2, %v1858_v56  ;;  %v191_v56 = vld [vmem:[%s1616_s23 + $0x4c] sm:$0x1] }
  0x73   : > { %v1073_v14 = vrot.slane %v191_v56, 5 }
  0x7a   : > { %1471 = vmatmul.msk.bf16.vlgmr.msra.gmra.mxu3 %vm360_vm2, %v1723_v13  ;;  %v985_v13 = vshll.u32 %v190_v29, 16 }
  0x7c   : > { %v987_v5 = vrot.slane %v985_v13, 5 }
  0x7d   : > { %1500 = vmatmul.msk.bf16.vlgmr.msra.gmra.mxu0 %vm360_vm2, %v1874_v60  ;;  %v991_v60 = vshll.u32 %v191_v56, 16 }
  0x7e   : > { %1416 = vmatmul.msk.bf16.gmra.mxu1 %vm360_vm2, %v829_v58 }
  0x7f   : > { %v993_v1 = vrot.slane %v991_v60, 5 }
  0x82   : > { %1444 = vmatmul.msk.bf16.gmra.mxu2 %vm360_vm2, %v420_v18 }
  0x8a   : > { %1472 = vmatmul.msk.bf16.gmra.mxu3 %vm360_vm2, %v1753_v36  ;;  %v988_v36 = vor.u32 %v987_v5, %v984_v7 }
  0x8c   : > { %v989_v0 = vrot.slane %v988_v36, 4 }
  0x8d   : > { %1501 = vmatmul.msk.bf16.gmra.mxu0 %vm360_vm2, %v549_v17 }
  0x8e   : > { %1417 = vmatmul.msk.bf16.gmra.mxu1 %vm360_vm2, %v830_v8  ;;  %v994_v12 = vsel %vm1670_vm3, %v989_v0, %v993_v1 }
  0x8f   : > { %v1004_v15 = vunpack.c.l.b16 %v994_v12 }
  0x91   : > { %v1005_v20 = vpack.c.b16 %v1004_v15, %v735_v55 }
  0x92   : > { %1445 = vmatmul.msk.bf16.gmra.mxu2 %vm360_vm2, %v421_v47 }
  0x9a   : > { %1473 = vmatmul.msk.bf16.gmra.mxu3 %vm360_vm2, %v1801_v22  ;;  %v1074_v22 = vsel %vm1787_vm6, %v1475_v16, %v1073_v14  ;;  %v2025_v14 = vld [vmem:[%s2084_s2] ss:$0 sm:$0xff] }
  0x9b   : > { %v1966_v10 = vpop.f32.mrf.mxu1  ;;  %v1084_v18 = vunpack.c.l.b16 %v1074_v22 }
  0x9d   : > { %1502 = vmatmul.msk.bf16.gmra.mxu0 %vm360_vm2, %v550_v53  ;;  %v1085_v34 = vpack.c.b16 %v1084_v18, %v827_v61 }
  0x9e   : > { %1418 = vmatmul.msk.bf16.gmra.mxu1 %vm360_vm2, %v831_v9 }
  0xa2   : > { %1446 = vmatmul.msk.bf16.gmra.mxu2 %vm360_vm2, %v916_v11 }
  0xa3   : > { %v1975_v25 = vpop.f32.mrf.mxu1 }
  0xa5   : > { %v1977_v21 = vpop.f32.mrf.mxu2 }
  0xaa   : > { %1474 = vmatmul.msk.bf16.gmra.mxu3 %vm360_vm2, %v1005_v20  ;;  %v382_v24 = vpop.f32.mrf.mxu0 }
  0xab   : > { %v467_v17 = vpop.f32.mrf.mxu1 }
  0xac   : > { %v468_v57 = vadd.f32 %v467_v17, %v382_v24 }
  0xad   : > { %v1980_v63 = vpop.f32.mrf.mxu3  ;;  %1503 = vmatmul.msk.bf16.gmra.mxu0 %vm360_vm2, %v1085_v34  ;;  %v1983_v26 = vpop.f32.mrf.mxu2 }
  0xb2   : > { %v384_v6 = vpop.f32.mrf.mxu0 }
  0xb3   : > { %v469_v27 = vpop.f32.mrf.mxu1 }
  0xb4   : > { %v470_v52 = vadd.f32 %v469_v27, %v384_v6 }
  0xb5   : > { %v1985_v2 = vpop.f32.mrf.mxu3  ;;  %v596_v28 = vpop.f32.mrf.mxu2 }
  0xb6   : > { %v616_v29 = vadd.f32 %v596_v28, %v468_v57 }
  0xba   : > { %v785_v30 = vpop.f32.mrf.mxu0 }
  0xbb   : > { %v472_v31 = vpop.f32.mrf.mxu1 }
  0xbc   : > { %v473_v1 = vadd.f32 %v472_v31, %v1966_v10 }
  0xbd   : > { %v684_v19 = vpop.f32.mrf.mxu3  ;;  %v598_v35 = vpop.f32.mrf.mxu2 }
  0xbe   : > { %v704_v13 = vadd.f32 %v684_v19, %v616_v29  ;;  %v617_v56 = vadd.f32 %v598_v35, %v470_v52 }
  0xc0   : > { %v805_v59 = vadd.f32 %v785_v30, %v704_v13 }
  0xc2   : > { %v787_v37 = vpop.f32.mrf.mxu0 }
  0xc3   : > { %v474_v40 = vpop.f32.mrf.mxu1 }
  0xc4   : > { %v475_v10 = vadd.f32 %v474_v40, %v1975_v25 }
  0xc5   : > { %v686_v38 = vpop.f32.mrf.mxu3  ;;  %v601_v41 = vpop.f32.mrf.mxu2 }
  0xc6   : > { %v705_v61 = vadd.f32 %v686_v38, %v617_v56  ;;  %v618_v12 = vadd.f32 %v601_v41, %v473_v1 }
  0xc8   : > { %v806_v15 = vadd.f32 %v787_v37, %v705_v61 }
  0xca   : > { %v790_v42 = vpop.f32.mrf.mxu0 }
  0xcb   : > { %v1987_v44 = vpop.f32.mrf.mxu1 }
  0xcc   : > { %v478_v29 = vadd.f32 %v1987_v44, %v1977_v21 }
  0xcd   : > { %v689_v43 = vpop.f32.mrf.mxu3  ;;  %v603_v32 = vpop.f32.mrf.mxu2 }
  0xce   : > { %v706_v34 = vadd.f32 %v689_v43, %v618_v12  ;;  %v619_v19 = vadd.f32 %v603_v32, %v475_v10 }
  0xd0   : > { %v807_v37 = vadd.f32 %v790_v42, %v706_v34 }
  0xd2   : > { %v1989_v39 = vpop.f32.mrf.mxu0 }
  0xd3   : > { %v1991_v54 = vpop.f32.mrf.mxu1 }
  0xd5   : > { %v691_v45 = vpop.f32.mrf.mxu3  ;;  %v1993_v46 = vpop.f32.mrf.mxu2 }
  0xd6   : > { %v707_v40 = vadd.f32 %v691_v45, %v619_v19  ;;  %v620_v32 = vadd.f32 %v1993_v46, %v478_v29  ;;  %v480_v46 = vadd.f32 %v1991_v54, %v1983_v26 }
  0xd8   : > { %v808_v56 = vadd.f32 %v1989_v39, %v707_v40 }
  0xda   : > { %v1995_v47 = vpop.f32.mrf.mxu0 }
  0xdb   : > { %v1999_v48 = vpop.f32.mrf.mxu1 }
  0xdd   : > { %v1997_v53 = vpop.f32.mrf.mxu3  ;;  %v2001_v49 = vpop.f32.mrf.mxu2 }
  0xde   : > { %v708_v61 = vadd.f32 %v1997_v53, %v620_v32  ;;  %v621_v39 = vadd.f32 %v2001_v49, %v480_v46  ;;  %v483_v49 = vadd.f32 %v1999_v48, %v1980_v63 }
  0xe0   : > { %v809_v12 = vadd.f32 %v1995_v47, %v708_v61 }
  0xe2   : > { %v2003_v50 = vpop.f32.mrf.mxu0 }
  0xe3   : > { %v2007_v23 = vpop.f32.mrf.mxu1 }
  0xe5   : > { %v2005_v3 = vpop.f32.mrf.mxu3  ;;  %v2009_v55 = vpop.f32.mrf.mxu2 }
  0xe6   : > { %v622_v47 = vadd.f32 %v2009_v55, %v483_v49  ;;  %v485_v55 = vadd.f32 %v2007_v23, %v1985_v2 }
  0xea   : > { %v2011_v4 = vpop.f32.mrf.mxu0 }
  0xeb   : > { %v877_v8 = vpop.f32.mrf.mxu1 }
  0xec   : > { %v897_v60 = vadd.f32 %v877_v8, %v805_v59 }
  0xed   : > { %v2013_v58 = vpop.f32.mrf.mxu3  ;;  %v2015_v33 = vpop.f32.mrf.mxu2 }
  0xf2   : > { %v2017_v51 = vpop.f32.mrf.mxu0 }
  0xf3   : > { %v879_v5 = vpop.f32.mrf.mxu1 }
  0xf4   : > { %v898_v18 = vadd.f32 %v879_v5, %v806_v15 }
  0xf5   : > { %v2019_v7 = vpop.f32.mrf.mxu3  ;;  %v953_v36 = vpop.f32.mrf.mxu2 }
  0xf6   : > { %v973_v62 = vadd.f32 %v953_v36, %v897_v60 }
  0xfa   : > { %v1122_v0 = vpop.f32.mrf.mxu0 }
  0xfb   : > { %v882_v11 = vpop.f32.mrf.mxu1 }
  0xfc   : > { %v899_v25 = vadd.f32 %v882_v11, %v807_v37 }
  0xfd   : > { %v1042_v9 = vpop.f32.mrf.mxu3  ;;  %v955_v22 = vpop.f32.mrf.mxu2 }
  0xfe   : > { %v1062_v16 = vadd.f32 %v1042_v9, %v973_v62  ;;  %v974_v17 = vadd.f32 %v955_v22, %v898_v18 }
 0x100   : > { %v1142_v20 = vadd.f32 %v1122_v0, %v1062_v16 }
 0x102   : > { %v1154_v24 = vadd.f32 %v2025_v14, %v1142_v20  ;;  %v1124_v6 = vpop.f32.mrf.mxu0  ;;  %v709_v20 = vadd.f32 %v2005_v3, %v621_v39 }
 0x103   : > { %v884_v30 = vpop.f32.mrf.mxu1 }
 0x104   : > { %v1162_v27 = vmax.f32 %v1154_v24, 0.0  ;;  %v900_v60 = vadd.f32 %v884_v30, %v808_v56  ;;  %v810_v10 = vadd.f32 %v2003_v50, %v709_v20  ;;  %v710_v30 = vadd.f32 %v2013_v58, %v622_v47 }
 0x105   : > { %v1044_v28 = vpop.f32.mrf.mxu3  ;;  %v958_v38 = vpop.f32.mrf.mxu2  ;;  %v623_v50 = vadd.f32 %v2015_v33, %v485_v55 }
 0x106   : > { %v1170_v31 = vpack.c.bf16 %v1162_v27, %v1162_v27  ;;  %v1063_v35 = vadd.f32 %v1044_v28, %v974_v17  ;;  %v975_v57 = vadd.f32 %v958_v38, %v899_v25  ;;  %v811_v25 = vadd.f32 %v2011_v4, %v710_v30 }
 0x108   : > { %1179 = vst.msk [vmem:[%s2033_s21] sm:$0xf] %vm1178_vm7, %v1170_v31  ;;  %v1143_v41 = vadd.f32 %v1124_v6, %v1063_v35 }
 0x10a   : > { %v1155_v43 = vadd.f32 %v2025_v14, %v1143_v41  ;;  %v1127_v8 = vpop.f32.mrf.mxu0 }
 0x10b   : > { %v887_v36 = vpop.f32.mrf.mxu1 }
 0x10c   : > { %v1163_v13 = vmax.f32 %v1155_v43, 0.0  ;;  %v901_v15 = vadd.f32 %v887_v36, %v809_v12 }
 0x10d   : > { %v1047_v52 = vpop.f32.mrf.mxu3  ;;  %v960_v59 = vpop.f32.mrf.mxu2 }
 0x10e   : > { %v1171_v5 = vpack.c.bf16 %v1163_v13, %v1163_v13  ;;  %v1064_v42 = vadd.f32 %v1047_v52, %v975_v57  ;;  %v976_v21 = vadd.f32 %v960_v59, %v900_v60  ;;  %v711_v57 = vadd.f32 %v2019_v7, %v623_v50 }
 0x110   : > { %1180 = vst.msk [vmem:[%s2033_s21 + $0x4] sm:$0xf] %vm1178_vm7, %v1171_v5  ;;  %v1144_v45 = vadd.f32 %v1127_v8, %v1064_v42  ;;  %v812_v4 = vadd.f32 %v2017_v51, %v711_v57 }
 0x112   : > { %v1156_v62 = vadd.f32 %v2025_v14, %v1144_v45  ;;  %v1129_v44 = vpop.f32.mrf.mxu0 }
 0x113   : > { %v889_v22 = vpop.f32.mrf.mxu1 }
 0x114   : > { %v1164_v0 = vmax.f32 %v1156_v62, 0.0  ;;  %v902_v28 = vadd.f32 %v889_v22, %v810_v10 }
 0x115   : > { %v1049_v1 = vpop.f32.mrf.mxu3  ;;  %v963_v16 = vpop.f32.mrf.mxu2 }
 0x116   : > { %v1172_v9 = vpack.c.bf16 %v1164_v0, %v1164_v0  ;;  %v1065_v11 = vadd.f32 %v1049_v1, %v976_v21  ;;  %v977_v26 = vadd.f32 %v963_v16, %v901_v15 }
 0x118   : > { %1181 = vst.msk [vmem:[%s2033_s21 + $0x8] sm:$0xf] %vm1178_vm7, %v1172_v9  ;;  %v1145_v53 = vadd.f32 %v1129_v44, %v1065_v11 }
 0x11a   : > { %v1157_v18 = vadd.f32 %v2025_v14, %v1145_v53  ;;  %v1132_v54 = vpop.f32.mrf.mxu0 }
 0x11b   : > { %v892_v63 = vpop.f32.mrf.mxu1 }
 0x11c   : > { %v1165_v34 = vmax.f32 %v1157_v18, 0.0  ;;  %v903_v43 = vadd.f32 %v892_v63, %v811_v25 }
 0x11d   : > { %v1052_v24 = vpop.f32.mrf.mxu3  ;;  %v965_v27 = vpop.f32.mrf.mxu2 }
 0x11e   : > { %v1173_v17 = vpack.c.bf16 %v1165_v34, %v1165_v34  ;;  %v1066_v6 = vadd.f32 %v1052_v24, %v977_v26  ;;  %v978_v31 = vadd.f32 %v965_v27, %v902_v28 }
 0x120   : > { %1182 = vst.msk [vmem:[%s2033_s21 + $0xc] sm:$0xf] %vm1178_vm7, %v1173_v17  ;;  %v1146_v3 = vadd.f32 %v1132_v54, %v1066_v6 }
 0x122   : > { %v1158_v19 = vadd.f32 %v2025_v14, %v1146_v3  ;;  %v1134_v48 = vpop.f32.mrf.mxu0 }
 0x123   : > { %v894_v23 = vpop.f32.mrf.mxu1 }
 0x124   : > { %v1166_v35 = vmax.f32 %v1158_v19, 0.0  ;;  %v904_v56 = vadd.f32 %v894_v23, %v812_v4 }
 0x125   : > { %v1054_v37 = vpop.f32.mrf.mxu3  ;;  %v968_v40 = vpop.f32.mrf.mxu2 }
 0x126   : > { %v1174_v38 = vpack.c.bf16 %v1166_v35, %v1166_v35  ;;  %v1067_v41 = vadd.f32 %v1054_v37, %v978_v31  ;;  %v979_v29 = vadd.f32 %v968_v40, %v903_v43 }
 0x128   : > { %1183 = vst.msk [vmem:[%s2033_s21 + $0x10] sm:$0xf] %vm1178_vm7, %v1174_v38  ;;  %v1147_v58 = vadd.f32 %v1134_v48, %v1067_v41 }
 0x12a   : > { %v1159_v8 = vadd.f32 %v2025_v14, %v1147_v58  ;;  %v1137_v13 = vpop.f32.mrf.mxu0 }
 0x12c   : > { %v1167_v2 = vmax.f32 %v1159_v8, 0.0 }
 0x12d   : > { %v1057_v33 = vpop.f32.mrf.mxu3  ;;  %v970_v5 = vpop.f32.mrf.mxu2 }
 0x12e   : > { %v1175_v52 = vpack.c.bf16 %v1167_v2, %v1167_v2  ;;  %v1068_v32 = vadd.f32 %v1057_v33, %v979_v29  ;;  %v980_v59 = vadd.f32 %v970_v5, %v904_v56 }
 0x130   : > { %1184 = vst.msk [vmem:[%s2033_s21 + $0x14] sm:$0xf] %vm1178_vm7, %v1175_v52  ;;  %v1148_v42 = vadd.f32 %v1137_v13, %v1068_v32 }
 0x132   : > { %v1160_v7 = vadd.f32 %v2025_v14, %v1148_v42  ;;  %v1139_v62 = vpop.f32.mrf.mxu0 }
 0x134   : > { %v1168_v36 = vmax.f32 %v1160_v7, 0.0 }
 0x135   : > { %v1059_v45 = vpop.f32.mrf.mxu3 }
 0x136   : > { %v1176_v60 = vpack.c.bf16 %v1168_v36, %v1168_v36  ;;  %v1069_v61 = vadd.f32 %v1059_v45, %v980_v59 }
 0x138   : > { %1185 = vst.msk [vmem:[%s2033_s21 + $0x18] sm:$0xf] %vm1178_vm7, %v1176_v60  ;;  %v1149_v21 = vadd.f32 %v1139_v62, %v1069_v61 }
 0x13a   : > { %v1161_v44 = vadd.f32 %v2025_v14, %v1149_v21 }
 0x13c   : > { %v1169_v51 = vmax.f32 %v1161_v44, 0.0 }
 0x13e   : > { %v1177_v46 = vpack.c.bf16 %v1169_v51, %v1169_v51 }
 0x140   : > { %1186 = vst.msk [vmem:[%s2033_s21 + $0x1c] sm:$0xf] %vm1178_vm7, %v1177_v46 }
 0x141 PF: > { %s13_s12 = sadd.s32 1, %s1571_s12  }
 0x142   : > { %p10_p4 = scmp.ge.s32.totalorder %s13_s12, 4  }
 0x144   :  { %12 = sbr.rel (!%p10_p4) target bundleno = 1 (0x1), region = 70 }

// kernel: asp_ocnet_forward.22
= control target key start
LH: loop header
LB: loop body
LE: loop exit
PB: predicated region body
PF: predicated region fallthrough
CT: control target
= control target key end

     0   :  { %s356_s12 = smov 0   ;;  %s382_s0 = inlined_call_operand.vmem [shape: bf16[2,4,4,32], index: 0, kind: input, shape index: {}]   ;;  %s383_s1 = inlined_call_operand.vmem [shape: bf16[1,32,32], index: 1, kind: input, shape index: {}]   ;;  %s384_s2 = inlined_call_operand.vmem [shape: f32[1,32], index: 2, kind: input, shape index: {}]   ;;  %s385_s3 = inlined_call_operand.vmem [shape: bf16[2,4,4,32], index: 3, kind: output, shape index: {}]  }
   0x1 LB: > { %s295_s13 = sadd.s32 4294967295, %s334_s12   ;;  %p299_p0 = scmp.ge.s32.totalorder %s334_s12, 1  ;;  %s334_s12 = sphi %s356_s12, %s13_s12  }
   0x2   : > { %p137_p1 = scmp.lt.s32.totalorder %s334_s12, 3 }
   0x4   : > { %p138_p2 = pnand %p299_p0, %p137_p1 }
   0x5   : > { %p161_p3 = scmp.lt.s32.totalorder (!%p138_p2), %s295_s13, 1 }
   0x6   : > { %141 = sbr.rel (%p138_p2) target bundleno = 167 (0xa7), region = 32 }
   0xb   : > { %v318_v0 = vld [vmem:[%s383_s1 + $0x8] sm:$0xff]  ;;  %v317_v1 = vld [vmem:[%s383_s1] sm:$0xff]  ;;  %s387_s13 = smov (!%p161_p3, %s295_s13), 1  ;;  %vm208_vm0 = vcmask 261120   ;;  %vm235_vm1 = vcmask 254976  }
   0xc   : > { %217 = vmatpush.bf16.msra.mxu0 %v318_v0  ;;  %s315_s18 = sshll.u32 %s387_s13, 3  ;;  %v327_v7 = vld [vmem:[%s384_s2] ss:$0 sm:$0xff] }
   0xd   : > { %s165_s21 = scalar_lea.vmem %s382_s0, %s315_s18  ;;  %s170_s26 = scalar_lea.vmem %s385_s3, %s315_s18 }
   0xe   : > { %v172_v2 = vld [vmem:[%s165_s21] sm:$0x3]  ;;  %v173_v3 = vld [vmem:[%s165_s21 + $0x2] sm:$0x3]  ;;  %v174_v4 = vld [vmem:[%s165_s21 + $0x4] sm:$0x3] }
   0xf   : > { %v175_v5 = vld [vmem:[%s165_s21 + $0x6] sm:$0x3]  ;;  %185 = vst [vmem:[#allocation1] ss:$4 sm:$0xff] %v172_v2 }
  0x10   : > { %218 = vmatpush.bf16.msra.mxu0 %v317_v1  ;;  %188 = vst [vmem:[#allocation1 + $0x1] ss:$4 sm:$0xff] %v173_v3 }
  0x11   : > { %191 = vst [vmem:[#allocation1 + $0x2] ss:$4 sm:$0xff] %v174_v4 }
  0x12   : > { %194 = vst [vmem:[#allocation1 + $0x3] ss:$4 sm:$0xff] %v175_v5 }
  0x19   : > { %v195_v6 = vld.sshfl [vmem:[#allocation1] sm:$0xff pattern:$0x73625140] }
  0x1a   : > { %312 = vmatmul.msk.bf16.vlgmr.msra.gmra.mxu0 %vm208_vm0, %v195_v6 }
  0x97   : > { %v220_v8 = vpop.f32.mrf.mxu0 }
  0x98   : > { %v221_v9 = vadd.f32 %v327_v7, %v220_v8 }
  0x9a   : > { %v227_v10 = vrot.slane %v221_v9, 4  ;;  %v231_v11 = vpack.c.bf16 %v221_v9, %v221_v9 }
  0x9c   : > { %v232_v12 = vpack.c.bf16 %v227_v10, %v227_v10  ;;  %236 = vst.msk [vmem:[%s170_s26] sm:$0x3] %vm235_vm1, %v231_v11 }
  0x9e   : > { %237 = vst.msk [vmem:[%s170_s26 + $0x2] sm:$0x3] %vm235_vm1, %v232_v12 }
  0x9f   : > { %v222_v13 = vpop.f32.mrf.mxu0 }
  0xa0   : > { %v223_v14 = vadd.f32 %v327_v7, %v222_v13 }
  0xa2   : > { %v228_v15 = vrot.slane %v223_v14, 4  ;;  %v233_v16 = vpack.c.bf16 %v223_v14, %v223_v14 }
  0xa4   : > { %v234_v17 = vpack.c.bf16 %v228_v15, %v228_v15  ;;  %238 = vst.msk [vmem:[%s170_s26 + $0x4] sm:$0x3] %vm235_vm1, %v233_v16 }
  0xa6   : > { %239 = vst.msk [vmem:[%s170_s26 + $0x6] sm:$0x3] %vm235_vm1, %v234_v17 }
  0xa7 PF: > { %s13_s12 = sadd.s32 1, %s334_s12  }
  0xa8   : > { %p10_p4 = scmp.ge.s32.totalorder %s13_s12, 4  }
  0xaa   :  { %12 = sbr.rel (!%p10_p4) target bundleno = 1 (0x1), region = 65 }

// kernel: asp_ocnet_forward.23
= control target key start
LH: loop header
LB: loop body
LE: loop exit
PB: predicated region body
PF: predicated region fallthrough
CT: control target
= control target key end

     0   :  { %vm27_vm0 = vcmask 130048   ;;  %vm201_vm1 = vcmask 261120   ;;  %vm231_vm2 = vcmask 257024   ;;  %s367_s0 = inlined_call_operand.vmem [shape: bf16[2,16,16], index: 0, kind: input, shape index: {}]   ;;  %s368_s1 = inlined_call_operand.vmem [shape: bf16[2,16,32], index: 1, kind: input, shape index: {}]   ;;  %s369_s2 = inlined_call_operand.vmem [shape: bf16[32,32], index: 2, kind: input, shape index: {}]   ;;  %s370_s3 = inlined_call_operand.vmem [shape: f32[1,32], index: 3, kind: input, shape index: {}]   ;;  %s371_s4 = inlined_call_operand.vmem [shape: bf16[2,16,32], index: 4, kind: output, shape index: {}]  }
   0x1   :  { %v270_v0 = vld [vmem:[%s367_s0] sm:$0xff]  ;;  %v271_v1 = vld [vmem:[%s367_s0 + $0x8] sm:$0xff] }
   0x2   :  { %v29_v2 = vsel %vm27_vm0, %v270_v0, 0  ;;  %v51_v3 = vsel %vm27_vm0, %v271_v1, 0  ;;  %v272_v36 = vld [vmem:[%s368_s1] sm:$0xff]  ;;  %v273_v37 = vld [vmem:[%s368_s1 + $0x8] sm:$0xff] }
   0x3   :  { %38 = vmatpush.bf16.xpose.msra.mxu0 %v29_v2  ;;  %60 = vmatpush.bf16.xpose.msra.mxu1 %v51_v3  ;;  %v275_v38 = vld [vmem:[%s369_s2 + $0x8] sm:$0xff]  ;;  %v274_v61 = vld [vmem:[%s369_s2] sm:$0xff] }
   0x4   :  { %144 = vmatpush.bf16.msra.mxu2 %v272_v36  ;;  %172 = vmatpush.bf16.msra.mxu3 %v273_v37 }
   0x8   :  { %214 = vmatpush.bf16.msrb.mxu2 %v275_v38  ;;  %276 = vmatpush.bf16.msrb.mxu3 %v275_v38 }
   0xa   :  { %244 = vmatmul.msk.bf16.vlgmr.msra.gmra.mxu0 %vm27_vm0, %v270_v0  ;;  %249 = vmatmul.msk.bf16.vlgmr.msra.gmra.mxu1 %vm27_vm0, %v271_v1 }
   0xc   :  { %215 = vmatpush.bf16.msrb.mxu2 %v274_v61  ;;  %277 = vmatpush.bf16.msrb.mxu3 %v274_v61 }
  0x87   :  { %v40_v4 = vpop.f32.mrf.mxu0  ;;  %v62_v5 = vpop.f32.mrf.mxu1 }
  0x88   :  { %v67_v6 = vmul.f32 0.25, %v40_v4  ;;  %v69_v7 = vmul.f32 0.25, %v62_v5  ;;  %v278_v4 = vld [vmem:[%s370_s3] ss:$0 sm:$0xff] }
  0x8a   :  { %v77_v8 = vsel %vm27_vm0, %v69_v7, -inf  ;;  %v71_v9 = vsel %vm27_vm0, %v67_v6, -inf }
  0x8b   :  { %78 = vmax.xlane.f32.xlu1 %v77_v8  ;;  %72 = vmax.xlane.f32.xlu0 %v71_v9 }
  0x8f   :  { %v42_v10 = vpop.f32.mrf.mxu0  ;;  %v64_v11 = vpop.f32.mrf.mxu1 }
  0x90   :  { %v68_v12 = vmul.f32 0.25, %v42_v10  ;;  %v70_v13 = vmul.f32 0.25, %v64_v11 }
  0x92   :  { %v80_v14 = vsel %vm27_vm0, %v70_v13, -inf  ;;  %v74_v15 = vsel %vm27_vm0, %v68_v12, -inf }
  0x93   :  { %81 = vmax.xlane.f32.xlu1 %v80_v14  ;;  %75 = vmax.xlane.f32.xlu0 %v74_v15 }
  0xfe   :  { %v79_v16 = vpop.xlane.xlu1 %78  ;;  %v73_v17 = vpop.xlane.xlu0 %72 }
  0xff   :  { %v85_v18 = vsub.f32 %v69_v7, %v79_v16  ;;  %v83_v19 = vsub.f32 %v67_v6, %v73_v17 }
 0x101   :  { %v91_v20 = vmul.f32 1.442695, %v85_v18  ;;  %v87_v21 = vmul.f32 1.442695, %v83_v19 }
 0x103   :  { %279 = vpow2.f32 %v91_v20 }
 0x104   :  { %281 = vpow2.f32 %v87_v21 }
 0x106   :  { %v82_v22 = vpop.xlane.xlu1 %81  ;;  %v76_v23 = vpop.xlane.xlu0 %75 }
 0x107   :  { %v86_v24 = vsub.f32 %v70_v13, %v82_v22  ;;  %v84_v25 = vsub.f32 %v68_v12, %v76_v23 }
 0x109   :  { %v280_v26 = vpop.eup %279  ;;  %v93_v27 = vmul.f32 1.442695, %v86_v24  ;;  %v89_v28 = vmul.f32 1.442695, %v84_v25 }
 0x10a   :  { %v282_v29 = vpop.eup %281  ;;  %v101_v30 = vsel %vm27_vm0, %v280_v26, 0.0 }
 0x10b   :  { %283 = vpow2.f32 %v93_v27  ;;  %v95_v31 = vsel %vm27_vm0, %v282_v29, 0.0  ;;  %102 = vadd.xlane.f32.xlu0 %v101_v30 }
 0x10c   :  { %285 = vpow2.f32 %v89_v28  ;;  %96 = vadd.xlane.f32.xlu2 %v95_v31 }
 0x111   :  { %v284_v32 = vpop.eup %283 }
 0x112   :  { %v286_v33 = vpop.eup %285  ;;  %v104_v34 = vsel %vm27_vm0, %v284_v32, 0.0 }
 0x113   :  { %105 = vadd.xlane.f32.xlu1 %v104_v34  ;;  %v98_v35 = vsel %vm27_vm0, %v286_v33, 0.0 }
 0x114   :  { %99 = vadd.xlane.f32.xlu2 %v98_v35 }
 0x17e   :  { %v103_v39 = vpop.xlane.xlu0 %102 }
 0x17f   :  { %v97_v40 = vpop.xlane.xlu2 %96  ;;  %287 = vrcp.f32 %v103_v39 }
 0x180   :  { %289 = vrcp.f32 %v97_v40 }
 0x185   :  { %v288_v42 = vpop.eup %287 }
 0x186   :  { %v106_v41 = vpop.xlane.xlu1 %105  ;;  %v290_v44 = vpop.eup %289  ;;  %v113_v45 = vmul.f32 %v288_v42, %v280_v26 }
 0x187   :  { %291 = vrcp.f32 %v106_v41  ;;  %v100_v43 = vpop.xlane.xlu2 %99  ;;  %v111_v46 = vmul.f32 %v290_v44, %v282_v29 }
 0x188   :  { %293 = vrcp.f32 %v100_v43  ;;  %v117_v50 = vpack.c.bf16 %v113_v45, %v113_v45 }
 0x189   :  { %v115_v52 = vpack.c.bf16 %v111_v46, %v111_v46 }
 0x18a   :  { %v153_v55 = vunpack.c.l.b16 %v117_v50 }
 0x18b   :  { %v125_v57 = vunpack.c.l.b16 %v115_v52 }
 0x18d   :  { %v292_v47 = vpop.eup %291 }
 0x18e   :  { %v294_v48 = vpop.eup %293  ;;  %v114_v49 = vmul.f32 %v292_v47, %v284_v32 }
 0x18f   :  { %v112_v51 = vmul.f32 %v294_v48, %v286_v33 }
 0x190   :  { %v118_v53 = vpack.c.bf16 %v114_v49, %v114_v49 }
 0x191   :  { %v116_v54 = vpack.c.bf16 %v112_v51, %v112_v51 }
 0x192   :  { %v154_v56 = vunpack.c.l.b16 %v118_v53 }
 0x193   :  { %v126_v58 = vunpack.c.l.b16 %v116_v54 }
 0x194   :  { %v155_v59 = vpack.c.b16 %v154_v56, %v153_v55 }
 0x195   :  { %v127_v60 = vpack.c.b16 %v126_v58, %v125_v57 }
 0x196   :  { %259 = vmatmul.msk.bf16.vlgmr.msra.gmra.mxu3 %vm27_vm0, %v155_v59 }
 0x197   :  { %254 = vmatmul.msk.bf16.vlgmr.msra.gmra.mxu2 %vm27_vm0, %v127_v60 }
 0x219   :  { %v174_v62 = vpop.f32.mrf.mxu3 }
 0x21a   :  { %v146_v63 = vpop.f32.mrf.mxu2 }
 0x221   :  { %v176_v0 = vpop.f32.mrf.mxu3 }
 0x222   :  { %v148_v1 = vpop.f32.mrf.mxu2  ;;  %v180_v2 = vpack.c.bf16 %v176_v0, %v174_v62 }
 0x223   :  { %v179_v3 = vpack.c.bf16 %v148_v1, %v146_v63 }
 0x224   :  { %269 = vmatmul.msk.bf16.vlgmr.msrb.gmra.mxu3 %vm201_vm1, %v180_v2 }
 0x225   :  { %268 = vmatmul.msk.bf16.vlgmr.msrb.gmra.mxu2 %vm201_vm1, %v179_v3 }
 0x2a7   :  { %v222_v5 = vpop.f32.mrf.mxu3 }
 0x2a8   :  { %v217_v6 = vpop.f32.mrf.mxu2  ;;  %v223_v7 = vadd.f32 %v278_v4, %v222_v5 }
 0x2a9   :  { %v218_v8 = vadd.f32 %v278_v4, %v217_v6 }
 0x2aa   :  { %v229_v9 = vpack.c.bf16 %v223_v7, %v223_v7 }
 0x2ab   :  { %v227_v10 = vpack.c.bf16 %v218_v8, %v218_v8 }
 0x2ac   :  { %234 = vst.msk [vmem:[%s371_s4 + $0x8] sm:$0xf] %vm231_vm2, %v229_v9 }
 0x2ad   :  { %232 = vst.msk [vmem:[%s371_s4] sm:$0xf] %vm231_vm2, %v227_v10 }
 0x2af   :  { %v224_v11 = vpop.f32.mrf.mxu3 }
 0x2b0   :  { %v219_v12 = vpop.f32.mrf.mxu2  ;;  %v225_v13 = vadd.f32 %v278_v4, %v224_v11 }
 0x2b1   :  { %v220_v14 = vadd.f32 %v278_v4, %v219_v12 }
 0x2b2   :  { %v230_v15 = vpack.c.bf16 %v225_v13, %v225_v13 }
 0x2b3   :  { %v228_v16 = vpack.c.bf16 %v220_v14, %v220_v14 }
 0x2b4   :  { %235 = vst.msk [vmem:[%s371_s4 + $0xc] sm:$0xf] %vm231_vm2, %v230_v15 }
 0x2b5   :  { %233 = vst.msk [vmem:[%s371_s4 + $0x4] sm:$0xf] %vm231_vm2, %v228_v16 }

// kernel: asp_ocnet_forward.24
= control target key start
LH: loop header
LB: loop body
LE: loop exit
PB: predicated region body
PF: predicated region fallthrough
CT: control target
= control target key end

     0   :  { %vm48_vm0 = vcmask 130048   ;;  %vm98_vm1 = vcmask 519168   ;;  %s205_s1 = inlined_call_operand.vmem [shape: bf16[16,64], index: 1, kind: input, shape index: {}]   ;;  %s206_s0 = inlined_call_operand.vmem [shape: bf16[64,16], index: 0, kind: input, shape index: {}]   ;;  %s207_s2 = inlined_call_operand.vmem [shape: bf16[64,64], index: 2, kind: output, shape index: {}]  }
   0x1   :  { %v139_v0 = vld [vmem:[%s205_s1] sm:$0xff]  ;;  %v136_v2 = vld [vmem:[%s206_s0 + $0x8] sm:$0xff]  ;;  %v137_v3 = vld [vmem:[%s206_s0 + $0x10] sm:$0xff] }
   0x2   :  { %v135_v1 = vld [vmem:[%s206_s0] sm:$0xff]  ;;  %68 = vmatpush.bf16.msra.mxu0 %v139_v0  ;;  %140 = vmatpush.bf16.msra.mxu1 %v139_v0  ;;  %v138_v4 = vld [vmem:[%s206_s0 + $0x18] sm:$0xff] }
   0x3   :  { %141 = vmatpush.bf16.msra.mxu2 %v139_v0  ;;  %142 = vmatpush.bf16.msra.mxu3 %v139_v0 }
   0x5   :  { %131 = vmatmul.msk.bf16.vlgmr.msra.gmra.mxu0 %vm48_vm0, %v135_v1  ;;  %132 = vmatmul.msk.bf16.vlgmr.msra.gmra.mxu1 %vm48_vm0, %v136_v2 }
   0x6   :  { %133 = vmatmul.msk.bf16.vlgmr.msra.gmra.mxu2 %vm48_vm0, %v137_v3  ;;  %134 = vmatmul.msk.bf16.vlgmr.msra.gmra.mxu3 %vm48_vm0, %v138_v4 }
  0x82   :  { %v70_v5 = vpop.f32.mrf.mxu0  ;;  %v75_v6 = vpop.f32.mrf.mxu1 }
  0x83   :  { %v90_v7 = vpack.c.bf16 %v70_v5, %v70_v5  ;;  %v92_v8 = vpack.c.bf16 %v75_v6, %v75_v6 }
  0x85   :  { %99 = vst.msk [vmem:[%s207_s2] sm:$0xf] %vm98_vm1, %v90_v7 }
  0x86   :  { %101 = vst.msk [vmem:[%s207_s2 + $0x8] sm:$0xf] %vm98_vm1, %v92_v8 }
  0x89   :  { %v80_v9 = vpop.f32.mrf.mxu2  ;;  %v85_v10 = vpop.f32.mrf.mxu3 }
  0x8a   :  { %v94_v11 = vpack.c.bf16 %v80_v9, %v80_v9  ;;  %v96_v12 = vpack.c.bf16 %v85_v10, %v85_v10  ;;  %v72_v13 = vpop.f32.mrf.mxu0  ;;  %v77_v14 = vpop.f32.mrf.mxu1 }
  0x8b   :  { %v91_v15 = vpack.c.bf16 %v72_v13, %v72_v13  ;;  %v93_v16 = vpack.c.bf16 %v77_v14, %v77_v14 }
  0x8c   :  { %103 = vst.msk [vmem:[%s207_s2 + $0x10] sm:$0xf] %vm98_vm1, %v94_v11 }
  0x8d   :  { %105 = vst.msk [vmem:[%s207_s2 + $0x18] sm:$0xf] %vm98_vm1, %v96_v12 }
  0x8e   :  { %100 = vst.msk [vmem:[%s207_s2 + $0x4] sm:$0xf] %vm98_vm1, %v91_v15 }
  0x8f   :  { %102 = vst.msk [vmem:[%s207_s2 + $0xc] sm:$0xf] %vm98_vm1, %v93_v16 }
  0x91   :  { %v82_v17 = vpop.f32.mrf.mxu2  ;;  %v87_v18 = vpop.f32.mrf.mxu3 }
  0x92   :  { %v95_v19 = vpack.c.bf16 %v82_v17, %v82_v17  ;;  %v97_v20 = vpack.c.bf16 %v87_v18, %v87_v18 }
  0x94   :  { %104 = vst.msk [vmem:[%s207_s2 + $0x14] sm:$0xf] %vm98_vm1, %v95_v19 }
  0x95   :  { %106 = vst.msk [vmem:[%s207_s2 + $0x1c] sm:$0xf] %vm98_vm1, %v97_v20 }

// kernel: asp_ocnet_forward.25
= control target key start
LH: loop header
LB: loop body
LE: loop exit
PB: predicated region body
PF: predicated region fallthrough
CT: control target
= control target key end

     0   :  { %s432_s12 = smov 0   ;;  %s476_s0 = inlined_call_operand.vmem [shape: bf16[2,8,8,32], index: 0, kind: input, shape index: {}]   ;;  %s477_s1 = inlined_call_operand.vmem [shape: bf16[1,32,32], index: 1, kind: input, shape index: {}]   ;;  %s478_s2 = inlined_call_operand.vmem [shape: f32[1,32], index: 2, kind: input, shape index: {}]   ;;  %s479_s3 = inlined_call_operand.vmem [shape: bf16[2,8,8,32], index: 3, kind: output, shape index: {}]  }
   0x1 LB: > { %s342_s13 = sadd.s32 4294967295, %s410_s12   ;;  %p346_p0 = scmp.ge.s32.totalorder %s410_s12, 1  ;;  %s410_s12 = sphi %s432_s12, %s13_s12  }
   0x2   : > { %p137_p1 = scmp.lt.s32.totalorder %s410_s12, 3 }
   0x4   : > { %p138_p2 = pnand %p346_p0, %p137_p1 }
   0x5   : > { %p161_p3 = scmp.lt.s32.totalorder (!%p138_p2), %s342_s13, 1 }
   0x6   : > { %141 = sbr.rel (%p138_p2) target bundleno = 168 (0xa8), region = 32 }
   0xb   : > { %v388_v0 = vld [vmem:[%s477_s1 + $0x8] sm:$0xff]  ;;  %v387_v1 = vld [vmem:[%s477_s1] sm:$0xff]  ;;  %s481_s13 = smov (!%p161_p3, %s342_s13), 1  ;;  %vm220_vm0 = vcmask 261120   ;;  %vm278_vm1 = vcmask 257024  }
   0xc   : > { %239 = vmatpush.bf16.msra.mxu0 %v388_v0  ;;  %389 = vmatpush.bf16.msra.mxu1 %v388_v0  ;;  %s381_s18 = sshll.u32 %s481_s13, 5  ;;  %v403_v6 = vld [vmem:[%s478_s2] ss:$0 sm:$0xff] }
   0xd   : > { %390 = vmatpush.bf16.msra.mxu2 %v388_v0  ;;  %391 = vmatpush.bf16.msra.mxu3 %v388_v0  ;;  %s165_s21 = scalar_lea.vmem %s476_s0, %s381_s18  ;;  %s455_s26 = scalar_lea.vmem %s479_s3, %s381_s18 }
   0xe   : > { %v383_v2 = vld [vmem:[%s165_s21] sm:$0xff]  ;;  %v384_v3 = vld [vmem:[%s165_s21 + $0x8] sm:$0xff]  ;;  %v385_v4 = vld [vmem:[%s165_s21 + $0x10] sm:$0xff] }
   0xf   : > { %v386_v5 = vld [vmem:[%s165_s21 + $0x18] sm:$0xff] }
  0x10   : > { %240 = vmatpush.bf16.msra.mxu0 %v387_v1  ;;  %392 = vmatpush.bf16.msra.mxu1 %v387_v1 }
  0x11   : > { %393 = vmatpush.bf16.msra.mxu2 %v387_v1  ;;  %394 = vmatpush.bf16.msra.mxu3 %v387_v1 }
  0x13   : > { %375 = vmatmul.msk.bf16.vlgmr.msra.gmra.mxu0 %vm220_vm0, %v383_v2  ;;  %376 = vmatmul.msk.bf16.vlgmr.msra.gmra.mxu1 %vm220_vm0, %v384_v3 }
  0x14   : > { %377 = vmatmul.msk.bf16.vlgmr.msra.gmra.mxu2 %vm220_vm0, %v385_v4  ;;  %378 = vmatmul.msk.bf16.vlgmr.msra.gmra.mxu3 %vm220_vm0, %v386_v5 }
  0x90   : > { %v242_v7 = vpop.f32.mrf.mxu0  ;;  %v247_v8 = vpop.f32.mrf.mxu1 }
  0x91   : > { %v243_v9 = vadd.f32 %v403_v6, %v242_v7  ;;  %v248_v10 = vadd.f32 %v403_v6, %v247_v8 }
  0x93   : > { %v262_v11 = vmax.f32 %v243_v9, 0.0  ;;  %v264_v12 = vmax.f32 %v248_v10, 0.0 }
  0x95   : > { %v270_v13 = vpack.c.bf16 %v262_v11, %v262_v11  ;;  %v272_v14 = vpack.c.bf16 %v264_v12, %v264_v12 }
  0x97   : > { %279 = vst.msk [vmem:[%s455_s26] sm:$0xf] %vm278_vm1, %v270_v13  ;;  %v252_v15 = vpop.f32.mrf.mxu2  ;;  %v257_v16 = vpop.f32.mrf.mxu3 }
  0x98   : > { %281 = vst.msk [vmem:[%s455_s26 + $0x8] sm:$0xf] %vm278_vm1, %v272_v14  ;;  %v253_v17 = vadd.f32 %v403_v6, %v252_v15  ;;  %v258_v18 = vadd.f32 %v403_v6, %v257_v16  ;;  %v244_v19 = vpop.f32.mrf.mxu0  ;;  %v249_v20 = vpop.f32.mrf.mxu1 }
  0x99   : > { %v245_v21 = vadd.f32 %v403_v6, %v244_v19  ;;  %v250_v22 = vadd.f32 %v403_v6, %v249_v20 }
  0x9a   : > { %v266_v23 = vmax.f32 %v253_v17, 0.0  ;;  %v268_v24 = vmax.f32 %v258_v18, 0.0 }
  0x9b   : > { %v263_v25 = vmax.f32 %v245_v21, 0.0  ;;  %v265_v26 = vmax.f32 %v250_v22, 0.0 }
  0x9c   : > { %v274_v27 = vpack.c.bf16 %v266_v23, %v266_v23  ;;  %v276_v28 = vpack.c.bf16 %v268_v24, %v268_v24 }
  0x9d   : > { %v271_v29 = vpack.c.bf16 %v263_v25, %v263_v25  ;;  %v273_v30 = vpack.c.bf16 %v265_v26, %v265_v26 }
  0x9e   : > { %283 = vst.msk [vmem:[%s455_s26 + $0x10] sm:$0xf] %vm278_vm1, %v274_v27 }
  0x9f   : > { %285 = vst.msk [vmem:[%s455_s26 + $0x18] sm:$0xf] %vm278_vm1, %v276_v28  ;;  %v254_v31 = vpop.f32.mrf.mxu2  ;;  %v259_v32 = vpop.f32.mrf.mxu3 }
  0xa0   : > { %280 = vst.msk [vmem:[%s455_s26 + $0x4] sm:$0xf] %vm278_vm1, %v271_v29  ;;  %v255_v33 = vadd.f32 %v403_v6, %v254_v31  ;;  %v260_v34 = vadd.f32 %v403_v6, %v259_v32 }
  0xa1   : > { %282 = vst.msk [vmem:[%s455_s26 + $0xc] sm:$0xf] %vm278_vm1, %v273_v30 }
  0xa2   : > { %v267_v35 = vmax.f32 %v255_v33, 0.0  ;;  %v269_v36 = vmax.f32 %v260_v34, 0.0 }
  0xa4   : > { %v275_v37 = vpack.c.bf16 %v267_v35, %v267_v35  ;;  %v277_v38 = vpack.c.bf16 %v269_v36, %v269_v36 }
  0xa6   : > { %284 = vst.msk [vmem:[%s455_s26 + $0x14] sm:$0xf] %vm278_vm1, %v275_v37 }
  0xa7   : > { %286 = vst.msk [vmem:[%s455_s26 + $0x1c] sm:$0xf] %vm278_vm1, %v277_v38 }
  0xa8 PF: > { %s13_s12 = sadd.s32 1, %s410_s12  }
  0xa9   : > { %p10_p4 = scmp.ge.s32.totalorder %s13_s12, 4  }
  0xab   :  { %12 = sbr.rel (!%p10_p4) target bundleno = 1 (0x1), region = 62 }

// kernel: asp_ocnet_forward.26
= control target key start
LH: loop header
LB: loop body
LE: loop exit
PB: predicated region body
PF: predicated region fallthrough
CT: control target
= control target key end

     0   :  { %s486_s12 = smov 0   ;;  %s525_s0 = inlined_call_operand.vmem [shape: bf16[2,8,8,64], index: 0, kind: input, shape index: {}]   ;;  %s526_s1 = inlined_call_operand.vmem [shape: bf16[1,64,128], index: 1, kind: input, shape index: {}]   ;;  %s527_s2 = inlined_call_operand.vmem [shape: f32[1,128], index: 2, kind: input, shape index: {}]   ;;  %s528_s3 = inlined_call_operand.vmem [shape: bf16[2,8,8,128], index: 3, kind: output, shape index: {}]  }
   0x1 LB: > { %s357_s13 = sadd.s32 4294967295, %s464_s12   ;;  %p361_p0 = scmp.ge.s32.totalorder %s464_s12, 1  ;;  %s464_s12 = sphi %s486_s12, %s13_s12  }
   0x2   : > { %p137_p1 = scmp.lt.s32.totalorder %s464_s12, 3 }
   0x4   : > { %p138_p2 = pnand %p361_p0, %p137_p1 }
   0x5   : > { %p161_p3 = scmp.lt.s32.totalorder (!%p138_p2), %s357_s13, 1 }
   0x6   : > { %141 = sbr.rel (%p138_p2) target bundleno = 176 (0xb0), region = 32 }
   0xb   : > { %v413_v0 = vld [vmem:[%s526_s1 + $0x18] sm:$0xff]  ;;  %v412_v1 = vld [vmem:[%s526_s1 + $0x10] sm:$0xff]  ;;  %s530_s13 = smov (!%p161_p3, %s357_s13), 1  ;;  %v411_v2 = vld [vmem:[%s526_s1 + $0x8] sm:$0xff]  ;;  %vm236_vm0 = vcmask 523264  }
   0xc   : > { %253 = vmatpush.bf16.msra.mxu0 %v413_v0  ;;  %437 = vmatpush.bf16.msra.mxu1 %v413_v0  ;;  %s404_s20 = sshll.u32 %s530_s13, 5  ;;  %v410_v3 = vld [vmem:[%s526_s1] sm:$0xff] }
   0xd   : > { %438 = vmatpush.bf16.msra.mxu2 %v413_v0  ;;  %439 = vmatpush.bf16.msra.mxu3 %v413_v0  ;;  %s165_s25 = scalar_lea.vmem %s525_s0, %s404_s20  ;;  %v457_v10 = vld [vmem:[%s527_s2] ss:$0 sm:$0xff]  ;;  %s170_s30 = scalar_lea.vmem %s528_s3, %s404_s20 }
   0xe   : > { %v406_v4 = vld [vmem:[%s165_s25] sm:$0xff]  ;;  %v407_v5 = vld [vmem:[%s165_s25 + $0x8] sm:$0xff]  ;;  %v408_v6 = vld [vmem:[%s165_s25 + $0x10] sm:$0xff] }
   0xf   : > { %v409_v7 = vld [vmem:[%s165_s25 + $0x18] sm:$0xff] }
  0x10   : > { %254 = vmatpush.bf16.msra.mxu0 %v412_v1  ;;  %440 = vmatpush.bf16.msra.mxu1 %v412_v1 }
  0x11   : > { %441 = vmatpush.bf16.msra.mxu2 %v412_v1  ;;  %442 = vmatpush.bf16.msra.mxu3 %v412_v1 }
  0x14   : > { %255 = vmatpush.bf16.msra.mxu0 %v411_v2  ;;  %443 = vmatpush.bf16.msra.mxu1 %v411_v2 }
  0x15   : > { %444 = vmatpush.bf16.msra.mxu2 %v411_v2  ;;  %445 = vmatpush.bf16.msra.mxu3 %v411_v2 }
  0x18   : > { %256 = vmatpush.bf16.msra.mxu0 %v410_v3  ;;  %446 = vmatpush.bf16.msra.mxu1 %v410_v3 }
  0x19   : > { %447 = vmatpush.bf16.msra.mxu2 %v410_v3  ;;  %448 = vmatpush.bf16.msra.mxu3 %v410_v3 }
  0x1b   : > { %398 = vmatmul.msk.bf16.vlgmr.msra.gmra.mxu0 %vm236_vm0, %v406_v4  ;;  %399 = vmatmul.msk.bf16.vlgmr.msra.gmra.mxu1 %vm236_vm0, %v407_v5 }
  0x1c   : > { %400 = vmatmul.msk.bf16.vlgmr.msra.gmra.mxu2 %vm236_vm0, %v408_v6  ;;  %401 = vmatmul.msk.bf16.vlgmr.msra.gmra.mxu3 %vm236_vm0, %v409_v7 }
  0x98   : > { %v258_v8 = vpop.f32.mrf.mxu0  ;;  %v263_v9 = vpop.f32.mrf.mxu1 }
  0x99   : > { %v259_v11 = vadd.f32 %v457_v10, %v258_v8  ;;  %v264_v12 = vadd.f32 %v457_v10, %v263_v9 }
  0x9b   : > { %v278_v19 = vmax.f32 %v259_v11, 0.0  ;;  %v280_v20 = vmax.f32 %v264_v12, 0.0 }
  0x9f   : > { %v268_v13 = vpop.f32.mrf.mxu2  ;;  %v273_v14 = vpop.f32.mrf.mxu3 }
  0xa0   : > { %v260_v15 = vpop.f32.mrf.mxu0  ;;  %v265_v16 = vpop.f32.mrf.mxu1  ;;  %v269_v25 = vadd.f32 %v457_v10, %v268_v13  ;;  %v274_v26 = vadd.f32 %v457_v10, %v273_v14 }
  0xa1   : > { %v261_v17 = vadd.f32 %v457_v10, %v260_v15  ;;  %v266_v18 = vadd.f32 %v457_v10, %v265_v16 }
  0xa2   : > { %v282_v31 = vmax.f32 %v269_v25, 0.0  ;;  %v284_v32 = vmax.f32 %v274_v26, 0.0 }
  0xa3   : > { %v279_v21 = vmax.f32 %v261_v17, 0.0  ;;  %v281_v22 = vmax.f32 %v266_v18, 0.0 }
  0xa5   : > { %v417_v23 = vpack.c.bf16 %v279_v21, %v278_v19  ;;  %v422_v24 = vpack.c.bf16 %v281_v22, %v280_v20 }
  0xa7   : > { %418 = vst [vmem:[%s170_s30] sm:$0xff] %v417_v23   ;;  %v270_v27 = vpop.f32.mrf.mxu2  ;;  %v275_v28 = vpop.f32.mrf.mxu3 }
  0xa8   : > { %434 = vst [vmem:[%s170_s30 + $0x8] sm:$0xff] %v422_v24   ;;  %v271_v29 = vadd.f32 %v457_v10, %v270_v27  ;;  %v276_v30 = vadd.f32 %v457_v10, %v275_v28 }
  0xaa   : > { %v283_v33 = vmax.f32 %v271_v29, 0.0  ;;  %v285_v34 = vmax.f32 %v276_v30, 0.0 }
  0xac   : > { %v427_v35 = vpack.c.bf16 %v283_v33, %v282_v31  ;;  %v432_v36 = vpack.c.bf16 %v285_v34, %v284_v32 }
  0xae   : > { %435 = vst [vmem:[%s170_s30 + $0x10] sm:$0xff] %v427_v35  }
  0xaf   : > { %436 = vst [vmem:[%s170_s30 + $0x18] sm:$0xff] %v432_v36  }
  0xb0 PF: > { %s13_s12 = sadd.s32 1, %s464_s12  }
  0xb1   : > { %p10_p4 = scmp.ge.s32.totalorder %s13_s12, 4  }
  0xb3   :  { %12 = sbr.rel (!%p10_p4) target bundleno = 1 (0x1), region = 62 }

// kernel: asp_ocnet_forward.27
= control target key start
LH: loop header
LB: loop body
LE: loop exit
PB: predicated region body
PF: predicated region fallthrough
CT: control target
= control target key end

     0   :  { %s774_s18 = smov 0   ;;  %s887_s0 = inlined_call_operand.vmem [shape: bf16[2,8,8,160], index: 0, kind: input, shape index: {}]   ;;  %s888_s1 = inlined_call_operand.vmem [shape: bf16[1,160,64], index: 1, kind: input, shape index: {}]   ;;  %s889_s2 = inlined_call_operand.vmem [shape: f32[1,64], index: 2, kind: input, shape index: {}]   ;;  %s890_s3 = inlined_call_operand.vmem [shape: bf16[64,5], index: 3, kind: input, shape index: {}]   ;;  %s891_s4 = inlined_call_operand.vmem [shape: f32[1,5], index: 4, kind: input, shape index: {}]   ;;  %s892_s5 = inlined_call_operand.vmem [shape: bf16[2,8,8,5], index: 5, kind: output, shape index: {}]  }
   0x1 LB: > { %s587_s19 = sadd.s32 4294967295, %s742_s18   ;;  %p591_p0 = scmp.ge.s32.totalorder %s742_s18, 1  ;;  %s742_s18 = sphi %s774_s18, %s15_s18  }
   0x2   : > { %p187_p1 = scmp.lt.s32.totalorder %s742_s18, 3 }
   0x4   : > { %p188_p2 = pnand %p591_p0, %p187_p1 }
   0x5   : > { %p215_p3 = scmp.lt.s32.totalorder (!%p188_p2), %s587_s19, 1 }
   0x6   : > { %191 = sbr.rel (%p188_p2) target bundleno = 378 (0x17a), region = 40 }
   0xb   : > { %v711_v0 = vld [vmem:[%s888_s1 + $0x38] sm:$0xff]  ;;  %v713_v1 = vld [vmem:[%s888_s1 + $0x48] sm:$0xff]  ;;  %v710_v2 = vld [vmem:[%s888_s1 + $0x30] sm:$0xff]  ;;  %s894_s19 = smov (!%p215_p3, %s587_s19), 1  ;;  %vm354_vm0 = vcmask 261120   ;;  %vm473_vm1 = vcmask 523264  }
   0xc   : > { %367 = vmatpush.bf16.msra.mxu0 %v711_v0  ;;  %718 = vmatpush.bf16.msra.mxu3 %v711_v0  ;;  %v712_v3 = vld [vmem:[%s888_s1 + $0x40] sm:$0xff]  ;;  %s694_s28 = sshll.u32 %s894_s19, 6  ;;  %v709_v4 = vld [vmem:[%s888_s1 + $0x28] sm:$0xff]  ;;  %v707_v9 = vld [vmem:[%s888_s1 + $0x18] sm:$0xff]  ;;  %s695_s8 = sshll.u32 %s894_s19, 5  ;;  %vm523_vm2 = vcmask 35840  }
   0xd   : > { %402 = vmatpush.bf16.msra.mxu1 %v713_v1  ;;  %s800_s6 = scalar_lea.vmem %s887_s0, %s694_s28  ;;  %v708_v8 = vld [vmem:[%s888_s1 + $0x20] sm:$0xff]  ;;  %v706_v10 = vld [vmem:[%s888_s1 + $0x10] sm:$0xff]  ;;  %v705_v13 = vld [vmem:[%s888_s1 + $0x8] sm:$0xff]  ;;  %s866_s11 = scalar_lea.vmem %s892_s5, %s695_s8 }
   0xe   : > { %v696_v5 = vld [vmem:[%s800_s6 + $0x4] sm:$0xf]  ;;  %v600_v6 = vld [vmem:[%s800_s6 + $0x8] sm:$0xf0]  ;;  %v698_v11 = vld [vmem:[%s800_s6 + $0x14] sm:$0xf] }
   0xf   : > { %v603_v7 = vor.u32 %v696_v5, %v600_v6  ;;  %v608_v12 = vld [vmem:[%s800_s6 + $0x18] sm:$0xf0]  ;;  %v704_v15 = vld [vmem:[%s888_s1] sm:$0xff]  ;;  %v697_v17 = vld [vmem:[%s800_s6 + $0x4] sm:$0xf0] }
  0x10   : > { %368 = vmatpush.bf16.msra.mxu0 %v710_v2  ;;  %719 = vmatpush.bf16.msra.mxu3 %v710_v2  ;;  %v611_v14 = vor.u32 %v698_v11, %v608_v12  ;;  %v598_v16 = vld [vmem:[%s800_s6] sm:$0xf]  ;;  %v606_v18 = vld [vmem:[%s800_s6 + $0x10] sm:$0xf]  ;;  %v699_v19 = vld [vmem:[%s800_s6 + $0x14] sm:$0xf0] }
  0x11   : > { %403 = vmatpush.bf16.msra.mxu1 %v712_v3  ;;  %v599_v20 = vor.u32 %v697_v17, %v598_v16  ;;  %v607_v21 = vor.u32 %v699_v19, %v606_v18  ;;  %v700_v22 = vld [vmem:[%s800_s6 + $0x24] sm:$0xf]  ;;  %v616_v23 = vld [vmem:[%s800_s6 + $0x28] sm:$0xf0]  ;;  %v614_v25 = vld [vmem:[%s800_s6 + $0x20] sm:$0xf] }
  0x12   : > { %v619_v24 = vor.u32 %v700_v22, %v616_v23  ;;  %v701_v26 = vld [vmem:[%s800_s6 + $0x24] sm:$0xf0]  ;;  %v702_v28 = vld [vmem:[%s800_s6 + $0x34] sm:$0xf]  ;;  %v624_v29 = vld [vmem:[%s800_s6 + $0x38] sm:$0xf0] }
  0x13   : > { %v615_v27 = vor.u32 %v701_v26, %v614_v25  ;;  %v627_v30 = vor.u32 %v702_v28, %v624_v29  ;;  %v622_v31 = vld [vmem:[%s800_s6 + $0x30] sm:$0xf]  ;;  %v703_v32 = vld [vmem:[%s800_s6 + $0x34] sm:$0xf0]  ;;  %v715_v36 = vld [vmem:[%s890_s3 + $0x8] sm:$0xff] }
  0x14   : > { %369 = vmatpush.bf16.msra.mxu0 %v709_v4  ;;  %720 = vmatpush.bf16.msra.mxu3 %v709_v4  ;;  %v623_v33 = vor.u32 %v703_v32, %v622_v31  ;;  %v717_v34 = vld [vmem:[%s890_s3 + $0x18] sm:$0xff]  ;;  %v716_v35 = vld [vmem:[%s890_s3 + $0x10] sm:$0xff]  ;;  %v714_v37 = vld [vmem:[%s890_s3] sm:$0xff] }
  0x15   : > { %668 = vmatmul.msk.bf16.vlgmr.msra.gmra.mxu1 %vm354_vm0, %v603_v7  ;;  %490 = vmatpush.bf16.msra.mxu2 %v717_v34  ;;  %v734_v41 = vld [vmem:[%s889_s2] ss:$0 sm:$0xff] }
  0x16   : > { %v735_v19 = vld [vmem:[%s891_s4] ss:$0 sm:$0xff] }
  0x18   : > { %370 = vmatpush.bf16.msra.mxu0 %v708_v8  ;;  %721 = vmatpush.bf16.msra.mxu3 %v708_v8 }
  0x19   : > { %491 = vmatpush.bf16.msra.mxu2 %v716_v35 }
  0x1c   : > { %371 = vmatpush.bf16.msra.mxu0 %v707_v9  ;;  %722 = vmatpush.bf16.msra.mxu3 %v707_v9 }
  0x1d   : > { %492 = vmatpush.bf16.msra.mxu2 %v715_v36 }
  0x20   : > { %372 = vmatpush.bf16.msra.mxu0 %v706_v10  ;;  %723 = vmatpush.bf16.msra.mxu3 %v706_v10 }
  0x21   : > { %493 = vmatpush.bf16.msra.mxu2 %v714_v37 }
  0x24   : > { %373 = vmatpush.bf16.msra.mxu0 %v705_v13  ;;  %724 = vmatpush.bf16.msra.mxu3 %v705_v13 }
  0x25   : > { %669 = vmatmul.msk.bf16.gmra.mxu1 %vm354_vm0, %v611_v14 }
  0x28   : > { %374 = vmatpush.bf16.msra.mxu0 %v704_v15  ;;  %725 = vmatpush.bf16.msra.mxu3 %v704_v15 }
  0x2b   : > { %375 = vmatmul.bf16.vlgmr.msra.gmra.mxu0 %v599_v20  ;;  %380 = vmatmul.bf16.vlgmr.msra.gmra.mxu3 %v607_v21 }
  0x35   : > { %670 = vmatmul.msk.bf16.gmra.mxu1 %vm354_vm0, %v619_v24 }
  0x3b   : > { %385 = vmatmul.bf16.gmra.mxu3 %v615_v27 }
  0x45   : > { %671 = vmatmul.msk.bf16.gmra.mxu1 %vm354_vm0, %v627_v30 }
  0x4b   : > { %390 = vmatmul.bf16.gmra.mxu3 %v623_v33 }
  0x92   : > { %v405_v38 = vpop.f32.mrf.mxu1 }
  0x9a   : > { %v407_v39 = vpop.f32.mrf.mxu1 }
  0xa2   : > { %v410_v42 = vpop.f32.mrf.mxu1 }
  0xa8   : > { %v376_v40 = vpop.f32.mrf.mxu0 }
  0xa9   : > { %v377_v43 = vadd.f32 %v734_v41, %v376_v40 }
  0xaa   : > { %v412_v49 = vpop.f32.mrf.mxu1 }
  0xab   : > { %v406_v46 = vadd.f32 %v405_v38, %v377_v43 }
  0xad   : > { %v425_v50 = vmax.f32 %v406_v46, 0.0 }
  0xae   : > { %v381_v44 = vpop.f32.mrf.mxu3 }
  0xaf   : > { %v382_v54 = vadd.f32 %v734_v41, %v381_v44 }
  0xb0   : > { %v378_v45 = vpop.f32.mrf.mxu0 }
  0xb1   : > { %v379_v47 = vadd.f32 %v734_v41, %v378_v45  ;;  %v411_v58 = vadd.f32 %v410_v42, %v382_v54 }
  0xb2   : > { %v415_v57 = vpop.f32.mrf.mxu1 }
  0xb3   : > { %v408_v48 = vadd.f32 %v407_v39, %v379_v47  ;;  %v427_v60 = vmax.f32 %v411_v58, 0.0 }
  0xb5   : > { %v426_v51 = vmax.f32 %v408_v48, 0.0 }
  0xb6   : > { %v383_v52 = vpop.f32.mrf.mxu3 }
  0xb7   : > { %v433_v53 = vpack.c.bf16 %v426_v51, %v425_v50  ;;  %v384_v55 = vadd.f32 %v734_v41, %v383_v52 }
  0xb9   : > { %688 = vmatmul.msk.bf16.vlgmr.msra.gmra.mxu2 %vm473_vm1, %v433_v53  ;;  %v413_v59 = vadd.f32 %v412_v49, %v384_v55 }
  0xba   : > { %v417_v0 = vpop.f32.mrf.mxu1 }
  0xbb   : > { %v428_v61 = vmax.f32 %v413_v59, 0.0 }
  0xbd   : > { %v434_v63 = vpack.c.bf16 %v428_v61, %v427_v60 }
  0xbe   : > { %v386_v56 = vpop.f32.mrf.mxu3 }
  0xbf   : > { %v387_v1 = vadd.f32 %v734_v41, %v386_v56 }
  0xc1   : > { %v416_v4 = vadd.f32 %v415_v57, %v387_v1 }
  0xc2   : > { %v420_v6 = vpop.f32.mrf.mxu1 }
  0xc3   : > { %v429_v7 = vmax.f32 %v416_v4, 0.0 }
  0xc6   : > { %v388_v62 = vpop.f32.mrf.mxu3 }
  0xc7   : > { %v389_v2 = vadd.f32 %v734_v41, %v388_v62 }
  0xc9   : > { %689 = vmatmul.msk.bf16.gmra.mxu2 %vm473_vm1, %v434_v63  ;;  %v418_v5 = vadd.f32 %v417_v0, %v389_v2 }
  0xca   : > { %v422_v13 = vpop.f32.mrf.mxu1 }
  0xcb   : > { %v430_v8 = vmax.f32 %v418_v5, 0.0 }
  0xcd   : > { %v435_v9 = vpack.c.bf16 %v430_v8, %v429_v7 }
  0xce   : > { %v391_v3 = vpop.f32.mrf.mxu3 }
  0xcf   : > { %v392_v11 = vadd.f32 %v734_v41, %v391_v3 }
  0xd1   : > { %v421_v14 = vadd.f32 %v420_v6, %v392_v11 }
  0xd3   : > { %v431_v16 = vmax.f32 %v421_v14, 0.0 }
  0xd6   : > { %v393_v10 = vpop.f32.mrf.mxu3 }
  0xd7   : > { %v394_v12 = vadd.f32 %v734_v41, %v393_v10 }
  0xd9   : > { %690 = vmatmul.msk.bf16.gmra.mxu2 %vm473_vm1, %v435_v9  ;;  %v423_v15 = vadd.f32 %v422_v13, %v394_v12 }
  0xdb   : > { %v432_v17 = vmax.f32 %v423_v15, 0.0 }
  0xdd   : > { %v436_v18 = vpack.c.bf16 %v432_v17, %v431_v16 }
  0xe9   : > { %691 = vmatmul.msk.bf16.gmra.mxu2 %vm473_vm1, %v436_v18 }
 0x13c   : > { %v495_v20 = vpop.f32.mrf.mxu2 }
 0x13d   : > { %v496_v21 = vadd.f32 %v735_v19, %v495_v20 }
 0x13f   : > { %v515_v22 = vpack.c.bf16 %v496_v21, %v496_v21 }
 0x141   : > { %524 = vst.msk [vmem:[%s866_s11] sm:$0xf] %vm523_vm2, %v515_v22 }
 0x144   : > { %v497_v23 = vpop.f32.mrf.mxu2 }
 0x145   : > { %v498_v24 = vadd.f32 %v735_v19, %v497_v23 }
 0x147   : > { %v516_v25 = vpack.c.bf16 %v498_v24, %v498_v24 }
 0x149   : > { %525 = vst.msk [vmem:[%s866_s11 + $0x4] sm:$0xf] %vm523_vm2, %v516_v25 }
 0x14c   : > { %v500_v26 = vpop.f32.mrf.mxu2 }
 0x14d   : > { %v501_v27 = vadd.f32 %v735_v19, %v500_v26 }
 0x14f   : > { %v517_v28 = vpack.c.bf16 %v501_v27, %v501_v27 }
 0x151   : > { %526 = vst.msk [vmem:[%s866_s11 + $0x8] sm:$0xf] %vm523_vm2, %v517_v28 }
 0x154   : > { %v502_v29 = vpop.f32.mrf.mxu2 }
 0x155   : > { %v503_v30 = vadd.f32 %v735_v19, %v502_v29 }
 0x157   : > { %v518_v31 = vpack.c.bf16 %v503_v30, %v503_v30 }
 0x159   : > { %527 = vst.msk [vmem:[%s866_s11 + $0xc] sm:$0xf] %vm523_vm2, %v518_v31 }
 0x15c   : > { %v505_v32 = vpop.f32.mrf.mxu2 }
 0x15d   : > { %v506_v33 = vadd.f32 %v735_v19, %v505_v32 }
 0x15f   : > { %v519_v34 = vpack.c.bf16 %v506_v33, %v506_v33 }
 0x161   : > { %528 = vst.msk [vmem:[%s866_s11 + $0x10] sm:$0xf] %vm523_vm2, %v519_v34 }
 0x164   : > { %v507_v35 = vpop.f32.mrf.mxu2 }
 0x165   : > { %v508_v36 = vadd.f32 %v735_v19, %v507_v35 }
 0x167   : > { %v520_v37 = vpack.c.bf16 %v508_v36, %v508_v36 }
 0x169   : > { %529 = vst.msk [vmem:[%s866_s11 + $0x14] sm:$0xf] %vm523_vm2, %v520_v37 }
 0x16c   : > { %v510_v38 = vpop.f32.mrf.mxu2 }
 0x16d   : > { %v511_v39 = vadd.f32 %v735_v19, %v510_v38 }
 0x16f   : > { %v521_v40 = vpack.c.bf16 %v511_v39, %v511_v39 }
 0x171   : > { %530 = vst.msk [vmem:[%s866_s11 + $0x18] sm:$0xf] %vm523_vm2, %v521_v40 }
 0x174   : > { %v512_v41 = vpop.f32.mrf.mxu2 }
 0x175   : > { %v513_v42 = vadd.f32 %v735_v19, %v512_v41 }
 0x177   : > { %v522_v43 = vpack.c.bf16 %v513_v42, %v513_v42 }
 0x179   : > { %531 = vst.msk [vmem:[%s866_s11 + $0x1c] sm:$0xf] %vm523_vm2, %v522_v43 }
 0x17a PF: > { %s15_s18 = sadd.s32 1, %s742_s18  }
 0x17b   : > { %p12_p4 = scmp.ge.s32.totalorder %s15_s18, 4  }
 0x17d   :  { %14 = sbr.rel (!%p12_p4) target bundleno = 1 (0x1), region = 70 }

// kernel: asp_ocnet_forward.29
= control target key start
LH: loop header
LB: loop body
LE: loop exit
PB: predicated region body
PF: predicated region fallthrough
CT: control target
= control target key end

     0   :  { %s628_s9 = smov 0   ;;  %s630_s10 = smov 0   ;;  %s768_s0 = inlined_call_operand.vmem [shape: bf16[10,64], index: 0, kind: input, shape index: {}]   ;;  %s769_s1 = inlined_call_operand.vmem [shape: bf16[64,1024], index: 1, kind: input, shape index: {}]   ;;  %s770_s2 = inlined_call_operand.vmem [shape: f32[10,1024], index: 2, kind: output, shape index: {}]  }
   0x1   :  { %s632_s11 = smov 0  }
   0x2 LB: > { %s459_s12 = sadd.s32 4294967295, %s611_s11   ;;  %s645_s13 = sadd.s32 1, %s611_s11   ;;  %s611_s11 = sphi %s632_s11, %s774_s11   ;;  %s607_s10 = sphi %s630_s10, %s773_s10   ;;  %s603_s9 = sphi %s628_s9, %s772_s9  }
   0x3   : > { %s37_s14 = ssub.s32 %s611_s11, %s645_s13  ;;  %s40_s15 = sadd.s32 1, %s607_s10 }
   0x4   : > { %p38_p0 = scmp.eq.s32.totalorder %s37_s14, 0  ;;  %p47_p1 = scmp.ne.s32.totalorder %s607_s10, %s603_s9 }
   0x5   : > { %p48_p2 = scmp.eq.s32.totalorder %s611_s11, 0  ;;  %p77_p3 = scmp.eq.s32.totalorder %s459_s12, 1 }
   0x6   : > { %s656_s16 = scalar_select %p38_p0, %s607_s10, %s40_s15  }
   0x7   : > { %p49_p4 = por %p48_p2, %p47_p1  ;;  %p658_p5 = por %p77_p3, %p47_p1 }
   0x8   : > { %p462_p6 = scmp.ge.s32.totalorder %s611_s11, 2 }
   0xa   : > { %102 = sbr.rel (%p462_p6) target bundleno = 35 (0x23), region = 20 }
   0xf   : > { %105 = sbr.rel (!%p49_p4) target bundleno = 35 (0x23), region = 24  ;;  %s107_s18 = sand.u32 (%p49_p4), 1, %s607_s10  }
  0x10   : > { %s546_s19 = sshll.u32 (%p49_p4), %s611_s11, 4  ;;  %s463_s20 = sshll.u32 (%p49_p4), %s107_s18, 7 }
  0x11   : > { %s668_s23 = scalar_lea.vmem (%p49_p4), %s769_s1, %s546_s19  ;;  %s109_s24 = scalar_lea.vmem (%p49_p4), [#allocation2], %s463_s20 }
  0x12   : > { %v125_v0 = vld [vmem:[%s668_s23] sm:$0xff] (%p49_p4)  ;;  %v127_v1 = vld [vmem:[%s668_s23 + $0x8] sm:$0xff] (%p49_p4) }
  0x13   : > { %v129_v2 = vld [vmem:[%s668_s23 + $0x20] sm:$0xff] (%p49_p4)  ;;  %126 = vst [vmem:[%s109_s24] sm:$0xff] (%p49_p4), %v125_v0  ;;  %v131_v3 = vld [vmem:[%s668_s23 + $0x28] sm:$0xff] (%p49_p4) }
  0x14   : > { %128 = vst [vmem:[%s109_s24 + $0x8] sm:$0xff] %v127_v1  ;;  %v133_v4 = vld [vmem:[%s668_s23 + $0x40] sm:$0xff]  ;;  %v135_v5 = vld [vmem:[%s668_s23 + $0x48] sm:$0xff] }
  0x15   : > { %130 = vst [vmem:[%s109_s24 + $0x10] sm:$0xff] %v129_v2  ;;  %v137_v6 = vld [vmem:[%s668_s23 + $0x60] sm:$0xff]  ;;  %v139_v7 = vld [vmem:[%s668_s23 + $0x68] sm:$0xff] }
  0x16   : > { %132 = vst [vmem:[%s109_s24 + $0x18] sm:$0xff] %v131_v3  ;;  %v141_v8 = vld [vmem:[%s668_s23 + $0x80] sm:$0xff]  ;;  %v143_v9 = vld [vmem:[%s668_s23 + $0x88] sm:$0xff] }
  0x17   : > { %134 = vst [vmem:[%s109_s24 + $0x20] sm:$0xff] %v133_v4  ;;  %v145_v10 = vld [vmem:[%s668_s23 + $0xa0] sm:$0xff]  ;;  %v147_v11 = vld [vmem:[%s668_s23 + $0xa8] sm:$0xff] }
  0x18   : > { %136 = vst [vmem:[%s109_s24 + $0x28] sm:$0xff] %v135_v5  ;;  %v149_v12 = vld [vmem:[%s668_s23 + $0xc0] sm:$0xff]  ;;  %v151_v13 = vld [vmem:[%s668_s23 + $0xc8] sm:$0xff] }
  0x19   : > { %138 = vst [vmem:[%s109_s24 + $0x30] sm:$0xff] %v137_v6  ;;  %v153_v14 = vld [vmem:[%s668_s23 + $0xe0] sm:$0xff]  ;;  %v155_v15 = vld [vmem:[%s668_s23 + $0xe8] sm:$0xff] }
  0x1a   : > { %140 = vst [vmem:[%s109_s24 + $0x38] sm:$0xff] %v139_v7 }
  0x1b   : > { %142 = vst [vmem:[%s109_s24 + $0x40] sm:$0xff] %v141_v8 }
  0x1c   : > { %144 = vst [vmem:[%s109_s24 + $0x48] sm:$0xff] %v143_v9 }
  0x1d   : > { %146 = vst [vmem:[%s109_s24 + $0x50] sm:$0xff] %v145_v10 }
  0x1e   : > { %148 = vst [vmem:[%s109_s24 + $0x58] sm:$0xff] %v147_v11 }
  0x1f   : > { %150 = vst [vmem:[%s109_s24 + $0x60] sm:$0xff] %v149_v12 }
  0x20   : > { %152 = vst [vmem:[%s109_s24 + $0x68] sm:$0xff] %v151_v13 }
  0x21   : > { %154 = vst [vmem:[%s109_s24 + $0x70] sm:$0xff] %v153_v14 }
  0x22   : > { %156 = vst [vmem:[%s109_s24 + $0x78] sm:$0xff] %v155_v15 }
  0x23 PF: > { %p466_p7 = scmp.ge.s32.totalorder %s611_s11, 1  ;;  %p161_p8 = scmp.lt.s32.totalorder %s611_s11, 3 }
  0x25   : > { %p162_p9 = pnand %p466_p7, %p161_p8 }
  0x26   : > { %s168_s25 = sand.u32 (!%p162_p9), 1, %s603_s9  }
  0x27   : > { %165 = sbr.rel (%p162_p9) target bundleno = 213 (0xd5), region = 47  ;;  %s467_s26 = sshll.u32 (!%p162_p9), %s168_s25, 7 }
  0x28   : > { %s691_s27 = scalar_lea.vmem (!%p162_p9), [#allocation2], %s467_s26  ;;  %s468_s4 = sshll.u32 (!%p162_p9), %s168_s25, 6 }
  0x29   : > { %s733_s5 = scalar_lea.vmem (!%p162_p9), [#allocation3], %s468_s4 }
  0x2c   : > { %v523_v16 = vld [vmem:[%s691_s27 + $0x60] sm:$0xf]  ;;  %v562_v17 = vld [vmem:[%s691_s27 + $0x6c] sm:$0xf0]  ;;  %v560_v18 = vld [vmem:[%s691_s27 + $0x64] sm:$0xf] }
  0x2d   : > { %v524_v19 = vor.u32 %v562_v17, %v523_v16  ;;  %v525_v20 = vld [vmem:[%s691_s27 + $0x70] sm:$0xf0]  ;;  %v531_v21 = vld [vmem:[%s691_s27 + $0x68] sm:$0xf]  ;;  %v563_v22 = vld [vmem:[%s691_s27 + $0x74] sm:$0xf0] }
  0x2e   : > { %v528_v23 = vor.u32 %v560_v18, %v525_v20  ;;  %v532_v24 = vor.u32 %v563_v22, %v531_v21  ;;  %v561_v25 = vld [vmem:[%s691_s27 + $0x6c] sm:$0xf]  ;;  %v533_v26 = vld [vmem:[%s691_s27 + $0x78] sm:$0xf0]  ;;  %v507_v27 = vld [vmem:[%s691_s27 + $0x40] sm:$0xf] }
  0x2f   : > { %302 = vmatpush.bf16.msra.mxu0 %v524_v19  ;;  %v536_v28 = vor.u32 %v561_v25, %v533_v26  ;;  %v558_v29 = vld [vmem:[%s691_s27 + $0x4c] sm:$0xf0]  ;;  %v556_v30 = vld [vmem:[%s691_s27 + $0x44] sm:$0xf]  ;;  %v509_v31 = vld [vmem:[%s691_s27 + $0x50] sm:$0xf0] }
  0x30   : > { %316 = vmatpush.bf16.msra.mxu1 %v528_v23  ;;  %330 = vmatpush.bf16.msra.mxu2 %v532_v24  ;;  %v508_v32 = vor.u32 %v558_v29, %v507_v27  ;;  %v512_v33 = vor.u32 %v556_v30, %v509_v31  ;;  %v515_v34 = vld [vmem:[%s691_s27 + $0x48] sm:$0xf]  ;;  %v559_v35 = vld [vmem:[%s691_s27 + $0x54] sm:$0xf0]  ;;  %v557_v36 = vld [vmem:[%s691_s27 + $0x4c] sm:$0xf] }
  0x31   : > { %344 = vmatpush.bf16.msra.mxu3 %v536_v28  ;;  %v516_v37 = vor.u32 %v559_v35, %v515_v34  ;;  %v517_v38 = vld [vmem:[%s691_s27 + $0x58] sm:$0xf0]  ;;  %v491_v39 = vld [vmem:[%s691_s27 + $0x20] sm:$0xf]  ;;  %v554_v40 = vld [vmem:[%s691_s27 + $0x2c] sm:$0xf0] }
  0x32   : > { %v520_v41 = vor.u32 %v557_v36, %v517_v38  ;;  %v552_v42 = vld [vmem:[%s691_s27 + $0x24] sm:$0xf]  ;;  %v493_v43 = vld [vmem:[%s691_s27 + $0x30] sm:$0xf0]  ;;  %v499_v44 = vld [vmem:[%s691_s27 + $0x28] sm:$0xf]  ;;  %v492_v45 = vor.u32 %v554_v40, %v491_v39 }
  0x33   : > { %303 = vmatpush.bf16.msra.mxu0 %v508_v32  ;;  %v555_v46 = vld [vmem:[%s691_s27 + $0x34] sm:$0xf0]  ;;  %v553_v47 = vld [vmem:[%s691_s27 + $0x2c] sm:$0xf]  ;;  %v501_v48 = vld [vmem:[%s691_s27 + $0x38] sm:$0xf0]  ;;  %v496_v49 = vor.u32 %v552_v42, %v493_v43 }
  0x34   : > { %317 = vmatpush.bf16.msra.mxu1 %v512_v33  ;;  %331 = vmatpush.bf16.msra.mxu2 %v516_v37  ;;  %v500_v50 = vor.u32 %v555_v46, %v499_v44  ;;  %v475_v51 = vld [vmem:[%s691_s27] sm:$0xf]  ;;  %v550_v52 = vld [vmem:[%s691_s27 + $0xc] sm:$0xf0]  ;;  %v548_v53 = vld [vmem:[%s691_s27 + $0x4] sm:$0xf]  ;;  %v504_v54 = vor.u32 %v553_v47, %v501_v48 }
  0x35   : > { %345 = vmatpush.bf16.msra.mxu3 %v520_v41  ;;  %v477_v55 = vld [vmem:[%s691_s27 + $0x10] sm:$0xf0]  ;;  %v483_v56 = vld [vmem:[%s691_s27 + $0x8] sm:$0xf]  ;;  %v551_v57 = vld [vmem:[%s691_s27 + $0x14] sm:$0xf0]  ;;  %v476_v60 = vor.u32 %v550_v52, %v475_v51 }
  0x36   : > { %v549_v58 = vld [vmem:[%s691_s27 + $0xc] sm:$0xf]  ;;  %v485_v59 = vld [vmem:[%s691_s27 + $0x18] sm:$0xf0]  ;;  %v471_v61 = vld [vmem:[%s768_s0] sm:$0xf]  ;;  %v480_v63 = vor.u32 %v548_v53, %v477_v55  ;;  %v484_v0 = vor.u32 %v551_v57, %v483_v56 }
  0x37   : > { %304 = vmatpush.bf16.msra.mxu0 %v492_v45  ;;  %v547_v62 = vld [vmem:[%s768_s0] sm:$0x10]  ;;  %v488_v1 = vor.u32 %v549_v58, %v485_v59  ;;  %vm294_vm0 = vcmask 523264   ;;  %s564_s6 = sshll.u32 (%p658_p5), %s459_s12, 5 }
  0x38   : > { %318 = vmatpush.bf16.msra.mxu1 %v496_v49  ;;  %332 = vmatpush.bf16.msra.mxu2 %v500_v50  ;;  %v472_v2 = vor.u32 %v547_v62, %v471_v61  ;;  %s371_s9 = scalar_lea.vmem (%p658_p5), %s770_s2, %s564_s6 }
  0x39   : > { %346 = vmatpush.bf16.msra.mxu3 %v504_v54 }
  0x3b   : > { %305 = vmatpush.bf16.msra.mxu0 %v476_v60 }
  0x3c   : > { %319 = vmatpush.bf16.msra.mxu1 %v480_v63  ;;  %333 = vmatpush.bf16.msra.mxu2 %v484_v0 }
  0x3d   : > { %347 = vmatpush.bf16.msra.mxu3 %v488_v1 }
  0x3e   : > { %537 = vmatmul.msk.bf16.vlgmr.msra.gmra.mxu0 %vm294_vm0, %v472_v2 }
  0x3f   : > { %538 = vmatmul.msk.bf16.vlgmr.msra.gmra.mxu1 %vm294_vm0, %v472_v2  ;;  %539 = vmatmul.msk.bf16.vlgmr.msra.gmra.mxu2 %vm294_vm0, %v472_v2 }
  0x40   : > { %540 = vmatmul.msk.bf16.vlgmr.msra.gmra.mxu3 %vm294_vm0, %v472_v2 }
  0xbb   : > { %v307_v3 = vpop.f32.mrf.mxu0 }
  0xbc   : > { %354 = vst [vmem:[%s733_s5] sm:$0xff] %v307_v3  ;;  %v321_v4 = vpop.f32.mrf.mxu1 }
  0xbd   : > { %355 = vst [vmem:[%s733_s5 + $0x8] sm:$0xff] %v321_v4 }
  0xc2   : > { %v335_v5 = vpop.f32.mrf.mxu2 }
  0xc3   : > { %356 = vst [vmem:[%s733_s5 + $0x10] sm:$0xff] %v335_v5  ;;  %v349_v6 = vpop.f32.mrf.mxu3  ;;  %v309_v7 = vpop.f32.mrf.mxu0  ;;  %v384_v11 = vld [vmem:[%s733_s5] sm:$0xff] (%p658_p5) }
  0xc4   : > { %357 = vst [vmem:[%s733_s5 + $0x18] sm:$0xff] %v349_v6  ;;  %v323_v8 = vpop.f32.mrf.mxu1  ;;  %v386_v12 = vld [vmem:[%s733_s5 + $0x8] sm:$0xff] (%p658_p5) }
  0xc5   : > { %358 = vst [vmem:[%s733_s5 + $0x20] sm:$0x3] %v309_v7 }
  0xc6   : > { %359 = vst [vmem:[%s733_s5 + $0x28] sm:$0x3] %v323_v8 }
  0xc7   : > { %385 = vst [vmem:[%s371_s9] sm:$0xff] (%p658_p5), %v384_v11 }
  0xc8   : > { %368 = sbr.rel (!%p658_p5) target bundleno = 213 (0xd5), region = 55  ;;  %387 = vst [vmem:[%s371_s9 + $0x8] sm:$0xff] (%p658_p5), %v386_v12 }
  0xca   : > { %v337_v9 = vpop.f32.mrf.mxu2  ;;  %v388_v13 = vld [vmem:[%s733_s5 + $0x10] sm:$0xff] (%p658_p5) }
  0xcb   : > { %360 = vst [vmem:[%s733_s5 + $0x30] sm:$0x3] %v337_v9  ;;  %v351_v10 = vpop.f32.mrf.mxu3  ;;  %v390_v14 = vld [vmem:[%s733_s5 + $0x18] sm:$0xff] (%p658_p5) }
  0xcc   : > { %361 = vst [vmem:[%s733_s5 + $0x38] sm:$0x3] %v351_v10  ;;  %v392_v15 = vld [vmem:[%s733_s5 + $0x20] sm:$0xff] (%p658_p5) }
  0xcd   : > { %389 = vst [vmem:[%s371_s9 + $0x10] sm:$0xff] %v388_v13  ;;  %v394_v16 = vld [vmem:[%s733_s5 + $0x28] sm:$0xff] }
  0xce   : > { %391 = vst [vmem:[%s371_s9 + $0x18] sm:$0xff] %v390_v14 }
  0xcf   : > { %393 = vst [vmem:[%s371_s9 + $0x40] sm:$0xff] %v392_v15 }
  0xd0   : > { %395 = vst [vmem:[%s371_s9 + $0x48] sm:$0xff] %v394_v16 }
  0xd2   : > { %v396_v17 = vld [vmem:[%s733_s5 + $0x30] sm:$0xff] }
  0xd3   : > { %v398_v18 = vld [vmem:[%s733_s5 + $0x38] sm:$0xff]  ;;  %397 = vst [vmem:[%s371_s9 + $0x50] sm:$0xff] %v396_v17 }
  0xd4   : > { %399 = vst [vmem:[%s371_s9 + $0x58] sm:$0xff] %v398_v18 }
  0xd5 PF: > { %p9_p10 = scmp.ge.s32.totalorder %s645_s13, 4   ;;  %s772_s9 = smov %s607_s10 }
  0xd6   : > { %s773_s10 = smov %s656_s16  ;;  %s774_s11 = smov %s645_s13 }
  0xd7   :  { %11 = sbr.rel (!%p9_p10) target bundleno = 2 (0x2), region = 109 }

// kernel: asp_ocnet_forward.18
= control target key start
LH: loop header
LB: loop body
LE: loop exit
PB: predicated region body
PF: predicated region fallthrough
CT: control target
= control target key end

     0   :  { %s1490_s18 = smov 0   ;;  %s1906_s0 = inlined_call_operand.vmem [shape: bf16[2,10,10,32], index: 0, kind: input, shape index: {}]   ;;  %s1907_s1 = inlined_call_operand.vmem [shape: bf16[9,32,64], index: 1, kind: input, shape index: {}]   ;;  %s1908_s2 = inlined_call_operand.vmem [shape: f32[1,64], index: 2, kind: input, shape index: {}]   ;;  %s1909_s3 = inlined_call_operand.vmem [shape: bf16[64,5], index: 3, kind: input, shape index: {}]   ;;  %s1910_s4 = inlined_call_operand.vmem [shape: f32[1,5], index: 4, kind: input, shape index: {}]   ;;  %s1911_s5 = inlined_call_operand.vmem [shape: bf16[2,8,8,5], index: 5, kind: output, shape index: {}]  }
   0x1 LB: > { %s1234_s19 = sadd.s32 4294967295, %s1458_s18   ;;  %p1238_p0 = scmp.ge.s32.totalorder %s1458_s18, 1  ;;  %s1458_s18 = sphi %s1490_s18, %s15_s18  }
   0x2   : > { %p187_p1 = scmp.lt.s32.totalorder %s1458_s18, 3 }
   0x4   : > { %p188_p2 = pnand %p1238_p0, %p187_p1 }
   0x5   : > { %p215_p3 = scmp.lt.s32.totalorder (!%p188_p2), %s1234_s19, 1 }
   0x6   : > { %191 = sbr.rel (%p188_p2) target bundleno = 465 (0x1d1), region = 40 }
   0xb   : > { %v1416_v0 = vld [vmem:[%s1907_s1 + $0x8] sm:$0xff]  ;;  %v1418_v1 = vld [vmem:[%s1907_s1 + $0x18] sm:$0xff]  ;;  %v1415_v2 = vld [vmem:[%s1907_s1] sm:$0xff]  ;;  %s1917_s19 = smov (!%p215_p3, %s1234_s19), 1  ;;  %vm394_vm0 = vcmask 261120   ;;  %vm517_vm4 = vcmask 1042432  }
   0xc   : > { %1439 = vmatpush.bf16.msra.mxu3 %v1416_v0  ;;  %1437 = vmatpush.bf16.msra.mxu2 %v1418_v1  ;;  %v1417_v3 = vld [vmem:[%s1907_s1 + $0x10] sm:$0xff]  ;;  %s1441_s28 = smul.u32 80, %s1917_s19  ;;  %v1420_v4 = vld [vmem:[%s1907_s1 + $0x28] sm:$0xff]  ;;  %v1422_v5 = vld [vmem:[%s1907_s1 + $0x38] sm:$0xff]  ;;  %vm250_vm1 = vsmask.f32 3328 }
   0xd   : > { %413 = vmatpush.bf16.msra.mxu0 %v1418_v1  ;;  %486 = vmatpush.bf16.msra.mxu1 %v1416_v0  ;;  %v1424_v6 = vld [vmem:[%s1907_s1 + $0x48] sm:$0xff]  ;;  %vm251_vm2 = vsmask.f32 7440  ;;  %v1419_v7 = vld [vmem:[%s1907_s1 + $0x20] sm:$0xff]  ;;  %v1421_v35 = vld [vmem:[%s1907_s1 + $0x30] sm:$0xff]  ;;  %vm518_vm5 = vcmask 1046532  }
   0xe   : > { %s1525_s12 = scalar_lea.vmem %s1906_s0, %s1441_s28  ;;  %vm1578_vm3 = vmor %vm250_vm1, %vm251_vm2  ;;  %v1423_v41 = vld [vmem:[%s1907_s1 + $0x40] sm:$0xff]  ;;  %vm1120_vm7 = vcmask 523264   ;;  %s1414_s26 = sshll.u32 %s1917_s19, 5  ;;  %vm1170_vm8 = vcmask 35840  }
   0xf   : > { %v1531_v8 = vld [vmem:[%s1525_s12 + $0x20] sm:$0xf]  ;;  %v1534_v9 = vld [vmem:[%s1525_s12 + $0x28] sm:$0xf]  ;;  %v1537_v10 = vld [vmem:[%s1525_s12 + $0x24] sm:$0x1]  ;;  %s1885_s29 = scalar_lea.vmem %s1911_s5, %s1414_s26 }
  0x10   : > { %1440 = vmatpush.bf16.msra.mxu3 %v1415_v2  ;;  %1438 = vmatpush.bf16.msra.mxu2 %v1417_v3  ;;  %v448_v11 = vunpack.c.l.b16 %v1531_v8  ;;  %v449_v12 = vunpack.c.l.b16 %v1534_v9  ;;  %v1542_v13 = vld [vmem:[%s1525_s12 + $0x2c] sm:$0x1]  ;;  %v310_v14 = vshrl.u32 %v1531_v8, 16  ;;  %v313_v15 = vshll.u32 %v1531_v8, 16  ;;  %v1547_v16 = vld [vmem:[%s1525_s12] sm:$0xf]  ;;  %vm1710_vm6 = vmor %vm517_vm4, %vm518_vm5 }
  0x11   : > { %414 = vmatpush.bf16.msra.mxu0 %v1417_v3  ;;  %487 = vmatpush.bf16.msra.mxu1 %v1415_v2  ;;  %v319_v17 = vshll.u32 %v1537_v10, 16  ;;  %v324_v18 = vshrl.u32 %v1534_v9, 16  ;;  %v327_v19 = vshll.u32 %v1534_v9, 16  ;;  %v333_v20 = vshll.u32 %v1542_v13, 16  ;;  %v1554_v21 = vld [vmem:[%s1525_s12 + $0x4] sm:$0x1] }
  0x12   : > { %v1560_v22 = vpack.c.b16 %v449_v12, %v448_v11  ;;  %v312_v23 = vrot.slane %v310_v14, 4  ;;  %v315_v24 = vrot.slane %v313_v15, 5  ;;  %v1563_v25 = vld [vmem:[%s1525_s12 + $0x8] sm:$0xf]  ;;  %v1566_v26 = vld [vmem:[%s1525_s12 + $0xc] sm:$0x1]  ;;  %v444_v48 = vunpack.c.l.b16 %v1547_v16 }
  0x13   : > { %v321_v27 = vrot.slane %v319_v17, 5  ;;  %v326_v28 = vrot.slane %v324_v18, 4  ;;  %v329_v29 = vrot.slane %v327_v19, 5  ;;  %v335_v30 = vrot.slane %v333_v20, 5  ;;  %v1592_v53 = vld [vmem:[%s1525_s12 + $0x30] sm:$0xf] }
  0x14   : > { %599 = vmatpush.bf16.msrb.mxu2 %v1420_v4  ;;  %671 = vmatpush.bf16.msrb.mxu3 %v1422_v5  ;;  %v316_v31 = vor.u32 %v315_v24, %v312_v23  ;;  %v254_v32 = vshrl.u32 %v1547_v16, 16  ;;  %v257_v33 = vshll.u32 %v1547_v16, 16  ;;  %v263_v34 = vshll.u32 %v1554_v21, 16  ;;  %v1600_v58 = vld [vmem:[%s1525_s12 + $0x38] sm:$0xf] }
  0x15   : > { %756 = vmatpush.bf16.msrb.mxu0 %v1424_v6  ;;  %1268 = vmatmul.msk.bf16.vlgmr.msra.gmra.mxu3 %vm394_vm0, %v1560_v22  ;;  %v330_v37 = vor.u32 %v329_v29, %v326_v28  ;;  %v268_v38 = vshrl.u32 %v1563_v25, 16  ;;  %v271_v39 = vshll.u32 %v1563_v25, 16  ;;  %v277_v40 = vshll.u32 %v1566_v26, 16  ;;  %v1603_v59 = vld [vmem:[%s1525_s12 + $0x34] sm:$0x1] }
  0x16   : > { %v317_v42 = vrot.slane %v316_v31, 4  ;;  %v256_v43 = vrot.slane %v254_v32, 4  ;;  %v259_v44 = vrot.slane %v257_v33, 5  ;;  %v265_v51 = vrot.slane %v263_v34, 5  ;;  %v1630_v15 = vld [vmem:[%s1525_s12 + $0x10] sm:$0xf] }
  0x17   : > { %v331_v45 = vrot.slane %v330_v37, 4  ;;  %v270_v46 = vrot.slane %v268_v38, 4  ;;  %v273_v47 = vrot.slane %v271_v39, 5  ;;  %v279_v52 = vrot.slane %v277_v40, 5  ;;  %v1636_v23 = vld [vmem:[%s1525_s12 + $0x14] sm:$0x1] }
  0x18   : > { %600 = vmatpush.bf16.msrb.mxu2 %v1419_v7  ;;  %672 = vmatpush.bf16.msrb.mxu3 %v1421_v35  ;;  %v322_v49 = vsel %vm1578_vm3, %v317_v42, %v321_v27  ;;  %v260_v50 = vor.u32 %v259_v44, %v256_v43  ;;  %v445_v57 = vunpack.c.l.b16 %v1563_v25  ;;  %v450_v62 = vunpack.c.l.b16 %v1592_v53  ;;  %v1626_v7 = vld [vmem:[%s1525_s12 + $0x3c] sm:$0x1]  ;;  %v1649_v33 = vld [vmem:[%s1525_s12 + $0x18] sm:$0xf] }
  0x19   : > { %757 = vmatpush.bf16.msrb.mxu0 %v1423_v41  ;;  %v336_v54 = vsel %vm1578_vm3, %v331_v45, %v335_v30  ;;  %v1596_v55 = vunpack.c.l.b16 %v322_v49  ;;  %v274_v56 = vor.u32 %v273_v47, %v270_v46  ;;  %v451_v63 = vunpack.c.l.b16 %v1600_v58  ;;  %v1428_v30 = vld [vmem:[%s1907_s1 + $0x68] sm:$0xff]  ;;  %v1655_v40 = vld [vmem:[%s1525_s12 + $0x1c] sm:$0x1] }
  0x1a   : > { %v1605_v60 = vunpack.c.l.b16 %v336_v54  ;;  %v261_v61 = vrot.slane %v260_v50, 4  ;;  %v452_v1 = vpack.c.b16 %v445_v57, %v444_v48  ;;  %v338_v2 = vshrl.u32 %v1592_v53, 16  ;;  %v1430_v49 = vld [vmem:[%s1907_s1 + $0x78] sm:$0xff] }
  0x1b   : > { %v275_v0 = vrot.slane %v274_v56, 4  ;;  %v341_v3 = vshll.u32 %v1592_v53, 16  ;;  %v1623_v6 = vpack.c.b16 %v451_v63, %v450_v62  ;;  %v347_v14 = vshll.u32 %v1603_v59, 16  ;;  %v1426_v50 = vld [vmem:[%s1907_s1 + $0x58] sm:$0xff] }
  0x1c   : > { %v1615_v4 = vpack.c.b16 %v1605_v60, %v1596_v55  ;;  %v266_v5 = vsel %vm1578_vm3, %v261_v61, %v265_v51  ;;  %1266 = vmatmul.msk.bf16.vlgmr.msra.gmra.mxu1 %vm394_vm0, %v452_v1  ;;  %v340_v19 = vrot.slane %v338_v2, 4  ;;  %v352_v28 = vshrl.u32 %v1600_v58, 16  ;;  %v1425_v2 = vld [vmem:[%s1907_s1 + $0x50] sm:$0xff]  ;;  %965 = vmatpush.bf16.msra.mxu3 %v1430_v49 }
  0x1d   : > { %v280_v17 = vsel %vm1578_vm3, %v275_v0, %v279_v52  ;;  %v370_v18 = vunpack.c.l.b16 %v266_v5  ;;  %v343_v20 = vrot.slane %v341_v3, 5  ;;  %v349_v27 = vrot.slane %v347_v14, 5  ;;  %832 = vmatpush.bf16.msrb.mxu1 %v1426_v50  ;;  %v1432_v3 = vld [vmem:[%s1907_s1 + $0x88] sm:$0xff] }
  0x1e   : > { %1256 = vmatmul.msk.bf16.vlgmr.msra.gmra.mxu2 %vm394_vm0, %v1615_v4  ;;  %v1640_v24 = vunpack.c.l.b16 %v280_v17  ;;  %v355_v29 = vshll.u32 %v1600_v58, 16  ;;  %v361_v32 = vshll.u32 %v1626_v7, 16  ;;  %v282_v34 = vshrl.u32 %v1630_v15, 16 }
  0x1f   : > { %v344_v31 = vor.u32 %v343_v20, %v340_v19  ;;  %v285_v35 = vshll.u32 %v1630_v15, 16  ;;  %v354_v38 = vrot.slane %v352_v28, 4  ;;  %v291_v41 = vshll.u32 %v1636_v23, 16  ;;  %892 = vmatpush.bf16.msra.mxu2 %v1428_v30 }
  0x20   : > { %v378_v37 = vpack.c.b16 %v1640_v24, %v370_v18  ;;  %v357_v39 = vrot.slane %v355_v29, 5  ;;  %v284_v43 = vrot.slane %v282_v34, 4  ;;  %v363_v46 = vrot.slane %v361_v32, 5 }
  0x21   : > { %v345_v42 = vrot.slane %v344_v31, 4  ;;  %v287_v44 = vrot.slane %v285_v35, 5  ;;  %v296_v47 = vshrl.u32 %v1649_v33, 16  ;;  %v299_v48 = vshll.u32 %v1649_v33, 16  ;;  %833 = vmatpush.bf16.msrb.mxu1 %v1425_v2 }
  0x22   : > { %1254 = vmatmul.msk.bf16.vlgmr.msra.gmra.mxu0 %vm394_vm0, %v378_v37  ;;  %v358_v45 = vor.u32 %v357_v39, %v354_v38  ;;  %v293_v54 = vrot.slane %v291_v41, 5  ;;  %v305_v56 = vshll.u32 %v1655_v40, 16  ;;  %v446_v14 = vunpack.c.l.b16 %v1630_v15 }
  0x23   : > { %v350_v51 = vsel %vm1578_vm3, %v345_v42, %v349_v27  ;;  %v288_v52 = vor.u32 %v287_v44, %v284_v43  ;;  %v298_v0 = vrot.slane %v296_v47, 4  ;;  %v301_v1 = vrot.slane %v299_v48, 5  ;;  %1029 = vmatpush.bf16.msra.mxu0 %v1432_v3  ;;  %v1436_v47 = vld [vmem:[%s1909_s3 + $0x18] sm:$0xff] }
  0x24   : > { %v359_v61 = vrot.slane %v358_v45, 4  ;;  %v447_v17 = vunpack.c.l.b16 %v1649_v33  ;;  %v1682_v19 = vunpack.c.l.b16 %v350_v51  ;;  %v307_v27 = vrot.slane %v305_v56, 5 }
  0x25   : > { %1269 = vmatmul.msk.bf16.gmra.mxu3 %vm394_vm0, %v1623_v6  ;;  %v289_v5 = vrot.slane %v288_v52, 4  ;;  %v302_v20 = vor.u32 %v301_v1, %v298_v0  ;;  %v530_v39 = vrot.slane %v1636_v23, 5  ;;  %v1272_v41 = vrot.slane %v1630_v15, 9  ;;  %1137 = vmatpush.bf16.msra.mxu1 %v1436_v47 }
  0x26   : > { %v364_v18 = vsel %vm1578_vm3, %v359_v61, %v363_v46  ;;  %v1688_v31 = vpack.c.b16 %v447_v17, %v446_v14  ;;  %v522_v42 = vrot.slane %v1554_v21, 5  ;;  %v526_v43 = vrot.slane %v1566_v26, 5 }
  0x27   : > { %v1684_v28 = vunpack.c.l.b16 %v364_v18  ;;  %v294_v29 = vsel %vm1578_vm3, %v289_v5, %v293_v54  ;;  %v303_v30 = vrot.slane %v302_v20, 4  ;;  %v1270_v44 = vrot.slane %v1547_v16, 9 }
  0x28   : > { %v372_v35 = vunpack.c.l.b16 %v294_v29  ;;  %v1271_v45 = vrot.slane %v1563_v25, 9  ;;  %v637_v46 = vpack.c.b16 %v446_v14, %v445_v57  ;;  %v531_v15 = vsel %vm1710_vm6, %v1272_v41, %v530_v39 }
  0x29   : > { %v1692_v32 = vpack.c.b16 %v1684_v28, %v1682_v19  ;;  %v308_v34 = vsel %vm1578_vm3, %v303_v30, %v307_v27  ;;  %v523_v21 = vsel %vm1710_vm6, %v1270_v44, %v522_v42  ;;  %v1275_v25 = vrot.slane %v1534_v9, 9  ;;  %v1769_v30 = vld [vmem:[%s1525_s12 + $0x40] sm:$0xf] }
  0x2a   : > { %v373_v37 = vunpack.c.l.b16 %v308_v34  ;;  %v527_v16 = vsel %vm1710_vm6, %v1271_v45, %v526_v43  ;;  %v542_v26 = vrot.slane %v1542_v13, 5  ;;  %v559_v57 = vunpack.c.l.b16 %v531_v15  ;;  %v1427_v13 = vld [vmem:[%s1907_s1 + $0x60] sm:$0xff] }
  0x2b   : > { %v557_v23 = vunpack.c.l.b16 %v523_v21  ;;  %v558_v48 = vunpack.c.l.b16 %v527_v16  ;;  %v722_v52 = vpack.c.b16 %v372_v35, %v1640_v24  ;;  %v1274_v54 = vrot.slane %v1531_v8, 9  ;;  %893 = vmatpush.bf16.msra.mxu2 %v1427_v13  ;;  %v1431_v8 = vld [vmem:[%s1907_s1 + $0x80] sm:$0xff] }
  0x2c   : > { %1267 = vmatmul.msk.bf16.gmra.mxu1 %vm394_vm0, %v1688_v31  ;;  %v1700_v38 = vpack.c.b16 %v373_v37, %v372_v35  ;;  %v543_v49 = vsel %vm1710_vm6, %v1275_v25, %v542_v26  ;;  %v538_v56 = vrot.slane %v1537_v10, 5  ;;  %v1273_v61 = vrot.slane %v1649_v33, 9  ;;  %v1429_v10 = vld [vmem:[%s1907_s1 + $0x70] sm:$0xff]  ;;  %1030 = vmatpush.bf16.msra.mxu0 %v1431_v8 }
  0x2d   : > { %v798_v50 = vpack.c.b16 %v559_v57, %v558_v48  ;;  %v565_v51 = vpack.c.b16 %v558_v48, %v557_v23  ;;  %v534_v0 = vrot.slane %v1655_v40, 5  ;;  %v638_v1 = vpack.c.b16 %v448_v11, %v447_v17  ;;  %966 = vmatpush.bf16.msra.mxu3 %v1429_v10  ;;  %v244_v23 = vld [vmem:[%s1525_s12 + $0x48] sm:$0xf] }
  0x2e   : > { %1257 = vmatmul.msk.bf16.gmra.mxu2 %vm394_vm0, %v1692_v32  ;;  %v539_v24 = vsel %vm1710_vm6, %v1274_v54, %v538_v56  ;;  %v1277_v11 = vrot.slane %v1600_v58, 9  ;;  %v550_v33 = vrot.slane %v1626_v7, 5  ;;  %v723_v18 = vpack.c.b16 %v1596_v55, %v373_v37 }
  0x2f   : > { %v535_v2 = vsel %vm1710_vm6, %v1273_v61, %v534_v0  ;;  %v561_v40 = vunpack.c.l.b16 %v539_v24  ;;  %v1276_v20 = vrot.slane %v1592_v53, 9  ;;  %v546_v7 = vrot.slane %v1603_v59, 5 }
  0x30   : > { %v560_v3 = vunpack.c.l.b16 %v535_v2  ;;  %v551_v5 = vsel %vm1710_vm6, %v1277_v11, %v550_v33  ;;  %v639_v27 = vpack.c.b16 %v450_v62, %v449_v12  ;;  %v562_v34 = vunpack.c.l.b16 %v543_v49  ;;  %v243_v62 = vld [vmem:[%s1525_s12 + $0x44] sm:$0x1] }
  0x31   : > { %v547_v29 = vsel %vm1710_vm6, %v1276_v20, %v546_v7  ;;  %v703_v35 = vshrl.u32 %v1769_v30, 16  ;;  %v706_v59 = vshll.u32 %v1769_v30, 16  ;;  %v636_v12 = vunpack.c.l.b16 %v1769_v30 }
  0x32   : > { %1255 = vmatmul.msk.bf16.gmra.mxu0 %vm394_vm0, %v1700_v38  ;;  %v799_v14 = vpack.c.b16 %v561_v40, %v560_v3  ;;  %v566_v17 = vpack.c.b16 %v560_v3, %v559_v57  ;;  %v563_v55 = vunpack.c.l.b16 %v547_v29  ;;  %v567_v9 = vpack.c.b16 %v562_v34, %v561_v40 }
  0x33   : > { %v705_v39 = vrot.slane %v703_v35, 4  ;;  %v708_v53 = vrot.slane %v706_v59, 5  ;;  %v724_v41 = vpack.c.b16 %v1682_v19, %v1605_v60  ;;  %v1326_v42 = vrot.slane %v1769_v30, 9 }
  0x34   : > { %v800_v37 = vpack.c.b16 %v563_v55, %v562_v34  ;;  %v790_v43 = vrot.slane %v243_v62, 5  ;;  %v712_v45 = vshll.u32 %v243_v62, 16  ;;  %v564_v60 = vunpack.c.l.b16 %v551_v5 }
  0x35   : > { %1306 = vmatmul.msk.bf16.vlgmr.msrb.gmra.mxu3 %vm394_vm0, %v637_v46  ;;  %v709_v44 = vor.u32 %v708_v53, %v705_v39  ;;  %v640_v46 = vpack.c.b16 %v636_v12, %v451_v63  ;;  %v924_v48 = vshrl.u32 %v244_v23, 16  ;;  %v927_v49 = vshll.u32 %v244_v23, 16 }
  0x36   : > { %v791_v15 = vsel %vm1710_vm6, %v1326_v42, %v790_v43  ;;  %v714_v16 = vrot.slane %v712_v45, 5  ;;  %v568_v57 = vpack.c.b16 %v564_v60, %v563_v55  ;;  %v1375_v10 = vrot.slane %v244_v23, 9  ;;  %v1435_v42 = vld [vmem:[%s1909_s3 + $0x10] sm:$0xff] }
  0x37   : > { %v710_v21 = vrot.slane %v709_v44, 4  ;;  %v797_v25 = vunpack.c.l.b16 %v791_v15  ;;  %1138 = vmatpush.bf16.msra.mxu1 %v1435_v42 }
  0x39   : > { %v715_v19 = vsel %vm1578_vm3, %v710_v21, %v714_v16  ;;  %v801_v26 = vpack.c.b16 %v797_v25, %v564_v60 }
  0x3a   : > { %v721_v58 = vunpack.c.l.b16 %v715_v19 }
  0x3c   : > { %1339 = vmatmul.msk.bf16.vlgmr.msrb.gmra.mxu1 %vm394_vm0, %v798_v50  ;;  %v725_v63 = vpack.c.b16 %v721_v58, %v1684_v28  ;;  %v926_v50 = vrot.slane %v924_v48, 4  ;;  %v245_v28 = vld [vmem:[%s1525_s12 + $0x4c] sm:$0x1] }
  0x3d   : > { %v933_v54 = vshll.u32 %v245_v28, 16  ;;  %v999_v2 = vrot.slane %v245_v28, 5 }
  0x3e   : > { %1290 = vmatmul.msk.bf16.vlgmr.msrb.gmra.mxu2 %vm394_vm0, %v565_v51  ;;  %v929_v51 = vrot.slane %v927_v49, 5 }
  0x3f   : > { %v1000_v11 = vsel %vm1710_vm6, %v1375_v10, %v999_v2 }
  0x40   : > { %v1006_v3 = vunpack.c.l.b16 %v1000_v11 }
  0x42   : > { %1322 = vmatmul.msk.bf16.vlgmr.msrb.gmra.mxu0 %vm394_vm0, %v722_v52  ;;  %v930_v52 = vor.u32 %v929_v51, %v926_v50  ;;  %v1007_v5 = vpack.c.b16 %v1006_v3, %v797_v25 }
  0x45   : > { %1307 = vmatmul.msk.bf16.gmra.mxu3 %vm394_vm0, %v638_v1 }
  0x4c   : > { %1340 = vmatmul.msk.bf16.gmra.mxu1 %vm394_vm0, %v799_v14 }
  0x4e   : > { %1291 = vmatmul.msk.bf16.gmra.mxu2 %vm394_vm0, %v566_v17 }
  0x52   : > { %1323 = vmatmul.msk.bf16.gmra.mxu0 %vm394_vm0, %v723_v18 }
  0x55   : > { %1308 = vmatmul.msk.bf16.gmra.mxu3 %vm394_vm0, %v639_v27 }
  0x5c   : > { %1341 = vmatmul.msk.bf16.gmra.mxu1 %vm394_vm0, %v800_v37 }
  0x5e   : > { %1292 = vmatmul.msk.bf16.gmra.mxu2 %vm394_vm0, %v567_v9 }
  0x62   : > { %1324 = vmatmul.msk.bf16.gmra.mxu0 %vm394_vm0, %v724_v41 }
  0x65   : > { %1309 = vmatmul.msk.bf16.gmra.mxu3 %vm394_vm0, %v640_v46 }
  0x6c   : > { %1342 = vmatmul.msk.bf16.gmra.mxu1 %vm394_vm0, %v801_v26 }
  0x6e   : > { %1293 = vmatmul.msk.bf16.gmra.mxu2 %vm394_vm0, %v568_v57 }
  0x72   : > { %1325 = vmatmul.msk.bf16.gmra.mxu0 %vm394_vm0, %v725_v63 }
  0x75   : > { %1371 = vmatmul.msk.bf16.vlgmr.msra.gmra.mxu3 %vm394_vm0, %v1700_v38  ;;  %v935_v38 = vrot.slane %v933_v54, 5 }
  0x7e   : > { %1355 = vmatmul.msk.bf16.vlgmr.msra.gmra.mxu2 %vm394_vm0, %v1688_v31  ;;  %v931_v31 = vrot.slane %v930_v52, 4 }
  0x82   : > { %1388 = vmatmul.msk.bf16.vlgmr.msra.gmra.mxu0 %vm394_vm0, %v566_v17 }
  0x85   : > { %1372 = vmatmul.msk.bf16.gmra.mxu3 %vm394_vm0, %v1615_v4  ;;  %v936_v4 = vsel %vm1578_vm3, %v931_v31, %v935_v38  ;;  %v1433_v38 = vld [vmem:[%s1909_s3] sm:$0xff] }
  0x86   : > { %v942_v13 = vunpack.c.l.b16 %v936_v4 }
  0x88   : > { %v943_v0 = vpack.c.b16 %v942_v13, %v721_v58 }
  0x8e   : > { %1356 = vmatmul.msk.bf16.gmra.mxu2 %vm394_vm0, %v1560_v22 }
  0x92   : > { %1389 = vmatmul.msk.bf16.gmra.mxu0 %vm394_vm0, %v567_v9 }
  0x95   : > { %1373 = vmatmul.msk.bf16.gmra.mxu3 %vm394_vm0, %v1692_v32  ;;  %v869_v32 = vunpack.c.l.b16 %v244_v23 }
  0x97   : > { %v870_v40 = vpack.c.b16 %v869_v32, %v636_v12 }
  0x98   : > { %v499_v56 = vpop.f32.mrf.mxu3 }
  0x99   : > { %v489_v30 = vpop.f32.mrf.mxu1 }
  0x9e   : > { %1357 = vmatmul.msk.bf16.gmra.mxu2 %vm394_vm0, %v1623_v6 }
  0x9f   : > { %v416_v61 = vpop.f32.mrf.mxu0 }
  0xa0   : > { %v501_v22 = vpop.f32.mrf.mxu3  ;;  %v490_v59 = vadd.f32 %v489_v30, %v416_v61 }
  0xa1   : > { %v426_v1 = vpop.f32.mrf.mxu2  ;;  %v491_v39 = vpop.f32.mrf.mxu1 }
  0xa2   : > { %1390 = vmatmul.msk.bf16.gmra.mxu0 %vm394_vm0, %v568_v57  ;;  %v500_v24 = vadd.f32 %v499_v56, %v426_v1  ;;  %v1434_v57 = vld [vmem:[%s1909_s3 + $0x8] sm:$0xff] }
  0xa3   : > { %1139 = vmatpush.bf16.msra.mxu1 %v1434_v57 }
  0xa5   : > { %1374 = vmatmul.msk.bf16.gmra.mxu3 %vm394_vm0, %v943_v0 }
  0xa7   : > { %v1812_v8 = vpop.f32.mrf.mxu0  ;;  %1140 = vmatpush.bf16.msra.mxu1 %v1433_v38 }
  0xa8   : > { %v504_v36 = vpop.f32.mrf.mxu3 }
  0xa9   : > { %v428_v33 = vpop.f32.mrf.mxu2  ;;  %v494_v44 = vpop.f32.mrf.mxu1 }
  0xaa   : > { %v1816_v6 = vadd.f32 %v501_v22, %v428_v33 }
  0xae   : > { %1358 = vmatmul.msk.bf16.gmra.mxu2 %vm394_vm0, %v870_v40 }
  0xaf   : > { %v421_v14 = vpop.f32.mrf.mxu0 }
  0xb0   : > { %v506_v17 = vpop.f32.mrf.mxu3  ;;  %v495_v15 = vadd.f32 %v494_v44, %v421_v14 }
  0xb1   : > { %v431_v18 = vpop.f32.mrf.mxu2  ;;  %v496_v51 = vpop.f32.mrf.mxu1 }
  0xb2   : > { %1391 = vmatmul.msk.bf16.gmra.mxu0 %vm394_vm0, %v1007_v5  ;;  %v505_v20 = vadd.f32 %v504_v36, %v431_v18  ;;  %v492_v36 = vadd.f32 %v491_v39, %v1812_v8  ;;  %v1855_v8 = vld [vmem:[%s1908_s2] ss:$0 sm:$0xff] }
  0xb7   : > { %v1820_v7 = vpop.f32.mrf.mxu0 }
  0xb8   : > { %v674_v27 = vpop.f32.mrf.mxu3 }
  0xb9   : > { %v433_v29 = vpop.f32.mrf.mxu2  ;;  %v835_v56 = vpop.f32.mrf.mxu1 }
  0xba   : > { %v1825_v55 = vadd.f32 %v506_v17, %v433_v29 }
  0xbf   : > { %v759_v34 = vpop.f32.mrf.mxu0 }
  0xc0   : > { %v676_v35 = vpop.f32.mrf.mxu3 }
  0xc1   : > { %v602_v37 = vpop.f32.mrf.mxu2  ;;  %v837_v2 = vpop.f32.mrf.mxu1 }
  0xc2   : > { %v622_v9 = vadd.f32 %v602_v37, %v490_v59  ;;  %v497_v59 = vadd.f32 %v496_v51, %v1820_v7 }
  0xc4   : > { %v694_v53 = vadd.f32 %v674_v27, %v622_v9 }
  0xc6   : > { %v779_v12 = vadd.f32 %v759_v34, %v694_v53 }
  0xc7   : > { %v761_v62 = vpop.f32.mrf.mxu0 }
  0xc8   : > { %v679_v41 = vpop.f32.mrf.mxu3  ;;  %v855_v3 = vadd.f32 %v835_v56, %v779_v12 }
  0xc9   : > { %v604_v43 = vpop.f32.mrf.mxu2  ;;  %v840_v18 = vpop.f32.mrf.mxu1 }
  0xca   : > { %v623_v11 = vadd.f32 %v604_v43, %v492_v36 }
  0xcc   : > { %v695_v5 = vadd.f32 %v676_v35, %v623_v11 }
  0xcf   : > { %v764_v45 = vpop.f32.mrf.mxu0 }
  0xd0   : > { %v681_v46 = vpop.f32.mrf.mxu3 }
  0xd1   : > { %v607_v21 = vpop.f32.mrf.mxu2  ;;  %v842_v53 = vpop.f32.mrf.mxu1 }
  0xd2   : > { %v624_v16 = vadd.f32 %v607_v21, %v495_v15 }
  0xd4   : > { %v696_v25 = vadd.f32 %v679_v41, %v624_v16 }
  0xd6   : > { %v781_v60 = vadd.f32 %v764_v45, %v696_v25 }
  0xd7   : > { %v766_v19 = vpop.f32.mrf.mxu0 }
  0xd8   : > { %v684_v26 = vpop.f32.mrf.mxu3  ;;  %v857_v42 = vadd.f32 %v840_v18, %v781_v60 }
  0xd9   : > { %v609_v58 = vpop.f32.mrf.mxu2 }
  0xda   : > { %v625_v39 = vadd.f32 %v609_v58, %v497_v59  ;;  %v845_v58 = vpop.f32.mrf.mxu1 }
  0xdc   : > { %v697_v43 = vadd.f32 %v681_v46, %v625_v39 }
  0xde   : > { %v782_v25 = vadd.f32 %v766_v19, %v697_v43 }
  0xdf   : > { %v769_v63 = vpop.f32.mrf.mxu0 }
  0xe0   : > { %v1833_v23 = vpop.f32.mrf.mxu3 }
  0xe1   : > { %v612_v48 = vpop.f32.mrf.mxu2 }
  0xe2   : > { %v626_v49 = vadd.f32 %v612_v48, %v500_v24  ;;  %v858_v48 = vadd.f32 %v842_v53, %v782_v25  ;;  %v1451_v25 = vld [vmem:[%s1910_s4] ss:$0 sm:$0xff] }
  0xe4   : > { %v698_v50 = vadd.f32 %v684_v26, %v626_v49 }
  0xe6   : > { %v1835_v28 = vadd.f32 %v769_v63, %v698_v50 }
  0xe7   : > { %v1837_v52 = vpop.f32.mrf.mxu0 }
  0xe8   : > { %v689_v54 = vpop.f32.mrf.mxu3  ;;  %v859_v19 = vadd.f32 %v845_v58, %v1835_v28 }
  0xe9   : > { %v614_v31 = vpop.f32.mrf.mxu2 }
  0xea   : > { %v627_v46 = vadd.f32 %v614_v31, %v1816_v6 }
  0xef   : > { %v774_v4 = vpop.f32.mrf.mxu0 }
  0xf0   : > { %v1842_v13 = vpop.f32.mrf.mxu3 }
  0xf1   : > { %v617_v61 = vpop.f32.mrf.mxu2 }
  0xf2   : > { %v628_v22 = vadd.f32 %v617_v61, %v505_v20  ;;  %v780_v20 = vadd.f32 %v761_v62, %v695_v5  ;;  %v699_v61 = vadd.f32 %v1833_v23, %v627_v46 }
  0xf4   : > { %v700_v0 = vadd.f32 %v689_v54, %v628_v22  ;;  %v856_v29 = vadd.f32 %v837_v2, %v780_v20 }
  0xf6   : > { %v1844_v1 = vadd.f32 %v774_v4, %v700_v0  ;;  %v847_v0 = vpop.f32.mrf.mxu1 }
  0xf7   : > { %v1846_v24 = vpop.f32.mrf.mxu0 }
  0xf8   : > { %v968_v10 = vpop.f32.mrf.mxu3 }
  0xf9   : > { %v1848_v32 = vpop.f32.mrf.mxu2 }
  0xfa   : > { %v629_v18 = vadd.f32 %v1848_v32, %v1825_v55 }
  0xfe   : > { %v850_v23 = vpop.f32.mrf.mxu1 }
  0xff   : > { %v1032_v33 = vpop.f32.mrf.mxu0 }
 0x100   : > { %v970_v40 = vpop.f32.mrf.mxu3 }
 0x101   : > { %v895_v14 = vpop.f32.mrf.mxu2 }
 0x102   : > { %v915_v17 = vadd.f32 %v895_v14, %v855_v3 }
 0x104   : > { %v988_v27 = vadd.f32 %v968_v10, %v915_v17 }
 0x106   : > { %v1052_v37 = vadd.f32 %v1032_v33, %v988_v27  ;;  %v784_v33 = vadd.f32 %v1837_v52, %v699_v61  ;;  %v861_v52 = vadd.f32 %v850_v23, %v1844_v1  ;;  %v852_v55 = vpop.f32.mrf.mxu1 }
 0x107   : > { %v1034_v47 = vpop.f32.mrf.mxu0 }
 0x108   : > { %v973_v34 = vpop.f32.mrf.mxu3  ;;  %v1064_v12 = vadd.f32 %v1855_v8, %v1052_v37  ;;  %v860_v3 = vadd.f32 %v847_v0, %v784_v33 }
 0x109   : > { %v897_v30 = vpop.f32.mrf.mxu2 }
 0x10a   : > { %v916_v9 = vadd.f32 %v897_v30, %v856_v29  ;;  %v1072_v7 = vmax.f32 %v1064_v12, 0.0  ;;  %v701_v29 = vadd.f32 %v1842_v13, %v629_v18 }
 0x10c   : > { %v989_v35 = vadd.f32 %v970_v40, %v916_v9  ;;  %v786_v53 = vadd.f32 %v1846_v24, %v701_v29 }
 0x10e   : > { %v1053_v62 = vadd.f32 %v1034_v47, %v989_v35 }
 0x10f   : > { %v1037_v41 = vpop.f32.mrf.mxu0 }
 0x110   : > { %v1065_v44 = vadd.f32 %v1855_v8, %v1053_v62  ;;  %v975_v16 = vpop.f32.mrf.mxu3  ;;  %v862_v62 = vadd.f32 %v852_v55, %v786_v53 }
 0x111   : > { %v900_v45 = vpop.f32.mrf.mxu2 }
 0x112   : > { %v1073_v15 = vmax.f32 %v1065_v44, 0.0  ;;  %v917_v21 = vadd.f32 %v900_v45, %v857_v42 }
 0x114   : > { %v1080_v26 = vpack.c.bf16 %v1073_v15, %v1072_v7  ;;  %v990_v57 = vadd.f32 %v973_v34, %v917_v21 }
 0x116   : > { %1408 = vmatmul.msk.bf16.vlgmr.msra.gmra.mxu1 %vm1120_vm7, %v1080_v26  ;;  %v1054_v50 = vadd.f32 %v1037_v41, %v990_v57 }
 0x117   : > { %v1039_v63 = vpop.f32.mrf.mxu0 }
 0x118   : > { %v978_v54 = vpop.f32.mrf.mxu3  ;;  %v1066_v56 = vadd.f32 %v1855_v8, %v1054_v50 }
 0x119   : > { %v902_v49 = vpop.f32.mrf.mxu2 }
 0x11a   : > { %v918_v60 = vadd.f32 %v902_v49, %v858_v48  ;;  %v1074_v36 = vmax.f32 %v1066_v56, 0.0 }
 0x11c   : > { %v991_v51 = vadd.f32 %v975_v16, %v918_v60 }
 0x11e   : > { %v1055_v38 = vadd.f32 %v1039_v63, %v991_v51 }
 0x11f   : > { %v1042_v4 = vpop.f32.mrf.mxu0 }
 0x120   : > { %v1067_v22 = vadd.f32 %v1855_v8, %v1055_v38  ;;  %v980_v40 = vpop.f32.mrf.mxu3 }
 0x121   : > { %v905_v10 = vpop.f32.mrf.mxu2 }
 0x122   : > { %v919_v2 = vadd.f32 %v905_v10, %v859_v19  ;;  %v1075_v11 = vmax.f32 %v1067_v22, 0.0 }
 0x124   : > { %v1081_v6 = vpack.c.bf16 %v1075_v11, %v1074_v36  ;;  %v992_v31 = vadd.f32 %v978_v54, %v919_v2 }
 0x126   : > { %1409 = vmatmul.msk.bf16.gmra.mxu1 %vm1120_vm7, %v1081_v6  ;;  %v1056_v28 = vadd.f32 %v1042_v4, %v992_v31 }
 0x127   : > { %v1044_v5 = vpop.f32.mrf.mxu0 }
 0x128   : > { %v1068_v47 = vadd.f32 %v1855_v8, %v1056_v28  ;;  %v983_v34 = vpop.f32.mrf.mxu3 }
 0x129   : > { %v907_v14 = vpop.f32.mrf.mxu2 }
 0x12a   : > { %v920_v17 = vadd.f32 %v907_v14, %v860_v3  ;;  %v1076_v9 = vmax.f32 %v1068_v47, 0.0 }
 0x12c   : > { %v993_v20 = vadd.f32 %v980_v40, %v920_v17 }
 0x12e   : > { %v1057_v27 = vadd.f32 %v1044_v5, %v993_v20 }
 0x12f   : > { %v1047_v35 = vpop.f32.mrf.mxu0 }
 0x130   : > { %v1069_v30 = vadd.f32 %v1855_v8, %v1057_v27  ;;  %v985_v42 = vpop.f32.mrf.mxu3 }
 0x131   : > { %v910_v59 = vpop.f32.mrf.mxu2 }
 0x132   : > { %v921_v37 = vadd.f32 %v910_v59, %v861_v52  ;;  %v1077_v39 = vmax.f32 %v1069_v30, 0.0 }
 0x134   : > { %v1082_v12 = vpack.c.bf16 %v1077_v39, %v1076_v9  ;;  %v994_v32 = vadd.f32 %v983_v34, %v921_v37 }
 0x136   : > { %1410 = vmatmul.msk.bf16.gmra.mxu1 %vm1120_vm7, %v1082_v12  ;;  %v1058_v41 = vadd.f32 %v1047_v35, %v994_v32 }
 0x137   : > { %v1049_v44 = vpop.f32.mrf.mxu0 }
 0x138   : > { %v1070_v7 = vadd.f32 %v1855_v8, %v1058_v41 }
 0x139   : > { %v912_v1 = vpop.f32.mrf.mxu2 }
 0x13a   : > { %v922_v13 = vadd.f32 %v912_v1, %v862_v62  ;;  %v1078_v21 = vmax.f32 %v1070_v7, 0.0 }
 0x13c   : > { %v995_v43 = vadd.f32 %v985_v42, %v922_v13 }
 0x13e   : > { %v1059_v45 = vadd.f32 %v1049_v44, %v995_v43 }
 0x140   : > { %v1071_v15 = vadd.f32 %v1855_v8, %v1059_v45 }
 0x142   : > { %v1079_v24 = vmax.f32 %v1071_v15, 0.0 }
 0x144   : > { %v1083_v16 = vpack.c.bf16 %v1079_v24, %v1078_v21 }
 0x146   : > { %1411 = vmatmul.msk.bf16.gmra.mxu1 %vm1120_vm7, %v1083_v16 }
 0x193   : > { %v1142_v26 = vpop.f32.mrf.mxu1 }
 0x194   : > { %v1143_v57 = vadd.f32 %v1451_v25, %v1142_v26 }
 0x196   : > { %v1162_v8 = vpack.c.bf16 %v1143_v57, %v1143_v57 }
 0x198   : > { %1171 = vst.msk [vmem:[%s1885_s29] sm:$0xf] %vm1170_vm8, %v1162_v8 }
 0x19b   : > { %v1144_v58 = vpop.f32.mrf.mxu1 }
 0x19c   : > { %v1145_v63 = vadd.f32 %v1451_v25, %v1144_v58 }
 0x19e   : > { %v1163_v48 = vpack.c.bf16 %v1145_v63, %v1145_v63 }
 0x1a0   : > { %1172 = vst.msk [vmem:[%s1885_s29 + $0x4] sm:$0xf] %vm1170_vm8, %v1163_v48 }
 0x1a3   : > { %v1147_v49 = vpop.f32.mrf.mxu1 }
 0x1a4   : > { %v1148_v50 = vadd.f32 %v1451_v25, %v1147_v49 }
 0x1a6   : > { %v1164_v60 = vpack.c.bf16 %v1148_v50, %v1148_v50 }
 0x1a8   : > { %1173 = vst.msk [vmem:[%s1885_s29 + $0x8] sm:$0xf] %vm1170_vm8, %v1164_v60 }
 0x1ab   : > { %v1149_v46 = vpop.f32.mrf.mxu1 }
 0x1ac   : > { %v1150_v51 = vadd.f32 %v1451_v25, %v1149_v46 }
 0x1ae   : > { %v1165_v54 = vpack.c.bf16 %v1150_v51, %v1150_v51 }
 0x1b0   : > { %1174 = vst.msk [vmem:[%s1885_s29 + $0xc] sm:$0xf] %vm1170_vm8, %v1165_v54 }
 0x1b3   : > { %v1152_v38 = vpop.f32.mrf.mxu1 }
 0x1b4   : > { %v1153_v56 = vadd.f32 %v1451_v25, %v1152_v38 }
 0x1b6   : > { %v1166_v4 = vpack.c.bf16 %v1153_v56, %v1153_v56 }
 0x1b8   : > { %1175 = vst.msk [vmem:[%s1885_s29 + $0x10] sm:$0xf] %vm1170_vm8, %v1166_v4 }
 0x1bb   : > { %v1154_v19 = vpop.f32.mrf.mxu1 }
 0x1bc   : > { %v1155_v61 = vadd.f32 %v1451_v25, %v1154_v19 }
 0x1be   : > { %v1167_v22 = vpack.c.bf16 %v1155_v61, %v1155_v61 }
 0x1c0   : > { %1176 = vst.msk [vmem:[%s1885_s29 + $0x14] sm:$0xf] %vm1170_vm8, %v1167_v22 }
 0x1c3   : > { %v1157_v0 = vpop.f32.mrf.mxu1 }
 0x1c4   : > { %v1158_v10 = vadd.f32 %v1451_v25, %v1157_v0 }
 0x1c6   : > { %v1168_v2 = vpack.c.bf16 %v1158_v10, %v1158_v10 }
 0x1c8   : > { %1177 = vst.msk [vmem:[%s1885_s29 + $0x18] sm:$0xf] %vm1170_vm8, %v1168_v2 }
 0x1cb   : > { %v1159_v36 = vpop.f32.mrf.mxu1 }
 0x1cc   : > { %v1160_v11 = vadd.f32 %v1451_v25, %v1159_v36 }
 0x1ce   : > { %v1169_v33 = vpack.c.bf16 %v1160_v11, %v1160_v11 }
 0x1d0   : > { %1178 = vst.msk [vmem:[%s1885_s29 + $0x1c] sm:$0xf] %vm1170_vm8, %v1169_v33 }
 0x1d1 PF: > { %s15_s18 = sadd.s32 1, %s1458_s18  }
 0x1d2   : > { %p12_p4 = scmp.ge.s32.totalorder %s15_s18, 4  }
 0x1d4   :  { %14 = sbr.rel (!%p12_p4) target bundleno = 1 (0x1), region = 78 }

</bundles_post_ra>
